<compile_context>
chip_gen: v7x
topology: tpu7x:2x2x1
jax: 0.10.0
libtpu: 0.0.40
codegen_flags: <defaults>
</compile_context>

<pallas_src>
import functools

import jax
import jax.numpy as jnp
import numpy as np
from jax import lax
from jax.experimental import pallas as pl
from jax.experimental.pallas import tpu as pltpu


def _conv_out(n, k, s):
    return (n - k) // s + 1


# ---------------------------------------------------------------------------
# Kernel 1: conv1 (8x8, stride 4) as a 2x2 stride-1 conv on the space-to-depth
# input.  Grid = (B,); per step one sample; patches are built in VMEM with
# contiguous slices and accumulated over the 2x2 taps on the MXU.
# ---------------------------------------------------------------------------
def _conv1_kernel(x_ref, w_ref, b_ref, o_ref, *, rk):
    # x_ref: (1, Hs, Ws, Cs) bf16   (s2d input, Cs = stride^2 * Cin)
    # w_ref: (rk*rk, Cs, Cout) bf16, b_ref: (1, Cout) f32
    # o_ref: (1, OH, OW, Cout) bf16
    OH, OW, Cout = o_ref.shape[1], o_ref.shape[2], o_ref.shape[3]
    xa = x_ref[0]                                             # (Hs, Ws, Cs)
    # TODO(synk): at full 256x256 scale (OH=63) switch this unrolled loop to a
    # lax.fori_loop and tile OH across an extra grid axis.
    for h in range(OH):
        acc = jnp.zeros((OW, Cout), jnp.float32)
        for di in range(rk):
            row = xa[h + di]                                  # (Ws, Cs)
            for dj in range(rk):
                acc = acc + jnp.dot(row[dj:dj + OW, :], w_ref[di * rk + dj],
                                    preferred_element_type=jnp.float32)
        y = jnp.maximum(acc + b_ref[...], 0.0)
        # 32 output lanes -> masked store, but this tensor is ~28 KB/sample;
        # it would be moot if conv1 were folded into the fused tail kernel.
        o_ref[0, h] = y.astype(o_ref.dtype)


def conv1_pallas(x_s2d, w, b, out_hw):
    B, Hs, Ws, Cs = x_s2d.shape
    OH, OW = out_hw
    n_off, _, Cout = w.shape
    rk = int(round(n_off ** 0.5))
    return pl.pallas_call(
        functools.partial(_conv1_kernel, rk=rk),
        out_shape=jax.ShapeDtypeStruct((B, OH, OW, Cout), jnp.bfloat16),
        grid=(B,),
        in_specs=[
            pl.BlockSpec((1, Hs, Ws, Cs), lambda bi: (bi, 0, 0, 0)),
            pl.BlockSpec((n_off, Cs, Cout), lambda bi: (0, 0, 0)),
            pl.BlockSpec((1, Cout), lambda bi: (0, 0)),
        ],
        out_specs=pl.BlockSpec((1, OH, OW, Cout), lambda bi: (bi, 0, 0, 0)),
        compiler_params=pltpu.CompilerParams(dimension_semantics=("parallel",)),
    )(x_s2d, w, b)


# ---------------------------------------------------------------------------
# Kernel 2: fused conv2 + conv3 + fc1 + fc2.
# Grid = (B, OH3): batch "parallel", conv3-row / fc1-K axis "arbitrary".
#   k == 0    : conv2 matmul + conv3 (stride-1 im2col in VMEM) -> a3 scratch
#   every k   : fc1 partial product for conv3 row k (fc1 weight block streamed)
#   k == last : bias + ReLU + fc2, store one (1, num_actions) row per sample
# ---------------------------------------------------------------------------
def _tail_kernel(p2_ref, w2_ref, b2_ref, w3_ref, b3_ref, wf1_ref, bf1_ref,
                 wf2_ref, bf2_ref, o_ref, a3_scr, acc_scr, *, ow2, k3):
    k = pl.program_id(1)
    OH3, OW3, C3 = a3_scr.shape

    @pl.when(k == 0)
    def _():
        # conv2: whole-sample patch matrix @ flattened weight, bias + ReLU.
        a2 = jnp.dot(p2_ref[0], w2_ref[...], preferred_element_type=jnp.float32)
        a2 = jnp.maximum(a2 + b2_ref[...], 0.0).astype(jnp.bfloat16)  # (OH2*OW2, C2)
        # conv3 (stride 1): patches are contiguous slices of a2, accumulated
        # over the 3x3 taps; output rows land in a VMEM scratch (no HBM trip).
        for oh in range(OH3):
            acc = jnp.zeros((OW3, C3), jnp.float32)
            for i in range(k3):
                slab = a2[(oh + i) * ow2:(oh + i) * ow2 + ow2, :]     # (OW2, C2)
                for j in range(k3):
                    acc = acc + jnp.dot(slab[j:j + OW3, :], w3_ref[i * k3 + j],
                                        preferred_element_type=jnp.float32)
            y3 = jnp.maximum(acc + b3_ref[...], 0.0)
            a3_scr[oh] = y3.astype(a3_scr.dtype)
        acc_scr[...] = jnp.zeros_like(acc_scr)

    # fc1 K-chunk for conv3 output row k; wf1_ref holds only this row's block,
    # so the fc1 weight is streamed instead of resident (v7x VMEM-safe shape).
    # TODO(synk): at full 256x256 scale fuse the OW3 inner loop into one
    # (OW3, OW3*C3) matmul per step for better MXU utilization.
    for ow in range(OW3):
        acc_scr[...] += jnp.dot(a3_scr[k, ow:ow + 1, :], wf1_ref[0, ow],
                                preferred_element_type=jnp.float32)

    @pl.when(k == pl.num_programs(1) - 1)
    def _():
        h = jnp.maximum(acc_scr[...] + bf1_ref[...], 0.0).astype(jnp.bfloat16)
        out = jnp.dot(h, wf2_ref[...], preferred_element_type=jnp.float32)
        o_ref[0] = (out + bf2_ref[...]).astype(o_ref.dtype)


def fused_tail_pallas(p2, w2, b2, w3, b3, wf1, bf1, wf2, bf2, *, ow2):
    B = p2.shape[0]
    OH3, OW3, C3, hidden = wf1.shape
    num_actions = wf2.shape[1]
    k3 = int(round(w3.shape[0] ** 0.5))
    out = pl.pallas_call(
        functools.partial(_tail_kernel, ow2=ow2, k3=k3),
        out_shape=jax.ShapeDtypeStruct((B, 1, num_actions), jnp.float32),
        grid=(B, OH3),
        in_specs=[
            pl.BlockSpec((1,) + p2.shape[1:], lambda bi, ki: (bi, 0, 0)),
            pl.BlockSpec(w2.shape, lambda bi, ki: (0, 0)),
            pl.BlockSpec(b2.shape, lambda bi, ki: (0, 0)),
            pl.BlockSpec(w3.shape, lambda bi, ki: (0, 0, 0)),
            pl.BlockSpec(b3.shape, lambda bi, ki: (0, 0)),
            pl.BlockSpec((1, OW3, C3, hidden), lambda bi, ki: (ki, 0, 0, 0)),
            pl.BlockSpec(bf1.shape, lambda bi, ki: (0, 0)),
            pl.BlockSpec(wf2.shape, lambda bi, ki: (0, 0)),
            pl.BlockSpec(bf2.shape, lambda bi, ki: (0, 0)),
        ],
        out_specs=pl.BlockSpec((1, 1, num_actions), lambda bi, ki: (bi, 0, 0)),
        scratch_shapes=[
            pltpu.VMEM((OH3, OW3, C3), jnp.bfloat16),   # conv3 output rows
            pltpu.VMEM((1, hidden), jnp.float32),       # fc1 accumulator
        ],
        compiler_params=pltpu.CompilerParams(
            dimension_semantics=("parallel", "arbitrary")),
    )(p2, w2, b2, w3, b3, wf1, bf1, wf2, bf2)
    return out[:, 0, :]


# ---------------------------------------------------------------------------
# XLA glue (hot path): pure layout transform of the raw input + tiny conv2
# patch gather between the two kernels.
# ---------------------------------------------------------------------------
def space_to_depth(x_nhwc, block):
    B, H, W, C = x_nhwc.shape
    x = x_nhwc.reshape(B, H // block, block, W // block, block, C)
    x = jnp.transpose(x, (0, 1, 3, 2, 4, 5))
    return x.reshape(B, H // block, W // block, block * block * C)


def im2col_nhwc(x, kh, kw, stride):
    """(B, H, W, C) -> (B, OH*OW, kh*kw*C); feature order (kh, kw, C)."""
    B, H, W, C = x.shape
    OH = _conv_out(H, kh, stride)
    OW = _conv_out(W, kw, stride)
    cols = [x[:, i:i + stride * OH:stride, j:j + stride * OW:stride, :]
            for i in range(kh) for j in range(kw)]
    patches = jnp.stack(cols, axis=3)                  # (B, OH, OW, kh*kw, C)
    return patches.reshape(B, OH * OW, kh * kw * C)


# ---------------------------------------------------------------------------
# Parameters: PyTorch-layout init (for the reference) + one-time kernel prep.
# ---------------------------------------------------------------------------
def init_params(key, input_channels, num_actions, H, W):
    h1, w1 = _conv_out(H, 8, 4), _conv_out(W, 8, 4)
    h2, w2 = _conv_out(h1, 4, 2), _conv_out(w1, 4, 2)
    h3, w3 = _conv_out(h2, 3, 1), _conv_out(w2, 3, 1)
    conv_out_size = 64 * h3 * w3

    keys = jax.random.split(key, 10)
    scale = 0.05
    return {
        "conv1_w": scale * jax.random.normal(keys[0], (32, input_channels, 8, 8), jnp.float32),
        "conv1_b": scale * jax.random.normal(keys[1], (32,), jnp.float32),
        "conv2_w": scale * jax.random.normal(keys[2], (64, 32, 4, 4), jnp.float32),
        "conv2_b": scale * jax.random.normal(keys[3], (64,), jnp.float32),
        "conv3_w": scale * jax.random.normal(keys[4], (64, 64, 3, 3), jnp.float32),
        "conv3_b": scale * jax.random.normal(keys[5], (64,), jnp.float32),
        "fc1_w": scale * jax.random.normal(keys[6], (512, conv_out_size), jnp.float32),
        "fc1_b": scale * jax.random.normal(keys[7], (512,), jnp.float32),
        "fc2_w": scale * jax.random.normal(keys[8], (num_actions, 512), jnp.float32),
        "fc2_b": scale * jax.random.normal(keys[9], (num_actions,), jnp.float32),
    }


def prepare_params(params, H, W, compute_dtype=jnp.bfloat16):
    """One-time reshape/transpose/cast of weights into kernel layouts."""
    h1, w1 = _conv_out(H, 8, 4), _conv_out(W, 8, 4)
    h2, w2 = _conv_out(h1, 4, 2), _conv_out(w1, 4, 2)
    h3, w3 = _conv_out(h2, 3, 1), _conv_out(w2, 3, 1)

    # conv1: (Cout, Cin, 8, 8) -> (2*2, 4*4*Cin, Cout) matching the s2d-by-4
    # input channel order (di, dj, c) and the kernel's (I, J) tap order.
    w = params["conv1_w"]
    co, ci, kh, kw = w.shape
    s = 4
    w = jnp.transpose(w, (2, 3, 1, 0))                        # (kh, kw, ci, co)
    w = w.reshape(kh // s, s, kw // s, s, ci, co)
    w = jnp.transpose(w, (0, 2, 1, 3, 4, 5))                  # (I, J, di, dj, ci, co)
    conv1_w = w.reshape((kh // s) * (kw // s), s * s * ci, co)

    # conv2: standard im2col flatten (i, j, ci) -> (K, Cout).
    w = params["conv2_w"]
    co2, ci2, k2, _ = w.shape
    conv2_w = jnp.transpose(w, (2, 3, 1, 0)).reshape(k2 * k2 * ci2, co2)

    # conv3: per-tap (i*3+j) blocks (Cin, Cout) for in-kernel shift-and-add.
    w = params["conv3_w"]
    co3, ci3, k3, _ = w.shape
    conv3_w = jnp.transpose(w, (2, 3, 1, 0)).reshape(k3 * k3, ci3, co3)

    # fc1: torch flattens (C, H, W); regroup as (oh3, ow3, C, 512) so the
    # fused kernel can stream one (ow3, C, 512) block per conv3 output row.
    fc1_w = params["fc1_w"].reshape(-1, co3, h3, w3)          # (512, C, h3, w3)
    fc1_w = jnp.transpose(fc1_w, (2, 3, 1, 0))                # (h3, w3, C, 512)

    return {
        "conv1_w": conv1_w.astype(compute_dtype),
        "conv1_b": params["conv1_b"].reshape(1, -1).astype(jnp.float32),
        "conv2_w": conv2_w.astype(compute_dtype),
        "conv2_b": params["conv2_b"].reshape(1, -1).astype(jnp.float32),
        "conv3_w": conv3_w.astype(compute_dtype),
        "conv3_b": params["conv3_b"].reshape(1, -1).astype(jnp.float32),
        "fc1_w": fc1_w.astype(compute_dtype),
        "fc1_b": params["fc1_b"].reshape(1, -1).astype(jnp.float32),
        "fc2_w": params["fc2_w"].T.astype(compute_dtype),     # (512, num_actions)
        "fc2_b": params["fc2_b"].reshape(1, -1).astype(jnp.float32),
    }


def qnetwork_forward(prep, x_nchw):
    B, C, H, W = x_nchw.shape
    h1, w1 = _conv_out(H, 8, 4), _conv_out(W, 8, 4)
    h2, w2 = _conv_out(h1, 4, 2), _conv_out(w1, 4, 2)

    # One-time input layout change: NCHW f32 -> NHWC bf16 -> space-to-depth by
    # the conv1 stride (pure transpose, NOT a replicated patch tensor).
    x = jnp.transpose(x_nchw, (0, 2, 3, 1)).astype(jnp.bfloat16)
    x = space_to_depth(x, 4)                                  # (B, H/4, W/4, 16*C)

    a1 = conv1_pallas(x, prep["conv1_w"], prep["conv1_b"], (h1, w1))

    # conv2's stride-2 window gather stays in XLA (tiny: ~36 KB/sample); the
    # rest of the network runs in one fused kernel with VMEM-resident
    # activations.
    # TODO(synk): pull this gather in-kernel (strided sublane loads) for the
    # full 256x256 scale to remove the last intermediate HBM round trip.
    p2 = im2col_nhwc(a1, 4, 4, 2)                             # (B, h2*w2, 512)

    return fused_tail_pallas(
        p2, prep["conv2_w"], prep["conv2_b"], prep["conv3_w"], prep["conv3_b"],
        prep["fc1_w"], prep["fc1_b"], prep["fc2_w"], prep["fc2_b"], ow2=w2)


# ---------------------------------------------------------------------------
# Pure-JAX f32 reference (PyTorch semantics) for the sanity check.
# ---------------------------------------------------------------------------
def _ref_conv_relu(x, w, b, stride):
    y = lax.conv_general_dilated(
        x, w, window_strides=(stride, stride), padding="VALID",
        dimension_numbers=("NCHW", "OIHW", "NCHW"),
    )
    return jax.nn.relu(y + b[None, :, None, None])


def qnetwork_reference(params, x):
    x = _ref_conv_relu(x, params["conv1_w"], params["conv1_b"], 4)
    x = _ref_conv_relu(x, params["conv2_w"], params["conv2_b"], 2)
    x = _ref_conv_relu(x, params["conv3_w"], params["conv3_b"], 1)
    x = x.reshape(x.shape[0], -1)
    x = jax.nn.relu(x @ params["fc1_w"].T + params["fc1_b"])
    return x @ params["fc2_w"].T + params["fc2_b"]


if __name__ == "__main__":
    B, C, H, W = 2, 3, 64, 64       # small version of the 3x256x256 input
    NUM_ACTIONS = 4

    key = jax.random.PRNGKey(0)
    pkey, xkey = jax.random.split(key)
    params = init_params(pkey, C, NUM_ACTIONS, H, W)
    prep = prepare_params(params, H, W)     # one-time weight prep (not hot path)
    x = jax.random.normal(xkey, (B, C, H, W), jnp.float32)

    fwd = jax.jit(qnetwork_forward)
    out = jax.block_until_ready(fwd(prep, x))
    assert out.shape == (B, NUM_ACTIONS), out.shape

    ref = jax.block_until_ready(jax.jit(qnetwork_reference)(params, x))
    # bf16 MXU inputs (f32 accumulation) vs. pure-f32 reference -> bf16-level
    # tolerance across the 5-layer stack.
    np.testing.assert_allclose(np.asarray(out), np.asarray(ref),
                               rtol=4e-2, atol=4e-2)

    print("KERNEL_OK")
</pallas_src>

<mosaic_0001>
module attributes {stable_mosaic.version = 11 : i64} {
  func.func @_conv1_kernel(%arg0: i32, %arg1: memref<1x16x16x48xbf16, #tpu.memory_space<vmem>>, %arg2: memref<4x48x32xbf16, #tpu.memory_space<vmem>>, %arg3: memref<1x32xf32, #tpu.memory_space<vmem>>, %arg4: memref<1x15x15x32xbf16, #tpu.memory_space<vmem>>) attributes {dimension_semantics = [#tpu.dimension_semantics<parallel>], iteration_bounds = array<i64: 2>, scalar_prefetch = 0 : i64, scratch_operands = 0 : i64, tpu.core_type = #tpu.core_type<tc>, window_params = [{transform_indices = @transform_0, window_bounds = array<i64: 1, 16, 16, 48>}, {pipeline_mode = #tpu.pipeline_mode<synchronous>, transform_indices = @transform_1, window_bounds = array<i64: 4, 48, 32>}, {pipeline_mode = #tpu.pipeline_mode<synchronous>, transform_indices = @transform_2, window_bounds = array<i64: 1, 32>}, {transform_indices = @transform_3, window_bounds = array<i64: 1, 15, 15, 32>}]} {
    %c0 = arith.constant 0 : index
    %c0_0 = arith.constant 0 : index
    %c0_1 = arith.constant 0 : index
    %c0_2 = arith.constant 0 : index
    %0 = vector.load %arg1[%c0, %c0_0, %c0_1, %c0_2] : memref<1x16x16x48xbf16, #tpu.memory_space<vmem>>, vector<1x16x16x48xbf16>
    %1 = vector.shape_cast %0 : vector<1x16x16x48xbf16> to vector<16x16x48xbf16>
    %cst = arith.constant 0.000000e+00 : f32
    %2 = vector.broadcast %cst : f32 to vector<15x32xf32>
    %3 = vector.extract_strided_slice %1 {offsets = [0, 0, 0], sizes = [1, 16, 48], strides = [1, 1, 1]} : vector<16x16x48xbf16> to vector<1x16x48xbf16>
    %4 = vector.shape_cast %3 : vector<1x16x48xbf16> to vector<16x48xbf16>
    %5 = vector.extract_strided_slice %4 {offsets = [0, 0], sizes = [15, 48], strides = [1, 1]} : vector<16x48xbf16> to vector<15x48xbf16>
    %c0_3 = arith.constant 0 : index
    %c0_4 = arith.constant 0 : index
    %c0_5 = arith.constant 0 : index
    %6 = vector.load %arg2[%c0_3, %c0_4, %c0_5] : memref<4x48x32xbf16, #tpu.memory_space<vmem>>, vector<1x48x32xbf16>
    %7 = vector.shape_cast %6 : vector<1x48x32xbf16> to vector<48x32xbf16>
    %cst_6 = arith.constant dense<0.000000e+00> : vector<15x32xf32>
    %8 = tpu.matmul %5, %7, %cst_6 {dimension_numbers = #tpu.dot_dimension_numbers<[1], [0], [0], [1], [0, 0, 1, 1], [], []>} : vector<15x48xbf16>, vector<48x32xbf16>, vector<15x32xf32> -> vector<15x32xf32>
    %9 = arith.addf %2, %8 : vector<15x32xf32>
    %10 = vector.extract_strided_slice %4 {offsets = [1, 0], sizes = [15, 48], strides = [1, 1]} : vector<16x48xbf16> to vector<15x48xbf16>
    %c1 = arith.constant 1 : index
    %c0_7 = arith.constant 0 : index
    %c0_8 = arith.constant 0 : index
    %11 = vector.load %arg2[%c1, %c0_7, %c0_8] : memref<4x48x32xbf16, #tpu.memory_space<vmem>>, vector<1x48x32xbf16>
    %12 = vector.shape_cast %11 : vector<1x48x32xbf16> to vector<48x32xbf16>
    %cst_9 = arith.constant dense<0.000000e+00> : vector<15x32xf32>
    %13 = tpu.matmul %10, %12, %cst_9 {dimension_numbers = #tpu.dot_dimension_numbers<[1], [0], [0], [1], [0, 0, 1, 1], [], []>} : vector<15x48xbf16>, vector<48x32xbf16>, vector<15x32xf32> -> vector<15x32xf32>
    %14 = arith.addf %9, %13 : vector<15x32xf32>
    %15 = vector.extract_strided_slice %1 {offsets = [1, 0, 0], sizes = [1, 16, 48], strides = [1, 1, 1]} : vector<16x16x48xbf16> to vector<1x16x48xbf16>
    %16 = vector.shape_cast %15 : vector<1x16x48xbf16> to vector<16x48xbf16>
    %17 = vector.extract_strided_slice %16 {offsets = [0, 0], sizes = [15, 48], strides = [1, 1]} : vector<16x48xbf16> to vector<15x48xbf16>
    %c2 = arith.constant 2 : index
    %c0_10 = arith.constant 0 : index
    %c0_11 = arith.constant 0 : index
    %18 = vector.load %arg2[%c2, %c0_10, %c0_11] : memref<4x48x32xbf16, #tpu.memory_space<vmem>>, vector<1x48x32xbf16>
    %19 = vector.shape_cast %18 : vector<1x48x32xbf16> to vector<48x32xbf16>
    %cst_12 = arith.constant dense<0.000000e+00> : vector<15x32xf32>
    %20 = tpu.matmul %17, %19, %cst_12 {dimension_numbers = #tpu.dot_dimension_numbers<[1], [0], [0], [1], [0, 0, 1, 1], [], []>} : vector<15x48xbf16>, vector<48x32xbf16>, vector<15x32xf32> -> vector<15x32xf32>
    %21 = arith.addf %14, %20 : vector<15x32xf32>
    %22 = vector.extract_strided_slice %16 {offsets = [1, 0], sizes = [15, 48], strides = [1, 1]} : vector<16x48xbf16> to vector<15x48xbf16>
    %c3 = arith.constant 3 : index
    %c0_13 = arith.constant 0 : index
    %c0_14 = arith.constant 0 : index
    %23 = vector.load %arg2[%c3, %c0_13, %c0_14] : memref<4x48x32xbf16, #tpu.memory_space<vmem>>, vector<1x48x32xbf16>
    %24 = vector.shape_cast %23 : vector<1x48x32xbf16> to vector<48x32xbf16>
    %cst_15 = arith.constant dense<0.000000e+00> : vector<15x32xf32>
    %25 = tpu.matmul %22, %24, %cst_15 {dimension_numbers = #tpu.dot_dimension_numbers<[1], [0], [0], [1], [0, 0, 1, 1], [], []>} : vector<15x48xbf16>, vector<48x32xbf16>, vector<15x32xf32> -> vector<15x32xf32>
    %26 = arith.addf %21, %25 : vector<15x32xf32>
    %c0_16 = arith.constant 0 : index
    %c0_17 = arith.constant 0 : index
    %27 = vector.load %arg3[%c0_16, %c0_17] : memref<1x32xf32, #tpu.memory_space<vmem>>, vector<1x32xf32>
    %28 = vector.broadcast %27 : vector<1x32xf32> to vector<15x32xf32>
    %29 = arith.addf %26, %28 : vector<15x32xf32>
    %cst_18 = arith.constant 0.000000e+00 : f32
    %30 = vector.broadcast %cst_18 : f32 to vector<15x32xf32>
    %31 = arith.maximumf %29, %30 : vector<15x32xf32>
    %32 = arith.truncf %31 : vector<15x32xf32> to vector<15x32xbf16>
    %c0_19 = arith.constant 0 : index
    %c0_20 = arith.constant 0 : index
    %c0_21 = arith.constant 0 : index
    %c0_22 = arith.constant 0 : index
    %33 = vector.load %arg4[%c0_19, %c0_20, %c0_21, %c0_22] : memref<1x15x15x32xbf16, #tpu.memory_space<vmem>>, vector<1x1x15x32xbf16>
    %34 = vector.shape_cast %33 : vector<1x1x15x32xbf16> to vector<15x32xbf16>
    %35 = vector.shape_cast %32 : vector<15x32xbf16> to vector<1x1x15x32xbf16>
    tpu.vector_store %arg4[%c0_19, %c0_20, %c0_21, %c0_22], %35 {strides = array<i32>} : memref<1x15x15x32xbf16, #tpu.memory_space<vmem>>, vector<1x1x15x32xbf16>,
    %cst_23 = arith.constant 0.000000e+00 : f32
    %36 = vector.broadcast %cst_23 : f32 to vector<15x32xf32>
    %37 = vector.extract_strided_slice %1 {offsets = [1, 0, 0], sizes = [1, 16, 48], strides = [1, 1, 1]} : vector<16x16x48xbf16> to vector<1x16x48xbf16>
    %38 = vector.shape_cast %37 : vector<1x16x48xbf16> to vector<16x48xbf16>
    %39 = vector.extract_strided_slice %38 {offsets = [0, 0], sizes = [15, 48], strides = [1, 1]} : vector<16x48xbf16> to vector<15x48xbf16>
    %c0_24 = arith.constant 0 : index
    %c0_25 = arith.constant 0 : index
    %c0_26 = arith.constant 0 : index
    %40 = vector.load %arg2[%c0_24, %c0_25, %c0_26] : memref<4x48x32xbf16, #tpu.memory_space<vmem>>, vector<1x48x32xbf16>
    %41 = vector.shape_cast %40 : vector<1x48x32xbf16> to vector<48x32xbf16>
    %cst_27 = arith.constant dense<0.000000e+00> : vector<15x32xf32>
    %42 = tpu.matmul %39, %41, %cst_27 {dimension_numbers = #tpu.dot_dimension_numbers<[1], [0], [0], [1], [0, 0, 1, 1], [], []>} : vector<15x48xbf16>, vector<48x32xbf16>, vector<15x32xf32> -> vector<15x32xf32>
    %43 = arith.addf %36, %42 : vector<15x32xf32>
    %44 = vector.extract_strided_slice %38 {offsets = [1, 0], sizes = [15, 48], strides = [1, 1]} : vector<16x48xbf16> to vector<15x48xbf16>
    %c1_28 = arith.constant 1 : index
    %c0_29 = arith.constant 0 : index
    %c0_30 = arith.constant 0 : index
    %45 = vector.load %arg2[%c1_28, %c0_29, %c0_30] : memref<4x48x32xbf16, #tpu.memory_space<vmem>>, vector<1x48x32xbf16>
    %46 = vector.shape_cast %45 : vector<1x48x32xbf16> to vector<48x32xbf16>
    %cst_31 = arith.constant dense<0.000000e+00> : vector<15x32xf32>
    %47 = tpu.matmul %44, %46, %cst_31 {dimension_numbers = #tpu.dot_dimension_numbers<[1], [0], [0], [1], [0, 0, 1, 1], [], []>} : vector<15x48xbf16>, vector<48x32xbf16>, vector<15x32xf32> -> vector<15x32xf32>
    %48 = arith.addf %43, %47 : vector<15x32xf32>
    %49 = vector.extract_strided_slice %1 {offsets = [2, 0, 0], sizes = [1, 16, 48], strides = [1, 1, 1]} : vector<16x16x48xbf16> to vector<1x16x48xbf16>
    %50 = vector.shape_cast %49 : vector<1x16x48xbf16> to vector<16x48xbf16>
    %51 = vector.extract_strided_slice %50 {offsets = [0, 0], sizes = [15, 48], strides = [1, 1]} : vector<16x48xbf16> to vector<15x48xbf16>
    %c2_32 = arith.constant 2 : index
    %c0_33 = arith.constant 0 : index
    %c0_34 = arith.constant 0 : index
    %52 = vector.load %arg2[%c2_32, %c0_33, %c0_34] : memref<4x48x32xbf16, #tpu.memory_space<vmem>>, vector<1x48x32xbf16>
    %53 = vector.shape_cast %52 : vector<1x48x32xbf16> to vector<48x32xbf16>
    %cst_35 = arith.constant dense<0.000000e+00> : vector<15x32xf32>
    %54 = tpu.matmul %51, %53, %cst_35 {dimension_numbers = #tpu.dot_dimension_numbers<[1], [0], [0], [1], [0, 0, 1, 1], [], []>} : vector<15x48xbf16>, vector<48x32xbf16>, vector<15x32xf32> -> vector<15x32xf32>
    %55 = arith.addf %48, %54 : vector<15x32xf32>
    %56 = vector.extract_strided_slice %50 {offsets = [1, 0], sizes = [15, 48], strides = [1, 1]} : vector<16x48xbf16> to vector<15x48xbf16>
    %c3_36 = arith.constant 3 : index
    %c0_37 = arith.constant 0 : index
    %c0_38 = arith.constant 0 : index
    %57 = vector.load %arg2[%c3_36, %c0_37, %c0_38] : memref<4x48x32xbf16, #tpu.memory_space<vmem>>, vector<1x48x32xbf16>
    %58 = vector.shape_cast %57 : vector<1x48x32xbf16> to vector<48x32xbf16>
    %cst_39 = arith.constant dense<0.000000e+00> : vector<15x32xf32>
    %59 = tpu.matmul %56, %58, %cst_39 {dimension_numbers = #tpu.dot_dimension_numbers<[1], [0], [0], [1], [0, 0, 1, 1], [], []>} : vector<15x48xbf16>, vector<48x32xbf16>, vector<15x32xf32> -> vector<15x32xf32>
    %60 = arith.addf %55, %59 : vector<15x32xf32>
    %c0_40 = arith.constant 0 : index
    %c0_41 = arith.constant 0 : index
    %61 = vector.load %arg3[%c0_40, %c0_41] : memref<1x32xf32, #tpu.memory_space<vmem>>, vector<1x32xf32>
    %62 = vector.broadcast %61 : vector<1x32xf32> to vector<15x32xf32>
    %63 = arith.addf %60, %62 : vector<15x32xf32>
    %cst_42 = arith.constant 0.000000e+00 : f32
    %64 = vector.broadcast %cst_42 : f32 to vector<15x32xf32>
    %65 = arith.maximumf %63, %64 : vector<15x32xf32>
    %66 = arith.truncf %65 : vector<15x32xf32> to vector<15x32xbf16>
    %c0_43 = arith.constant 0 : index
    %c1_44 = arith.constant 1 : index
    %c0_45 = arith.constant 0 : index
    %c0_46 = arith.constant 0 : index
    %67 = vector.load %arg4[%c0_43, %c1_44, %c0_45, %c0_46] : memref<1x15x15x32xbf16, #tpu.memory_space<vmem>>, vector<1x1x15x32xbf16>
    %68 = vector.shape_cast %67 : vector<1x1x15x32xbf16> to vector<15x32xbf16>
    %69 = vector.shape_cast %66 : vector<15x32xbf16> to vector<1x1x15x32xbf16>
    tpu.vector_store %arg4[%c0_43, %c1_44, %c0_45, %c0_46], %69 {strides = array<i32>} : memref<1x15x15x32xbf16, #tpu.memory_space<vmem>>, vector<1x1x15x32xbf16>,
    %cst_47 = arith.constant 0.000000e+00 : f32
    %70 = vector.broadcast %cst_47 : f32 to vector<15x32xf32>
    %71 = vector.extract_strided_slice %1 {offsets = [2, 0, 0], sizes = [1, 16, 48], strides = [1, 1, 1]} : vector<16x16x48xbf16> to vector<1x16x48xbf16>
    %72 = vector.shape_cast %71 : vector<1x16x48xbf16> to vector<16x48xbf16>
    %73 = vector.extract_strided_slice %72 {offsets = [0, 0], sizes = [15, 48], strides = [1, 1]} : vector<16x48xbf16> to vector<15x48xbf16>
    %c0_48 = arith.constant 0 : index
    %c0_49 = arith.constant 0 : index
    %c0_50 = arith.constant 0 : index
    %74 = vector.load %arg2[%c0_48, %c0_49, %c0_50] : memref<4x48x32xbf16, #tpu.memory_space<vmem>>, vector<1x48x32xbf16>
    %75 = vector.shape_cast %74 : vector<1x48x32xbf16> to vector<48x32xbf16>
    %cst_51 = arith.constant dense<0.000000e+00> : vector<15x32xf32>
    %76 = tpu.matmul %73, %75, %cst_51 {dimension_numbers = #tpu.dot_dimension_numbers<[1], [0], [0], [1], [0, 0, 1, 1], [], []>} : vector<15x48xbf16>, vector<48x32xbf16>, vector<15x32xf32> -> vector<15x32xf32>
    %77 = arith.addf %70, %76 : vector<15x32xf32>
    %78 = vector.extract_strided_slice %72 {offsets = [1, 0], sizes = [15, 48], strides = [1, 1]} : vector<16x48xbf16> to vector<15x48xbf16>
    %c1_52 = arith.constant 1 : index
    %c0_53 = arith.constant 0 : index
    %c0_54 = arith.constant 0 : index
    %79 = vector.load %arg2[%c1_52, %c0_53, %c0_54] : memref<4x48x32xbf16, #tpu.memory_space<vmem>>, vector<1x48x32xbf16>
    %80 = vector.shape_cast %79 : vector<1x48x32xbf16> to vector<48x32xbf16>
    %cst_55 = arith.constant dense<0.000000e+00> : vector<15x32xf32>
    %81 = tpu.matmul %78, %80, %cst_55 {dimension_numbers = #tpu.dot_dimension_numbers<[1], [0], [0], [1], [0, 0, 1, 1], [], []>} : vector<15x48xbf16>, vector<48x32xbf16>, vector<15x32xf32> -> vector<15x32xf32>
    %82 = arith.addf %77, %81 : vector<15x32xf32>
    %83 = vector.extract_strided_slice %1 {offsets = [3, 0, 0], sizes = [1, 16, 48], strides = [1, 1, 1]} : vector<16x16x48xbf16> to vector<1x16x48xbf16>
    %84 = vector.shape_cast %83 : vector<1x16x48xbf16> to vector<16x48xbf16>
    %85 = vector.extract_strided_slice %84 {offsets = [0, 0], sizes = [15, 48], strides = [1, 1]} : vector<16x48xbf16> to vector<15x48xbf16>
    %c2_56 = arith.constant 2 : index
    %c0_57 = arith.constant 0 : index
    %c0_58 = arith.constant 0 : index
    %86 = vector.load %arg2[%c2_56, %c0_57, %c0_58] : memref<4x48x32xbf16, #tpu.memory_space<vmem>>, vector<1x48x32xbf16>
    %87 = vector.shape_cast %86 : vector<1x48x32xbf16> to vector<48x32xbf16>
    %cst_59 = arith.constant dense<0.000000e+00> : vector<15x32xf32>
    %88 = tpu.matmul %85, %87, %cst_59 {dimension_numbers = #tpu.dot_dimension_numbers<[1], [0], [0], [1], [0, 0, 1, 1], [], []>} : vector<15x48xbf16>, vector<48x32xbf16>, vector<15x32xf32> -> vector<15x32xf32>
    %89 = arith.addf %82, %88 : vector<15x32xf32>
    %90 = vector.extract_strided_slice %84 {offsets = [1, 0], sizes = [15, 48], strides = [1, 1]} : vector<16x48xbf16> to vector<15x48xbf16>
    %c3_60 = arith.constant 3 : index
    %c0_61 = arith.constant 0 : index
    %c0_62 = arith.constant 0 : index
    %91 = vector.load %arg2[%c3_60, %c0_61, %c0_62] : memref<4x48x32xbf16, #tpu.memory_space<vmem>>, vector<1x48x32xbf16>
    %92 = vector.shape_cast %91 : vector<1x48x32xbf16> to vector<48x32xbf16>
    %cst_63 = arith.constant dense<0.000000e+00> : vector<15x32xf32>
    %93 = tpu.matmul %90, %92, %cst_63 {dimension_numbers = #tpu.dot_dimension_numbers<[1], [0], [0], [1], [0, 0, 1, 1], [], []>} : vector<15x48xbf16>, vector<48x32xbf16>, vector<15x32xf32> -> vector<15x32xf32>
    %94 = arith.addf %89, %93 : vector<15x32xf32>
    %c0_64 = arith.constant 0 : index
    %c0_65 = arith.constant 0 : index
    %95 = vector.load %arg3[%c0_64, %c0_65] : memref<1x32xf32, #tpu.memory_space<vmem>>, vector<1x32xf32>
    %96 = vector.broadcast %95 : vector<1x32xf32> to vector<15x32xf32>
    %97 = arith.addf %94, %96 : vector<15x32xf32>
    %cst_66 = arith.constant 0.000000e+00 : f32
    %98 = vector.broadcast %cst_66 : f32 to vector<15x32xf32>
    %99 = arith.maximumf %97, %98 : vector<15x32xf32>
    %100 = arith.truncf %99 : vector<15x32xf32> to vector<15x32xbf16>
    %c0_67 = arith.constant 0 : index
    %c2_68 = arith.constant 2 : index
    %c0_69 = arith.constant 0 : index
    %c0_70 = arith.constant 0 : index
    %101 = vector.load %arg4[%c0_67, %c2_68, %c0_69, %c0_70] : memref<1x15x15x32xbf16, #tpu.memory_space<vmem>>, vector<1x1x15x32xbf16>
    %102 = vector.shape_cast %101 : vector<1x1x15x32xbf16> to vector<15x32xbf16>
    %103 = vector.shape_cast %100 : vector<15x32xbf16> to vector<1x1x15x32xbf16>
    tpu.vector_store %arg4[%c0_67, %c2_68, %c0_69, %c0_70], %103 {strides = array<i32>} : memref<1x15x15x32xbf16, #tpu.memory_space<vmem>>, vector<1x1x15x32xbf16>,
    %cst_71 = arith.constant 0.000000e+00 : f32
    %104 = vector.broadcast %cst_71 : f32 to vector<15x32xf32>
    %105 = vector.extract_strided_slice %1 {offsets = [3, 0, 0], sizes = [1, 16, 48], strides = [1, 1, 1]} : vector<16x16x48xbf16> to vector<1x16x48xbf16>
    %106 = vector.shape_cast %105 : vector<1x16x48xbf16> to vector<16x48xbf16>
    %107 = vector.extract_strided_slice %106 {offsets = [0, 0], sizes = [15, 48], strides = [1, 1]} : vector<16x48xbf16> to vector<15x48xbf16>
    %c0_72 = arith.constant 0 : index
    %c0_73 = arith.constant 0 : index
    %c0_74 = arith.constant 0 : index
    %108 = vector.load %arg2[%c0_72, %c0_73, %c0_74] : memref<4x48x32xbf16, #tpu.memory_space<vmem>>, vector<1x48x32xbf16>
    %109 = vector.shape_cast %108 : vector<1x48x32xbf16> to vector<48x32xbf16>
    %cst_75 = arith.constant dense<0.000000e+00> : vector<15x32xf32>
    %110 = tpu.matmul %107, %109, %cst_75 {dimension_numbers = #tpu.dot_dimension_numbers<[1], [0], [0], [1], [0, 0, 1, 1], [], []>} : vector<15x48xbf16>, vector<48x32xbf16>, vector<15x32xf32> -> vector<15x32xf32>
    %111 = arith.addf %104, %110 : vector<15x32xf32>
    %112 = vector.extract_strided_slice %106 {offsets = [1, 0], sizes = [15, 48], strides = [1, 1]} : vector<16x48xbf16> to vector<15x48xbf16>
    %c1_76 = arith.constant 1 : index
    %c0_77 = arith.constant 0 : index
    %c0_78 = arith.constant 0 : index
    %113 = vector.load %arg2[%c1_76, %c0_77, %c0_78] : memref<4x48x32xbf16, #tpu.memory_space<vmem>>, vector<1x48x32xbf16>
    %114 = vector.shape_cast %113 : vector<1x48x32xbf16> to vector<48x32xbf16>
    %cst_79 = arith.constant dense<0.000000e+00> : vector<15x32xf32>
    %115 = tpu.matmul %112, %114, %cst_79 {dimension_numbers = #tpu.dot_dimension_numbers<[1], [0], [0], [1], [0, 0, 1, 1], [], []>} : vector<15x48xbf16>, vector<48x32xbf16>, vector<15x32xf32> -> vector<15x32xf32>
    %116 = arith.addf %111, %115 : vector<15x32xf32>
    %117 = vector.extract_strided_slice %1 {offsets = [4, 0, 0], sizes = [1, 16, 48], strides = [1, 1, 1]} : vector<16x16x48xbf16> to vector<1x16x48xbf16>
    %118 = vector.shape_cast %117 : vector<1x16x48xbf16> to vector<16x48xbf16>
    %119 = vector.extract_strided_slice %118 {offsets = [0, 0], sizes = [15, 48], strides = [1, 1]} : vector<16x48xbf16> to vector<15x48xbf16>
    %c2_80 = arith.constant 2 : index
    %c0_81 = arith.constant 0 : index
    %c0_82 = arith.constant 0 : index
    %120 = vector.load %arg2[%c2_80, %c0_81, %c0_82] : memref<4x48x32xbf16, #tpu.memory_space<vmem>>, vector<1x48x32xbf16>
    %121 = vector.shape_cast %120 : vector<1x48x32xbf16> to vector<48x32xbf16>
    %cst_83 = arith.constant dense<0.000000e+00> : vector<15x32xf32>
    %122 = tpu.matmul %119, %121, %cst_83 {dimension_numbers = #tpu.dot_dimension_numbers<[1], [0], [0], [1], [0, 0, 1, 1], [], []>} : vector<15x48xbf16>, vector<48x32xbf16>, vector<15x32xf32> -> vector<15x32xf32>
    %123 = arith.addf %116, %122 : vector<15x32xf32>
    %124 = vector.extract_strided_slice %118 {offsets = [1, 0], sizes = [15, 48], strides = [1, 1]} : vector<16x48xbf16> to vector<15x48xbf16>
    %c3_84 = arith.constant 3 : index
    %c0_85 = arith.constant 0 : index
    %c0_86 = arith.constant 0 : index
    %125 = vector.load %arg2[%c3_84, %c0_85, %c0_86] : memref<4x48x32xbf16, #tpu.memory_space<vmem>>, vector<1x48x32xbf16>
    %126 = vector.shape_cast %125 : vector<1x48x32xbf16> to vector<48x32xbf16>
    %cst_87 = arith.constant dense<0.000000e+00> : vector<15x32xf32>
    %127 = tpu.matmul %124, %126, %cst_87 {dimension_numbers = #tpu.dot_dimension_numbers<[1], [0], [0], [1], [0, 0, 1, 1], [], []>} : vector<15x48xbf16>, vector<48x32xbf16>, vector<15x32xf32> -> vector<15x32xf32>
    %128 = arith.addf %123, %127 : vector<15x32xf32>
    %c0_88 = arith.constant 0 : index
    %c0_89 = arith.constant 0 : index
    %129 = vector.load %arg3[%c0_88, %c0_89] : memref<1x32xf32, #tpu.memory_space<vmem>>, vector<1x32xf32>
    %130 = vector.broadcast %129 : vector<1x32xf32> to vector<15x32xf32>
    %131 = arith.addf %128, %130 : vector<15x32xf32>
    %cst_90 = arith.constant 0.000000e+00 : f32
    %132 = vector.broadcast %cst_90 : f32 to vector<15x32xf32>
    %133 = arith.maximumf %131, %132 : vector<15x32xf32>
    %134 = arith.truncf %133 : vector<15x32xf32> to vector<15x32xbf16>
    %c0_91 = arith.constant 0 : index
    %c3_92 = arith.constant 3 : index
    %c0_93 = arith.constant 0 : index
    %c0_94 = arith.constant 0 : index
    %135 = vector.load %arg4[%c0_91, %c3_92, %c0_93, %c0_94] : memref<1x15x15x32xbf16, #tpu.memory_space<vmem>>, vector<1x1x15x32xbf16>
    %136 = vector.shape_cast %135 : vector<1x1x15x32xbf16> to vector<15x32xbf16>
    %137 = vector.shape_cast %134 : vector<15x32xbf16> to vector<1x1x15x32xbf16>
    tpu.vector_store %arg4[%c0_91, %c3_92, %c0_93, %c0_94], %137 {strides = array<i32>} : memref<1x15x15x32xbf16, #tpu.memory_space<vmem>>, vector<1x1x15x32xbf16>,
    %cst_95 = arith.constant 0.000000e+00 : f32
    %138 = vector.broadcast %cst_95 : f32 to vector<15x32xf32>
    %139 = vector.extract_strided_slice %1 {offsets = [4, 0, 0], sizes = [1, 16, 48], strides = [1, 1, 1]} : vector<16x16x48xbf16> to vector<1x16x48xbf16>
    %140 = vector.shape_cast %139 : vector<1x16x48xbf16> to vector<16x48xbf16>
    %141 = vector.extract_strided_slice %140 {offsets = [0, 0], sizes = [15, 48], strides = [1, 1]} : vector<16x48xbf16> to vector<15x48xbf16>
    %c0_96 = arith.constant 0 : index
    %c0_97 = arith.constant 0 : index
    %c0_98 = arith.constant 0 : index
    %142 = vector.load %arg2[%c0_96, %c0_97, %c0_98] : memref<4x48x32xbf16, #tpu.memory_space<vmem>>, vector<1x48x32xbf16>
    %143 = vector.shape_cast %142 : vector<1x48x32xbf16> to vector<48x32xbf16>
    %cst_99 = arith.constant dense<0.000000e+00> : vector<15x32xf32>
    %144 = tpu.matmul %141, %143, %cst_99 {dimension_numbers = #tpu.dot_dimension_numbers<[1], [0], [0], [1], [0, 0, 1, 1], [], []>} : vector<15x48xbf16>, vector<48x32xbf16>, vector<15x32xf32> -> vector<15x32xf32>
    %145 = arith.addf %138, %144 : vector<15x32xf32>
    %146 = vector.extract_strided_slice %140 {offsets = [1, 0], sizes = [15, 48], strides = [1, 1]} : vector<16x48xbf16> to vector<15x48xbf16>
    %c1_100 = arith.constant 1 : index
    %c0_101 = arith.constant 0 : index
    %c0_102 = arith.constant 0 : index
    %147 = vector.load %arg2[%c1_100, %c0_101, %c0_102] : memref<4x48x32xbf16, #tpu.memory_space<vmem>>, vector<1x48x32xbf16>
    %148 = vector.shape_cast %147 : vector<1x48x32xbf16> to vector<48x32xbf16>
    %cst_103 = arith.constant dense<0.000000e+00> : vector<15x32xf32>
    %149 = tpu.matmul %146, %148, %cst_103 {dimension_numbers = #tpu.dot_dimension_numbers<[1], [0], [0], [1], [0, 0, 1, 1], [], []>} : vector<15x48xbf16>, vector<48x32xbf16>, vector<15x32xf32> -> vector<15x32xf32>
    %150 = arith.addf %145, %149 : vector<15x32xf32>
    %151 = vector.extract_strided_slice %1 {offsets = [5, 0, 0], sizes = [1, 16, 48], strides = [1, 1, 1]} : vector<16x16x48xbf16> to vector<1x16x48xbf16>
    %152 = vector.shape_cast %151 : vector<1x16x48xbf16> to vector<16x48xbf16>
    %153 = vector.extract_strided_slice %152 {offsets = [0, 0], sizes = [15, 48], strides = [1, 1]} : vector<16x48xbf16> to vector<15x48xbf16>
    %c2_104 = arith.constant 2 : index
    %c0_105 = arith.constant 0 : index
    %c0_106 = arith.constant 0 : index
    %154 = vector.load %arg2[%c2_104, %c0_105, %c0_106] : memref<4x48x32xbf16, #tpu.memory_space<vmem>>, vector<1x48x32xbf16>
    %155 = vector.shape_cast %154 : vector<1x48x32xbf16> to vector<48x32xbf16>
    %cst_107 = arith.constant dense<0.000000e+00> : vector<15x32xf32>
    %156 = tpu.matmul %153, %155, %cst_107 {dimension_numbers = #tpu.dot_dimension_numbers<[1], [0], [0], [1], [0, 0, 1, 1], [], []>} : vector<15x48xbf16>, vector<48x32xbf16>, vector<15x32xf32> -> vector<15x32xf32>
    %157 = arith.addf %150, %156 : vector<15x32xf32>
    %158 = vector.extract_strided_slice %152 {offsets = [1, 0], sizes = [15, 48], strides = [1, 1]} : vector<16x48xbf16> to vector<15x48xbf16>
    %c3_108 = arith.constant 3 : index
    %c0_109 = arith.constant 0 : index
    %c0_110 = arith.constant 0 : index
    %159 = vector.load %arg2[%c3_108, %c0_109, %c0_110] : memref<4x48x32xbf16, #tpu.memory_space<vmem>>, vector<1x48x32xbf16>
    %160 = vector.shape_cast %159 : vector<1x48x32xbf16> to vector<48x32xbf16>
    %cst_111 = arith.constant dense<0.000000e+00> : vector<15x32xf32>
    %161 = tpu.matmul %158, %160, %cst_111 {dimension_numbers = #tpu.dot_dimension_numbers<[1], [0], [0], [1], [0, 0, 1, 1], [], []>} : vector<15x48xbf16>, vector<48x32xbf16>, vector<15x32xf32> -> vector<15x32xf32>
    %162 = arith.addf %157, %161 : vector<15x32xf32>
    %c0_112 = arith.constant 0 : index
    %c0_113 = arith.constant 0 : index
    %163 = vector.load %arg3[%c0_112, %c0_113] : memref<1x32xf32, #tpu.memory_space<vmem>>, vector<1x32xf32>
    %164 = vector.broadcast %163 : vector<1x32xf32> to vector<15x32xf32>
    %165 = arith.addf %162, %164 : vector<15x32xf32>
    %cst_114 = arith.constant 0.000000e+00 : f32
    %166 = vector.broadcast %cst_114 : f32 to vector<15x32xf32>
    %167 = arith.maximumf %165, %166 : vector<15x32xf32>
    %168 = arith.truncf %167 : vector<15x32xf32> to vector<15x32xbf16>
    %c0_115 = arith.constant 0 : index
    %c4 = arith.constant 4 : index
    %c0_116 = arith.constant 0 : index
    %c0_117 = arith.constant 0 : index
    %169 = vector.load %arg4[%c0_115, %c4, %c0_116, %c0_117] : memref<1x15x15x32xbf16, #tpu.memory_space<vmem>>, vector<1x1x15x32xbf16>
    %170 = vector.shape_cast %169 : vector<1x1x15x32xbf16> to vector<15x32xbf16>
    %171 = vector.shape_cast %168 : vector<15x32xbf16> to vector<1x1x15x32xbf16>
    tpu.vector_store %arg4[%c0_115, %c4, %c0_116, %c0_117], %171 {strides = array<i32>} : memref<1x15x15x32xbf16, #tpu.memory_space<vmem>>, vector<1x1x15x32xbf16>,
    %cst_118 = arith.constant 0.000000e+00 : f32
    %172 = vector.broadcast %cst_118 : f32 to vector<15x32xf32>
    %173 = vector.extract_strided_slice %1 {offsets = [5, 0, 0], sizes = [1, 16, 48], strides = [1, 1, 1]} : vector<16x16x48xbf16> to vector<1x16x48xbf16>
    %174 = vector.shape_cast %173 : vector<1x16x48xbf16> to vector<16x48xbf16>
    %175 = vector.extract_strided_slice %174 {offsets = [0, 0], sizes = [15, 48], strides = [1, 1]} : vector<16x48xbf16> to vector<15x48xbf16>
    %c0_119 = arith.constant 0 : index
    %c0_120 = arith.constant 0 : index
    %c0_121 = arith.constant 0 : index
    %176 = vector.load %arg2[%c0_119, %c0_120, %c0_121] : memref<4x48x32xbf16, #tpu.memory_space<vmem>>, vector<1x48x32xbf16>
    %177 = vector.shape_cast %176 : vector<1x48x32xbf16> to vector<48x32xbf16>
    %cst_122 = arith.constant dense<0.000000e+00> : vector<15x32xf32>
    %178 = tpu.matmul %175, %177, %cst_122 {dimension_numbers = #tpu.dot_dimension_numbers<[1], [0], [0], [1], [0, 0, 1, 1], [], []>} : vector<15x48xbf16>, vector<48x32xbf16>, vector<15x32xf32> -> vector<15x32xf32>
    %179 = arith.addf %172, %178 : vector<15x32xf32>
    %180 = vector.extract_strided_slice %174 {offsets = [1, 0], sizes = [15, 48], strides = [1, 1]} : vector<16x48xbf16> to vector<15x48xbf16>
    %c1_123 = arith.constant 1 : index
    %c0_124 = arith.constant 0 : index
    %c0_125 = arith.constant 0 : index
    %181 = vector.load %arg2[%c1_123, %c0_124, %c0_125] : memref<4x48x32xbf16, #tpu.memory_space<vmem>>, vector<1x48x32xbf16>
    %182 = vector.shape_cast %181 : vector<1x48x32xbf16> to vector<48x32xbf16>
    %cst_126 = arith.constant dense<0.000000e+00> : vector<15x32xf32>
    %183 = tpu.matmul %180, %182, %cst_126 {dimension_numbers = #tpu.dot_dimension_numbers<[1], [0], [0], [1], [0, 0, 1, 1], [], []>} : vector<15x48xbf16>, vector<48x32xbf16>, vector<15x32xf32> -> vector<15x32xf32>
    %184 = arith.addf %179, %183 : vector<15x32xf32>
    %185 = vector.extract_strided_slice %1 {offsets = [6, 0, 0], sizes = [1, 16, 48], strides = [1, 1, 1]} : vector<16x16x48xbf16> to vector<1x16x48xbf16>
    %186 = vector.shape_cast %185 : vector<1x16x48xbf16> to vector<16x48xbf16>
    %187 = vector.extract_strided_slice %186 {offsets = [0, 0], sizes = [15, 48], strides = [1, 1]} : vector<16x48xbf16> to vector<15x48xbf16>
    %c2_127 = arith.constant 2 : index
    %c0_128 = arith.constant 0 : index
    %c0_129 = arith.constant 0 : index
    %188 = vector.load %arg2[%c2_127, %c0_128, %c0_129] : memref<4x48x32xbf16, #tpu.memory_space<vmem>>, vector<1x48x32xbf16>
    %189 = vector.shape_cast %188 : vector<1x48x32xbf16> to vector<48x32xbf16>
    %cst_130 = arith.constant dense<0.000000e+00> : vector<15x32xf32>
    %190 = tpu.matmul %187, %189, %cst_130 {dimension_numbers = #tpu.dot_dimension_numbers<[1], [0], [0], [1], [0, 0, 1, 1], [], []>} : vector<15x48xbf16>, vector<48x32xbf16>, vector<15x32xf32> -> vector<15x32xf32>
    %191 = arith.addf %184, %190 : vector<15x32xf32>
    %192 = vector.extract_strided_slice %186 {offsets = [1, 0], sizes = [15, 48], strides = [1, 1]} : vector<16x48xbf16> to vector<15x48xbf16>
    %c3_131 = arith.constant 3 : index
    %c0_132 = arith.constant 0 : index
    %c0_133 = arith.constant 0 : index
    %193 = vector.load %arg2[%c3_131, %c0_132, %c0_133] : memref<4x48x32xbf16, #tpu.memory_space<vmem>>, vector<1x48x32xbf16>
    %194 = vector.shape_cast %193 : vector<1x48x32xbf16> to vector<48x32xbf16>
    %cst_134 = arith.constant dense<0.000000e+00> : vector<15x32xf32>
    %195 = tpu.matmul %192, %194, %cst_134 {dimension_numbers = #tpu.dot_dimension_numbers<[1], [0], [0], [1], [0, 0, 1, 1], [], []>} : vector<15x48xbf16>, vector<48x32xbf16>, vector<15x32xf32> -> vector<15x32xf32>
    %196 = arith.addf %191, %195 : vector<15x32xf32>
    %c0_135 = arith.constant 0 : index
    %c0_136 = arith.constant 0 : index
    %197 = vector.load %arg3[%c0_135, %c0_136] : memref<1x32xf32, #tpu.memory_space<vmem>>, vector<1x32xf32>
    %198 = vector.broadcast %197 : vector<1x32xf32> to vector<15x32xf32>
    %199 = arith.addf %196, %198 : vector<15x32xf32>
    %cst_137 = arith.constant 0.000000e+00 : f32
    %200 = vector.broadcast %cst_137 : f32 to vector<15x32xf32>
    %201 = arith.maximumf %199, %200 : vector<15x32xf32>
    %202 = arith.truncf %201 : vector<15x32xf32> to vector<15x32xbf16>
    %c0_138 = arith.constant 0 : index
    %c5 = arith.constant 5 : index
    %c0_139 = arith.constant 0 : index
    %c0_140 = arith.constant 0 : index
    %203 = vector.load %arg4[%c0_138, %c5, %c0_139, %c0_140] : memref<1x15x15x32xbf16, #tpu.memory_space<vmem>>, vector<1x1x15x32xbf16>
    %204 = vector.shape_cast %203 : vector<1x1x15x32xbf16> to vector<15x32xbf16>
    %205 = vector.shape_cast %202 : vector<15x32xbf16> to vector<1x1x15x32xbf16>
    tpu.vector_store %arg4[%c0_138, %c5, %c0_139, %c0_140], %205 {strides = array<i32>} : memref<1x15x15x32xbf16, #tpu.memory_space<vmem>>, vector<1x1x15x32xbf16>,
    %cst_141 = arith.constant 0.000000e+00 : f32
    %206 = vector.broadcast %cst_141 : f32 to vector<15x32xf32>
    %207 = vector.extract_strided_slice %1 {offsets = [6, 0, 0], sizes = [1, 16, 48], strides = [1, 1, 1]} : vector<16x16x48xbf16> to vector<1x16x48xbf16>
    %208 = vector.shape_cast %207 : vector<1x16x48xbf16> to vector<16x48xbf16>
    %209 = vector.extract_strided_slice %208 {offsets = [0, 0], sizes = [15, 48], strides = [1, 1]} : vector<16x48xbf16> to vector<15x48xbf16>
    %c0_142 = arith.constant 0 : index
    %c0_143 = arith.constant 0 : index
    %c0_144 = arith.constant 0 : index
    %210 = vector.load %arg2[%c0_142, %c0_143, %c0_144] : memref<4x48x32xbf16, #tpu.memory_space<vmem>>, vector<1x48x32xbf16>
    %211 = vector.shape_cast %210 : vector<1x48x32xbf16> to vector<48x32xbf16>
    %cst_145 = arith.constant dense<0.000000e+00> : vector<15x32xf32>
    %212 = tpu.matmul %209, %211, %cst_145 {dimension_numbers = #tpu.dot_dimension_numbers<[1], [0], [0], [1], [0, 0, 1, 1], [], []>} : vector<15x48xbf16>, vector<48x32xbf16>, vector<15x32xf32> -> vector<15x32xf32>
    %213 = arith.addf %206, %212 : vector<15x32xf32>
    %214 = vector.extract_strided_slice %208 {offsets = [1, 0], sizes = [15, 48], strides = [1, 1]} : vector<16x48xbf16> to vector<15x48xbf16>
    %c1_146 = arith.constant 1 : index
    %c0_147 = arith.constant 0 : index
    %c0_148 = arith.constant 0 : index
    %215 = vector.load %arg2[%c1_146, %c0_147, %c0_148] : memref<4x48x32xbf16, #tpu.memory_space<vmem>>, vector<1x48x32xbf16>
    %216 = vector.shape_cast %215 : vector<1x48x32xbf16> to vector<48x32xbf16>
    %cst_149 = arith.constant dense<0.000000e+00> : vector<15x32xf32>
    %217 = tpu.matmul %214, %216, %cst_149 {dimension_numbers = #tpu.dot_dimension_numbers<[1], [0], [0], [1], [0, 0, 1, 1], [], []>} : vector<15x48xbf16>, vector<48x32xbf16>, vector<15x32xf32> -> vector<15x32xf32>
    %218 = arith.addf %213, %217 : vector<15x32xf32>
    %219 = vector.extract_strided_slice %1 {offsets = [7, 0, 0], sizes = [1, 16, 48], strides = [1, 1, 1]} : vector<16x16x48xbf16> to vector<1x16x48xbf16>
    %220 = vector.shape_cast %219 : vector<1x16x48xbf16> to vector<16x48xbf16>
    %221 = vector.extract_strided_slice %220 {offsets = [0, 0], sizes = [15, 48], strides = [1, 1]} : vector<16x48xbf16> to vector<15x48xbf16>
    %c2_150 = arith.constant 2 : index
    %c0_151 = arith.constant 0 : index
    %c0_152 = arith.constant 0 : index
    %222 = vector.load %arg2[%c2_150, %c0_151, %c0_152] : memref<4x48x32xbf16, #tpu.memory_space<vmem>>, vector<1x48x32xbf16>
    %223 = vector.shape_cast %222 : vector<1x48x32xbf16> to vector<48x32xbf16>
    %cst_153 = arith.constant dense<0.000000e+00> : vector<15x32xf32>
    %224 = tpu.matmul %221, %223, %cst_153 {dimension_numbers = #tpu.dot_dimension_numbers<[1], [0], [0], [1], [0, 0, 1, 1], [], []>} : vector<15x48xbf16>, vector<48x32xbf16>, vector<15x32xf32> -> vector<15x32xf32>
    %225 = arith.addf %218, %224 : vector<15x32xf32>
    %226 = vector.extract_strided_slice %220 {offsets = [1, 0], sizes = [15, 48], strides = [1, 1]} : vector<16x48xbf16> to vector<15x48xbf16>
    %c3_154 = arith.constant 3 : index
    %c0_155 = arith.constant 0 : index
    %c0_156 = arith.constant 0 : index
    %227 = vector.load %arg2[%c3_154, %c0_155, %c0_156] : memref<4x48x32xbf16, #tpu.memory_space<vmem>>, vector<1x48x32xbf16>
    %228 = vector.shape_cast %227 : vector<1x48x32xbf16> to vector<48x32xbf16>
    %cst_157 = arith.constant dense<0.000000e+00> : vector<15x32xf32>
    %229 = tpu.matmul %226, %228, %cst_157 {dimension_numbers = #tpu.dot_dimension_numbers<[1], [0], [0], [1], [0, 0, 1, 1], [], []>} : vector<15x48xbf16>, vector<48x32xbf16>, vector<15x32xf32> -> vector<15x32xf32>
    %230 = arith.addf %225, %229 : vector<15x32xf32>
    %c0_158 = arith.constant 0 : index
    %c0_159 = arith.constant 0 : index
    %231 = vector.load %arg3[%c0_158, %c0_159] : memref<1x32xf32, #tpu.memory_space<vmem>>, vector<1x32xf32>
    %232 = vector.broadcast %231 : vector<1x32xf32> to vector<15x32xf32>
    %233 = arith.addf %230, %232 : vector<15x32xf32>
    %cst_160 = arith.constant 0.000000e+00 : f32
    %234 = vector.broadcast %cst_160 : f32 to vector<15x32xf32>
    %235 = arith.maximumf %233, %234 : vector<15x32xf32>
    %236 = arith.truncf %235 : vector<15x32xf32> to vector<15x32xbf16>
    %c0_161 = arith.constant 0 : index
    %c6 = arith.constant 6 : index
    %c0_162 = arith.constant 0 : index
    %c0_163 = arith.constant 0 : index
    %237 = vector.load %arg4[%c0_161, %c6, %c0_162, %c0_163] : memref<1x15x15x32xbf16, #tpu.memory_space<vmem>>, vector<1x1x15x32xbf16>
    %238 = vector.shape_cast %237 : vector<1x1x15x32xbf16> to vector<15x32xbf16>
    %239 = vector.shape_cast %236 : vector<15x32xbf16> to vector<1x1x15x32xbf16>
    tpu.vector_store %arg4[%c0_161, %c6, %c0_162, %c0_163], %239 {strides = array<i32>} : memref<1x15x15x32xbf16, #tpu.memory_space<vmem>>, vector<1x1x15x32xbf16>,
    %cst_164 = arith.constant 0.000000e+00 : f32
    %240 = vector.broadcast %cst_164 : f32 to vector<15x32xf32>
    %241 = vector.extract_strided_slice %1 {offsets = [7, 0, 0], sizes = [1, 16, 48], strides = [1, 1, 1]} : vector<16x16x48xbf16> to vector<1x16x48xbf16>
    %242 = vector.shape_cast %241 : vector<1x16x48xbf16> to vector<16x48xbf16>
    %243 = vector.extract_strided_slice %242 {offsets = [0, 0], sizes = [15, 48], strides = [1, 1]} : vector<16x48xbf16> to vector<15x48xbf16>
    %c0_165 = arith.constant 0 : index
    %c0_166 = arith.constant 0 : index
    %c0_167 = arith.constant 0 : index
    %244 = vector.load %arg2[%c0_165, %c0_166, %c0_167] : memref<4x48x32xbf16, #tpu.memory_space<vmem>>, vector<1x48x32xbf16>
    %245 = vector.shape_cast %244 : vector<1x48x32xbf16> to vector<48x32xbf16>
    %cst_168 = arith.constant dense<0.000000e+00> : vector<15x32xf32>
    %246 = tpu.matmul %243, %245, %cst_168 {dimension_numbers = #tpu.dot_dimension_numbers<[1], [0], [0], [1], [0, 0, 1, 1], [], []>} : vector<15x48xbf16>, vector<48x32xbf16>, vector<15x32xf32> -> vector<15x32xf32>
    %247 = arith.addf %240, %246 : vector<15x32xf32>
    %248 = vector.extract_strided_slice %242 {offsets = [1, 0], sizes = [15, 48], strides = [1, 1]} : vector<16x48xbf16> to vector<15x48xbf16>
    %c1_169 = arith.constant 1 : index
    %c0_170 = arith.constant 0 : index
    %c0_171 = arith.constant 0 : index
    %249 = vector.load %arg2[%c1_169, %c0_170, %c0_171] : memref<4x48x32xbf16, #tpu.memory_space<vmem>>, vector<1x48x32xbf16>
    %250 = vector.shape_cast %249 : vector<1x48x32xbf16> to vector<48x32xbf16>
    %cst_172 = arith.constant dense<0.000000e+00> : vector<15x32xf32>
    %251 = tpu.matmul %248, %250, %cst_172 {dimension_numbers = #tpu.dot_dimension_numbers<[1], [0], [0], [1], [0, 0, 1, 1], [], []>} : vector<15x48xbf16>, vector<48x32xbf16>, vector<15x32xf32> -> vector<15x32xf32>
    %252 = arith.addf %247, %251 : vector<15x32xf32>
    %253 = vector.extract_strided_slice %1 {offsets = [8, 0, 0], sizes = [1, 16, 48], strides = [1, 1, 1]} : vector<16x16x48xbf16> to vector<1x16x48xbf16>
    %254 = vector.shape_cast %253 : vector<1x16x48xbf16> to vector<16x48xbf16>
    %255 = vector.extract_strided_slice %254 {offsets = [0, 0], sizes = [15, 48], strides = [1, 1]} : vector<16x48xbf16> to vector<15x48xbf16>
    %c2_173 = arith.constant 2 : index
    %c0_174 = arith.constant 0 : index
    %c0_175 = arith.constant 0 : index
    %256 = vector.load %arg2[%c2_173, %c0_174, %c0_175] : memref<4x48x32xbf16, #tpu.memory_space<vmem>>, vector<1x48x32xbf16>
    %257 = vector.shape_cast %256 : vector<1x48x32xbf16> to vector<48x32xbf16>
    %cst_176 = arith.constant dense<0.000000e+00> : vector<15x32xf32>
    %258 = tpu.matmul %255, %257, %cst_176 {dimension_numbers = #tpu.dot_dimension_numbers<[1], [0], [0], [1], [0, 0, 1, 1], [], []>} : vector<15x48xbf16>, vector<48x32xbf16>, vector<15x32xf32> -> vector<15x32xf32>
    %259 = arith.addf %252, %258 : vector<15x32xf32>
    %260 = vector.extract_strided_slice %254 {offsets = [1, 0], sizes = [15, 48], strides = [1, 1]} : vector<16x48xbf16> to vector<15x48xbf16>
    %c3_177 = arith.constant 3 : index
    %c0_178 = arith.constant 0 : index
    %c0_179 = arith.constant 0 : index
    %261 = vector.load %arg2[%c3_177, %c0_178, %c0_179] : memref<4x48x32xbf16, #tpu.memory_space<vmem>>, vector<1x48x32xbf16>
    %262 = vector.shape_cast %261 : vector<1x48x32xbf16> to vector<48x32xbf16>
    %cst_180 = arith.constant dense<0.000000e+00> : vector<15x32xf32>
    %263 = tpu.matmul %260, %262, %cst_180 {dimension_numbers = #tpu.dot_dimension_numbers<[1], [0], [0], [1], [0, 0, 1, 1], [], []>} : vector<15x48xbf16>, vector<48x32xbf16>, vector<15x32xf32> -> vector<15x32xf32>
    %264 = arith.addf %259, %263 : vector<15x32xf32>
    %c0_181 = arith.constant 0 : index
    %c0_182 = arith.constant 0 : index
    %265 = vector.load %arg3[%c0_181, %c0_182] : memref<1x32xf32, #tpu.memory_space<vmem>>, vector<1x32xf32>
    %266 = vector.broadcast %265 : vector<1x32xf32> to vector<15x32xf32>
    %267 = arith.addf %264, %266 : vector<15x32xf32>
    %cst_183 = arith.constant 0.000000e+00 : f32
    %268 = vector.broadcast %cst_183 : f32 to vector<15x32xf32>
    %269 = arith.maximumf %267, %268 : vector<15x32xf32>
    %270 = arith.truncf %269 : vector<15x32xf32> to vector<15x32xbf16>
    %c0_184 = arith.constant 0 : index
    %c7 = arith.constant 7 : index
    %c0_185 = arith.constant 0 : index
    %c0_186 = arith.constant 0 : index
    %271 = vector.load %arg4[%c0_184, %c7, %c0_185, %c0_186] : memref<1x15x15x32xbf16, #tpu.memory_space<vmem>>, vector<1x1x15x32xbf16>
    %272 = vector.shape_cast %271 : vector<1x1x15x32xbf16> to vector<15x32xbf16>
    %273 = vector.shape_cast %270 : vector<15x32xbf16> to vector<1x1x15x32xbf16>
    tpu.vector_store %arg4[%c0_184, %c7, %c0_185, %c0_186], %273 {strides = array<i32>} : memref<1x15x15x32xbf16, #tpu.memory_space<vmem>>, vector<1x1x15x32xbf16>,
    %cst_187 = arith.constant 0.000000e+00 : f32
    %274 = vector.broadcast %cst_187 : f32 to vector<15x32xf32>
    %275 = vector.extract_strided_slice %1 {offsets = [8, 0, 0], sizes = [1, 16, 48], strides = [1, 1, 1]} : vector<16x16x48xbf16> to vector<1x16x48xbf16>
    %276 = vector.shape_cast %275 : vector<1x16x48xbf16> to vector<16x48xbf16>
    %277 = vector.extract_strided_slice %276 {offsets = [0, 0], sizes = [15, 48], strides = [1, 1]} : vector<16x48xbf16> to vector<15x48xbf16>
    %c0_188 = arith.constant 0 : index
    %c0_189 = arith.constant 0 : index
    %c0_190 = arith.constant 0 : index
    %278 = vector.load %arg2[%c0_188, %c0_189, %c0_190] : memref<4x48x32xbf16, #tpu.memory_space<vmem>>, vector<1x48x32xbf16>
    %279 = vector.shape_cast %278 : vector<1x48x32xbf16> to vector<48x32xbf16>
    %cst_191 = arith.constant dense<0.000000e+00> : vector<15x32xf32>
    %280 = tpu.matmul %277, %279, %cst_191 {dimension_numbers = #tpu.dot_dimension_numbers<[1], [0], [0], [1], [0, 0, 1, 1], [], []>} : vector<15x48xbf16>, vector<48x32xbf16>, vector<15x32xf32> -> vector<15x32xf32>
    %281 = arith.addf %274, %280 : vector<15x32xf32>
    %282 = vector.extract_strided_slice %276 {offsets = [1, 0], sizes = [15, 48], strides = [1, 1]} : vector<16x48xbf16> to vector<15x48xbf16>
    %c1_192 = arith.constant 1 : index
    %c0_193 = arith.constant 0 : index
    %c0_194 = arith.constant 0 : index
    %283 = vector.load %arg2[%c1_192, %c0_193, %c0_194] : memref<4x48x32xbf16, #tpu.memory_space<vmem>>, vector<1x48x32xbf16>
    %284 = vector.shape_cast %283 : vector<1x48x32xbf16> to vector<48x32xbf16>
    %cst_195 = arith.constant dense<0.000000e+00> : vector<15x32xf32>
    %285 = tpu.matmul %282, %284, %cst_195 {dimension_numbers = #tpu.dot_dimension_numbers<[1], [0], [0], [1], [0, 0, 1, 1], [], []>} : vector<15x48xbf16>, vector<48x32xbf16>, vector<15x32xf32> -> vector<15x32xf32>
    %286 = arith.addf %281, %285 : vector<15x32xf32>
    %287 = vector.extract_strided_slice %1 {offsets = [9, 0, 0], sizes = [1, 16, 48], strides = [1, 1, 1]} : vector<16x16x48xbf16> to vector<1x16x48xbf16>
    %288 = vector.shape_cast %287 : vector<1x16x48xbf16> to vector<16x48xbf16>
    %289 = vector.extract_strided_slice %288 {offsets = [0, 0], sizes = [15, 48], strides = [1, 1]} : vector<16x48xbf16> to vector<15x48xbf16>
    %c2_196 = arith.constant 2 : index
    %c0_197 = arith.constant 0 : index
    %c0_198 = arith.constant 0 : index
    %290 = vector.load %arg2[%c2_196, %c0_197, %c0_198] : memref<4x48x32xbf16, #tpu.memory_space<vmem>>, vector<1x48x32xbf16>
    %291 = vector.shape_cast %290 : vector<1x48x32xbf16> to vector<48x32xbf16>
    %cst_199 = arith.constant dense<0.000000e+00> : vector<15x32xf32>
    %292 = tpu.matmul %289, %291, %cst_199 {dimension_numbers = #tpu.dot_dimension_numbers<[1], [0], [0], [1], [0, 0, 1, 1], [], []>} : vector<15x48xbf16>, vector<48x32xbf16>, vector<15x32xf32> -> vector<15x32xf32>
    %293 = arith.addf %286, %292 : vector<15x32xf32>
    %294 = vector.extract_strided_slice %288 {offsets = [1, 0], sizes = [15, 48], strides = [1, 1]} : vector<16x48xbf16> to vector<15x48xbf16>
    %c3_200 = arith.constant 3 : index
    %c0_201 = arith.constant 0 : index
    %c0_202 = arith.constant 0 : index
    %295 = vector.load %arg2[%c3_200, %c0_201, %c0_202] : memref<4x48x32xbf16, #tpu.memory_space<vmem>>, vector<1x48x32xbf16>
    %296 = vector.shape_cast %295 : vector<1x48x32xbf16> to vector<48x32xbf16>
    %cst_203 = arith.constant dense<0.000000e+00> : vector<15x32xf32>
    %297 = tpu.matmul %294, %296, %cst_203 {dimension_numbers = #tpu.dot_dimension_numbers<[1], [0], [0], [1], [0, 0, 1, 1], [], []>} : vector<15x48xbf16>, vector<48x32xbf16>, vector<15x32xf32> -> vector<15x32xf32>
    %298 = arith.addf %293, %297 : vector<15x32xf32>
    %c0_204 = arith.constant 0 : index
    %c0_205 = arith.constant 0 : index
    %299 = vector.load %arg3[%c0_204, %c0_205] : memref<1x32xf32, #tpu.memory_space<vmem>>, vector<1x32xf32>
    %300 = vector.broadcast %299 : vector<1x32xf32> to vector<15x32xf32>
    %301 = arith.addf %298, %300 : vector<15x32xf32>
    %cst_206 = arith.constant 0.000000e+00 : f32
    %302 = vector.broadcast %cst_206 : f32 to vector<15x32xf32>
    %303 = arith.maximumf %301, %302 : vector<15x32xf32>
    %304 = arith.truncf %303 : vector<15x32xf32> to vector<15x32xbf16>
    %c0_207 = arith.constant 0 : index
    %c8 = arith.constant 8 : index
    %c0_208 = arith.constant 0 : index
    %c0_209 = arith.constant 0 : index
    %305 = vector.load %arg4[%c0_207, %c8, %c0_208, %c0_209] : memref<1x15x15x32xbf16, #tpu.memory_space<vmem>>, vector<1x1x15x32xbf16>
    %306 = vector.shape_cast %305 : vector<1x1x15x32xbf16> to vector<15x32xbf16>
    %307 = vector.shape_cast %304 : vector<15x32xbf16> to vector<1x1x15x32xbf16>
    tpu.vector_store %arg4[%c0_207, %c8, %c0_208, %c0_209], %307 {strides = array<i32>} : memref<1x15x15x32xbf16, #tpu.memory_space<vmem>>, vector<1x1x15x32xbf16>,
    %cst_210 = arith.constant 0.000000e+00 : f32
    %308 = vector.broadcast %cst_210 : f32 to vector<15x32xf32>
    %309 = vector.extract_strided_slice %1 {offsets = [9, 0, 0], sizes = [1, 16, 48], strides = [1, 1, 1]} : vector<16x16x48xbf16> to vector<1x16x48xbf16>
    %310 = vector.shape_cast %309 : vector<1x16x48xbf16> to vector<16x48xbf16>
    %311 = vector.extract_strided_slice %310 {offsets = [0, 0], sizes = [15, 48], strides = [1, 1]} : vector<16x48xbf16> to vector<15x48xbf16>
    %c0_211 = arith.constant 0 : index
    %c0_212 = arith.constant 0 : index
    %c0_213 = arith.constant 0 : index
    %312 = vector.load %arg2[%c0_211, %c0_212, %c0_213] : memref<4x48x32xbf16, #tpu.memory_space<vmem>>, vector<1x48x32xbf16>
    %313 = vector.shape_cast %312 : vector<1x48x32xbf16> to vector<48x32xbf16>
    %cst_214 = arith.constant dense<0.000000e+00> : vector<15x32xf32>
    %314 = tpu.matmul %311, %313, %cst_214 {dimension_numbers = #tpu.dot_dimension_numbers<[1], [0], [0], [1], [0, 0, 1, 1], [], []>} : vector<15x48xbf16>, vector<48x32xbf16>, vector<15x32xf32> -> vector<15x32xf32>
    %315 = arith.addf %308, %314 : vector<15x32xf32>
    %316 = vector.extract_strided_slice %310 {offsets = [1, 0], sizes = [15, 48], strides = [1, 1]} : vector<16x48xbf16> to vector<15x48xbf16>
    %c1_215 = arith.constant 1 : index
    %c0_216 = arith.constant 0 : index
    %c0_217 = arith.constant 0 : index
    %317 = vector.load %arg2[%c1_215, %c0_216, %c0_217] : memref<4x48x32xbf16, #tpu.memory_space<vmem>>, vector<1x48x32xbf16>
    %318 = vector.shape_cast %317 : vector<1x48x32xbf16> to vector<48x32xbf16>
    %cst_218 = arith.constant dense<0.000000e+00> : vector<15x32xf32>
    %319 = tpu.matmul %316, %318, %cst_218 {dimension_numbers = #tpu.dot_dimension_numbers<[1], [0], [0], [1], [0, 0, 1, 1], [], []>} : vector<15x48xbf16>, vector<48x32xbf16>, vector<15x32xf32> -> vector<15x32xf32>
    %320 = arith.addf %315, %319 : vector<15x32xf32>
    %321 = vector.extract_strided_slice %1 {offsets = [10, 0, 0], sizes = [1, 16, 48], strides = [1, 1, 1]} : vector<16x16x48xbf16> to vector<1x16x48xbf16>
    %322 = vector.shape_cast %321 : vector<1x16x48xbf16> to vector<16x48xbf16>
    %323 = vector.extract_strided_slice %322 {offsets = [0, 0], sizes = [15, 48], strides = [1, 1]} : vector<16x48xbf16> to vector<15x48xbf16>
    %c2_219 = arith.constant 2 : index
    %c0_220 = arith.constant 0 : index
    %c0_221 = arith.constant 0 : index
    %324 = vector.load %arg2[%c2_219, %c0_220, %c0_221] : memref<4x48x32xbf16, #tpu.memory_space<vmem>>, vector<1x48x32xbf16>
    %325 = vector.shape_cast %324 : vector<1x48x32xbf16> to vector<48x32xbf16>
    %cst_222 = arith.constant dense<0.000000e+00> : vector<15x32xf32>
    %326 = tpu.matmul %323, %325, %cst_222 {dimension_numbers = #tpu.dot_dimension_numbers<[1], [0], [0], [1], [0, 0, 1, 1], [], []>} : vector<15x48xbf16>, vector<48x32xbf16>, vector<15x32xf32> -> vector<15x32xf32>
    %327 = arith.addf %320, %326 : vector<15x32xf32>
    %328 = vector.extract_strided_slice %322 {offsets = [1, 0], sizes = [15, 48], strides = [1, 1]} : vector<16x48xbf16> to vector<15x48xbf16>
    %c3_223 = arith.constant 3 : index
    %c0_224 = arith.constant 0 : index
    %c0_225 = arith.constant 0 : index
    %329 = vector.load %arg2[%c3_223, %c0_224, %c0_225] : memref<4x48x32xbf16, #tpu.memory_space<vmem>>, vector<1x48x32xbf16>
    %330 = vector.shape_cast %329 : vector<1x48x32xbf16> to vector<48x32xbf16>
    %cst_226 = arith.constant dense<0.000000e+00> : vector<15x32xf32>
    %331 = tpu.matmul %328, %330, %cst_226 {dimension_numbers = #tpu.dot_dimension_numbers<[1], [0], [0], [1], [0, 0, 1, 1], [], []>} : vector<15x48xbf16>, vector<48x32xbf16>, vector<15x32xf32> -> vector<15x32xf32>
    %332 = arith.addf %327, %331 : vector<15x32xf32>
    %c0_227 = arith.constant 0 : index
    %c0_228 = arith.constant 0 : index
    %333 = vector.load %arg3[%c0_227, %c0_228] : memref<1x32xf32, #tpu.memory_space<vmem>>, vector<1x32xf32>
    %334 = vector.broadcast %333 : vector<1x32xf32> to vector<15x32xf32>
    %335 = arith.addf %332, %334 : vector<15x32xf32>
    %cst_229 = arith.constant 0.000000e+00 : f32
    %336 = vector.broadcast %cst_229 : f32 to vector<15x32xf32>
    %337 = arith.maximumf %335, %336 : vector<15x32xf32>
    %338 = arith.truncf %337 : vector<15x32xf32> to vector<15x32xbf16>
    %c0_230 = arith.constant 0 : index
    %c9 = arith.constant 9 : index
    %c0_231 = arith.constant 0 : index
    %c0_232 = arith.constant 0 : index
    %339 = vector.load %arg4[%c0_230, %c9, %c0_231, %c0_232] : memref<1x15x15x32xbf16, #tpu.memory_space<vmem>>, vector<1x1x15x32xbf16>
    %340 = vector.shape_cast %339 : vector<1x1x15x32xbf16> to vector<15x32xbf16>
    %341 = vector.shape_cast %338 : vector<15x32xbf16> to vector<1x1x15x32xbf16>
    tpu.vector_store %arg4[%c0_230, %c9, %c0_231, %c0_232], %341 {strides = array<i32>} : memref<1x15x15x32xbf16, #tpu.memory_space<vmem>>, vector<1x1x15x32xbf16>,
    %cst_233 = arith.constant 0.000000e+00 : f32
    %342 = vector.broadcast %cst_233 : f32 to vector<15x32xf32>
    %343 = vector.extract_strided_slice %1 {offsets = [10, 0, 0], sizes = [1, 16, 48], strides = [1, 1, 1]} : vector<16x16x48xbf16> to vector<1x16x48xbf16>
    %344 = vector.shape_cast %343 : vector<1x16x48xbf16> to vector<16x48xbf16>
    %345 = vector.extract_strided_slice %344 {offsets = [0, 0], sizes = [15, 48], strides = [1, 1]} : vector<16x48xbf16> to vector<15x48xbf16>
    %c0_234 = arith.constant 0 : index
    %c0_235 = arith.constant 0 : index
    %c0_236 = arith.constant 0 : index
    %346 = vector.load %arg2[%c0_234, %c0_235, %c0_236] : memref<4x48x32xbf16, #tpu.memory_space<vmem>>, vector<1x48x32xbf16>
    %347 = vector.shape_cast %346 : vector<1x48x32xbf16> to vector<48x32xbf16>
    %cst_237 = arith.constant dense<0.000000e+00> : vector<15x32xf32>
    %348 = tpu.matmul %345, %347, %cst_237 {dimension_numbers = #tpu.dot_dimension_numbers<[1], [0], [0], [1], [0, 0, 1, 1], [], []>} : vector<15x48xbf16>, vector<48x32xbf16>, vector<15x32xf32> -> vector<15x32xf32>
    %349 = arith.addf %342, %348 : vector<15x32xf32>
    %350 = vector.extract_strided_slice %344 {offsets = [1, 0], sizes = [15, 48], strides = [1, 1]} : vector<16x48xbf16> to vector<15x48xbf16>
    %c1_238 = arith.constant 1 : index
    %c0_239 = arith.constant 0 : index
    %c0_240 = arith.constant 0 : index
    %351 = vector.load %arg2[%c1_238, %c0_239, %c0_240] : memref<4x48x32xbf16, #tpu.memory_space<vmem>>, vector<1x48x32xbf16>
    %352 = vector.shape_cast %351 : vector<1x48x32xbf16> to vector<48x32xbf16>
    %cst_241 = arith.constant dense<0.000000e+00> : vector<15x32xf32>
    %353 = tpu.matmul %350, %352, %cst_241 {dimension_numbers = #tpu.dot_dimension_numbers<[1], [0], [0], [1], [0, 0, 1, 1], [], []>} : vector<15x48xbf16>, vector<48x32xbf16>, vector<15x32xf32> -> vector<15x32xf32>
    %354 = arith.addf %349, %353 : vector<15x32xf32>
    %355 = vector.extract_strided_slice %1 {offsets = [11, 0, 0], sizes = [1, 16, 48], strides = [1, 1, 1]} : vector<16x16x48xbf16> to vector<1x16x48xbf16>
    %356 = vector.shape_cast %355 : vector<1x16x48xbf16> to vector<16x48xbf16>
    %357 = vector.extract_strided_slice %356 {offsets = [0, 0], sizes = [15, 48], strides = [1, 1]} : vector<16x48xbf16> to vector<15x48xbf16>
    %c2_242 = arith.constant 2 : index
    %c0_243 = arith.constant 0 : index
    %c0_244 = arith.constant 0 : index
    %358 = vector.load %arg2[%c2_242, %c0_243, %c0_244] : memref<4x48x32xbf16, #tpu.memory_space<vmem>>, vector<1x48x32xbf16>
    %359 = vector.shape_cast %358 : vector<1x48x32xbf16> to vector<48x32xbf16>
    %cst_245 = arith.constant dense<0.000000e+00> : vector<15x32xf32>
    %360 = tpu.matmul %357, %359, %cst_245 {dimension_numbers = #tpu.dot_dimension_numbers<[1], [0], [0], [1], [0, 0, 1, 1], [], []>} : vector<15x48xbf16>, vector<48x32xbf16>, vector<15x32xf32> -> vector<15x32xf32>
    %361 = arith.addf %354, %360 : vector<15x32xf32>
    %362 = vector.extract_strided_slice %356 {offsets = [1, 0], sizes = [15, 48], strides = [1, 1]} : vector<16x48xbf16> to vector<15x48xbf16>
    %c3_246 = arith.constant 3 : index
    %c0_247 = arith.constant 0 : index
    %c0_248 = arith.constant 0 : index
    %363 = vector.load %arg2[%c3_246, %c0_247, %c0_248] : memref<4x48x32xbf16, #tpu.memory_space<vmem>>, vector<1x48x32xbf16>
    %364 = vector.shape_cast %363 : vector<1x48x32xbf16> to vector<48x32xbf16>
    %cst_249 = arith.constant dense<0.000000e+00> : vector<15x32xf32>
    %365 = tpu.matmul %362, %364, %cst_249 {dimension_numbers = #tpu.dot_dimension_numbers<[1], [0], [0], [1], [0, 0, 1, 1], [], []>} : vector<15x48xbf16>, vector<48x32xbf16>, vector<15x32xf32> -> vector<15x32xf32>
    %366 = arith.addf %361, %365 : vector<15x32xf32>
    %c0_250 = arith.constant 0 : index
    %c0_251 = arith.constant 0 : index
    %367 = vector.load %arg3[%c0_250, %c0_251] : memref<1x32xf32, #tpu.memory_space<vmem>>, vector<1x32xf32>
    %368 = vector.broadcast %367 : vector<1x32xf32> to vector<15x32xf32>
    %369 = arith.addf %366, %368 : vector<15x32xf32>
    %cst_252 = arith.constant 0.000000e+00 : f32
    %370 = vector.broadcast %cst_252 : f32 to vector<15x32xf32>
    %371 = arith.maximumf %369, %370 : vector<15x32xf32>
    %372 = arith.truncf %371 : vector<15x32xf32> to vector<15x32xbf16>
    %c0_253 = arith.constant 0 : index
    %c10 = arith.constant 10 : index
    %c0_254 = arith.constant 0 : index
    %c0_255 = arith.constant 0 : index
    %373 = vector.load %arg4[%c0_253, %c10, %c0_254, %c0_255] : memref<1x15x15x32xbf16, #tpu.memory_space<vmem>>, vector<1x1x15x32xbf16>
    %374 = vector.shape_cast %373 : vector<1x1x15x32xbf16> to vector<15x32xbf16>
    %375 = vector.shape_cast %372 : vector<15x32xbf16> to vector<1x1x15x32xbf16>
    tpu.vector_store %arg4[%c0_253, %c10, %c0_254, %c0_255], %375 {strides = array<i32>} : memref<1x15x15x32xbf16, #tpu.memory_space<vmem>>, vector<1x1x15x32xbf16>,
    %cst_256 = arith.constant 0.000000e+00 : f32
    %376 = vector.broadcast %cst_256 : f32 to vector<15x32xf32>
    %377 = vector.extract_strided_slice %1 {offsets = [11, 0, 0], sizes = [1, 16, 48], strides = [1, 1, 1]} : vector<16x16x48xbf16> to vector<1x16x48xbf16>
    %378 = vector.shape_cast %377 : vector<1x16x48xbf16> to vector<16x48xbf16>
    %379 = vector.extract_strided_slice %378 {offsets = [0, 0], sizes = [15, 48], strides = [1, 1]} : vector<16x48xbf16> to vector<15x48xbf16>
    %c0_257 = arith.constant 0 : index
    %c0_258 = arith.constant 0 : index
    %c0_259 = arith.constant 0 : index
    %380 = vector.load %arg2[%c0_257, %c0_258, %c0_259] : memref<4x48x32xbf16, #tpu.memory_space<vmem>>, vector<1x48x32xbf16>
    %381 = vector.shape_cast %380 : vector<1x48x32xbf16> to vector<48x32xbf16>
    %cst_260 = arith.constant dense<0.000000e+00> : vector<15x32xf32>
    %382 = tpu.matmul %379, %381, %cst_260 {dimension_numbers = #tpu.dot_dimension_numbers<[1], [0], [0], [1], [0, 0, 1, 1], [], []>} : vector<15x48xbf16>, vector<48x32xbf16>, vector<15x32xf32> -> vector<15x32xf32>
    %383 = arith.addf %376, %382 : vector<15x32xf32>
    %384 = vector.extract_strided_slice %378 {offsets = [1, 0], sizes = [15, 48], strides = [1, 1]} : vector<16x48xbf16> to vector<15x48xbf16>
    %c1_261 = arith.constant 1 : index
    %c0_262 = arith.constant 0 : index
    %c0_263 = arith.constant 0 : index
    %385 = vector.load %arg2[%c1_261, %c0_262, %c0_263] : memref<4x48x32xbf16, #tpu.memory_space<vmem>>, vector<1x48x32xbf16>
    %386 = vector.shape_cast %385 : vector<1x48x32xbf16> to vector<48x32xbf16>
    %cst_264 = arith.constant dense<0.000000e+00> : vector<15x32xf32>
    %387 = tpu.matmul %384, %386, %cst_264 {dimension_numbers = #tpu.dot_dimension_numbers<[1], [0], [0], [1], [0, 0, 1, 1], [], []>} : vector<15x48xbf16>, vector<48x32xbf16>, vector<15x32xf32> -> vector<15x32xf32>
    %388 = arith.addf %383, %387 : vector<15x32xf32>
    %389 = vector.extract_strided_slice %1 {offsets = [12, 0, 0], sizes = [1, 16, 48], strides = [1, 1, 1]} : vector<16x16x48xbf16> to vector<1x16x48xbf16>
    %390 = vector.shape_cast %389 : vector<1x16x48xbf16> to vector<16x48xbf16>
    %391 = vector.extract_strided_slice %390 {offsets = [0, 0], sizes = [15, 48], strides = [1, 1]} : vector<16x48xbf16> to vector<15x48xbf16>
    %c2_265 = arith.constant 2 : index
    %c0_266 = arith.constant 0 : index
    %c0_267 = arith.constant 0 : index
    %392 = vector.load %arg2[%c2_265, %c0_266, %c0_267] : memref<4x48x32xbf16, #tpu.memory_space<vmem>>, vector<1x48x32xbf16>
    %393 = vector.shape_cast %392 : vector<1x48x32xbf16> to vector<48x32xbf16>
    %cst_268 = arith.constant dense<0.000000e+00> : vector<15x32xf32>
    %394 = tpu.matmul %391, %393, %cst_268 {dimension_numbers = #tpu.dot_dimension_numbers<[1], [0], [0], [1], [0, 0, 1, 1], [], []>} : vector<15x48xbf16>, vector<48x32xbf16>, vector<15x32xf32> -> vector<15x32xf32>
    %395 = arith.addf %388, %394 : vector<15x32xf32>
    %396 = vector.extract_strided_slice %390 {offsets = [1, 0], sizes = [15, 48], strides = [1, 1]} : vector<16x48xbf16> to vector<15x48xbf16>
    %c3_269 = arith.constant 3 : index
    %c0_270 = arith.constant 0 : index
    %c0_271 = arith.constant 0 : index
    %397 = vector.load %arg2[%c3_269, %c0_270, %c0_271] : memref<4x48x32xbf16, #tpu.memory_space<vmem>>, vector<1x48x32xbf16>
    %398 = vector.shape_cast %397 : vector<1x48x32xbf16> to vector<48x32xbf16>
    %cst_272 = arith.constant dense<0.000000e+00> : vector<15x32xf32>
    %399 = tpu.matmul %396, %398, %cst_272 {dimension_numbers = #tpu.dot_dimension_numbers<[1], [0], [0], [1], [0, 0, 1, 1], [], []>} : vector<15x48xbf16>, vector<48x32xbf16>, vector<15x32xf32> -> vector<15x32xf32>
    %400 = arith.addf %395, %399 : vector<15x32xf32>
    %c0_273 = arith.constant 0 : index
    %c0_274 = arith.constant 0 : index
    %401 = vector.load %arg3[%c0_273, %c0_274] : memref<1x32xf32, #tpu.memory_space<vmem>>, vector<1x32xf32>
    %402 = vector.broadcast %401 : vector<1x32xf32> to vector<15x32xf32>
    %403 = arith.addf %400, %402 : vector<15x32xf32>
    %cst_275 = arith.constant 0.000000e+00 : f32
    %404 = vector.broadcast %cst_275 : f32 to vector<15x32xf32>
    %405 = arith.maximumf %403, %404 : vector<15x32xf32>
    %406 = arith.truncf %405 : vector<15x32xf32> to vector<15x32xbf16>
    %c0_276 = arith.constant 0 : index
    %c11 = arith.constant 11 : index
    %c0_277 = arith.constant 0 : index
    %c0_278 = arith.constant 0 : index
    %407 = vector.load %arg4[%c0_276, %c11, %c0_277, %c0_278] : memref<1x15x15x32xbf16, #tpu.memory_space<vmem>>, vector<1x1x15x32xbf16>
    %408 = vector.shape_cast %407 : vector<1x1x15x32xbf16> to vector<15x32xbf16>
    %409 = vector.shape_cast %406 : vector<15x32xbf16> to vector<1x1x15x32xbf16>
    tpu.vector_store %arg4[%c0_276, %c11, %c0_277, %c0_278], %409 {strides = array<i32>} : memref<1x15x15x32xbf16, #tpu.memory_space<vmem>>, vector<1x1x15x32xbf16>,
    %cst_279 = arith.constant 0.000000e+00 : f32
    %410 = vector.broadcast %cst_279 : f32 to vector<15x32xf32>
    %411 = vector.extract_strided_slice %1 {offsets = [12, 0, 0], sizes = [1, 16, 48], strides = [1, 1, 1]} : vector<16x16x48xbf16> to vector<1x16x48xbf16>
    %412 = vector.shape_cast %411 : vector<1x16x48xbf16> to vector<16x48xbf16>
    %413 = vector.extract_strided_slice %412 {offsets = [0, 0], sizes = [15, 48], strides = [1, 1]} : vector<16x48xbf16> to vector<15x48xbf16>
    %c0_280 = arith.constant 0 : index
    %c0_281 = arith.constant 0 : index
    %c0_282 = arith.constant 0 : index
    %414 = vector.load %arg2[%c0_280, %c0_281, %c0_282] : memref<4x48x32xbf16, #tpu.memory_space<vmem>>, vector<1x48x32xbf16>
    %415 = vector.shape_cast %414 : vector<1x48x32xbf16> to vector<48x32xbf16>
    %cst_283 = arith.constant dense<0.000000e+00> : vector<15x32xf32>
    %416 = tpu.matmul %413, %415, %cst_283 {dimension_numbers = #tpu.dot_dimension_numbers<[1], [0], [0], [1], [0, 0, 1, 1], [], []>} : vector<15x48xbf16>, vector<48x32xbf16>, vector<15x32xf32> -> vector<15x32xf32>
    %417 = arith.addf %410, %416 : vector<15x32xf32>
    %418 = vector.extract_strided_slice %412 {offsets = [1, 0], sizes = [15, 48], strides = [1, 1]} : vector<16x48xbf16> to vector<15x48xbf16>
    %c1_284 = arith.constant 1 : index
    %c0_285 = arith.constant 0 : index
    %c0_286 = arith.constant 0 : index
    %419 = vector.load %arg2[%c1_284, %c0_285, %c0_286] : memref<4x48x32xbf16, #tpu.memory_space<vmem>>, vector<1x48x32xbf16>
    %420 = vector.shape_cast %419 : vector<1x48x32xbf16> to vector<48x32xbf16>
    %cst_287 = arith.constant dense<0.000000e+00> : vector<15x32xf32>
    %421 = tpu.matmul %418, %420, %cst_287 {dimension_numbers = #tpu.dot_dimension_numbers<[1], [0], [0], [1], [0, 0, 1, 1], [], []>} : vector<15x48xbf16>, vector<48x32xbf16>, vector<15x32xf32> -> vector<15x32xf32>
    %422 = arith.addf %417, %421 : vector<15x32xf32>
    %423 = vector.extract_strided_slice %1 {offsets = [13, 0, 0], sizes = [1, 16, 48], strides = [1, 1, 1]} : vector<16x16x48xbf16> to vector<1x16x48xbf16>
    %424 = vector.shape_cast %423 : vector<1x16x48xbf16> to vector<16x48xbf16>
    %425 = vector.extract_strided_slice %424 {offsets = [0, 0], sizes = [15, 48], strides = [1, 1]} : vector<16x48xbf16> to vector<15x48xbf16>
    %c2_288 = arith.constant 2 : index
    %c0_289 = arith.constant 0 : index
    %c0_290 = arith.constant 0 : index
    %426 = vector.load %arg2[%c2_288, %c0_289, %c0_290] : memref<4x48x32xbf16, #tpu.memory_space<vmem>>, vector<1x48x32xbf16>
    %427 = vector.shape_cast %426 : vector<1x48x32xbf16> to vector<48x32xbf16>
    %cst_291 = arith.constant dense<0.000000e+00> : vector<15x32xf32>
    %428 = tpu.matmul %425, %427, %cst_291 {dimension_numbers = #tpu.dot_dimension_numbers<[1], [0], [0], [1], [0, 0, 1, 1], [], []>} : vector<15x48xbf16>, vector<48x32xbf16>, vector<15x32xf32> -> vector<15x32xf32>
    %429 = arith.addf %422, %428 : vector<15x32xf32>
    %430 = vector.extract_strided_slice %424 {offsets = [1, 0], sizes = [15, 48], strides = [1, 1]} : vector<16x48xbf16> to vector<15x48xbf16>
    %c3_292 = arith.constant 3 : index
    %c0_293 = arith.constant 0 : index
    %c0_294 = arith.constant 0 : index
    %431 = vector.load %arg2[%c3_292, %c0_293, %c0_294] : memref<4x48x32xbf16, #tpu.memory_space<vmem>>, vector<1x48x32xbf16>
    %432 = vector.shape_cast %431 : vector<1x48x32xbf16> to vector<48x32xbf16>
    %cst_295 = arith.constant dense<0.000000e+00> : vector<15x32xf32>
    %433 = tpu.matmul %430, %432, %cst_295 {dimension_numbers = #tpu.dot_dimension_numbers<[1], [0], [0], [1], [0, 0, 1, 1], [], []>} : vector<15x48xbf16>, vector<48x32xbf16>, vector<15x32xf32> -> vector<15x32xf32>
    %434 = arith.addf %429, %433 : vector<15x32xf32>
    %c0_296 = arith.constant 0 : index
    %c0_297 = arith.constant 0 : index
    %435 = vector.load %arg3[%c0_296, %c0_297] : memref<1x32xf32, #tpu.memory_space<vmem>>, vector<1x32xf32>
    %436 = vector.broadcast %435 : vector<1x32xf32> to vector<15x32xf32>
    %437 = arith.addf %434, %436 : vector<15x32xf32>
    %cst_298 = arith.constant 0.000000e+00 : f32
    %438 = vector.broadcast %cst_298 : f32 to vector<15x32xf32>
    %439 = arith.maximumf %437, %438 : vector<15x32xf32>
    %440 = arith.truncf %439 : vector<15x32xf32> to vector<15x32xbf16>
    %c0_299 = arith.constant 0 : index
    %c12 = arith.constant 12 : index
    %c0_300 = arith.constant 0 : index
    %c0_301 = arith.constant 0 : index
    %441 = vector.load %arg4[%c0_299, %c12, %c0_300, %c0_301] : memref<1x15x15x32xbf16, #tpu.memory_space<vmem>>, vector<1x1x15x32xbf16>
    %442 = vector.shape_cast %441 : vector<1x1x15x32xbf16> to vector<15x32xbf16>
    %443 = vector.shape_cast %440 : vector<15x32xbf16> to vector<1x1x15x32xbf16>
    tpu.vector_store %arg4[%c0_299, %c12, %c0_300, %c0_301], %443 {strides = array<i32>} : memref<1x15x15x32xbf16, #tpu.memory_space<vmem>>, vector<1x1x15x32xbf16>,
    %cst_302 = arith.constant 0.000000e+00 : f32
    %444 = vector.broadcast %cst_302 : f32 to vector<15x32xf32>
    %445 = vector.extract_strided_slice %1 {offsets = [13, 0, 0], sizes = [1, 16, 48], strides = [1, 1, 1]} : vector<16x16x48xbf16> to vector<1x16x48xbf16>
    %446 = vector.shape_cast %445 : vector<1x16x48xbf16> to vector<16x48xbf16>
    %447 = vector.extract_strided_slice %446 {offsets = [0, 0], sizes = [15, 48], strides = [1, 1]} : vector<16x48xbf16> to vector<15x48xbf16>
    %c0_303 = arith.constant 0 : index
    %c0_304 = arith.constant 0 : index
    %c0_305 = arith.constant 0 : index
    %448 = vector.load %arg2[%c0_303, %c0_304, %c0_305] : memref<4x48x32xbf16, #tpu.memory_space<vmem>>, vector<1x48x32xbf16>
    %449 = vector.shape_cast %448 : vector<1x48x32xbf16> to vector<48x32xbf16>
    %cst_306 = arith.constant dense<0.000000e+00> : vector<15x32xf32>
    %450 = tpu.matmul %447, %449, %cst_306 {dimension_numbers = #tpu.dot_dimension_numbers<[1], [0], [0], [1], [0, 0, 1, 1], [], []>} : vector<15x48xbf16>, vector<48x32xbf16>, vector<15x32xf32> -> vector<15x32xf32>
    %451 = arith.addf %444, %450 : vector<15x32xf32>
    %452 = vector.extract_strided_slice %446 {offsets = [1, 0], sizes = [15, 48], strides = [1, 1]} : vector<16x48xbf16> to vector<15x48xbf16>
    %c1_307 = arith.constant 1 : index
    %c0_308 = arith.constant 0 : index
    %c0_309 = arith.constant 0 : index
    %453 = vector.load %arg2[%c1_307, %c0_308, %c0_309] : memref<4x48x32xbf16, #tpu.memory_space<vmem>>, vector<1x48x32xbf16>
    %454 = vector.shape_cast %453 : vector<1x48x32xbf16> to vector<48x32xbf16>
    %cst_310 = arith.constant dense<0.000000e+00> : vector<15x32xf32>
    %455 = tpu.matmul %452, %454, %cst_310 {dimension_numbers = #tpu.dot_dimension_numbers<[1], [0], [0], [1], [0, 0, 1, 1], [], []>} : vector<15x48xbf16>, vector<48x32xbf16>, vector<15x32xf32> -> vector<15x32xf32>
    %456 = arith.addf %451, %455 : vector<15x32xf32>
    %457 = vector.extract_strided_slice %1 {offsets = [14, 0, 0], sizes = [1, 16, 48], strides = [1, 1, 1]} : vector<16x16x48xbf16> to vector<1x16x48xbf16>
    %458 = vector.shape_cast %457 : vector<1x16x48xbf16> to vector<16x48xbf16>
    %459 = vector.extract_strided_slice %458 {offsets = [0, 0], sizes = [15, 48], strides = [1, 1]} : vector<16x48xbf16> to vector<15x48xbf16>
    %c2_311 = arith.constant 2 : index
    %c0_312 = arith.constant 0 : index
    %c0_313 = arith.constant 0 : index
    %460 = vector.load %arg2[%c2_311, %c0_312, %c0_313] : memref<4x48x32xbf16, #tpu.memory_space<vmem>>, vector<1x48x32xbf16>
    %461 = vector.shape_cast %460 : vector<1x48x32xbf16> to vector<48x32xbf16>
    %cst_314 = arith.constant dense<0.000000e+00> : vector<15x32xf32>
    %462 = tpu.matmul %459, %461, %cst_314 {dimension_numbers = #tpu.dot_dimension_numbers<[1], [0], [0], [1], [0, 0, 1, 1], [], []>} : vector<15x48xbf16>, vector<48x32xbf16>, vector<15x32xf32> -> vector<15x32xf32>
    %463 = arith.addf %456, %462 : vector<15x32xf32>
    %464 = vector.extract_strided_slice %458 {offsets = [1, 0], sizes = [15, 48], strides = [1, 1]} : vector<16x48xbf16> to vector<15x48xbf16>
    %c3_315 = arith.constant 3 : index
    %c0_316 = arith.constant 0 : index
    %c0_317 = arith.constant 0 : index
    %465 = vector.load %arg2[%c3_315, %c0_316, %c0_317] : memref<4x48x32xbf16, #tpu.memory_space<vmem>>, vector<1x48x32xbf16>
    %466 = vector.shape_cast %465 : vector<1x48x32xbf16> to vector<48x32xbf16>
    %cst_318 = arith.constant dense<0.000000e+00> : vector<15x32xf32>
    %467 = tpu.matmul %464, %466, %cst_318 {dimension_numbers = #tpu.dot_dimension_numbers<[1], [0], [0], [1], [0, 0, 1, 1], [], []>} : vector<15x48xbf16>, vector<48x32xbf16>, vector<15x32xf32> -> vector<15x32xf32>
    %468 = arith.addf %463, %467 : vector<15x32xf32>
    %c0_319 = arith.constant 0 : index
    %c0_320 = arith.constant 0 : index
    %469 = vector.load %arg3[%c0_319, %c0_320] : memref<1x32xf32, #tpu.memory_space<vmem>>, vector<1x32xf32>
    %470 = vector.broadcast %469 : vector<1x32xf32> to vector<15x32xf32>
    %471 = arith.addf %468, %470 : vector<15x32xf32>
    %cst_321 = arith.constant 0.000000e+00 : f32
    %472 = vector.broadcast %cst_321 : f32 to vector<15x32xf32>
    %473 = arith.maximumf %471, %472 : vector<15x32xf32>
    %474 = arith.truncf %473 : vector<15x32xf32> to vector<15x32xbf16>
    %c0_322 = arith.constant 0 : index
    %c13 = arith.constant 13 : index
    %c0_323 = arith.constant 0 : index
    %c0_324 = arith.constant 0 : index
    %475 = vector.load %arg4[%c0_322, %c13, %c0_323, %c0_324] : memref<1x15x15x32xbf16, #tpu.memory_space<vmem>>, vector<1x1x15x32xbf16>
    %476 = vector.shape_cast %475 : vector<1x1x15x32xbf16> to vector<15x32xbf16>
    %477 = vector.shape_cast %474 : vector<15x32xbf16> to vector<1x1x15x32xbf16>
    tpu.vector_store %arg4[%c0_322, %c13, %c0_323, %c0_324], %477 {strides = array<i32>} : memref<1x15x15x32xbf16, #tpu.memory_space<vmem>>, vector<1x1x15x32xbf16>,
    %cst_325 = arith.constant 0.000000e+00 : f32
    %478 = vector.broadcast %cst_325 : f32 to vector<15x32xf32>
    %479 = vector.extract_strided_slice %1 {offsets = [14, 0, 0], sizes = [1, 16, 48], strides = [1, 1, 1]} : vector<16x16x48xbf16> to vector<1x16x48xbf16>
    %480 = vector.shape_cast %479 : vector<1x16x48xbf16> to vector<16x48xbf16>
    %481 = vector.extract_strided_slice %480 {offsets = [0, 0], sizes = [15, 48], strides = [1, 1]} : vector<16x48xbf16> to vector<15x48xbf16>
    %c0_326 = arith.constant 0 : index
    %c0_327 = arith.constant 0 : index
    %c0_328 = arith.constant 0 : index
    %482 = vector.load %arg2[%c0_326, %c0_327, %c0_328] : memref<4x48x32xbf16, #tpu.memory_space<vmem>>, vector<1x48x32xbf16>
    %483 = vector.shape_cast %482 : vector<1x48x32xbf16> to vector<48x32xbf16>
    %cst_329 = arith.constant dense<0.000000e+00> : vector<15x32xf32>
    %484 = tpu.matmul %481, %483, %cst_329 {dimension_numbers = #tpu.dot_dimension_numbers<[1], [0], [0], [1], [0, 0, 1, 1], [], []>} : vector<15x48xbf16>, vector<48x32xbf16>, vector<15x32xf32> -> vector<15x32xf32>
    %485 = arith.addf %478, %484 : vector<15x32xf32>
    %486 = vector.extract_strided_slice %480 {offsets = [1, 0], sizes = [15, 48], strides = [1, 1]} : vector<16x48xbf16> to vector<15x48xbf16>
    %c1_330 = arith.constant 1 : index
    %c0_331 = arith.constant 0 : index
    %c0_332 = arith.constant 0 : index
    %487 = vector.load %arg2[%c1_330, %c0_331, %c0_332] : memref<4x48x32xbf16, #tpu.memory_space<vmem>>, vector<1x48x32xbf16>
    %488 = vector.shape_cast %487 : vector<1x48x32xbf16> to vector<48x32xbf16>
    %cst_333 = arith.constant dense<0.000000e+00> : vector<15x32xf32>
    %489 = tpu.matmul %486, %488, %cst_333 {dimension_numbers = #tpu.dot_dimension_numbers<[1], [0], [0], [1], [0, 0, 1, 1], [], []>} : vector<15x48xbf16>, vector<48x32xbf16>, vector<15x32xf32> -> vector<15x32xf32>
    %490 = arith.addf %485, %489 : vector<15x32xf32>
    %491 = vector.extract_strided_slice %1 {offsets = [15, 0, 0], sizes = [1, 16, 48], strides = [1, 1, 1]} : vector<16x16x48xbf16> to vector<1x16x48xbf16>
    %492 = vector.shape_cast %491 : vector<1x16x48xbf16> to vector<16x48xbf16>
    %493 = vector.extract_strided_slice %492 {offsets = [0, 0], sizes = [15, 48], strides = [1, 1]} : vector<16x48xbf16> to vector<15x48xbf16>
    %c2_334 = arith.constant 2 : index
    %c0_335 = arith.constant 0 : index
    %c0_336 = arith.constant 0 : index
    %494 = vector.load %arg2[%c2_334, %c0_335, %c0_336] : memref<4x48x32xbf16, #tpu.memory_space<vmem>>, vector<1x48x32xbf16>
    %495 = vector.shape_cast %494 : vector<1x48x32xbf16> to vector<48x32xbf16>
    %cst_337 = arith.constant dense<0.000000e+00> : vector<15x32xf32>
    %496 = tpu.matmul %493, %495, %cst_337 {dimension_numbers = #tpu.dot_dimension_numbers<[1], [0], [0], [1], [0, 0, 1, 1], [], []>} : vector<15x48xbf16>, vector<48x32xbf16>, vector<15x32xf32> -> vector<15x32xf32>
    %497 = arith.addf %490, %496 : vector<15x32xf32>
    %498 = vector.extract_strided_slice %492 {offsets = [1, 0], sizes = [15, 48], strides = [1, 1]} : vector<16x48xbf16> to vector<15x48xbf16>
    %c3_338 = arith.constant 3 : index
    %c0_339 = arith.constant 0 : index
    %c0_340 = arith.constant 0 : index
    %499 = vector.load %arg2[%c3_338, %c0_339, %c0_340] : memref<4x48x32xbf16, #tpu.memory_space<vmem>>, vector<1x48x32xbf16>
    %500 = vector.shape_cast %499 : vector<1x48x32xbf16> to vector<48x32xbf16>
    %cst_341 = arith.constant dense<0.000000e+00> : vector<15x32xf32>
    %501 = tpu.matmul %498, %500, %cst_341 {dimension_numbers = #tpu.dot_dimension_numbers<[1], [0], [0], [1], [0, 0, 1, 1], [], []>} : vector<15x48xbf16>, vector<48x32xbf16>, vector<15x32xf32> -> vector<15x32xf32>
    %502 = arith.addf %497, %501 : vector<15x32xf32>
    %c0_342 = arith.constant 0 : index
    %c0_343 = arith.constant 0 : index
    %503 = vector.load %arg3[%c0_342, %c0_343] : memref<1x32xf32, #tpu.memory_space<vmem>>, vector<1x32xf32>
    %504 = vector.broadcast %503 : vector<1x32xf32> to vector<15x32xf32>
    %505 = arith.addf %502, %504 : vector<15x32xf32>
    %cst_344 = arith.constant 0.000000e+00 : f32
    %506 = vector.broadcast %cst_344 : f32 to vector<15x32xf32>
    %507 = arith.maximumf %505, %506 : vector<15x32xf32>
    %508 = arith.truncf %507 : vector<15x32xf32> to vector<15x32xbf16>
    %c0_345 = arith.constant 0 : index
    %c14 = arith.constant 14 : index
    %c0_346 = arith.constant 0 : index
    %c0_347 = arith.constant 0 : index
    %509 = vector.load %arg4[%c0_345, %c14, %c0_346, %c0_347] : memref<1x15x15x32xbf16, #tpu.memory_space<vmem>>, vector<1x1x15x32xbf16>
    %510 = vector.shape_cast %509 : vector<1x1x15x32xbf16> to vector<15x32xbf16>
    %511 = vector.shape_cast %508 : vector<15x32xbf16> to vector<1x1x15x32xbf16>
    tpu.vector_store %arg4[%c0_345, %c14, %c0_346, %c0_347], %511 {strides = array<i32>} : memref<1x15x15x32xbf16, #tpu.memory_space<vmem>>, vector<1x1x15x32xbf16>,
    return
  }
  func.func @transform_0(%arg0: i32) -> (i32, i32, i32, i32) {
    %c0_i32 = arith.constant 0 : i32
    %c0_i32_0 = arith.constant 0 : i32
    %c0_i32_1 = arith.constant 0 : i32
    %c0_i32_2 = arith.constant 0 : i32
    return %arg0, %c0_i32, %c0_i32_0, %c0_i32_1 : i32, i32, i32, i32
  }
  func.func @transform_1(%arg0: i32) -> (i32, i32, i32) {
    %c0_i32 = arith.constant 0 : i32
    %c0_i32_0 = arith.constant 0 : i32
    %c0_i32_1 = arith.constant 0 : i32
    %c0_i32_2 = arith.constant 0 : i32
    return %c0_i32, %c0_i32_0, %c0_i32_1 : i32, i32, i32
  }
  func.func @transform_2(%arg0: i32) -> (i32, i32) {
    %c0_i32 = arith.constant 0 : i32
    %c0_i32_0 = arith.constant 0 : i32
    %c0_i32_1 = arith.constant 0 : i32
    return %c0_i32, %c0_i32_0 : i32, i32
  }
  func.func @transform_3(%arg0: i32) -> (i32, i32, i32, i32) {
    %c0_i32 = arith.constant 0 : i32
    %c0_i32_0 = arith.constant 0 : i32
    %c0_i32_1 = arith.constant 0 : i32
    %c0_i32_2 = arith.constant 0 : i32
    return %arg0, %c0_i32, %c0_i32_0, %c0_i32_1 : i32, i32, i32, i32
  }
}

module attributes {stable_mosaic.version = 11 : i64} {
  func.func @_tail_kernel(%arg0: i32, %arg1: i32, %arg2: memref<1x36x512xbf16, #tpu.memory_space<vmem>>, %arg3: memref<512x64xbf16, #tpu.memory_space<vmem>>, %arg4: memref<1x64xf32, #tpu.memory_space<vmem>>, %arg5: memref<9x64x64xbf16, #tpu.memory_space<vmem>>, %arg6: memref<1x64xf32, #tpu.memory_space<vmem>>, %arg7: memref<1x4x64x512xbf16, #tpu.memory_space<vmem>>, %arg8: memref<1x512xf32, #tpu.memory_space<vmem>>, %arg9: memref<512x4xbf16, #tpu.memory_space<vmem>>, %arg10: memref<1x4xf32, #tpu.memory_space<vmem>>, %arg11: memref<1x1x4xf32, #tpu.memory_space<vmem>>, %arg12: memref<4x4x64xbf16, #tpu.memory_space<vmem>>, %arg13: memref<1x512xf32, #tpu.memory_space<vmem>>) attributes {dimension_semantics = [#tpu.dimension_semantics<parallel>, #tpu.dimension_semantics<arbitrary>], iteration_bounds = array<i64: 2, 4>, scalar_prefetch = 0 : i64, scratch_operands = 2 : i64, tpu.core_type = #tpu.core_type<tc>, window_params = [{transform_indices = @transform_0, window_bounds = array<i64: 1, 36, 512>}, {pipeline_mode = #tpu.pipeline_mode<synchronous>, transform_indices = @transform_1, window_bounds = array<i64: 512, 64>}, {pipeline_mode = #tpu.pipeline_mode<synchronous>, transform_indices = @transform_2, window_bounds = array<i64: 1, 64>}, {pipeline_mode = #tpu.pipeline_mode<synchronous>, transform_indices = @transform_3, window_bounds = array<i64: 9, 64, 64>}, {pipeline_mode = #tpu.pipeline_mode<synchronous>, transform_indices = @transform_4, window_bounds = array<i64: 1, 64>}, {transform_indices = @transform_5, window_bounds = array<i64: 1, 4, 64, 512>}, {pipeline_mode = #tpu.pipeline_mode<synchronous>, transform_indices = @transform_6, window_bounds = array<i64: 1, 512>}, {pipeline_mode = #tpu.pipeline_mode<synchronous>, transform_indices = @transform_7, window_bounds = array<i64: 512, 4>}, {pipeline_mode = #tpu.pipeline_mode<synchronous>, transform_indices = @transform_8, window_bounds = array<i64: 1, 4>}, {transform_indices = @transform_9, window_bounds = array<i64: 1, 1, 4>}]} {
    %c0_i32 = arith.constant 0 : i32
    %0 = arith.cmpi eq, %arg1, %c0_i32 : i32
    %1 = arith.extui %0 : i1 to i32
    %c0_i32_0 = arith.constant 0 : i32
    %2 = arith.cmpi ne, %1, %c0_i32_0 : i32
    scf.if %2 {
      %c0_41 = arith.constant 0 : index
      %c0_42 = arith.constant 0 : index
      %c0_43 = arith.constant 0 : index
      %42 = vector.load %arg2[%c0_41, %c0_42, %c0_43] : memref<1x36x512xbf16, #tpu.memory_space<vmem>>, vector<1x36x512xbf16>
      %43 = vector.shape_cast %42 : vector<1x36x512xbf16> to vector<36x512xbf16>
      %c0_44 = arith.constant 0 : index
      %c0_45 = arith.constant 0 : index
      %44 = vector.load %arg3[%c0_44, %c0_45] : memref<512x64xbf16, #tpu.memory_space<vmem>>, vector<512x64xbf16>
      %cst_46 = arith.constant dense<0.000000e+00> : vector<36x64xf32>
      %45 = tpu.matmul %43, %44, %cst_46 {dimension_numbers = #tpu.dot_dimension_numbers<[1], [0], [0], [1], [0, 0, 1, 1], [], []>} : vector<36x512xbf16>, vector<512x64xbf16>, vector<36x64xf32> -> vector<36x64xf32>
      %c0_47 = arith.constant 0 : index
      %c0_48 = arith.constant 0 : index
      %46 = vector.load %arg4[%c0_47, %c0_48] : memref<1x64xf32, #tpu.memory_space<vmem>>, vector<1x64xf32>
      %47 = vector.broadcast %46 : vector<1x64xf32> to vector<36x64xf32>
      %48 = arith.addf %45, %47 : vector<36x64xf32>
      %cst_49 = arith.constant 0.000000e+00 : f32
      %49 = vector.broadcast %cst_49 : f32 to vector<36x64xf32>
      %50 = arith.maximumf %48, %49 : vector<36x64xf32>
      %51 = arith.truncf %50 : vector<36x64xf32> to vector<36x64xbf16>
      %cst_50 = arith.constant 0.000000e+00 : f32
      %52 = vector.broadcast %cst_50 : f32 to vector<4x64xf32>
      %53 = vector.extract_strided_slice %51 {offsets = [0, 0], sizes = [6, 64], strides = [1, 1]} : vector<36x64xbf16> to vector<6x64xbf16>
      %54 = vector.extract_strided_slice %53 {offsets = [0, 0], sizes = [4, 64], strides = [1, 1]} : vector<6x64xbf16> to vector<4x64xbf16>
      %c0_51 = arith.constant 0 : index
      %c0_52 = arith.constant 0 : index
      %c0_53 = arith.constant 0 : index
      %55 = vector.load %arg5[%c0_51, %c0_52, %c0_53] : memref<9x64x64xbf16, #tpu.memory_space<vmem>>, vector<1x64x64xbf16>
      %56 = vector.shape_cast %55 : vector<1x64x64xbf16> to vector<64x64xbf16>
      %cst_54 = arith.constant dense<0.000000e+00> : vector<4x64xf32>
      %57 = tpu.matmul %54, %56, %cst_54 {dimension_numbers = #tpu.dot_dimension_numbers<[1], [0], [0], [1], [0, 0, 1, 1], [], []>} : vector<4x64xbf16>, vector<64x64xbf16>, vector<4x64xf32> -> vector<4x64xf32>
      %58 = arith.addf %52, %57 : vector<4x64xf32>
      %59 = vector.extract_strided_slice %53 {offsets = [1, 0], sizes = [4, 64], strides = [1, 1]} : vector<6x64xbf16> to vector<4x64xbf16>
      %c1_55 = arith.constant 1 : index
      %c0_56 = arith.constant 0 : index
      %c0_57 = arith.constant 0 : index
      %60 = vector.load %arg5[%c1_55, %c0_56, %c0_57] : memref<9x64x64xbf16, #tpu.memory_space<vmem>>, vector<1x64x64xbf16>
      %61 = vector.shape_cast %60 : vector<1x64x64xbf16> to vector<64x64xbf16>
      %cst_58 = arith.constant dense<0.000000e+00> : vector<4x64xf32>
      %62 = tpu.matmul %59, %61, %cst_58 {dimension_numbers = #tpu.dot_dimension_numbers<[1], [0], [0], [1], [0, 0, 1, 1], [], []>} : vector<4x64xbf16>, vector<64x64xbf16>, vector<4x64xf32> -> vector<4x64xf32>
      %63 = arith.addf %58, %62 : vector<4x64xf32>
      %64 = vector.extract_strided_slice %53 {offsets = [2, 0], sizes = [4, 64], strides = [1, 1]} : vector<6x64xbf16> to vector<4x64xbf16>
      %c2_59 = arith.constant 2 : index
      %c0_60 = arith.constant 0 : index
      %c0_61 = arith.constant 0 : index
      %65 = vector.load %arg5[%c2_59, %c0_60, %c0_61] : memref<9x64x64xbf16, #tpu.memory_space<vmem>>, vector<1x64x64xbf16>
      %66 = vector.shape_cast %65 : vector<1x64x64xbf16> to vector<64x64xbf16>
      %cst_62 = arith.constant dense<0.000000e+00> : vector<4x64xf32>
      %67 = tpu.matmul %64, %66, %cst_62 {dimension_numbers = #tpu.dot_dimension_numbers<[1], [0], [0], [1], [0, 0, 1, 1], [], []>} : vector<4x64xbf16>, vector<64x64xbf16>, vector<4x64xf32> -> vector<4x64xf32>
      %68 = arith.addf %63, %67 : vector<4x64xf32>
      %69 = vector.extract_strided_slice %51 {offsets = [6, 0], sizes = [6, 64], strides = [1, 1]} : vector<36x64xbf16> to vector<6x64xbf16>
      %70 = vector.extract_strided_slice %69 {offsets = [0, 0], sizes = [4, 64], strides = [1, 1]} : vector<6x64xbf16> to vector<4x64xbf16>
      %c3_63 = arith.constant 3 : index
      %c0_64 = arith.constant 0 : index
      %c0_65 = arith.constant 0 : index
      %71 = vector.load %arg5[%c3_63, %c0_64, %c0_65] : memref<9x64x64xbf16, #tpu.memory_space<vmem>>, vector<1x64x64xbf16>
      %72 = vector.shape_cast %71 : vector<1x64x64xbf16> to vector<64x64xbf16>
      %cst_66 = arith.constant dense<0.000000e+00> : vector<4x64xf32>
      %73 = tpu.matmul %70, %72, %cst_66 {dimension_numbers = #tpu.dot_dimension_numbers<[1], [0], [0], [1], [0, 0, 1, 1], [], []>} : vector<4x64xbf16>, vector<64x64xbf16>, vector<4x64xf32> -> vector<4x64xf32>
      %74 = arith.addf %68, %73 : vector<4x64xf32>
      %75 = vector.extract_strided_slice %69 {offsets = [1, 0], sizes = [4, 64], strides = [1, 1]} : vector<6x64xbf16> to vector<4x64xbf16>
      %c4 = arith.constant 4 : index
      %c0_67 = arith.constant 0 : index
      %c0_68 = arith.constant 0 : index
      %76 = vector.load %arg5[%c4, %c0_67, %c0_68] : memref<9x64x64xbf16, #tpu.memory_space<vmem>>, vector<1x64x64xbf16>
      %77 = vector.shape_cast %76 : vector<1x64x64xbf16> to vector<64x64xbf16>
      %cst_69 = arith.constant dense<0.000000e+00> : vector<4x64xf32>
      %78 = tpu.matmul %75, %77, %cst_69 {dimension_numbers = #tpu.dot_dimension_numbers<[1], [0], [0], [1], [0, 0, 1, 1], [], []>} : vector<4x64xbf16>, vector<64x64xbf16>, vector<4x64xf32> -> vector<4x64xf32>
      %79 = arith.addf %74, %78 : vector<4x64xf32>
      %80 = vector.extract_strided_slice %69 {offsets = [2, 0], sizes = [4, 64], strides = [1, 1]} : vector<6x64xbf16> to vector<4x64xbf16>
      %c5 = arith.constant 5 : index
      %c0_70 = arith.constant 0 : index
      %c0_71 = arith.constant 0 : index
      %81 = vector.load %arg5[%c5, %c0_70, %c0_71] : memref<9x64x64xbf16, #tpu.memory_space<vmem>>, vector<1x64x64xbf16>
      %82 = vector.shape_cast %81 : vector<1x64x64xbf16> to vector<64x64xbf16>
      %cst_72 = arith.constant dense<0.000000e+00> : vector<4x64xf32>
      %83 = tpu.matmul %80, %82, %cst_72 {dimension_numbers = #tpu.dot_dimension_numbers<[1], [0], [0], [1], [0, 0, 1, 1], [], []>} : vector<4x64xbf16>, vector<64x64xbf16>, vector<4x64xf32> -> vector<4x64xf32>
      %84 = arith.addf %79, %83 : vector<4x64xf32>
      %85 = vector.extract_strided_slice %51 {offsets = [12, 0], sizes = [6, 64], strides = [1, 1]} : vector<36x64xbf16> to vector<6x64xbf16>
      %86 = vector.extract_strided_slice %85 {offsets = [0, 0], sizes = [4, 64], strides = [1, 1]} : vector<6x64xbf16> to vector<4x64xbf16>
      %c6 = arith.constant 6 : index
      %c0_73 = arith.constant 0 : index
      %c0_74 = arith.constant 0 : index
      %87 = vector.load %arg5[%c6, %c0_73, %c0_74] : memref<9x64x64xbf16, #tpu.memory_space<vmem>>, vector<1x64x64xbf16>
      %88 = vector.shape_cast %87 : vector<1x64x64xbf16> to vector<64x64xbf16>
      %cst_75 = arith.constant dense<0.000000e+00> : vector<4x64xf32>
      %89 = tpu.matmul %86, %88, %cst_75 {dimension_numbers = #tpu.dot_dimension_numbers<[1], [0], [0], [1], [0, 0, 1, 1], [], []>} : vector<4x64xbf16>, vector<64x64xbf16>, vector<4x64xf32> -> vector<4x64xf32>
      %90 = arith.addf %84, %89 : vector<4x64xf32>
      %91 = vector.extract_strided_slice %85 {offsets = [1, 0], sizes = [4, 64], strides = [1, 1]} : vector<6x64xbf16> to vector<4x64xbf16>
      %c7 = arith.constant 7 : index
      %c0_76 = arith.constant 0 : index
      %c0_77 = arith.constant 0 : index
      %92 = vector.load %arg5[%c7, %c0_76, %c0_77] : memref<9x64x64xbf16, #tpu.memory_space<vmem>>, vector<1x64x64xbf16>
      %93 = vector.shape_cast %92 : vector<1x64x64xbf16> to vector<64x64xbf16>
      %cst_78 = arith.constant dense<0.000000e+00> : vector<4x64xf32>
      %94 = tpu.matmul %91, %93, %cst_78 {dimension_numbers = #tpu.dot_dimension_numbers<[1], [0], [0], [1], [0, 0, 1, 1], [], []>} : vector<4x64xbf16>, vector<64x64xbf16>, vector<4x64xf32> -> vector<4x64xf32>
      %95 = arith.addf %90, %94 : vector<4x64xf32>
      %96 = vector.extract_strided_slice %85 {offsets = [2, 0], sizes = [4, 64], strides = [1, 1]} : vector<6x64xbf16> to vector<4x64xbf16>
      %c8 = arith.constant 8 : index
      %c0_79 = arith.constant 0 : index
      %c0_80 = arith.constant 0 : index
      %97 = vector.load %arg5[%c8, %c0_79, %c0_80] : memref<9x64x64xbf16, #tpu.memory_space<vmem>>, vector<1x64x64xbf16>
      %98 = vector.shape_cast %97 : vector<1x64x64xbf16> to vector<64x64xbf16>
      %cst_81 = arith.constant dense<0.000000e+00> : vector<4x64xf32>
      %99 = tpu.matmul %96, %98, %cst_81 {dimension_numbers = #tpu.dot_dimension_numbers<[1], [0], [0], [1], [0, 0, 1, 1], [], []>} : vector<4x64xbf16>, vector<64x64xbf16>, vector<4x64xf32> -> vector<4x64xf32>
      %100 = arith.addf %95, %99 : vector<4x64xf32>
      %c0_82 = arith.constant 0 : index
      %c0_83 = arith.constant 0 : index
      %101 = vector.load %arg6[%c0_82, %c0_83] : memref<1x64xf32, #tpu.memory_space<vmem>>, vector<1x64xf32>
      %102 = vector.broadcast %101 : vector<1x64xf32> to vector<4x64xf32>
      %103 = arith.addf %100, %102 : vector<4x64xf32>
      %cst_84 = arith.constant 0.000000e+00 : f32
      %104 = vector.broadcast %cst_84 : f32 to vector<4x64xf32>
      %105 = arith.maximumf %103, %104 : vector<4x64xf32>
      %106 = arith.truncf %105 : vector<4x64xf32> to vector<4x64xbf16>
      %c0_85 = arith.constant 0 : index
      %c0_86 = arith.constant 0 : index
      %c0_87 = arith.constant 0 : index
      %107 = vector.load %arg12[%c0_85, %c0_86, %c0_87] : memref<4x4x64xbf16, #tpu.memory_space<vmem>>, vector<1x4x64xbf16>
      %108 = vector.shape_cast %107 : vector<1x4x64xbf16> to vector<4x64xbf16>
      %109 = vector.shape_cast %106 : vector<4x64xbf16> to vector<1x4x64xbf16>
      tpu.vector_store %arg12[%c0_85, %c0_86, %c0_87], %109 {strides = array<i32>} : memref<4x4x64xbf16, #tpu.memory_space<vmem>>, vector<1x4x64xbf16>,
      %cst_88 = arith.constant 0.000000e+00 : f32
      %110 = vector.broadcast %cst_88 : f32 to vector<4x64xf32>
      %111 = vector.extract_strided_slice %51 {offsets = [6, 0], sizes = [6, 64], strides = [1, 1]} : vector<36x64xbf16> to vector<6x64xbf16>
      %112 = vector.extract_strided_slice %111 {offsets = [0, 0], sizes = [4, 64], strides = [1, 1]} : vector<6x64xbf16> to vector<4x64xbf16>
      %c0_89 = arith.constant 0 : index
      %c0_90 = arith.constant 0 : index
      %c0_91 = arith.constant 0 : index
      %113 = vector.load %arg5[%c0_89, %c0_90, %c0_91] : memref<9x64x64xbf16, #tpu.memory_space<vmem>>, vector<1x64x64xbf16>
      %114 = vector.shape_cast %113 : vector<1x64x64xbf16> to vector<64x64xbf16>
      %cst_92 = arith.constant dense<0.000000e+00> : vector<4x64xf32>
      %115 = tpu.matmul %112, %114, %cst_92 {dimension_numbers = #tpu.dot_dimension_numbers<[1], [0], [0], [1], [0, 0, 1, 1], [], []>} : vector<4x64xbf16>, vector<64x64xbf16>, vector<4x64xf32> -> vector<4x64xf32>
      %116 = arith.addf %110, %115 : vector<4x64xf32>
      %117 = vector.extract_strided_slice %111 {offsets = [1, 0], sizes = [4, 64], strides = [1, 1]} : vector<6x64xbf16> to vector<4x64xbf16>
      %c1_93 = arith.constant 1 : index
      %c0_94 = arith.constant 0 : index
      %c0_95 = arith.constant 0 : index
      %118 = vector.load %arg5[%c1_93, %c0_94, %c0_95] : memref<9x64x64xbf16, #tpu.memory_space<vmem>>, vector<1x64x64xbf16>
      %119 = vector.shape_cast %118 : vector<1x64x64xbf16> to vector<64x64xbf16>
      %cst_96 = arith.constant dense<0.000000e+00> : vector<4x64xf32>
      %120 = tpu.matmul %117, %119, %cst_96 {dimension_numbers = #tpu.dot_dimension_numbers<[1], [0], [0], [1], [0, 0, 1, 1], [], []>} : vector<4x64xbf16>, vector<64x64xbf16>, vector<4x64xf32> -> vector<4x64xf32>
      %121 = arith.addf %116, %120 : vector<4x64xf32>
      %122 = vector.extract_strided_slice %111 {offsets = [2, 0], sizes = [4, 64], strides = [1, 1]} : vector<6x64xbf16> to vector<4x64xbf16>
      %c2_97 = arith.constant 2 : index
      %c0_98 = arith.constant 0 : index
      %c0_99 = arith.constant 0 : index
      %123 = vector.load %arg5[%c2_97, %c0_98, %c0_99] : memref<9x64x64xbf16, #tpu.memory_space<vmem>>, vector<1x64x64xbf16>
      %124 = vector.shape_cast %123 : vector<1x64x64xbf16> to vector<64x64xbf16>
      %cst_100 = arith.constant dense<0.000000e+00> : vector<4x64xf32>
      %125 = tpu.matmul %122, %124, %cst_100 {dimension_numbers = #tpu.dot_dimension_numbers<[1], [0], [0], [1], [0, 0, 1, 1], [], []>} : vector<4x64xbf16>, vector<64x64xbf16>, vector<4x64xf32> -> vector<4x64xf32>
      %126 = arith.addf %121, %125 : vector<4x64xf32>
      %127 = vector.extract_strided_slice %51 {offsets = [12, 0], sizes = [6, 64], strides = [1, 1]} : vector<36x64xbf16> to vector<6x64xbf16>
      %128 = vector.extract_strided_slice %127 {offsets = [0, 0], sizes = [4, 64], strides = [1, 1]} : vector<6x64xbf16> to vector<4x64xbf16>
      %c3_101 = arith.constant 3 : index
      %c0_102 = arith.constant 0 : index
      %c0_103 = arith.constant 0 : index
      %129 = vector.load %arg5[%c3_101, %c0_102, %c0_103] : memref<9x64x64xbf16, #tpu.memory_space<vmem>>, vector<1x64x64xbf16>
      %130 = vector.shape_cast %129 : vector<1x64x64xbf16> to vector<64x64xbf16>
      %cst_104 = arith.constant dense<0.000000e+00> : vector<4x64xf32>
      %131 = tpu.matmul %128, %130, %cst_104 {dimension_numbers = #tpu.dot_dimension_numbers<[1], [0], [0], [1], [0, 0, 1, 1], [], []>} : vector<4x64xbf16>, vector<64x64xbf16>, vector<4x64xf32> -> vector<4x64xf32>
      %132 = arith.addf %126, %131 : vector<4x64xf32>
      %133 = vector.extract_strided_slice %127 {offsets = [1, 0], sizes = [4, 64], strides = [1, 1]} : vector<6x64xbf16> to vector<4x64xbf16>
      %c4_105 = arith.constant 4 : index
      %c0_106 = arith.constant 0 : index
      %c0_107 = arith.constant 0 : index
      %134 = vector.load %arg5[%c4_105, %c0_106, %c0_107] : memref<9x64x64xbf16, #tpu.memory_space<vmem>>, vector<1x64x64xbf16>
      %135 = vector.shape_cast %134 : vector<1x64x64xbf16> to vector<64x64xbf16>
      %cst_108 = arith.constant dense<0.000000e+00> : vector<4x64xf32>
      %136 = tpu.matmul %133, %135, %cst_108 {dimension_numbers = #tpu.dot_dimension_numbers<[1], [0], [0], [1], [0, 0, 1, 1], [], []>} : vector<4x64xbf16>, vector<64x64xbf16>, vector<4x64xf32> -> vector<4x64xf32>
      %137 = arith.addf %132, %136 : vector<4x64xf32>
      %138 = vector.extract_strided_slice %127 {offsets = [2, 0], sizes = [4, 64], strides = [1, 1]} : vector<6x64xbf16> to vector<4x64xbf16>
      %c5_109 = arith.constant 5 : index
      %c0_110 = arith.constant 0 : index
      %c0_111 = arith.constant 0 : index
      %139 = vector.load %arg5[%c5_109, %c0_110, %c0_111] : memref<9x64x64xbf16, #tpu.memory_space<vmem>>, vector<1x64x64xbf16>
      %140 = vector.shape_cast %139 : vector<1x64x64xbf16> to vector<64x64xbf16>
      %cst_112 = arith.constant dense<0.000000e+00> : vector<4x64xf32>
      %141 = tpu.matmul %138, %140, %cst_112 {dimension_numbers = #tpu.dot_dimension_numbers<[1], [0], [0], [1], [0, 0, 1, 1], [], []>} : vector<4x64xbf16>, vector<64x64xbf16>, vector<4x64xf32> -> vector<4x64xf32>
      %142 = arith.addf %137, %141 : vector<4x64xf32>
      %143 = vector.extract_strided_slice %51 {offsets = [18, 0], sizes = [6, 64], strides = [1, 1]} : vector<36x64xbf16> to vector<6x64xbf16>
      %144 = vector.extract_strided_slice %143 {offsets = [0, 0], sizes = [4, 64], strides = [1, 1]} : vector<6x64xbf16> to vector<4x64xbf16>
      %c6_113 = arith.constant 6 : index
      %c0_114 = arith.constant 0 : index
      %c0_115 = arith.constant 0 : index
      %145 = vector.load %arg5[%c6_113, %c0_114, %c0_115] : memref<9x64x64xbf16, #tpu.memory_space<vmem>>, vector<1x64x64xbf16>
      %146 = vector.shape_cast %145 : vector<1x64x64xbf16> to vector<64x64xbf16>
      %cst_116 = arith.constant dense<0.000000e+00> : vector<4x64xf32>
      %147 = tpu.matmul %144, %146, %cst_116 {dimension_numbers = #tpu.dot_dimension_numbers<[1], [0], [0], [1], [0, 0, 1, 1], [], []>} : vector<4x64xbf16>, vector<64x64xbf16>, vector<4x64xf32> -> vector<4x64xf32>
      %148 = arith.addf %142, %147 : vector<4x64xf32>
      %149 = vector.extract_strided_slice %143 {offsets = [1, 0], sizes = [4, 64], strides = [1, 1]} : vector<6x64xbf16> to vector<4x64xbf16>
      %c7_117 = arith.constant 7 : index
      %c0_118 = arith.constant 0 : index
      %c0_119 = arith.constant 0 : index
      %150 = vector.load %arg5[%c7_117, %c0_118, %c0_119] : memref<9x64x64xbf16, #tpu.memory_space<vmem>>, vector<1x64x64xbf16>
      %151 = vector.shape_cast %150 : vector<1x64x64xbf16> to vector<64x64xbf16>
      %cst_120 = arith.constant dense<0.000000e+00> : vector<4x64xf32>
      %152 = tpu.matmul %149, %151, %cst_120 {dimension_numbers = #tpu.dot_dimension_numbers<[1], [0], [0], [1], [0, 0, 1, 1], [], []>} : vector<4x64xbf16>, vector<64x64xbf16>, vector<4x64xf32> -> vector<4x64xf32>
      %153 = arith.addf %148, %152 : vector<4x64xf32>
      %154 = vector.extract_strided_slice %143 {offsets = [2, 0], sizes = [4, 64], strides = [1, 1]} : vector<6x64xbf16> to vector<4x64xbf16>
      %c8_121 = arith.constant 8 : index
      %c0_122 = arith.constant 0 : index
      %c0_123 = arith.constant 0 : index
      %155 = vector.load %arg5[%c8_121, %c0_122, %c0_123] : memref<9x64x64xbf16, #tpu.memory_space<vmem>>, vector<1x64x64xbf16>
      %156 = vector.shape_cast %155 : vector<1x64x64xbf16> to vector<64x64xbf16>
      %cst_124 = arith.constant dense<0.000000e+00> : vector<4x64xf32>
      %157 = tpu.matmul %154, %156, %cst_124 {dimension_numbers = #tpu.dot_dimension_numbers<[1], [0], [0], [1], [0, 0, 1, 1], [], []>} : vector<4x64xbf16>, vector<64x64xbf16>, vector<4x64xf32> -> vector<4x64xf32>
      %158 = arith.addf %153, %157 : vector<4x64xf32>
      %c0_125 = arith.constant 0 : index
      %c0_126 = arith.constant 0 : index
      %159 = vector.load %arg6[%c0_125, %c0_126] : memref<1x64xf32, #tpu.memory_space<vmem>>, vector<1x64xf32>
      %160 = vector.broadcast %159 : vector<1x64xf32> to vector<4x64xf32>
      %161 = arith.addf %158, %160 : vector<4x64xf32>
      %cst_127 = arith.constant 0.000000e+00 : f32
      %162 = vector.broadcast %cst_127 : f32 to vector<4x64xf32>
      %163 = arith.maximumf %161, %162 : vector<4x64xf32>
      %164 = arith.truncf %163 : vector<4x64xf32> to vector<4x64xbf16>
      %c1_128 = arith.constant 1 : index
      %c0_129 = arith.constant 0 : index
      %c0_130 = arith.constant 0 : index
      %165 = vector.load %arg12[%c1_128, %c0_129, %c0_130] : memref<4x4x64xbf16, #tpu.memory_space<vmem>>, vector<1x4x64xbf16>
      %166 = vector.shape_cast %165 : vector<1x4x64xbf16> to vector<4x64xbf16>
      %167 = vector.shape_cast %164 : vector<4x64xbf16> to vector<1x4x64xbf16>
      tpu.vector_store %arg12[%c1_128, %c0_129, %c0_130], %167 {strides = array<i32>} : memref<4x4x64xbf16, #tpu.memory_space<vmem>>, vector<1x4x64xbf16>,
      %cst_131 = arith.constant 0.000000e+00 : f32
      %168 = vector.broadcast %cst_131 : f32 to vector<4x64xf32>
      %169 = vector.extract_strided_slice %51 {offsets = [12, 0], sizes = [6, 64], strides = [1, 1]} : vector<36x64xbf16> to vector<6x64xbf16>
      %170 = vector.extract_strided_slice %169 {offsets = [0, 0], sizes = [4, 64], strides = [1, 1]} : vector<6x64xbf16> to vector<4x64xbf16>
      %c0_132 = arith.constant 0 : index
      %c0_133 = arith.constant 0 : index
      %c0_134 = arith.constant 0 : index
      %171 = vector.load %arg5[%c0_132, %c0_133, %c0_134] : memref<9x64x64xbf16, #tpu.memory_space<vmem>>, vector<1x64x64xbf16>
      %172 = vector.shape_cast %171 : vector<1x64x64xbf16> to vector<64x64xbf16>
      %cst_135 = arith.constant dense<0.000000e+00> : vector<4x64xf32>
      %173 = tpu.matmul %170, %172, %cst_135 {dimension_numbers = #tpu.dot_dimension_numbers<[1], [0], [0], [1], [0, 0, 1, 1], [], []>} : vector<4x64xbf16>, vector<64x64xbf16>, vector<4x64xf32> -> vector<4x64xf32>
      %174 = arith.addf %168, %173 : vector<4x64xf32>
      %175 = vector.extract_strided_slice %169 {offsets = [1, 0], sizes = [4, 64], strides = [1, 1]} : vector<6x64xbf16> to vector<4x64xbf16>
      %c1_136 = arith.constant 1 : index
      %c0_137 = arith.constant 0 : index
      %c0_138 = arith.constant 0 : index
      %176 = vector.load %arg5[%c1_136, %c0_137, %c0_138] : memref<9x64x64xbf16, #tpu.memory_space<vmem>>, vector<1x64x64xbf16>
      %177 = vector.shape_cast %176 : vector<1x64x64xbf16> to vector<64x64xbf16>
      %cst_139 = arith.constant dense<0.000000e+00> : vector<4x64xf32>
      %178 = tpu.matmul %175, %177, %cst_139 {dimension_numbers = #tpu.dot_dimension_numbers<[1], [0], [0], [1], [0, 0, 1, 1], [], []>} : vector<4x64xbf16>, vector<64x64xbf16>, vector<4x64xf32> -> vector<4x64xf32>
      %179 = arith.addf %174, %178 : vector<4x64xf32>
      %180 = vector.extract_strided_slice %169 {offsets = [2, 0], sizes = [4, 64], strides = [1, 1]} : vector<6x64xbf16> to vector<4x64xbf16>
      %c2_140 = arith.constant 2 : index
      %c0_141 = arith.constant 0 : index
      %c0_142 = arith.constant 0 : index
      %181 = vector.load %arg5[%c2_140, %c0_141, %c0_142] : memref<9x64x64xbf16, #tpu.memory_space<vmem>>, vector<1x64x64xbf16>
      %182 = vector.shape_cast %181 : vector<1x64x64xbf16> to vector<64x64xbf16>
      %cst_143 = arith.constant dense<0.000000e+00> : vector<4x64xf32>
      %183 = tpu.matmul %180, %182, %cst_143 {dimension_numbers = #tpu.dot_dimension_numbers<[1], [0], [0], [1], [0, 0, 1, 1], [], []>} : vector<4x64xbf16>, vector<64x64xbf16>, vector<4x64xf32> -> vector<4x64xf32>
      %184 = arith.addf %179, %183 : vector<4x64xf32>
      %185 = vector.extract_strided_slice %51 {offsets = [18, 0], sizes = [6, 64], strides = [1, 1]} : vector<36x64xbf16> to vector<6x64xbf16>
      %186 = vector.extract_strided_slice %185 {offsets = [0, 0], sizes = [4, 64], strides = [1, 1]} : vector<6x64xbf16> to vector<4x64xbf16>
      %c3_144 = arith.constant 3 : index
      %c0_145 = arith.constant 0 : index
      %c0_146 = arith.constant 0 : index
      %187 = vector.load %arg5[%c3_144, %c0_145, %c0_146] : memref<9x64x64xbf16, #tpu.memory_space<vmem>>, vector<1x64x64xbf16>
      %188 = vector.shape_cast %187 : vector<1x64x64xbf16> to vector<64x64xbf16>
      %cst_147 = arith.constant dense<0.000000e+00> : vector<4x64xf32>
      %189 = tpu.matmul %186, %188, %cst_147 {dimension_numbers = #tpu.dot_dimension_numbers<[1], [0], [0], [1], [0, 0, 1, 1], [], []>} : vector<4x64xbf16>, vector<64x64xbf16>, vector<4x64xf32> -> vector<4x64xf32>
      %190 = arith.addf %184, %189 : vector<4x64xf32>
      %191 = vector.extract_strided_slice %185 {offsets = [1, 0], sizes = [4, 64], strides = [1, 1]} : vector<6x64xbf16> to vector<4x64xbf16>
      %c4_148 = arith.constant 4 : index
      %c0_149 = arith.constant 0 : index
      %c0_150 = arith.constant 0 : index
      %192 = vector.load %arg5[%c4_148, %c0_149, %c0_150] : memref<9x64x64xbf16, #tpu.memory_space<vmem>>, vector<1x64x64xbf16>
      %193 = vector.shape_cast %192 : vector<1x64x64xbf16> to vector<64x64xbf16>
      %cst_151 = arith.constant dense<0.000000e+00> : vector<4x64xf32>
      %194 = tpu.matmul %191, %193, %cst_151 {dimension_numbers = #tpu.dot_dimension_numbers<[1], [0], [0], [1], [0, 0, 1, 1], [], []>} : vector<4x64xbf16>, vector<64x64xbf16>, vector<4x64xf32> -> vector<4x64xf32>
      %195 = arith.addf %190, %194 : vector<4x64xf32>
      %196 = vector.extract_strided_slice %185 {offsets = [2, 0], sizes = [4, 64], strides = [1, 1]} : vector<6x64xbf16> to vector<4x64xbf16>
      %c5_152 = arith.constant 5 : index
      %c0_153 = arith.constant 0 : index
      %c0_154 = arith.constant 0 : index
      %197 = vector.load %arg5[%c5_152, %c0_153, %c0_154] : memref<9x64x64xbf16, #tpu.memory_space<vmem>>, vector<1x64x64xbf16>
      %198 = vector.shape_cast %197 : vector<1x64x64xbf16> to vector<64x64xbf16>
      %cst_155 = arith.constant dense<0.000000e+00> : vector<4x64xf32>
      %199 = tpu.matmul %196, %198, %cst_155 {dimension_numbers = #tpu.dot_dimension_numbers<[1], [0], [0], [1], [0, 0, 1, 1], [], []>} : vector<4x64xbf16>, vector<64x64xbf16>, vector<4x64xf32> -> vector<4x64xf32>
      %200 = arith.addf %195, %199 : vector<4x64xf32>
      %201 = vector.extract_strided_slice %51 {offsets = [24, 0], sizes = [6, 64], strides = [1, 1]} : vector<36x64xbf16> to vector<6x64xbf16>
      %202 = vector.extract_strided_slice %201 {offsets = [0, 0], sizes = [4, 64], strides = [1, 1]} : vector<6x64xbf16> to vector<4x64xbf16>
      %c6_156 = arith.constant 6 : index
      %c0_157 = arith.constant 0 : index
      %c0_158 = arith.constant 0 : index
      %203 = vector.load %arg5[%c6_156, %c0_157, %c0_158] : memref<9x64x64xbf16, #tpu.memory_space<vmem>>, vector<1x64x64xbf16>
      %204 = vector.shape_cast %203 : vector<1x64x64xbf16> to vector<64x64xbf16>
      %cst_159 = arith.constant dense<0.000000e+00> : vector<4x64xf32>
      %205 = tpu.matmul %202, %204, %cst_159 {dimension_numbers = #tpu.dot_dimension_numbers<[1], [0], [0], [1], [0, 0, 1, 1], [], []>} : vector<4x64xbf16>, vector<64x64xbf16>, vector<4x64xf32> -> vector<4x64xf32>
      %206 = arith.addf %200, %205 : vector<4x64xf32>
      %207 = vector.extract_strided_slice %201 {offsets = [1, 0], sizes = [4, 64], strides = [1, 1]} : vector<6x64xbf16> to vector<4x64xbf16>
      %c7_160 = arith.constant 7 : index
      %c0_161 = arith.constant 0 : index
      %c0_162 = arith.constant 0 : index
      %208 = vector.load %arg5[%c7_160, %c0_161, %c0_162] : memref<9x64x64xbf16, #tpu.memory_space<vmem>>, vector<1x64x64xbf16>
      %209 = vector.shape_cast %208 : vector<1x64x64xbf16> to vector<64x64xbf16>
      %cst_163 = arith.constant dense<0.000000e+00> : vector<4x64xf32>
      %210 = tpu.matmul %207, %209, %cst_163 {dimension_numbers = #tpu.dot_dimension_numbers<[1], [0], [0], [1], [0, 0, 1, 1], [], []>} : vector<4x64xbf16>, vector<64x64xbf16>, vector<4x64xf32> -> vector<4x64xf32>
      %211 = arith.addf %206, %210 : vector<4x64xf32>
      %212 = vector.extract_strided_slice %201 {offsets = [2, 0], sizes = [4, 64], strides = [1, 1]} : vector<6x64xbf16> to vector<4x64xbf16>
      %c8_164 = arith.constant 8 : index
      %c0_165 = arith.constant 0 : index
      %c0_166 = arith.constant 0 : index
      %213 = vector.load %arg5[%c8_164, %c0_165, %c0_166] : memref<9x64x64xbf16, #tpu.memory_space<vmem>>, vector<1x64x64xbf16>
      %214 = vector.shape_cast %213 : vector<1x64x64xbf16> to vector<64x64xbf16>
      %cst_167 = arith.constant dense<0.000000e+00> : vector<4x64xf32>
      %215 = tpu.matmul %212, %214, %cst_167 {dimension_numbers = #tpu.dot_dimension_numbers<[1], [0], [0], [1], [0, 0, 1, 1], [], []>} : vector<4x64xbf16>, vector<64x64xbf16>, vector<4x64xf32> -> vector<4x64xf32>
      %216 = arith.addf %211, %215 : vector<4x64xf32>
      %c0_168 = arith.constant 0 : index
      %c0_169 = arith.constant 0 : index
      %217 = vector.load %arg6[%c0_168, %c0_169] : memref<1x64xf32, #tpu.memory_space<vmem>>, vector<1x64xf32>
      %218 = vector.broadcast %217 : vector<1x64xf32> to vector<4x64xf32>
      %219 = arith.addf %216, %218 : vector<4x64xf32>
      %cst_170 = arith.constant 0.000000e+00 : f32
      %220 = vector.broadcast %cst_170 : f32 to vector<4x64xf32>
      %221 = arith.maximumf %219, %220 : vector<4x64xf32>
      %222 = arith.truncf %221 : vector<4x64xf32> to vector<4x64xbf16>
      %c2_171 = arith.constant 2 : index
      %c0_172 = arith.constant 0 : index
      %c0_173 = arith.constant 0 : index
      %223 = vector.load %arg12[%c2_171, %c0_172, %c0_173] : memref<4x4x64xbf16, #tpu.memory_space<vmem>>, vector<1x4x64xbf16>
      %224 = vector.shape_cast %223 : vector<1x4x64xbf16> to vector<4x64xbf16>
      %225 = vector.shape_cast %222 : vector<4x64xbf16> to vector<1x4x64xbf16>
      tpu.vector_store %arg12[%c2_171, %c0_172, %c0_173], %225 {strides = array<i32>} : memref<4x4x64xbf16, #tpu.memory_space<vmem>>, vector<1x4x64xbf16>,
      %cst_174 = arith.constant 0.000000e+00 : f32
      %226 = vector.broadcast %cst_174 : f32 to vector<4x64xf32>
      %227 = vector.extract_strided_slice %51 {offsets = [18, 0], sizes = [6, 64], strides = [1, 1]} : vector<36x64xbf16> to vector<6x64xbf16>
      %228 = vector.extract_strided_slice %227 {offsets = [0, 0], sizes = [4, 64], strides = [1, 1]} : vector<6x64xbf16> to vector<4x64xbf16>
      %c0_175 = arith.constant 0 : index
      %c0_176 = arith.constant 0 : index
      %c0_177 = arith.constant 0 : index
      %229 = vector.load %arg5[%c0_175, %c0_176, %c0_177] : memref<9x64x64xbf16, #tpu.memory_space<vmem>>, vector<1x64x64xbf16>
      %230 = vector.shape_cast %229 : vector<1x64x64xbf16> to vector<64x64xbf16>
      %cst_178 = arith.constant dense<0.000000e+00> : vector<4x64xf32>
      %231 = tpu.matmul %228, %230, %cst_178 {dimension_numbers = #tpu.dot_dimension_numbers<[1], [0], [0], [1], [0, 0, 1, 1], [], []>} : vector<4x64xbf16>, vector<64x64xbf16>, vector<4x64xf32> -> vector<4x64xf32>
      %232 = arith.addf %226, %231 : vector<4x64xf32>
      %233 = vector.extract_strided_slice %227 {offsets = [1, 0], sizes = [4, 64], strides = [1, 1]} : vector<6x64xbf16> to vector<4x64xbf16>
      %c1_179 = arith.constant 1 : index
      %c0_180 = arith.constant 0 : index
      %c0_181 = arith.constant 0 : index
      %234 = vector.load %arg5[%c1_179, %c0_180, %c0_181] : memref<9x64x64xbf16, #tpu.memory_space<vmem>>, vector<1x64x64xbf16>
      %235 = vector.shape_cast %234 : vector<1x64x64xbf16> to vector<64x64xbf16>
      %cst_182 = arith.constant dense<0.000000e+00> : vector<4x64xf32>
      %236 = tpu.matmul %233, %235, %cst_182 {dimension_numbers = #tpu.dot_dimension_numbers<[1], [0], [0], [1], [0, 0, 1, 1], [], []>} : vector<4x64xbf16>, vector<64x64xbf16>, vector<4x64xf32> -> vector<4x64xf32>
      %237 = arith.addf %232, %236 : vector<4x64xf32>
      %238 = vector.extract_strided_slice %227 {offsets = [2, 0], sizes = [4, 64], strides = [1, 1]} : vector<6x64xbf16> to vector<4x64xbf16>
      %c2_183 = arith.constant 2 : index
      %c0_184 = arith.constant 0 : index
      %c0_185 = arith.constant 0 : index
      %239 = vector.load %arg5[%c2_183, %c0_184, %c0_185] : memref<9x64x64xbf16, #tpu.memory_space<vmem>>, vector<1x64x64xbf16>
      %240 = vector.shape_cast %239 : vector<1x64x64xbf16> to vector<64x64xbf16>
      %cst_186 = arith.constant dense<0.000000e+00> : vector<4x64xf32>
      %241 = tpu.matmul %238, %240, %cst_186 {dimension_numbers = #tpu.dot_dimension_numbers<[1], [0], [0], [1], [0, 0, 1, 1], [], []>} : vector<4x64xbf16>, vector<64x64xbf16>, vector<4x64xf32> -> vector<4x64xf32>
      %242 = arith.addf %237, %241 : vector<4x64xf32>
      %243 = vector.extract_strided_slice %51 {offsets = [24, 0], sizes = [6, 64], strides = [1, 1]} : vector<36x64xbf16> to vector<6x64xbf16>
      %244 = vector.extract_strided_slice %243 {offsets = [0, 0], sizes = [4, 64], strides = [1, 1]} : vector<6x64xbf16> to vector<4x64xbf16>
      %c3_187 = arith.constant 3 : index
      %c0_188 = arith.constant 0 : index
      %c0_189 = arith.constant 0 : index
      %245 = vector.load %arg5[%c3_187, %c0_188, %c0_189] : memref<9x64x64xbf16, #tpu.memory_space<vmem>>, vector<1x64x64xbf16>
      %246 = vector.shape_cast %245 : vector<1x64x64xbf16> to vector<64x64xbf16>
      %cst_190 = arith.constant dense<0.000000e+00> : vector<4x64xf32>
      %247 = tpu.matmul %244, %246, %cst_190 {dimension_numbers = #tpu.dot_dimension_numbers<[1], [0], [0], [1], [0, 0, 1, 1], [], []>} : vector<4x64xbf16>, vector<64x64xbf16>, vector<4x64xf32> -> vector<4x64xf32>
      %248 = arith.addf %242, %247 : vector<4x64xf32>
      %249 = vector.extract_strided_slice %243 {offsets = [1, 0], sizes = [4, 64], strides = [1, 1]} : vector<6x64xbf16> to vector<4x64xbf16>
      %c4_191 = arith.constant 4 : index
      %c0_192 = arith.constant 0 : index
      %c0_193 = arith.constant 0 : index
      %250 = vector.load %arg5[%c4_191, %c0_192, %c0_193] : memref<9x64x64xbf16, #tpu.memory_space<vmem>>, vector<1x64x64xbf16>
      %251 = vector.shape_cast %250 : vector<1x64x64xbf16> to vector<64x64xbf16>
      %cst_194 = arith.constant dense<0.000000e+00> : vector<4x64xf32>
      %252 = tpu.matmul %249, %251, %cst_194 {dimension_numbers = #tpu.dot_dimension_numbers<[1], [0], [0], [1], [0, 0, 1, 1], [], []>} : vector<4x64xbf16>, vector<64x64xbf16>, vector<4x64xf32> -> vector<4x64xf32>
      %253 = arith.addf %248, %252 : vector<4x64xf32>
      %254 = vector.extract_strided_slice %243 {offsets = [2, 0], sizes = [4, 64], strides = [1, 1]} : vector<6x64xbf16> to vector<4x64xbf16>
      %c5_195 = arith.constant 5 : index
      %c0_196 = arith.constant 0 : index
      %c0_197 = arith.constant 0 : index
      %255 = vector.load %arg5[%c5_195, %c0_196, %c0_197] : memref<9x64x64xbf16, #tpu.memory_space<vmem>>, vector<1x64x64xbf16>
      %256 = vector.shape_cast %255 : vector<1x64x64xbf16> to vector<64x64xbf16>
      %cst_198 = arith.constant dense<0.000000e+00> : vector<4x64xf32>
      %257 = tpu.matmul %254, %256, %cst_198 {dimension_numbers = #tpu.dot_dimension_numbers<[1], [0], [0], [1], [0, 0, 1, 1], [], []>} : vector<4x64xbf16>, vector<64x64xbf16>, vector<4x64xf32> -> vector<4x64xf32>
      %258 = arith.addf %253, %257 : vector<4x64xf32>
      %259 = vector.extract_strided_slice %51 {offsets = [30, 0], sizes = [6, 64], strides = [1, 1]} : vector<36x64xbf16> to vector<6x64xbf16>
      %260 = vector.extract_strided_slice %259 {offsets = [0, 0], sizes = [4, 64], strides = [1, 1]} : vector<6x64xbf16> to vector<4x64xbf16>
      %c6_199 = arith.constant 6 : index
      %c0_200 = arith.constant 0 : index
      %c0_201 = arith.constant 0 : index
      %261 = vector.load %arg5[%c6_199, %c0_200, %c0_201] : memref<9x64x64xbf16, #tpu.memory_space<vmem>>, vector<1x64x64xbf16>
      %262 = vector.shape_cast %261 : vector<1x64x64xbf16> to vector<64x64xbf16>
      %cst_202 = arith.constant dense<0.000000e+00> : vector<4x64xf32>
      %263 = tpu.matmul %260, %262, %cst_202 {dimension_numbers = #tpu.dot_dimension_numbers<[1], [0], [0], [1], [0, 0, 1, 1], [], []>} : vector<4x64xbf16>, vector<64x64xbf16>, vector<4x64xf32> -> vector<4x64xf32>
      %264 = arith.addf %258, %263 : vector<4x64xf32>
      %265 = vector.extract_strided_slice %259 {offsets = [1, 0], sizes = [4, 64], strides = [1, 1]} : vector<6x64xbf16> to vector<4x64xbf16>
      %c7_203 = arith.constant 7 : index
      %c0_204 = arith.constant 0 : index
      %c0_205 = arith.constant 0 : index
      %266 = vector.load %arg5[%c7_203, %c0_204, %c0_205] : memref<9x64x64xbf16, #tpu.memory_space<vmem>>, vector<1x64x64xbf16>
      %267 = vector.shape_cast %266 : vector<1x64x64xbf16> to vector<64x64xbf16>
      %cst_206 = arith.constant dense<0.000000e+00> : vector<4x64xf32>
      %268 = tpu.matmul %265, %267, %cst_206 {dimension_numbers = #tpu.dot_dimension_numbers<[1], [0], [0], [1], [0, 0, 1, 1], [], []>} : vector<4x64xbf16>, vector<64x64xbf16>, vector<4x64xf32> -> vector<4x64xf32>
      %269 = arith.addf %264, %268 : vector<4x64xf32>
      %270 = vector.extract_strided_slice %259 {offsets = [2, 0], sizes = [4, 64], strides = [1, 1]} : vector<6x64xbf16> to vector<4x64xbf16>
      %c8_207 = arith.constant 8 : index
      %c0_208 = arith.constant 0 : index
      %c0_209 = arith.constant 0 : index
      %271 = vector.load %arg5[%c8_207, %c0_208, %c0_209] : memref<9x64x64xbf16, #tpu.memory_space<vmem>>, vector<1x64x64xbf16>
      %272 = vector.shape_cast %271 : vector<1x64x64xbf16> to vector<64x64xbf16>
      %cst_210 = arith.constant dense<0.000000e+00> : vector<4x64xf32>
      %273 = tpu.matmul %270, %272, %cst_210 {dimension_numbers = #tpu.dot_dimension_numbers<[1], [0], [0], [1], [0, 0, 1, 1], [], []>} : vector<4x64xbf16>, vector<64x64xbf16>, vector<4x64xf32> -> vector<4x64xf32>
      %274 = arith.addf %269, %273 : vector<4x64xf32>
      %c0_211 = arith.constant 0 : index
      %c0_212 = arith.constant 0 : index
      %275 = vector.load %arg6[%c0_211, %c0_212] : memref<1x64xf32, #tpu.memory_space<vmem>>, vector<1x64xf32>
      %276 = vector.broadcast %275 : vector<1x64xf32> to vector<4x64xf32>
      %277 = arith.addf %274, %276 : vector<4x64xf32>
      %cst_213 = arith.constant 0.000000e+00 : f32
      %278 = vector.broadcast %cst_213 : f32 to vector<4x64xf32>
      %279 = arith.maximumf %277, %278 : vector<4x64xf32>
      %280 = arith.truncf %279 : vector<4x64xf32> to vector<4x64xbf16>
      %c3_214 = arith.constant 3 : index
      %c0_215 = arith.constant 0 : index
      %c0_216 = arith.constant 0 : index
      %281 = vector.load %arg12[%c3_214, %c0_215, %c0_216] : memref<4x4x64xbf16, #tpu.memory_space<vmem>>, vector<1x4x64xbf16>
      %282 = vector.shape_cast %281 : vector<1x4x64xbf16> to vector<4x64xbf16>
      %283 = vector.shape_cast %280 : vector<4x64xbf16> to vector<1x4x64xbf16>
      tpu.vector_store %arg12[%c3_214, %c0_215, %c0_216], %283 {strides = array<i32>} : memref<4x4x64xbf16, #tpu.memory_space<vmem>>, vector<1x4x64xbf16>,
      %cst_217 = arith.constant 0.000000e+00 : f32
      %284 = vector.broadcast %cst_217 : f32 to vector<1x512xf32>
      %c0_218 = arith.constant 0 : index
      %c0_219 = arith.constant 0 : index
      %285 = vector.load %arg13[%c0_218, %c0_219] : memref<1x512xf32, #tpu.memory_space<vmem>>, vector<1x512xf32>
      tpu.vector_store %arg13[%c0_218, %c0_219], %284 {strides = array<i32>} : memref<1x512xf32, #tpu.memory_space<vmem>>, vector<1x512xf32>,
    } else {
    }
    %c0 = arith.constant 0 : index
    %c0_1 = arith.constant 0 : index
    %3 = vector.load %arg13[%c0, %c0_1] : memref<1x512xf32, #tpu.memory_space<vmem>>, vector<1x512xf32>
    %4 = arith.index_cast %arg1 : i32 to index
    %c0_2 = arith.constant 0 : index
    %c0_3 = arith.constant 0 : index
    %5 = vector.load %arg12[%4, %c0_2, %c0_3] : memref<4x4x64xbf16, #tpu.memory_space<vmem>>, vector<1x1x64xbf16>
    %6 = vector.shape_cast %5 : vector<1x1x64xbf16> to vector<1x64xbf16>
    %c0_4 = arith.constant 0 : index
    %c0_5 = arith.constant 0 : index
    %c0_6 = arith.constant 0 : index
    %c0_7 = arith.constant 0 : index
    %7 = vector.load %arg7[%c0_4, %c0_5, %c0_6, %c0_7] : memref<1x4x64x512xbf16, #tpu.memory_space<vmem>>, vector<1x1x64x512xbf16>
    %8 = vector.shape_cast %7 : vector<1x1x64x512xbf16> to vector<64x512xbf16>
    %cst = arith.constant dense<0.000000e+00> : vector<1x512xf32>
    %9 = tpu.matmul %6, %8, %cst {dimension_numbers = #tpu.dot_dimension_numbers<[1], [0], [0], [1], [0, 0, 1, 1], [], []>} : vector<1x64xbf16>, vector<64x512xbf16>, vector<1x512xf32> -> vector<1x512xf32>
    %10 = arith.addf %3, %9 : vector<1x512xf32>
    %c0_8 = arith.constant 0 : index
    %c0_9 = arith.constant 0 : index
    %11 = vector.load %arg13[%c0_8, %c0_9] : memref<1x512xf32, #tpu.memory_space<vmem>>, vector<1x512xf32>
    tpu.vector_store %arg13[%c0_8, %c0_9], %10 {strides = array<i32>} : memref<1x512xf32, #tpu.memory_space<vmem>>, vector<1x512xf32>,
    %c0_10 = arith.constant 0 : index
    %c0_11 = arith.constant 0 : index
    %12 = vector.load %arg13[%c0_10, %c0_11] : memref<1x512xf32, #tpu.memory_space<vmem>>, vector<1x512xf32>
    %13 = arith.index_cast %arg1 : i32 to index
    %c1 = arith.constant 1 : index
    %c0_12 = arith.constant 0 : index
    %14 = vector.load %arg12[%13, %c1, %c0_12] : memref<4x4x64xbf16, #tpu.memory_space<vmem>>, vector<1x1x64xbf16>
    %15 = vector.shape_cast %14 : vector<1x1x64xbf16> to vector<1x64xbf16>
    %c0_13 = arith.constant 0 : index
    %c1_14 = arith.constant 1 : index
    %c0_15 = arith.constant 0 : index
    %c0_16 = arith.constant 0 : index
    %16 = vector.load %arg7[%c0_13, %c1_14, %c0_15, %c0_16] : memref<1x4x64x512xbf16, #tpu.memory_space<vmem>>, vector<1x1x64x512xbf16>
    %17 = vector.shape_cast %16 : vector<1x1x64x512xbf16> to vector<64x512xbf16>
    %cst_17 = arith.constant dense<0.000000e+00> : vector<1x512xf32>
    %18 = tpu.matmul %15, %17, %cst_17 {dimension_numbers = #tpu.dot_dimension_numbers<[1], [0], [0], [1], [0, 0, 1, 1], [], []>} : vector<1x64xbf16>, vector<64x512xbf16>, vector<1x512xf32> -> vector<1x512xf32>
    %19 = arith.addf %12, %18 : vector<1x512xf32>
    %c0_18 = arith.constant 0 : index
    %c0_19 = arith.constant 0 : index
    %20 = vector.load %arg13[%c0_18, %c0_19] : memref<1x512xf32, #tpu.memory_space<vmem>>, vector<1x512xf32>
    tpu.vector_store %arg13[%c0_18, %c0_19], %19 {strides = array<i32>} : memref<1x512xf32, #tpu.memory_space<vmem>>, vector<1x512xf32>,
    %c0_20 = arith.constant 0 : index
    %c0_21 = arith.constant 0 : index
    %21 = vector.load %arg13[%c0_20, %c0_21] : memref<1x512xf32, #tpu.memory_space<vmem>>, vector<1x512xf32>
    %22 = arith.index_cast %arg1 : i32 to index
    %c2 = arith.constant 2 : index
    %c0_22 = arith.constant 0 : index
    %23 = vector.load %arg12[%22, %c2, %c0_22] : memref<4x4x64xbf16, #tpu.memory_space<vmem>>, vector<1x1x64xbf16>
    %24 = vector.shape_cast %23 : vector<1x1x64xbf16> to vector<1x64xbf16>
    %c0_23 = arith.constant 0 : index
    %c2_24 = arith.constant 2 : index
    %c0_25 = arith.constant 0 : index
    %c0_26 = arith.constant 0 : index
    %25 = vector.load %arg7[%c0_23, %c2_24, %c0_25, %c0_26] : memref<1x4x64x512xbf16, #tpu.memory_space<vmem>>, vector<1x1x64x512xbf16>
    %26 = vector.shape_cast %25 : vector<1x1x64x512xbf16> to vector<64x512xbf16>
    %cst_27 = arith.constant dense<0.000000e+00> : vector<1x512xf32>
    %27 = tpu.matmul %24, %26, %cst_27 {dimension_numbers = #tpu.dot_dimension_numbers<[1], [0], [0], [1], [0, 0, 1, 1], [], []>} : vector<1x64xbf16>, vector<64x512xbf16>, vector<1x512xf32> -> vector<1x512xf32>
    %28 = arith.addf %21, %27 : vector<1x512xf32>
    %c0_28 = arith.constant 0 : index
    %c0_29 = arith.constant 0 : index
    %29 = vector.load %arg13[%c0_28, %c0_29] : memref<1x512xf32, #tpu.memory_space<vmem>>, vector<1x512xf32>
    tpu.vector_store %arg13[%c0_28, %c0_29], %28 {strides = array<i32>} : memref<1x512xf32, #tpu.memory_space<vmem>>, vector<1x512xf32>,
    %c0_30 = arith.constant 0 : index
    %c0_31 = arith.constant 0 : index
    %30 = vector.load %arg13[%c0_30, %c0_31] : memref<1x512xf32, #tpu.memory_space<vmem>>, vector<1x512xf32>
    %31 = arith.index_cast %arg1 : i32 to index
    %c3 = arith.constant 3 : index
    %c0_32 = arith.constant 0 : index
    %32 = vector.load %arg12[%31, %c3, %c0_32] : memref<4x4x64xbf16, #tpu.memory_space<vmem>>, vector<1x1x64xbf16>
    %33 = vector.shape_cast %32 : vector<1x1x64xbf16> to vector<1x64xbf16>
    %c0_33 = arith.constant 0 : index
    %c3_34 = arith.constant 3 : index
    %c0_35 = arith.constant 0 : index
    %c0_36 = arith.constant 0 : index
    %34 = vector.load %arg7[%c0_33, %c3_34, %c0_35, %c0_36] : memref<1x4x64x512xbf16, #tpu.memory_space<vmem>>, vector<1x1x64x512xbf16>
    %35 = vector.shape_cast %34 : vector<1x1x64x512xbf16> to vector<64x512xbf16>
    %cst_37 = arith.constant dense<0.000000e+00> : vector<1x512xf32>
    %36 = tpu.matmul %33, %35, %cst_37 {dimension_numbers = #tpu.dot_dimension_numbers<[1], [0], [0], [1], [0, 0, 1, 1], [], []>} : vector<1x64xbf16>, vector<64x512xbf16>, vector<1x512xf32> -> vector<1x512xf32>
    %37 = arith.addf %30, %36 : vector<1x512xf32>
    %c0_38 = arith.constant 0 : index
    %c0_39 = arith.constant 0 : index
    %38 = vector.load %arg13[%c0_38, %c0_39] : memref<1x512xf32, #tpu.memory_space<vmem>>, vector<1x512xf32>
    tpu.vector_store %arg13[%c0_38, %c0_39], %37 {strides = array<i32>} : memref<1x512xf32, #tpu.memory_space<vmem>>, vector<1x512xf32>,
    %c3_i32 = arith.constant 3 : i32
    %39 = arith.cmpi eq, %arg1, %c3_i32 : i32
    %40 = arith.extui %39 : i1 to i32
    %c0_i32_40 = arith.constant 0 : i32
    %41 = arith.cmpi ne, %40, %c0_i32_40 : i32
    scf.if %41 {
      %c0_41 = arith.constant 0 : index
      %c0_42 = arith.constant 0 : index
      %42 = vector.load %arg13[%c0_41, %c0_42] : memref<1x512xf32, #tpu.memory_space<vmem>>, vector<1x512xf32>
      %c0_43 = arith.constant 0 : index
      %c0_44 = arith.constant 0 : index
      %43 = vector.load %arg8[%c0_43, %c0_44] : memref<1x512xf32, #tpu.memory_space<vmem>>, vector<1x512xf32>
      %44 = arith.addf %42, %43 : vector<1x512xf32>
      %cst_45 = arith.constant 0.000000e+00 : f32
      %45 = vector.broadcast %cst_45 : f32 to vector<1x512xf32>
      %46 = arith.maximumf %44, %45 : vector<1x512xf32>
      %47 = arith.truncf %46 : vector<1x512xf32> to vector<1x512xbf16>
      %c0_46 = arith.constant 0 : index
      %c0_47 = arith.constant 0 : index
      %48 = vector.load %arg9[%c0_46, %c0_47] : memref<512x4xbf16, #tpu.memory_space<vmem>>, vector<512x4xbf16>
      %cst_48 = arith.constant dense<0.000000e+00> : vector<1x4xf32>
      %49 = tpu.matmul %47, %48, %cst_48 {dimension_numbers = #tpu.dot_dimension_numbers<[1], [0], [0], [1], [0, 0, 1, 1], [], []>} : vector<1x512xbf16>, vector<512x4xbf16>, vector<1x4xf32> -> vector<1x4xf32>
      %c0_49 = arith.constant 0 : index
      %c0_50 = arith.constant 0 : index
      %50 = vector.load %arg10[%c0_49, %c0_50] : memref<1x4xf32, #tpu.memory_space<vmem>>, vector<1x4xf32>
      %51 = arith.addf %49, %50 : vector<1x4xf32>
      %c0_51 = arith.constant 0 : index
      %c0_52 = arith.constant 0 : index
      %c0_53 = arith.constant 0 : index
      %52 = vector.load %arg11[%c0_51, %c0_52, %c0_53] : memref<1x1x4xf32, #tpu.memory_space<vmem>>, vector<1x1x4xf32>
      %53 = vector.shape_cast %52 : vector<1x1x4xf32> to vector<1x4xf32>
      %54 = vector.shape_cast %51 : vector<1x4xf32> to vector<1x1x4xf32>
      tpu.vector_store %arg11[%c0_51, %c0_52, %c0_53], %54 {strides = array<i32>} : memref<1x1x4xf32, #tpu.memory_space<vmem>>, vector<1x1x4xf32>,
    } else {
    }
    return
  }
  func.func @transform_0(%arg0: i32, %arg1: i32) -> (i32, i32, i32) {
    %c0_i32 = arith.constant 0 : i32
    %c0_i32_0 = arith.constant 0 : i32
    %c0_i32_1 = arith.constant 0 : i32
    return %arg0, %c0_i32, %c0_i32_0 : i32, i32, i32
  }
  func.func @transform_1(%arg0: i32, %arg1: i32) -> (i32, i32) {
    %c0_i32 = arith.constant 0 : i32
    %c0_i32_0 = arith.constant 0 : i32
    %c0_i32_1 = arith.constant 0 : i32
    return %c0_i32, %c0_i32_0 : i32, i32
  }
  func.func @transform_2(%arg0: i32, %arg1: i32) -> (i32, i32) {
    %c0_i32 = arith.constant 0 : i32
    %c0_i32_0 = arith.constant 0 : i32
    %c0_i32_1 = arith.constant 0 : i32
    return %c0_i32, %c0_i32_0 : i32, i32
  }
  func.func @transform_3(%arg0: i32, %arg1: i32) -> (i32, i32, i32) {
    %c0_i32 = arith.constant 0 : i32
    %c0_i32_0 = arith.constant 0 : i32
    %c0_i32_1 = arith.constant 0 : i32
    %c0_i32_2 = arith.constant 0 : i32
    return %c0_i32, %c0_i32_0, %c0_i32_1 : i32, i32, i32
  }
  func.func @transform_4(%arg0: i32, %arg1: i32) -> (i32, i32) {
    %c0_i32 = arith.constant 0 : i32
    %c0_i32_0 = arith.constant 0 : i32
    %c0_i32_1 = arith.constant 0 : i32
    return %c0_i32, %c0_i32_0 : i32, i32
  }
  func.func @transform_5(%arg0: i32, %arg1: i32) -> (i32, i32, i32, i32) {
    %c0_i32 = arith.constant 0 : i32
    %c0_i32_0 = arith.constant 0 : i32
    %c0_i32_1 = arith.constant 0 : i32
    %c0_i32_2 = arith.constant 0 : i32
    return %arg1, %c0_i32, %c0_i32_0, %c0_i32_1 : i32, i32, i32, i32
  }
  func.func @transform_6(%arg0: i32, %arg1: i32) -> (i32, i32) {
    %c0_i32 = arith.constant 0 : i32
    %c0_i32_0 = arith.constant 0 : i32
    %c0_i32_1 = arith.constant 0 : i32
    return %c0_i32, %c0_i32_0 : i32, i32
  }
  func.func @transform_7(%arg0: i32, %arg1: i32) -> (i32, i32) {
    %c0_i32 = arith.constant 0 : i32
    %c0_i32_0 = arith.constant 0 : i32
    %c0_i32_1 = arith.constant 0 : i32
    return %c0_i32, %c0_i32_0 : i32, i32
  }
  func.func @transform_8(%arg0: i32, %arg1: i32) -> (i32, i32) {
    %c0_i32 = arith.constant 0 : i32
    %c0_i32_0 = arith.constant 0 : i32
    %c0_i32_1 = arith.constant 0 : i32
    return %c0_i32, %c0_i32_0 : i32, i32
  }
  func.func @transform_9(%arg0: i32, %arg1: i32) -> (i32, i32, i32) {
    %c0_i32 = arith.constant 0 : i32
    %c0_i32_0 = arith.constant 0 : i32
    %c0_i32_1 = arith.constant 0 : i32
    return %arg0, %c0_i32, %c0_i32_0 : i32, i32, i32
  }
}

</mosaic_0001>

<bundles_post_ra>
// kernel: qnetwork_forward.2
= control target key start
LH: loop header
LB: loop body
LE: loop exit
PB: predicated region body
PF: predicated region fallthrough
CT: control target
= control target key end

     0   :  { %s6589_s12 = smov 0   ;;  %s7721_s0 = inlined_call_operand.vmem [shape: bf16[2,16,16,48], index: 0, kind: input, shape index: {}]   ;;  %s7722_s1 = inlined_call_operand.vmem [shape: bf16[4,48,32], index: 1, kind: input, shape index: {}]   ;;  %s7723_s2 = inlined_call_operand.vmem [shape: f32[1,32], index: 2, kind: input, shape index: {}]   ;;  %s7724_s3 = inlined_call_operand.vmem [shape: bf16[2,15,15,32], index: 3, kind: output, shape index: {}]  }
   0x1 LB: > { %s4858_s13 = sadd.s32 4294967295, %s6565_s12   ;;  %p4862_p0 = scmp.ge.s32.totalorder %s6565_s12, 1  ;;  %s6565_s12 = sphi %s6589_s12, %s13_s12  }
   0x2   : > { %p137_p1 = scmp.lt.s32.totalorder %s6565_s12, 3 }
   0x4   : > { %p138_p2 = pnand %p4862_p0, %p137_p1 }
   0x5   : > { %v6363_v0 = vld [vmem:[%s7722_s1 + $0x18] sm:$0xff] (!%p138_p2)   ;;  %v6567_v1 = vmov (!%p138_p2), 0.0   ;;  %v6364_v2 = vld [vmem:[%s7722_s1] sm:$0xff] (!%p138_p2)   ;;  %vm6568_vm0 = vmmov (!%p138_p2), 0   ;;  %p161_p3 = scmp.lt.s32.totalorder (!%p138_p2), %s4858_s13, 1  ;;  %v6366_v4 = vld [vmem:[%s7722_s1 + $0x8] sm:$0xff] (!%p138_p2)  }
   0x6   : > { %141 = sbr.rel (%p138_p2) target bundleno = 597 (0x255), region = 32  ;;  %5752 = vmatprep.subr.bf16.mxu0 (!%p138_p2), %v6567_v1  ;;  %5762 = vmatprep.subr.bf16.mxu1 (!%p138_p2), %v6567_v1  ;;  %v6365_v3 = vld [vmem:[%s7722_s1 + $0x20] sm:$0xff] (!%p138_p2)   ;;  %v6367_v5 = vld [vmem:[%s7722_s1 + $0x28] sm:$0xff] (!%p138_p2)   ;;  %v6368_v6 = vld [vmem:[%s7722_s1 + $0x10] sm:$0xff] (!%p138_p2)   ;;  %vm247_vm1 = vcmask (!%p138_p2), 392192   ;;  %vm525_vm2 = vcmask (!%p138_p2), 257024  }
   0x7   : > { %5753 = vmatpush3.bf16.msra.mxu0 (!%p138_p2), %v6363_v0  ;;  %5768 = vmatprep.mubr.msk.bf16.mxu1 (!%p138_p2), %vm6568_vm0, %v6567_v1  ;;  %v6371_v10 = vld [vmem:[%s7722_s1 + $0x48] sm:$0xff] (!%p138_p2)   ;;  %v6370_v12 = vld [vmem:[%s7722_s1 + $0x30] sm:$0xff] (!%p138_p2)   ;;  %v6372_v16 = vld [vmem:[%s7722_s1 + $0x38] sm:$0xff] (!%p138_p2)   ;;  %vm528_vm3 = vsmask.f32 (!%p138_p2), 3328 }
   0x8   : > { %5763 = vmatpush3.bf16.msra.mxu1 (!%p138_p2), %v6364_v2  ;;  %5754 = vmatprep.subr.bf16.mxu0 (!%p138_p2), %v6567_v1  ;;  %v6373_v15 = vld [vmem:[%s7722_s1 + $0x50] sm:$0xff] (!%p138_p2)   ;;  %v6375_v20 = vld [vmem:[%s7722_s1 + $0x58] sm:$0xff] (!%p138_p2)   ;;  %v6374_v21 = vld [vmem:[%s7722_s1 + $0x40] sm:$0xff] (!%p138_p2)  }
   0x9   : > { %5764 = vmatprep.subr.bf16.mxu1 (!%p138_p2), %v6567_v1  ;;  %5758 = vmatprep.mubr.msk.bf16.mxu0 (!%p138_p2), %vm6568_vm0, %v6567_v1  ;;  %v6378_v23 = vld [vmem:[%s7722_s1] sm:$0xff] (!%p138_p2)   ;;  %v6377_v24 = vld [vmem:[%s7722_s1 + $0x18] sm:$0xff] (!%p138_p2)   ;;  %v6380_v25 = vld [vmem:[%s7722_s1 + $0x8] sm:$0xff] (!%p138_p2)  }
   0xa   : > { %v6379_v26 = vld [vmem:[%s7722_s1 + $0x20] sm:$0xff] (!%p138_p2)   ;;  %v6382_v27 = vld [vmem:[%s7722_s1 + $0x10] sm:$0xff] (!%p138_p2)   ;;  %v6381_v28 = vld [vmem:[%s7722_s1 + $0x28] sm:$0xff] (!%p138_p2)  }
   0xb   : > { %5755 = vmatpush3.bf16.msra.mxu0 (!%p138_p2), %v6365_v3  ;;  %v6384_v30 = vld [vmem:[%s7722_s1 + $0x48] sm:$0xff] (!%p138_p2)   ;;  %v6383_v31 = vld [vmem:[%s7722_s1 + $0x30] sm:$0xff] (!%p138_p2)   ;;  %v6385_v34 = vld [vmem:[%s7722_s1 + $0x38] sm:$0xff] (!%p138_p2)  }
   0xc   : > { %5765 = vmatpush3.bf16.msra.mxu1 (!%p138_p2), %v6366_v4  ;;  %5756 = vmatprep.subr.bf16.mxu0 (!%p138_p2), %v6567_v1  ;;  %v6386_v33 = vld [vmem:[%s7722_s1 + $0x50] sm:$0xff] (!%p138_p2)   ;;  %v6388_v35 = vld [vmem:[%s7722_s1 + $0x58] sm:$0xff] (!%p138_p2)   ;;  %v6387_v38 = vld [vmem:[%s7722_s1 + $0x40] sm:$0xff] (!%p138_p2)  }
   0xd   : > { %s7728_s13 = smov (!%p161_p3, %s4858_s13), 1  ;;  %5766 = vmatprep.subr.bf16.mxu1 %v6567_v1  ;;  %v6391_v40 = vld [vmem:[%s7722_s1] sm:$0xff]   ;;  %v6390_v41 = vld [vmem:[%s7722_s1 + $0x18] sm:$0xff]   ;;  %v6393_v42 = vld [vmem:[%s7722_s1 + $0x8] sm:$0xff]  }
   0xe   : > { %s5481_s24 = sshll.u32 %s7728_s13, 7  ;;  %v6392_v43 = vld [vmem:[%s7722_s1 + $0x20] sm:$0xff]   ;;  %v6395_v44 = vld [vmem:[%s7722_s1 + $0x10] sm:$0xff]   ;;  %v6394_v45 = vld [vmem:[%s7722_s1 + $0x28] sm:$0xff]   ;;  %s6352_s23 = smul.u32 120, %s7728_s13 }
   0xf   : > { %s6630_s29 = scalar_lea.vmem %s7721_s0, %s5481_s24  ;;  %5757 = vmatpush3.bf16.msra.mxu0 %v6367_v5  ;;  %v6397_v47 = vld [vmem:[%s7722_s1 + $0x48] sm:$0xff]   ;;  %v6396_v48 = vld [vmem:[%s7722_s1 + $0x30] sm:$0xff]   ;;  %v6398_v51 = vld [vmem:[%s7722_s1 + $0x38] sm:$0xff]  }
  0x10   : > { %v6369_v7 = vld [vmem:[%s6630_s29] sm:$0xff]   ;;  %5767 = vmatpush3.bf16.msra.mxu1 %v6368_v6  ;;  %5772 = vmatprep.subr.bf16.mxu0 %v6567_v1  ;;  %v6376_v14 = vld [vmem:[%s6630_s29 + $0x8] sm:$0xff]   ;;  %v6389_v29 = vld [vmem:[%s6630_s29 + $0x10] sm:$0xff]   ;;  %s7259_s30 = scalar_lea.vmem %s7724_s3, %s6352_s23 }
  0x11   : > { %v223_v8 = vshrl.u32 %v6369_v7, 16  ;;  %v225_v9 = vshll.u32 %v6369_v7, 16  ;;  %5782 = vmatprep.subr.bf16.mxu1 %v6567_v1  ;;  %v438_v17 = vshll.u32 %v6376_v14, 16  ;;  %v436_v18 = vshrl.u32 %v6376_v14, 16  ;;  %v6402_v46 = vld [vmem:[%s6630_s29 + $0x18] sm:$0xff]   ;;  %v6399_v50 = vld [vmem:[%s7722_s1 + $0x50] sm:$0xff]   ;;  %vm7268_vm4 = vmand %vm525_vm2, %vm528_vm3 }
  0x12   : > { %v746_v32 = vshll.u32 %v6389_v29, 16  ;;  %v744_v36 = vshrl.u32 %v6389_v29, 16  ;;  %v1051_v49 = vshll.u32 %v6402_v46, 16  ;;  %v1049_v52 = vshrl.u32 %v6402_v46, 16  ;;  %v6401_v54 = vld [vmem:[%s7722_s1 + $0x58] sm:$0xff]   ;;  %v6400_v55 = vld [vmem:[%s7722_s1 + $0x40] sm:$0xff]  }
  0x13   : > { %v227_v11 = vrot.slane %v225_v9, 1  ;;  %5769 = vmatmul.mubr.msk.bf16.vlgmr.msra.gmra.mrb[0].mxu1 %vm247_vm1, %v6369_v7  ;;  %v440_v19 = vrot.slane %v438_v17, 1  ;;  %v6404_v57 = vld [vmem:[%s7722_s1] sm:$0xff]   ;;  %v6403_v58 = vld [vmem:[%s7722_s1 + $0x18] sm:$0xff]   ;;  %v6406_v59 = vld [vmem:[%s7722_s1 + $0x8] sm:$0xff]  }
  0x14   : > { %5783 = vmatpush3.bf16.msra.mxu1 %v6371_v10  ;;  %5788 = vmatprep.mubr.msk.bf16.mxu1 %vm6568_vm0, %v6567_v1  ;;  %v748_v37 = vrot.slane %v746_v32, 1  ;;  %v1053_v53 = vrot.slane %v1051_v49, 1  ;;  %v6405_v60 = vld [vmem:[%s7722_s1 + $0x20] sm:$0xff]   ;;  %v6408_v61 = vld [vmem:[%s7722_s1 + $0x10] sm:$0xff]   ;;  %v6407_v62 = vld [vmem:[%s7722_s1 + $0x28] sm:$0xff]  }
  0x15   : > { %v228_v13 = vor.u32 %v227_v11, %v223_v8  ;;  %5784 = vmatprep.subr.bf16.mxu1 %v6567_v1  ;;  %v441_v22 = vor.u32 %v440_v19, %v436_v18  ;;  %v6415_v63 = vld [vmem:[%s6630_s29 + $0x20] sm:$0xff]   ;;  %v6410_v0 = vld [vmem:[%s7722_s1 + $0x48] sm:$0xff]   ;;  %v6409_v2 = vld [vmem:[%s7722_s1 + $0x30] sm:$0xff]  }
  0x16   : > { %v749_v39 = vor.u32 %v748_v37, %v744_v36  ;;  %v1054_v56 = vor.u32 %v1053_v53, %v1049_v52  ;;  %v1356_v3 = vshll.u32 %v6415_v63, 16  ;;  %v6412_v4 = vld [vmem:[%s7722_s1 + $0x50] sm:$0xff]   ;;  %v6411_v5 = vld [vmem:[%s7722_s1 + $0x38] sm:$0xff]   ;;  %v1354_v6 = vshrl.u32 %v6415_v63, 16  ;;  %v6413_v9 = vld [vmem:[%s7722_s1 + $0x40] sm:$0xff]  }
  0x17   : > { %5759 = vmatmul.mubr.msk.bf16.vlgmr.msra.gmra.mrb[0].mxu0 %vm247_vm1, %v228_v13  ;;  %v6414_v8 = vld [vmem:[%s7722_s1 + $0x58] sm:$0xff]   ;;  %v6417_v11 = vld [vmem:[%s7722_s1] sm:$0xff]   ;;  %v6419_v13 = vld [vmem:[%s7722_s1 + $0x8] sm:$0xff]  }
  0x18   : > { %5773 = vmatpush3.bf16.msra.mxu0 %v6370_v12  ;;  %5778 = vmatprep.mubr.msk.bf16.mxu0 %vm6568_vm0, %v6567_v1  ;;  %v1358_v7 = vrot.slane %v1356_v3, 1  ;;  %v6416_v12 = vld [vmem:[%s7722_s1 + $0x18] sm:$0xff]   ;;  %v6428_v17 = vld [vmem:[%s6630_s29 + $0x28] sm:$0xff]   ;;  %v6422_v19 = vld [vmem:[%s7722_s1 + $0x30] sm:$0xff]  }
  0x19   : > { %5774 = vmatprep.subr.bf16.mxu0 %v6567_v1  ;;  %5785 = vmatpush3.bf16.msra.mxu1 %v6373_v15  ;;  %v6421_v15 = vld [vmem:[%s7722_s1 + $0x10] sm:$0xff]   ;;  %v6423_v18 = vld [vmem:[%s7722_s1 + $0x48] sm:$0xff]  }
  0x1a   : > { %5786 = vmatprep.subr.bf16.mxu1 %v6567_v1  ;;  %v1359_v10 = vor.u32 %v1358_v7, %v1354_v6  ;;  %v6434_v32 = vld [vmem:[%s7722_s1 + $0x10] sm:$0xff]   ;;  %v6449_v52 = vld [vmem:[%s7722_s1 + $0x48] sm:$0xff]  }
  0x1b   : > { %v6435_v36 = vld [vmem:[%s7722_s1 + $0x30] sm:$0xff]   ;;  %v6459_v3 = vld [vmem:[%s7722_s1 + $0x28] sm:$0xff]  }
  0x1c   : > { %5775 = vmatpush3.bf16.msra.mxu0 %v6372_v16  ;;  %v6420_v16 = vld [vmem:[%s7722_s1 + $0x28] sm:$0xff]   ;;  %v6438_v37 = vld [vmem:[%s7722_s1 + $0x50] sm:$0xff]  }
  0x1d   : > { %5776 = vmatprep.subr.bf16.mxu0 %v6567_v1  ;;  %5787 = vmatpush3.bf16.msra.mxu1 %v6375_v20  ;;  %v1661_v20 = vshll.u32 %v6428_v17, 16  ;;  %v6447_v49 = vld [vmem:[%s7722_s1 + $0x10] sm:$0xff]   ;;  %v6462_v6 = vld [vmem:[%s7722_s1 + $0x48] sm:$0xff]  }
  0x1e   : > { %5802 = vmatprep.subr.bf16.mxu1 %v6567_v1  ;;  %v6448_v53 = vld [vmem:[%s7722_s1 + $0x30] sm:$0xff]  }
  0x1f   : > { %v6461_v7 = vld [vmem:[%s7722_s1 + $0x30] sm:$0xff]  }
  0x20   : > { %5777 = vmatpush3.bf16.msra.mxu0 %v6374_v21  ;;  %5789 = vmatmul.mubr.msk.bf16.vlgmr.msra.gmra.mrb[4].mxu1 %vm247_vm1, %v441_v22  ;;  %v6425_v21 = vld [vmem:[%s7722_s1 + $0x50] sm:$0xff]  }
  0x21   : > { %5792 = vmatprep.subr.bf16.mxu0 %v6567_v1  ;;  %5803 = vmatpush3.bf16.msra.mxu1 %v6378_v23  ;;  %v1659_v23 = vshrl.u32 %v6428_v17, 16 }
  0x22   : > { %5808 = vmatprep.mubr.msk.bf16.mxu1 %vm6568_vm0, %v6567_v1  ;;  %5804 = vmatprep.subr.bf16.mxu1 %v6567_v1 }
  0x23   : > { %5779 = vmatmul.mubr.msk.bf16.vlgmr.msra.gmra.mrb[4].mxu0 %vm247_vm1, %v6376_v14 }
  0x24   : > { %5793 = vmatpush3.bf16.msra.mxu0 %v6377_v24  ;;  %5798 = vmatprep.mubr.msk.bf16.mxu0 %vm6568_vm0, %v6567_v1  ;;  %v1663_v24 = vrot.slane %v1661_v20, 1  ;;  %v6473_v20 = vld [vmem:[%s7722_s1 + $0x10] sm:$0xff]  }
  0x25   : > { %5794 = vmatprep.subr.bf16.mxu0 %v6567_v1  ;;  %5805 = vmatpush3.bf16.msra.mxu1 %v6380_v25  ;;  %v6427_v25 = vld [vmem:[%s7722_s1 + $0x58] sm:$0xff]  }
  0x26   : > { %5806 = vmatprep.subr.bf16.mxu1 %v6567_v1 }
  0x28   : > { %5795 = vmatpush3.bf16.msra.mxu0 %v6379_v26  ;;  %v6426_v26 = vld [vmem:[%s7722_s1 + $0x40] sm:$0xff]  }
  0x29   : > { %5796 = vmatprep.subr.bf16.mxu0 %v6567_v1  ;;  %5807 = vmatpush3.bf16.msra.mxu1 %v6382_v27  ;;  %v1664_v27 = vor.u32 %v1663_v24, %v1659_v23  ;;  %v6475_v23 = vld [vmem:[%s7722_s1 + $0x48] sm:$0xff]   ;;  %v6474_v24 = vld [vmem:[%s7722_s1 + $0x30] sm:$0xff]  }
  0x2a   : > { %5822 = vmatprep.subr.bf16.mxu1 %v6567_v1 }
  0x2c   : > { %5797 = vmatpush3.bf16.msra.mxu0 %v6381_v28  ;;  %5809 = vmatmul.mubr.msk.bf16.vlgmr.msra.gmra.mrb[8].mxu1 %vm247_vm1, %v6376_v14  ;;  %v6418_v14 = vld [vmem:[%s7722_s1 + $0x20] sm:$0xff]  }
  0x2d   : > { %5812 = vmatprep.subr.bf16.mxu0 %v6567_v1  ;;  %5823 = vmatpush3.bf16.msra.mxu1 %v6384_v30  ;;  %v6430_v28 = vld [vmem:[%s7722_s1] sm:$0xff]   ;;  %v6432_v30 = vld [vmem:[%s7722_s1 + $0x8] sm:$0xff]  }
  0x2e   : > { %5828 = vmatprep.mubr.msk.bf16.mxu1 %vm6568_vm0, %v6567_v1  ;;  %5824 = vmatprep.subr.bf16.mxu1 %v6567_v1 }
  0x2f   : > { %5799 = vmatmul.mubr.msk.bf16.vlgmr.msra.gmra.mrb[8].mxu0 %vm247_vm1, %v441_v22  ;;  %v6424_v22 = vld [vmem:[%s7722_s1 + $0x38] sm:$0xff]  }
  0x30   : > { %5813 = vmatpush3.bf16.msra.mxu0 %v6383_v31  ;;  %5818 = vmatprep.mubr.msk.bf16.mxu0 %vm6568_vm0, %v6567_v1  ;;  %v6431_v31 = vld [vmem:[%s7722_s1 + $0x20] sm:$0xff]  }
  0x31   : > { %5814 = vmatprep.subr.bf16.mxu0 %v6567_v1  ;;  %5825 = vmatpush3.bf16.msra.mxu1 %v6386_v33  ;;  %v6433_v33 = vld [vmem:[%s7722_s1 + $0x28] sm:$0xff]  }
  0x32   : > { %5826 = vmatprep.subr.bf16.mxu1 %v6567_v1 }
  0x34   : > { %5815 = vmatpush3.bf16.msra.mxu0 %v6385_v34  ;;  %v6441_v34 = vld [vmem:[%s6630_s29 + $0x30] sm:$0xff]  }
  0x35   : > { %5816 = vmatprep.subr.bf16.mxu0 %v6567_v1  ;;  %5827 = vmatpush3.bf16.msra.mxu1 %v6388_v35  ;;  %v6436_v35 = vld [vmem:[%s7722_s1 + $0x48] sm:$0xff]  }
  0x36   : > { %5842 = vmatprep.subr.bf16.mxu1 %v6567_v1 }
  0x38   : > { %5817 = vmatpush3.bf16.msra.mxu0 %v6387_v38  ;;  %5829 = vmatmul.mubr.msk.bf16.vlgmr.msra.gmra.mrb[12].mxu1 %vm247_vm1, %v749_v39  ;;  %v1966_v38 = vshll.u32 %v6441_v34, 16 }
  0x39   : > { %5832 = vmatprep.subr.bf16.mxu0 %v6567_v1  ;;  %5843 = vmatpush3.bf16.msra.mxu1 %v6391_v40  ;;  %v1964_v40 = vshrl.u32 %v6441_v34, 16 }
  0x3a   : > { %5848 = vmatprep.mubr.msk.bf16.mxu1 %vm6568_vm0, %v6567_v1  ;;  %5844 = vmatprep.subr.bf16.mxu1 %v6567_v1 }
  0x3b   : > { %5819 = vmatmul.mubr.msk.bf16.vlgmr.msra.gmra.mrb[12].mxu0 %vm247_vm1, %v6389_v29 }
  0x3c   : > { %5833 = vmatpush3.bf16.msra.mxu0 %v6390_v41  ;;  %5838 = vmatprep.mubr.msk.bf16.mxu0 %vm6568_vm0, %v6567_v1  ;;  %v1968_v41 = vrot.slane %v1966_v38, 1 }
  0x3d   : > { %5834 = vmatprep.subr.bf16.mxu0 %v6567_v1  ;;  %5845 = vmatpush3.bf16.msra.mxu1 %v6393_v42  ;;  %v6440_v42 = vld [vmem:[%s7722_s1 + $0x58] sm:$0xff]  }
  0x3e   : > { %5846 = vmatprep.subr.bf16.mxu1 %v6567_v1 }
  0x40   : > { %5835 = vmatpush3.bf16.msra.mxu0 %v6392_v43  ;;  %v6439_v43 = vld [vmem:[%s7722_s1 + $0x40] sm:$0xff]  }
  0x41   : > { %5836 = vmatprep.subr.bf16.mxu0 %v6567_v1  ;;  %5847 = vmatpush3.bf16.msra.mxu1 %v6395_v44  ;;  %v1969_v44 = vor.u32 %v1968_v41, %v1964_v40  ;;  %v7189_v41 = vld [vmem:[%s6630_s29 + $0x50] sm:$0xff]  }
  0x42   : > { %5862 = vmatprep.subr.bf16.mxu1 %v6567_v1 }
  0x44   : > { %5837 = vmatpush3.bf16.msra.mxu0 %v6394_v45  ;;  %5849 = vmatmul.mubr.msk.bf16.vlgmr.msra.gmra.mrb[16].mxu1 %vm247_vm1, %v6389_v29  ;;  %v6429_v29 = vld [vmem:[%s7722_s1 + $0x18] sm:$0xff]   ;;  %v6443_v45 = vld [vmem:[%s7722_s1] sm:$0xff]  }
  0x45   : > { %5852 = vmatprep.subr.bf16.mxu0 %v6567_v1  ;;  %5863 = vmatpush3.bf16.msra.mxu1 %v6397_v47  ;;  %v6445_v47 = vld [vmem:[%s7722_s1 + $0x8] sm:$0xff]  }
  0x46   : > { %5868 = vmatprep.mubr.msk.bf16.mxu1 %vm6568_vm0, %v6567_v1  ;;  %5864 = vmatprep.subr.bf16.mxu1 %v6567_v1 }
  0x47   : > { %5839 = vmatmul.mubr.msk.bf16.vlgmr.msra.gmra.mrb[16].mxu0 %vm247_vm1, %v749_v39  ;;  %v6437_v39 = vld [vmem:[%s7722_s1 + $0x38] sm:$0xff]  }
  0x48   : > { %5853 = vmatpush3.bf16.msra.mxu0 %v6396_v48  ;;  %5858 = vmatprep.mubr.msk.bf16.mxu0 %vm6568_vm0, %v6567_v1  ;;  %v6444_v48 = vld [vmem:[%s7722_s1 + $0x20] sm:$0xff]  }
  0x49   : > { %5854 = vmatprep.subr.bf16.mxu0 %v6567_v1  ;;  %5865 = vmatpush3.bf16.msra.mxu1 %v6399_v50  ;;  %v6446_v50 = vld [vmem:[%s7722_s1 + $0x28] sm:$0xff]  }
  0x4a   : > { %5866 = vmatprep.subr.bf16.mxu1 %v6567_v1 }
  0x4c   : > { %5855 = vmatpush3.bf16.msra.mxu0 %v6398_v51  ;;  %v6454_v51 = vld [vmem:[%s6630_s29 + $0x38] sm:$0xff]  }
  0x4d   : > { %5856 = vmatprep.subr.bf16.mxu0 %v6567_v1  ;;  %5867 = vmatpush3.bf16.msra.mxu1 %v6401_v54  ;;  %v2271_v54 = vshll.u32 %v6454_v51, 16 }
  0x4e   : > { %5882 = vmatprep.subr.bf16.mxu1 %v6567_v1 }
  0x50   : > { %5857 = vmatpush3.bf16.msra.mxu0 %v6400_v55  ;;  %5869 = vmatmul.mubr.msk.bf16.vlgmr.msra.gmra.mrb[20].mxu1 %vm247_vm1, %v1054_v56  ;;  %v6451_v55 = vld [vmem:[%s7722_s1 + $0x50] sm:$0xff]  }
  0x51   : > { %5872 = vmatprep.subr.bf16.mxu0 %v6567_v1  ;;  %5883 = vmatpush3.bf16.msra.mxu1 %v6404_v57  ;;  %v2269_v57 = vshrl.u32 %v6454_v51, 16 }
  0x52   : > { %5888 = vmatprep.mubr.msk.bf16.mxu1 %vm6568_vm0, %v6567_v1  ;;  %5884 = vmatprep.subr.bf16.mxu1 %v6567_v1 }
  0x53   : > { %5859 = vmatmul.mubr.msk.bf16.vlgmr.msra.gmra.mrb[20].mxu0 %vm247_vm1, %v6402_v46 }
  0x54   : > { %5873 = vmatpush3.bf16.msra.mxu0 %v6403_v58  ;;  %5878 = vmatprep.mubr.msk.bf16.mxu0 %vm6568_vm0, %v6567_v1  ;;  %v2273_v58 = vrot.slane %v2271_v54, 1  ;;  %v6489_v54 = vld [vmem:[%s7722_s1 + $0x38] sm:$0xff]  }
  0x55   : > { %5874 = vmatprep.subr.bf16.mxu0 %v6567_v1  ;;  %5885 = vmatpush3.bf16.msra.mxu1 %v6406_v59  ;;  %v6452_v59 = vld [vmem:[%s7722_s1 + $0x40] sm:$0xff]  }
  0x56   : > { %5886 = vmatprep.subr.bf16.mxu1 %v6567_v1 }
  0x58   : > { %5875 = vmatpush3.bf16.msra.mxu0 %v6405_v60  ;;  %v6453_v60 = vld [vmem:[%s7722_s1 + $0x58] sm:$0xff]  }
  0x59   : > { %5876 = vmatprep.subr.bf16.mxu0 %v6567_v1  ;;  %5887 = vmatpush3.bf16.msra.mxu1 %v6408_v61  ;;  %v2274_v61 = vor.u32 %v2273_v58, %v2269_v57  ;;  %v6492_v57 = vld [vmem:[%s7722_s1 + $0x58] sm:$0xff]  }
  0x5a   : > { %5902 = vmatprep.subr.bf16.mxu1 %v6567_v1 }
  0x5c   : > { %5877 = vmatpush3.bf16.msra.mxu0 %v6407_v62  ;;  %5889 = vmatmul.mubr.msk.bf16.vlgmr.msra.gmra.mrb[24].mxu1 %vm247_vm1, %v6402_v46  ;;  %v6442_v46 = vld [vmem:[%s7722_s1 + $0x18] sm:$0xff]  }
  0x5d   : > { %5892 = vmatprep.subr.bf16.mxu0 %v6567_v1  ;;  %5903 = vmatpush3.bf16.msra.mxu1 %v6410_v0  ;;  %v6455_v62 = vld [vmem:[%s7722_s1 + $0x18] sm:$0xff]   ;;  %v6457_v0 = vld [vmem:[%s7722_s1 + $0x20] sm:$0xff]  }
  0x5e   : > { %5908 = vmatprep.mubr.msk.bf16.mxu1 %vm6568_vm0, %v6567_v1  ;;  %5904 = vmatprep.subr.bf16.mxu1 %v6567_v1 }
  0x5f   : > { %5879 = vmatmul.mubr.msk.bf16.vlgmr.msra.gmra.mrb[24].mxu0 %vm247_vm1, %v1054_v56  ;;  %v6450_v56 = vld [vmem:[%s7722_s1 + $0x38] sm:$0xff]  }
  0x60   : > { %5893 = vmatpush3.bf16.msra.mxu0 %v6409_v2  ;;  %5898 = vmatprep.mubr.msk.bf16.mxu0 %vm6568_vm0, %v6567_v1  ;;  %v6458_v2 = vld [vmem:[%s7722_s1 + $0x8] sm:$0xff]  }
  0x61   : > { %5894 = vmatprep.subr.bf16.mxu0 %v6567_v1  ;;  %5905 = vmatpush3.bf16.msra.mxu1 %v6412_v4  ;;  %v6460_v4 = vld [vmem:[%s7722_s1 + $0x10] sm:$0xff]  }
  0x62   : > { %5906 = vmatprep.subr.bf16.mxu1 %v6567_v1 }
  0x64   : > { %5895 = vmatpush3.bf16.msra.mxu0 %v6411_v5  ;;  %v6467_v5 = vld [vmem:[%s6630_s29 + $0x40] sm:$0xff]  }
  0x65   : > { %5896 = vmatprep.subr.bf16.mxu0 %v6567_v1  ;;  %5907 = vmatpush3.bf16.msra.mxu1 %v6414_v8  ;;  %v2576_v8 = vshll.u32 %v6467_v5, 16 }
  0x66   : > { %5922 = vmatprep.subr.bf16.mxu1 %v6567_v1 }
  0x68   : > { %5897 = vmatpush3.bf16.msra.mxu0 %v6413_v9  ;;  %5909 = vmatmul.mubr.msk.bf16.vlgmr.msra.gmra.mrb[28].mxu1 %vm247_vm1, %v1359_v10  ;;  %v6463_v9 = vld [vmem:[%s7722_s1 + $0x38] sm:$0xff]  }
  0x69   : > { %5912 = vmatprep.subr.bf16.mxu0 %v6567_v1  ;;  %5923 = vmatpush3.bf16.msra.mxu1 %v6417_v11  ;;  %v2574_v11 = vshrl.u32 %v6467_v5, 16 }
  0x6a   : > { %5928 = vmatprep.mubr.msk.bf16.mxu1 %vm6568_vm0, %v6567_v1  ;;  %5924 = vmatprep.subr.bf16.mxu1 %v6567_v1 }
  0x6b   : > { %5899 = vmatmul.mubr.msk.bf16.vlgmr.msra.gmra.mrb[28].mxu0 %vm247_vm1, %v6415_v63 }
  0x6c   : > { %5913 = vmatpush3.bf16.msra.mxu0 %v6416_v12  ;;  %5918 = vmatprep.mubr.msk.bf16.mxu0 %vm6568_vm0, %v6567_v1  ;;  %v2578_v12 = vrot.slane %v2576_v8, 1 }
  0x6d   : > { %5914 = vmatprep.subr.bf16.mxu0 %v6567_v1  ;;  %5925 = vmatpush3.bf16.msra.mxu1 %v6419_v13  ;;  %v6465_v13 = vld [vmem:[%s7722_s1 + $0x40] sm:$0xff]  }
  0x6e   : > { %5926 = vmatprep.subr.bf16.mxu1 %v6567_v1 }
  0x70   : > { %5915 = vmatpush3.bf16.msra.mxu0 %v6418_v14  ;;  %v6466_v14 = vld [vmem:[%s7722_s1 + $0x58] sm:$0xff]  }
  0x71   : > { %5916 = vmatprep.subr.bf16.mxu0 %v6567_v1  ;;  %5927 = vmatpush3.bf16.msra.mxu1 %v6421_v15  ;;  %v2579_v15 = vor.u32 %v2578_v12, %v2574_v11  ;;  %v6497_v11 = vld [vmem:[%s7722_s1 + $0x8] sm:$0xff]  }
  0x72   : > { %5942 = vmatprep.subr.bf16.mxu1 %v6567_v1 }
  0x74   : > { %5917 = vmatpush3.bf16.msra.mxu0 %v6420_v16  ;;  %5929 = vmatmul.mubr.msk.bf16.vlgmr.msra.gmra.mrb[32].mxu1 %vm247_vm1, %v6415_v63  ;;  %v6456_v63 = vld [vmem:[%s7722_s1] sm:$0xff]  }
  0x75   : > { %5932 = vmatprep.subr.bf16.mxu0 %v6567_v1  ;;  %5943 = vmatpush3.bf16.msra.mxu1 %v6423_v18  ;;  %v6469_v16 = vld [vmem:[%s7722_s1] sm:$0xff]   ;;  %v6471_v18 = vld [vmem:[%s7722_s1 + $0x8] sm:$0xff]  }
  0x76   : > { %5948 = vmatprep.mubr.msk.bf16.mxu1 %vm6568_vm0, %v6567_v1  ;;  %5944 = vmatprep.subr.bf16.mxu1 %v6567_v1 }
  0x77   : > { %5919 = vmatmul.mubr.msk.bf16.vlgmr.msra.gmra.mrb[32].mxu0 %vm247_vm1, %v1359_v10  ;;  %v6464_v10 = vld [vmem:[%s7722_s1 + $0x50] sm:$0xff]  }
  0x78   : > { %5933 = vmatpush3.bf16.msra.mxu0 %v6422_v19  ;;  %5938 = vmatprep.mubr.msk.bf16.mxu0 %vm6568_vm0, %v6567_v1  ;;  %v6470_v19 = vld [vmem:[%s7722_s1 + $0x20] sm:$0xff]  }
  0x79   : > { %5934 = vmatprep.subr.bf16.mxu0 %v6567_v1  ;;  %5945 = vmatpush3.bf16.msra.mxu1 %v6425_v21  ;;  %v6472_v21 = vld [vmem:[%s7722_s1 + $0x28] sm:$0xff]  }
  0x7a   : > { %5946 = vmatprep.subr.bf16.mxu1 %v6567_v1 }
  0x7c   : > { %5935 = vmatpush3.bf16.msra.mxu0 %v6424_v22  ;;  %v7123_v22 = vld [vmem:[%s6630_s29 + $0x48] sm:$0xff]  }
  0x7d   : > { %5936 = vmatprep.subr.bf16.mxu0 %v6567_v1  ;;  %5947 = vmatpush3.bf16.msra.mxu1 %v6427_v25  ;;  %v2881_v25 = vshll.u32 %v7123_v22, 16 }
  0x7e   : > { %5962 = vmatprep.subr.bf16.mxu1 %v6567_v1 }
  0x80   : > { %5937 = vmatpush3.bf16.msra.mxu0 %v6426_v26  ;;  %5949 = vmatmul.mubr.msk.bf16.vlgmr.msra.gmra.mrb[36].mxu1 %vm247_vm1, %v1664_v27  ;;  %v6477_v26 = vld [vmem:[%s7722_s1 + $0x50] sm:$0xff]  }
  0x81   : > { %5952 = vmatprep.subr.bf16.mxu0 %v6567_v1  ;;  %5963 = vmatpush3.bf16.msra.mxu1 %v6430_v28  ;;  %v2879_v28 = vshrl.u32 %v7123_v22, 16 }
  0x82   : > { %5968 = vmatprep.mubr.msk.bf16.mxu1 %vm6568_vm0, %v6567_v1  ;;  %5964 = vmatprep.subr.bf16.mxu1 %v6567_v1 }
  0x83   : > { %5939 = vmatmul.mubr.msk.bf16.vlgmr.msra.gmra.mrb[36].mxu0 %vm247_vm1, %v6428_v17 }
  0x84   : > { %5953 = vmatpush3.bf16.msra.mxu0 %v6429_v29  ;;  %5958 = vmatprep.mubr.msk.bf16.mxu0 %vm6568_vm0, %v6567_v1  ;;  %v2883_v29 = vrot.slane %v2881_v25, 1 }
  0x85   : > { %5954 = vmatprep.subr.bf16.mxu0 %v6567_v1  ;;  %5965 = vmatpush3.bf16.msra.mxu1 %v6432_v30  ;;  %v6479_v30 = vld [vmem:[%s7722_s1 + $0x58] sm:$0xff]  }
  0x86   : > { %5966 = vmatprep.subr.bf16.mxu1 %v6567_v1 }
  0x88   : > { %5955 = vmatpush3.bf16.msra.mxu0 %v6431_v31  ;;  %v6478_v31 = vld [vmem:[%s7722_s1 + $0x40] sm:$0xff]  }
  0x89   : > { %5956 = vmatprep.subr.bf16.mxu0 %v6567_v1  ;;  %5967 = vmatpush3.bf16.msra.mxu1 %v6434_v32  ;;  %v2884_v32 = vor.u32 %v2883_v29, %v2879_v28  ;;  %v6501_v29 = vld [vmem:[%s7722_s1 + $0x48] sm:$0xff]  }
  0x8a   : > { %5982 = vmatprep.subr.bf16.mxu1 %v6567_v1 }
  0x8c   : > { %5957 = vmatpush3.bf16.msra.mxu0 %v6433_v33  ;;  %5969 = vmatmul.mubr.msk.bf16.vlgmr.msra.gmra.mrb[40].mxu1 %vm247_vm1, %v6428_v17  ;;  %v6468_v17 = vld [vmem:[%s7722_s1 + $0x18] sm:$0xff]   ;;  %v6482_v33 = vld [vmem:[%s7722_s1] sm:$0xff]  }
  0x8d   : > { %5972 = vmatprep.subr.bf16.mxu0 %v6567_v1  ;;  %5983 = vmatpush3.bf16.msra.mxu1 %v6436_v35  ;;  %v6484_v35 = vld [vmem:[%s7722_s1 + $0x8] sm:$0xff]  }
  0x8e   : > { %5988 = vmatprep.mubr.msk.bf16.mxu1 %vm6568_vm0, %v6567_v1  ;;  %5984 = vmatprep.subr.bf16.mxu1 %v6567_v1 }
  0x8f   : > { %5959 = vmatmul.mubr.msk.bf16.vlgmr.msra.gmra.mrb[40].mxu0 %vm247_vm1, %v1664_v27  ;;  %v6476_v27 = vld [vmem:[%s7722_s1 + $0x38] sm:$0xff]  }
  0x90   : > { %5973 = vmatpush3.bf16.msra.mxu0 %v6435_v36  ;;  %5978 = vmatprep.mubr.msk.bf16.mxu0 %vm6568_vm0, %v6567_v1  ;;  %v6483_v36 = vld [vmem:[%s7722_s1 + $0x20] sm:$0xff]  }
  0x91   : > { %5974 = vmatprep.subr.bf16.mxu0 %v6567_v1  ;;  %5985 = vmatpush3.bf16.msra.mxu1 %v6438_v37  ;;  %v6486_v37 = vld [vmem:[%s7722_s1 + $0x10] sm:$0xff]  }
  0x92   : > { %5986 = vmatprep.subr.bf16.mxu1 %v6567_v1 }
  0x94   : > { %5975 = vmatpush3.bf16.msra.mxu0 %v6437_v39  ;;  %v6485_v39 = vld [vmem:[%s7722_s1 + $0x28] sm:$0xff]  }
  0x95   : > { %5976 = vmatprep.subr.bf16.mxu0 %v6567_v1  ;;  %5987 = vmatpush3.bf16.msra.mxu1 %v6440_v42 }
  0x96   : > { %6002 = vmatprep.subr.bf16.mxu1 %v6567_v1 }
  0x98   : > { %5977 = vmatpush3.bf16.msra.mxu0 %v6439_v43  ;;  %5989 = vmatmul.mubr.msk.bf16.vlgmr.msra.gmra.mrb[44].mxu1 %vm247_vm1, %v1969_v44 }
  0x99   : > { %5992 = vmatprep.subr.bf16.mxu0 %v6567_v1  ;;  %6003 = vmatpush3.bf16.msra.mxu1 %v6443_v45 }
  0x9a   : > { %6008 = vmatprep.mubr.msk.bf16.mxu1 %vm6568_vm0, %v6567_v1  ;;  %6004 = vmatprep.subr.bf16.mxu1 %v6567_v1 }
  0x9b   : > { %5979 = vmatmul.mubr.msk.bf16.vlgmr.msra.gmra.mrb[44].mxu0 %vm247_vm1, %v6441_v34 }
  0x9c   : > { %5993 = vmatpush3.bf16.msra.mxu0 %v6442_v46  ;;  %5998 = vmatprep.mubr.msk.bf16.mxu0 %vm6568_vm0, %v6567_v1 }
  0x9d   : > { %5994 = vmatprep.subr.bf16.mxu0 %v6567_v1  ;;  %6005 = vmatpush3.bf16.msra.mxu1 %v6445_v47 }
  0x9e   : > { %6006 = vmatprep.subr.bf16.mxu1 %v6567_v1 }
  0xa0   : > { %5995 = vmatpush3.bf16.msra.mxu0 %v6444_v48 }
  0xa1   : > { %5996 = vmatprep.subr.bf16.mxu0 %v6567_v1  ;;  %6007 = vmatpush3.bf16.msra.mxu1 %v6447_v49  ;;  %v6487_v49 = vld [vmem:[%s7722_s1 + $0x30] sm:$0xff]  }
  0xa2   : > { %6022 = vmatprep.subr.bf16.mxu1 %v6567_v1 }
  0xa4   : > { %5997 = vmatpush3.bf16.msra.mxu0 %v6446_v50  ;;  %6009 = vmatmul.mubr.msk.bf16.vlgmr.msra.gmra.mrb[48].mxu1 %vm247_vm1, %v6441_v34  ;;  %v6481_v34 = vld [vmem:[%s7722_s1 + $0x18] sm:$0xff]  }
  0xa5   : > { %6012 = vmatprep.subr.bf16.mxu0 %v6567_v1  ;;  %6023 = vmatpush3.bf16.msra.mxu1 %v6449_v52  ;;  %v3186_v52 = vshll.u32 %v7189_v41, 16 }
  0xa6   : > { %6028 = vmatprep.mubr.msk.bf16.mxu1 %vm6568_vm0, %v6567_v1  ;;  %6024 = vmatprep.subr.bf16.mxu1 %v6567_v1 }
  0xa7   : > { %5999 = vmatmul.mubr.msk.bf16.vlgmr.msra.gmra.mrb[48].mxu0 %vm247_vm1, %v1969_v44  ;;  %v6488_v44 = vld [vmem:[%s7722_s1 + $0x48] sm:$0xff]  }
  0xa8   : > { %6013 = vmatpush3.bf16.msra.mxu0 %v6448_v53  ;;  %6018 = vmatprep.mubr.msk.bf16.mxu0 %vm6568_vm0, %v6567_v1  ;;  %v6490_v53 = vld [vmem:[%s7722_s1 + $0x50] sm:$0xff]  }
  0xa9   : > { %6014 = vmatprep.subr.bf16.mxu0 %v6567_v1  ;;  %6025 = vmatpush3.bf16.msra.mxu1 %v6451_v55  ;;  %v3184_v55 = vshrl.u32 %v7189_v41, 16 }
  0xaa   : > { %6026 = vmatprep.subr.bf16.mxu1 %v6567_v1 }
  0xac   : > { %6015 = vmatpush3.bf16.msra.mxu0 %v6450_v56  ;;  %v3188_v56 = vrot.slane %v3186_v52, 1 }
  0xad   : > { %6016 = vmatprep.subr.bf16.mxu0 %v6567_v1  ;;  %6027 = vmatpush3.bf16.msra.mxu1 %v6453_v60 }
  0xae   : > { %6042 = vmatprep.subr.bf16.mxu1 %v6567_v1 }
  0xb0   : > { %6017 = vmatpush3.bf16.msra.mxu0 %v6452_v59  ;;  %6029 = vmatmul.mubr.msk.bf16.vlgmr.msra.gmra.mrb[52].mxu1 %vm247_vm1, %v2274_v61  ;;  %v6491_v59 = vld [vmem:[%s7722_s1 + $0x40] sm:$0xff]  }
  0xb1   : > { %6032 = vmatprep.subr.bf16.mxu0 %v6567_v1  ;;  %6043 = vmatpush3.bf16.msra.mxu1 %v6456_v63 }
  0xb2   : > { %6048 = vmatprep.mubr.msk.bf16.mxu1 %vm6568_vm0, %v6567_v1  ;;  %6044 = vmatprep.subr.bf16.mxu1 %v6567_v1 }
  0xb3   : > { %6019 = vmatmul.mubr.msk.bf16.vlgmr.msra.gmra.mrb[52].mxu0 %vm247_vm1, %v6454_v51 }
  0xb4   : > { %6033 = vmatpush3.bf16.msra.mxu0 %v6455_v62  ;;  %6038 = vmatprep.mubr.msk.bf16.mxu0 %vm6568_vm0, %v6567_v1 }
  0xb5   : > { %6034 = vmatprep.subr.bf16.mxu0 %v6567_v1  ;;  %6045 = vmatpush3.bf16.msra.mxu1 %v6458_v2 }
  0xb6   : > { %6046 = vmatprep.subr.bf16.mxu1 %v6567_v1 }
  0xb8   : > { %6035 = vmatpush3.bf16.msra.mxu0 %v6457_v0  ;;  %v6495_v0 = vld [vmem:[%s7722_s1] sm:$0xff]  }
  0xb9   : > { %6036 = vmatprep.subr.bf16.mxu0 %v6567_v1  ;;  %6047 = vmatpush3.bf16.msra.mxu1 %v6460_v4 }
  0xba   : > { %6062 = vmatprep.subr.bf16.mxu1 %v6567_v1 }
  0xbc   : > { %6037 = vmatpush3.bf16.msra.mxu0 %v6459_v3  ;;  %6049 = vmatmul.mubr.msk.bf16.vlgmr.msra.gmra.mrb[56].mxu1 %vm247_vm1, %v6454_v51 }
  0xbd   : > { %6052 = vmatprep.subr.bf16.mxu0 %v6567_v1  ;;  %6063 = vmatpush3.bf16.msra.mxu1 %v6462_v6 }
  0xbe   : > { %6068 = vmatprep.mubr.msk.bf16.mxu1 %vm6568_vm0, %v6567_v1  ;;  %6064 = vmatprep.subr.bf16.mxu1 %v6567_v1 }
  0xbf   : > { %6039 = vmatmul.mubr.msk.bf16.vlgmr.msra.gmra.mrb[56].mxu0 %vm247_vm1, %v2274_v61  ;;  %v7224_v61 = vor.u32 %v3188_v56, %v3184_v55  ;;  %v6507_v55 = vld [vmem:[%s7722_s1 + $0x18] sm:$0xff]  }
  0xc0   : > { %6053 = vmatpush3.bf16.msra.mxu0 %v6461_v7  ;;  %6058 = vmatprep.mubr.msk.bf16.mxu0 %vm6568_vm0, %v6567_v1  ;;  %v6494_v7 = vld [vmem:[%s7722_s1 + $0x18] sm:$0xff]  }
  0xc1   : > { %6054 = vmatprep.subr.bf16.mxu0 %v6567_v1  ;;  %6065 = vmatpush3.bf16.msra.mxu1 %v6464_v10 }
  0xc2   : > { %6066 = vmatprep.subr.bf16.mxu1 %v6567_v1 }
  0xc4   : > { %6055 = vmatpush3.bf16.msra.mxu0 %v6463_v9 }
  0xc5   : > { %6056 = vmatprep.subr.bf16.mxu0 %v6567_v1  ;;  %6067 = vmatpush3.bf16.msra.mxu1 %v6466_v14  ;;  %v6496_v14 = vld [vmem:[%s7722_s1 + $0x20] sm:$0xff]  }
  0xc6   : > { %6082 = vmatprep.subr.bf16.mxu1 %v6567_v1 }
  0xc8   : > { %6057 = vmatpush3.bf16.msra.mxu0 %v6465_v13  ;;  %6069 = vmatmul.mubr.msk.bf16.vlgmr.msra.gmra.mrb[60].mxu1 %vm247_vm1, %v2579_v15 }
  0xc9   : > { %6072 = vmatprep.subr.bf16.mxu0 %v6567_v1  ;;  %6083 = vmatpush3.bf16.msra.mxu1 %v6469_v16 }
  0xca   : > { %6088 = vmatprep.mubr.msk.bf16.mxu1 %vm6568_vm0, %v6567_v1  ;;  %6084 = vmatprep.subr.bf16.mxu1 %v6567_v1 }
  0xcb   : > { %6059 = vmatmul.mubr.msk.bf16.vlgmr.msra.gmra.mrb[60].mxu0 %vm247_vm1, %v6467_v5 }
  0xcc   : > { %6073 = vmatpush3.bf16.msra.mxu0 %v6468_v17  ;;  %6078 = vmatprep.mubr.msk.bf16.mxu0 %vm6568_vm0, %v6567_v1  ;;  %v6499_v17 = vld [vmem:[%s7722_s1 + $0x10] sm:$0xff]  }
  0xcd   : > { %6074 = vmatprep.subr.bf16.mxu0 %v6567_v1  ;;  %6085 = vmatpush3.bf16.msra.mxu1 %v6471_v18 }
  0xce   : > { %6086 = vmatprep.subr.bf16.mxu1 %v6567_v1 }
  0xd0   : > { %6075 = vmatpush3.bf16.msra.mxu0 %v6470_v19 }
  0xd1   : > { %6076 = vmatprep.subr.bf16.mxu0 %v6567_v1  ;;  %6087 = vmatpush3.bf16.msra.mxu1 %v6473_v20 }
  0xd2   : > { %6102 = vmatprep.subr.bf16.mxu1 %v6567_v1 }
  0xd4   : > { %6077 = vmatpush3.bf16.msra.mxu0 %v6472_v21  ;;  %6089 = vmatmul.mubr.msk.bf16.vlgmr.msra.gmra.mrb[64].mxu1 %vm247_vm1, %v6467_v5  ;;  %v7233_v5 = vld [vmem:[%s7723_s2] ss:$0 sm:$0xff]  ;;  %v530_v21 = vld [vmem:[%s7259_s30 + $0x4] sm:$0xf] }
  0xd5   : > { %6092 = vmatprep.subr.bf16.mxu0 %v6567_v1  ;;  %6103 = vmatpush3.bf16.msra.mxu1 %v6475_v23  ;;  %v6498_v23 = vld [vmem:[%s7722_s1 + $0x28] sm:$0xff]  }
  0xd6   : > { %6108 = vmatprep.mubr.msk.bf16.mxu1 %vm6568_vm0, %v6567_v1  ;;  %6104 = vmatprep.subr.bf16.mxu1 %v6567_v1 }
  0xd7   : > { %6079 = vmatmul.mubr.msk.bf16.vlgmr.msra.gmra.mrb[64].mxu0 %vm247_vm1, %v2579_v15 }
  0xd8   : > { %6093 = vmatpush3.bf16.msra.mxu0 %v6474_v24  ;;  %6098 = vmatprep.mubr.msk.bf16.mxu0 %vm6568_vm0, %v6567_v1 }
  0xd9   : > { %6094 = vmatprep.subr.bf16.mxu0 %v6567_v1  ;;  %6105 = vmatpush3.bf16.msra.mxu1 %v6477_v26  ;;  %v7280_v26 = vld [vmem:[%s6630_s29 + $0x58] sm:$0xff]  }
  0xda   : > { %6106 = vmatprep.subr.bf16.mxu1 %v6567_v1 }
  0xdc   : > { %6095 = vmatpush3.bf16.msra.mxu0 %v6476_v27 }
  0xdd   : > { %6096 = vmatprep.subr.bf16.mxu0 %v6567_v1  ;;  %6107 = vmatpush3.bf16.msra.mxu1 %v6479_v30 }
  0xde   : > { %6122 = vmatprep.subr.bf16.mxu1 %v6567_v1 }
  0xe0   : > { %6097 = vmatpush3.bf16.msra.mxu0 %v6478_v31  ;;  %6109 = vmatmul.mubr.msk.bf16.vlgmr.msra.gmra.mrb[68].mxu1 %vm247_vm1, %v2884_v32 }
  0xe1   : > { %6112 = vmatprep.subr.bf16.mxu0 %v6567_v1  ;;  %6123 = vmatpush3.bf16.msra.mxu1 %v6482_v33 }
  0xe2   : > { %6128 = vmatprep.mubr.msk.bf16.mxu1 %vm6568_vm0, %v6567_v1  ;;  %6124 = vmatprep.subr.bf16.mxu1 %v6567_v1 }
  0xe3   : > { %6099 = vmatmul.mubr.msk.bf16.vlgmr.msra.gmra.mrb[68].mxu0 %vm247_vm1, %v7123_v22 }
  0xe4   : > { %6113 = vmatpush3.bf16.msra.mxu0 %v6481_v34  ;;  %6118 = vmatprep.mubr.msk.bf16.mxu0 %vm6568_vm0, %v6567_v1 }
  0xe5   : > { %6114 = vmatprep.subr.bf16.mxu0 %v6567_v1  ;;  %6125 = vmatpush3.bf16.msra.mxu1 %v6484_v35  ;;  %v6500_v35 = vld [vmem:[%s7722_s1 + $0x30] sm:$0xff]  }
  0xe6   : > { %6126 = vmatprep.subr.bf16.mxu1 %v6567_v1  ;;  %v346_v38 = vpop.f32.mrb[0].mxu1 }
  0xe7   : > { %v5770_v40 = vpop.f32.mrb[1].mxu1 }
  0xe8   : > { %6115 = vmatpush3.bf16.msra.mxu0 %v6483_v36  ;;  %v349_v43 = vpop.f32.mrb[2].mxu1  ;;  %v6502_v40 = vld [vmem:[%s7722_s1 + $0x38] sm:$0xff]  }
  0xe9   : > { %6116 = vmatprep.subr.bf16.mxu0 %v6567_v1  ;;  %6127 = vmatpush3.bf16.msra.mxu1 %v6486_v37  ;;  %v5771_v47 = vpop.f32.mrb[3].mxu1 }
  0xea   : > { %v285_v42 = vpop.f32.mrb[0].mxu0  ;;  %6142 = vmatprep.subr.bf16.mxu1 %v6567_v1 }
  0xeb   : > { %v347_v45 = vadd.f32 %v346_v38, %v285_v42  ;;  %v5760_v46 = vpop.f32.mrb[1].mxu0  ;;  %v3491_v38 = vshll.u32 %v7280_v26, 16 }
  0xec   : > { %6117 = vmatpush3.bf16.msra.mxu0 %v6485_v39  ;;  %v288_v48 = vpop.f32.mrb[2].mxu0  ;;  %6129 = vmatmul.mubr.msk.bf16.vlgmr.msra.gmra.mrb[72].mxu1 %vm247_vm1, %v7123_v22  ;;  %v6503_v39 = vld [vmem:[%s7722_s1 + $0x50] sm:$0xff]  }
  0xed   : > { %v350_v50 = vadd.f32 %v349_v43, %v288_v48  ;;  %v5761_v51 = vpop.f32.mrb[3].mxu0  ;;  %6132 = vmatprep.subr.bf16.mxu0 %v6567_v1  ;;  %6143 = vmatpush3.bf16.msra.mxu1 %v6488_v44  ;;  %v3493_v42 = vrot.slane %v3491_v38, 1  ;;  %v6505_v43 = vld [vmem:[%s7722_s1 + $0x58] sm:$0xff]  }
  0xee   : > { %6148 = vmatprep.mubr.msk.bf16.mxu1 %vm6568_vm0, %v6567_v1  ;;  %6144 = vmatprep.subr.bf16.mxu1 %v6567_v1 }
  0xef   : > { %6119 = vmatmul.mubr.msk.bf16.vlgmr.msra.gmra.mrb[72].mxu0 %vm247_vm1, %v2884_v32 }
  0xf0   : > { %6133 = vmatpush3.bf16.msra.mxu0 %v6487_v49  ;;  %6138 = vmatprep.mubr.msk.bf16.mxu0 %vm6568_vm0, %v6567_v1 }
  0xf1   : > { %6134 = vmatprep.subr.bf16.mxu0 %v6567_v1  ;;  %6145 = vmatpush3.bf16.msra.mxu1 %v6490_v53 }
  0xf2   : > { %6146 = vmatprep.subr.bf16.mxu1 %v6567_v1 }
  0xf3   : > { %v497_v58 = vpop.f32.mrb[4].mxu1 }
  0xf4   : > { %6135 = vmatpush3.bf16.msra.mxu0 %v6489_v54  ;;  %v5790_v60 = vpop.f32.mrb[5].mxu1 }
  0xf5   : > { %6136 = vmatprep.subr.bf16.mxu0 %v6567_v1  ;;  %v500_v63 = vpop.f32.mrb[6].mxu1  ;;  %6147 = vmatpush3.bf16.msra.mxu1 %v6492_v57 }
  0xf6   : > { %v420_v62 = vpop.f32.mrb[4].mxu0  ;;  %v5791_v4 = vpop.f32.mrb[7].mxu1  ;;  %6162 = vmatprep.subr.bf16.mxu1 %v6567_v1 }
  0xf7   : > { %v427_v2 = vadd.f32 %v420_v62, %v347_v45  ;;  %v5780_v3 = vpop.f32.mrb[5].mxu0  ;;  %v6504_v45 = vld [vmem:[%s7722_s1 + $0x40] sm:$0xff]  }
  0xf8   : > { %v423_v6 = vpop.f32.mrb[6].mxu0  ;;  %6137 = vmatpush3.bf16.msra.mxu0 %v6491_v59  ;;  %6149 = vmatmul.mubr.msk.bf16.vlgmr.msra.gmra.mrb[76].mxu1 %vm247_vm1, %v7224_v61  ;;  %v6510_v59 = vld [vmem:[%s7722_s1 + $0x8] sm:$0xff]   ;;  %v6509_v62 = vld [vmem:[%s7722_s1 + $0x20] sm:$0xff]  }
  0xf9   : > { %v504_v8 = vadd.f32 %v497_v58, %v427_v2  ;;  %v428_v9 = vadd.f32 %v423_v6, %v350_v50  ;;  %v5781_v10 = vpop.f32.mrb[7].mxu0  ;;  %6152 = vmatprep.subr.bf16.mxu0 %v6567_v1  ;;  %6163 = vmatpush3.bf16.msra.mxu1 %v6495_v0  ;;  %v6508_v50 = vld [vmem:[%s7722_s1] sm:$0xff]   ;;  %v6512_v2 = vld [vmem:[%s7722_s1 + $0x10] sm:$0xff]   ;;  %v4944_v6 = vld [vmem:[%s7259_s30 + $0xc] sm:$0xf] }
  0xfa   : > { %6168 = vmatprep.mubr.msk.bf16.mxu1 %vm6568_vm0, %v6567_v1  ;;  %6164 = vmatprep.subr.bf16.mxu1 %v6567_v1 }
  0xfb   : > { %v513_v12 = vadd.f32 %v7233_v5, %v504_v8  ;;  %v505_v13 = vadd.f32 %v500_v63, %v428_v9  ;;  %6139 = vmatmul.mubr.msk.bf16.vlgmr.msra.gmra.mrb[76].mxu0 %vm247_vm1, %v7189_v41  ;;  %v6511_v8 = vld [vmem:[%s7722_s1 + $0x28] sm:$0xff]  }
  0xfc   : > { %6153 = vmatpush3.bf16.msra.mxu0 %v6494_v7  ;;  %6158 = vmatprep.mubr.msk.bf16.mxu0 %vm6568_vm0, %v6567_v1 }
  0xfd   : > { %v515_v15 = vmax.f32 %v513_v12, 0.0  ;;  %v514_v16 = vadd.f32 %v7233_v5, %v505_v13  ;;  %6154 = vmatprep.subr.bf16.mxu0 %v6567_v1  ;;  %6165 = vmatpush3.bf16.msra.mxu1 %v6497_v11  ;;  %v7359_v11 = vld [vmem:[%s6630_s29 + $0x60] sm:$0xff]  }
  0xfe   : > { %6166 = vmatprep.subr.bf16.mxu1 %v6567_v1 }
  0xff   : > { %v5482_v18 = vpack.c.bf16 %v515_v15, %v515_v15  ;;  %v516_v19 = vmax.f32 %v514_v16, 0.0  ;;  %v656_v22 = vpop.f32.mrb[8].mxu1 }
 0x100   : > { %6155 = vmatpush3.bf16.msra.mxu0 %v6496_v14  ;;  %v5810_v25 = vpop.f32.mrb[9].mxu1  ;;  %v6514_v14 = vld [vmem:[%s7722_s1 + $0x48] sm:$0xff]  }
 0x101   : > { %526 = vst.msk [vmem:[%s7259_s30] sm:$0xf] %vm525_vm2, %v5482_v18  ;;  %v5483_v24 = vpack.c.bf16 %v516_v19, %v516_v19  ;;  %6156 = vmatprep.subr.bf16.mxu0 %v6567_v1  ;;  %v659_v28 = vpop.f32.mrb[10].mxu1  ;;  %6167 = vmatpush3.bf16.msra.mxu1 %v6499_v17  ;;  %v6516_v25 = vld [vmem:[%s7722_s1 + $0x50] sm:$0xff]  }
 0x102   : > { %v597_v27 = vpop.f32.mrb[8].mxu0  ;;  %v5811_v33 = vpop.f32.mrb[11].mxu1  ;;  %6182 = vmatprep.subr.bf16.mxu1 %v6567_v1 }
 0x103   : > { %v531_v30 = vsel %vm7268_vm4, %v5483_v24, %v530_v21  ;;  %v657_v31 = vadd.f32 %v656_v22, %v597_v27  ;;  %v5800_v32 = vpop.f32.mrb[9].mxu0  ;;  %v6513_v21 = vld [vmem:[%s7722_s1 + $0x30] sm:$0xff]   ;;  %v3796_v24 = vshll.u32 %v7359_v11, 16  ;;  %v3794_v27 = vshrl.u32 %v7359_v11, 16 }
 0x104   : > { %532 = vst [vmem:[%s7259_s30 + $0x4] sm:$0xf] %v531_v30  ;;  %v600_v34 = vpop.f32.mrb[10].mxu0  ;;  %6157 = vmatpush3.bf16.msra.mxu0 %v6498_v23  ;;  %6169 = vmatmul.mubr.msk.bf16.vlgmr.msra.gmra.mrb[80].mxu1 %vm247_vm1, %v7189_v41  ;;  %v3489_v41 = vshrl.u32 %v7280_v26, 16 }
 0x105   : > { %v660_v36 = vadd.f32 %v659_v28, %v600_v34  ;;  %v5801_v37 = vpop.f32.mrb[11].mxu0  ;;  %6172 = vmatprep.subr.bf16.mxu0 %v6567_v1  ;;  %6183 = vmatpush3.bf16.msra.mxu1 %v6501_v29  ;;  %v3798_v28 = vrot.slane %v3796_v24, 1  ;;  %v6518_v29 = vld [vmem:[%s7722_s1 + $0x58] sm:$0xff]  }
 0x106   : > { %6188 = vmatprep.mubr.msk.bf16.mxu1 %vm6568_vm0, %v6567_v1  ;;  %6184 = vmatprep.subr.bf16.mxu1 %v6567_v1  ;;  %v7319_v47 = vor.u32 %v3493_v42, %v3489_v41  ;;  %v6520_v41 = vld [vmem:[%s7722_s1 + $0x18] sm:$0xff]  }
 0x107   : > { %6159 = vmatmul.mubr.msk.bf16.vlgmr.msra.gmra.mrb[80].mxu0 %vm247_vm1, %v7224_v61  ;;  %v7398_v33 = vor.u32 %v3798_v28, %v3794_v27  ;;  %v6533_v27 = vld [vmem:[%s7722_s1 + $0x18] sm:$0xff]  }
 0x108   : > { %6173 = vmatpush3.bf16.msra.mxu0 %v6500_v35  ;;  %6178 = vmatprep.mubr.msk.bf16.mxu0 %vm6568_vm0, %v6567_v1 }
 0x109   : > { %6174 = vmatprep.subr.bf16.mxu0 %v6567_v1  ;;  %6185 = vmatpush3.bf16.msra.mxu1 %v6503_v39 }
 0x10a   : > { %6186 = vmatprep.subr.bf16.mxu1 %v6567_v1 }
 0x10b   : > { %v805_v44 = vpop.f32.mrb[12].mxu1 }
 0x10c   : > { %6175 = vmatpush3.bf16.msra.mxu0 %v6502_v40  ;;  %v5830_v46 = vpop.f32.mrb[13].mxu1 }
 0x10d   : > { %6176 = vmatprep.subr.bf16.mxu0 %v6567_v1  ;;  %v808_v49 = vpop.f32.mrb[14].mxu1  ;;  %6187 = vmatpush3.bf16.msra.mxu1 %v6505_v43 }
 0x10e   : > { %v729_v48 = vpop.f32.mrb[12].mxu0  ;;  %v5831_v53 = vpop.f32.mrb[15].mxu1  ;;  %6202 = vmatprep.subr.bf16.mxu1 %v6567_v1 }
 0x10f   : > { %v736_v51 = vadd.f32 %v729_v48, %v657_v31  ;;  %v5820_v52 = vpop.f32.mrb[13].mxu0  ;;  %v6517_v31 = vld [vmem:[%s7722_s1 + $0x40] sm:$0xff]  }
 0x110   : > { %v732_v54 = vpop.f32.mrb[14].mxu0  ;;  %6177 = vmatpush3.bf16.msra.mxu0 %v6504_v45  ;;  %6189 = vmatmul.mubr.msk.bf16.vlgmr.msra.gmra.mrb[84].mxu1 %vm247_vm1, %v7319_v47  ;;  %v6523_v45 = vld [vmem:[%s7722_s1 + $0x8] sm:$0xff]   ;;  %v6522_v48 = vld [vmem:[%s7722_s1 + $0x20] sm:$0xff]  }
 0x111   : > { %v812_v56 = vadd.f32 %v805_v44, %v736_v51  ;;  %v737_v57 = vadd.f32 %v732_v54, %v660_v36  ;;  %v5821_v58 = vpop.f32.mrb[15].mxu0  ;;  %6192 = vmatprep.subr.bf16.mxu0 %v6567_v1  ;;  %6203 = vmatpush3.bf16.msra.mxu1 %v6508_v50  ;;  %v6521_v36 = vld [vmem:[%s7722_s1] sm:$0xff]   ;;  %v6525_v51 = vld [vmem:[%s7722_s1 + $0x10] sm:$0xff]  }
 0x112   : > { %6208 = vmatprep.mubr.msk.bf16.mxu1 %vm6568_vm0, %v6567_v1  ;;  %6204 = vmatprep.subr.bf16.mxu1 %v6567_v1  ;;  %v4985_v54 = vld [vmem:[%s7259_s30 + $0x14] sm:$0xf] }
 0x113   : > { %v821_v60 = vadd.f32 %v7233_v5, %v812_v56  ;;  %v813_v61 = vadd.f32 %v808_v49, %v737_v57  ;;  %6179 = vmatmul.mubr.msk.bf16.vlgmr.msra.gmra.mrb[84].mxu0 %vm247_vm1, %v7280_v26  ;;  %v6524_v56 = vld [vmem:[%s7722_s1 + $0x28] sm:$0xff]  }
 0x114   : > { %6193 = vmatpush3.bf16.msra.mxu0 %v6507_v55  ;;  %6198 = vmatprep.mubr.msk.bf16.mxu0 %vm6568_vm0, %v6567_v1 }
 0x115   : > { %v823_v63 = vmax.f32 %v821_v60, 0.0  ;;  %v822_v0 = vadd.f32 %v7233_v5, %v813_v61  ;;  %6194 = vmatprep.subr.bf16.mxu0 %v6567_v1  ;;  %6205 = vmatpush3.bf16.msra.mxu1 %v6510_v59  ;;  %v7438_v59 = vld [vmem:[%s6630_s29 + $0x68] sm:$0xff]  }
 0x116   : > { %6206 = vmatprep.subr.bf16.mxu1 %v6567_v1 }
 0x117   : > { %v5484_v3 = vpack.c.bf16 %v823_v63, %v823_v63  ;;  %v824_v4 = vmax.f32 %v822_v0, 0.0  ;;  %v961_v7 = vpop.f32.mrb[16].mxu1 }
 0x118   : > { %6195 = vmatpush3.bf16.msra.mxu0 %v6509_v62  ;;  %v5850_v10 = vpop.f32.mrb[17].mxu1  ;;  %v6527_v62 = vld [vmem:[%s7722_s1 + $0x48] sm:$0xff]  }
 0x119   : > { %4943 = vst.msk [vmem:[%s7259_s30 + $0x8] sm:$0xf] %vm525_vm2, %v5484_v3  ;;  %v5485_v9 = vpack.c.bf16 %v824_v4, %v824_v4  ;;  %6196 = vmatprep.subr.bf16.mxu0 %v6567_v1  ;;  %v964_v13 = vpop.f32.mrb[18].mxu1  ;;  %6207 = vmatpush3.bf16.msra.mxu1 %v6512_v2  ;;  %v6529_v10 = vld [vmem:[%s7722_s1 + $0x50] sm:$0xff]  }
 0x11a   : > { %v902_v12 = vpop.f32.mrb[16].mxu0  ;;  %v5851_v18 = vpop.f32.mrb[19].mxu1  ;;  %6222 = vmatprep.subr.bf16.mxu1 %v6567_v1 }
 0x11b   : > { %v836_v15 = vsel %vm7268_vm4, %v5485_v9, %v4944_v6  ;;  %v962_v16 = vadd.f32 %v961_v7, %v902_v12  ;;  %v5840_v17 = vpop.f32.mrb[17].mxu0  ;;  %v6526_v6 = vld [vmem:[%s7722_s1 + $0x30] sm:$0xff]   ;;  %v4101_v9 = vshll.u32 %v7438_v59, 16  ;;  %v4099_v12 = vshrl.u32 %v7438_v59, 16 }
 0x11c   : > { %4945 = vst [vmem:[%s7259_s30 + $0xc] sm:$0xf] %v836_v15  ;;  %v905_v19 = vpop.f32.mrb[18].mxu0  ;;  %6197 = vmatpush3.bf16.msra.mxu0 %v6511_v8  ;;  %6209 = vmatmul.mubr.msk.bf16.vlgmr.msra.gmra.mrb[88].mxu1 %vm247_vm1, %v7280_v26  ;;  %v6515_v26 = vld [vmem:[%s7722_s1 + $0x38] sm:$0xff]  }
 0x11d   : > { %v965_v22 = vadd.f32 %v964_v13, %v905_v19  ;;  %v5841_v23 = vpop.f32.mrb[19].mxu0  ;;  %6212 = vmatprep.subr.bf16.mxu0 %v6567_v1  ;;  %6223 = vmatpush3.bf16.msra.mxu1 %v6514_v14  ;;  %v4103_v13 = vrot.slane %v4101_v9, 1  ;;  %v6531_v14 = vld [vmem:[%s7722_s1 + $0x58] sm:$0xff]  }
 0x11e   : > { %6228 = vmatprep.mubr.msk.bf16.mxu1 %vm6568_vm0, %v6567_v1  ;;  %6224 = vmatprep.subr.bf16.mxu1 %v6567_v1 }
 0x11f   : > { %6199 = vmatmul.mubr.msk.bf16.vlgmr.msra.gmra.mrb[88].mxu0 %vm247_vm1, %v7319_v47  ;;  %v7477_v18 = vor.u32 %v4103_v13, %v4099_v12  ;;  %v6546_v12 = vld [vmem:[%s7722_s1 + $0x18] sm:$0xff]  }
 0x120   : > { %6213 = vmatpush3.bf16.msra.mxu0 %v6513_v21  ;;  %6218 = vmatprep.mubr.msk.bf16.mxu0 %vm6568_vm0, %v6567_v1 }
 0x121   : > { %6214 = vmatprep.subr.bf16.mxu0 %v6567_v1  ;;  %6225 = vmatpush3.bf16.msra.mxu1 %v6516_v25 }
 0x122   : > { %6226 = vmatprep.subr.bf16.mxu1 %v6567_v1 }
 0x123   : > { %v1110_v30 = vpop.f32.mrb[20].mxu1 }
 0x124   : > { %6215 = vmatpush3.bf16.msra.mxu0 %v6515_v26  ;;  %v5870_v32 = vpop.f32.mrb[21].mxu1 }
 0x125   : > { %6216 = vmatprep.subr.bf16.mxu0 %v6567_v1  ;;  %v1113_v35 = vpop.f32.mrb[22].mxu1  ;;  %6227 = vmatpush3.bf16.msra.mxu1 %v6518_v29 }
 0x126   : > { %v1034_v34 = vpop.f32.mrb[20].mxu0  ;;  %v5871_v39 = vpop.f32.mrb[23].mxu1  ;;  %6242 = vmatprep.subr.bf16.mxu1 %v6567_v1 }
 0x127   : > { %v1041_v37 = vadd.f32 %v1034_v34, %v962_v16  ;;  %v5860_v38 = vpop.f32.mrb[21].mxu0  ;;  %v6530_v16 = vld [vmem:[%s7722_s1 + $0x40] sm:$0xff]  }
 0x128   : > { %v1037_v40 = vpop.f32.mrb[22].mxu0  ;;  %6217 = vmatpush3.bf16.msra.mxu0 %v6517_v31  ;;  %6229 = vmatmul.mubr.msk.bf16.vlgmr.msra.gmra.mrb[92].mxu1 %vm247_vm1, %v7398_v33  ;;  %v6536_v31 = vld [vmem:[%s7722_s1 + $0x8] sm:$0xff]   ;;  %v6535_v34 = vld [vmem:[%s7722_s1 + $0x20] sm:$0xff]  }
 0x129   : > { %v1117_v42 = vadd.f32 %v1110_v30, %v1041_v37  ;;  %v1042_v43 = vadd.f32 %v1037_v40, %v965_v22  ;;  %v5861_v44 = vpop.f32.mrb[23].mxu0  ;;  %6232 = vmatprep.subr.bf16.mxu0 %v6567_v1  ;;  %6243 = vmatpush3.bf16.msra.mxu1 %v6521_v36  ;;  %v6534_v22 = vld [vmem:[%s7722_s1] sm:$0xff]   ;;  %v6538_v37 = vld [vmem:[%s7722_s1 + $0x10] sm:$0xff]   ;;  %v5026_v40 = vld [vmem:[%s7259_s30 + $0x1c] sm:$0xf] }
 0x12a   : > { %6248 = vmatprep.mubr.msk.bf16.mxu1 %vm6568_vm0, %v6567_v1  ;;  %6244 = vmatprep.subr.bf16.mxu1 %v6567_v1 }
 0x12b   : > { %v1126_v46 = vadd.f32 %v7233_v5, %v1117_v42  ;;  %v1118_v47 = vadd.f32 %v1113_v35, %v1042_v43  ;;  %6219 = vmatmul.mubr.msk.bf16.vlgmr.msra.gmra.mrb[92].mxu0 %vm247_vm1, %v7359_v11  ;;  %v6537_v42 = vld [vmem:[%s7722_s1 + $0x28] sm:$0xff]  }
 0x12c   : > { %6233 = vmatpush3.bf16.msra.mxu0 %v6520_v41  ;;  %6238 = vmatprep.mubr.msk.bf16.mxu0 %vm6568_vm0, %v6567_v1 }
 0x12d   : > { %v1128_v49 = vmax.f32 %v1126_v46, 0.0  ;;  %v1127_v50 = vadd.f32 %v7233_v5, %v1118_v47  ;;  %6234 = vmatprep.subr.bf16.mxu0 %v6567_v1  ;;  %6245 = vmatpush3.bf16.msra.mxu1 %v6523_v45  ;;  %v7517_v45 = vld [vmem:[%s6630_s29 + $0x70] sm:$0xff]  }
 0x12e   : > { %6246 = vmatprep.subr.bf16.mxu1 %v6567_v1 }
 0x12f   : > { %v5486_v52 = vpack.c.bf16 %v1128_v49, %v1128_v49  ;;  %v1129_v53 = vmax.f32 %v1127_v50, 0.0  ;;  %v1266_v55 = vpop.f32.mrb[24].mxu1 }
 0x130   : > { %6235 = vmatpush3.bf16.msra.mxu0 %v6522_v48  ;;  %v5890_v58 = vpop.f32.mrb[25].mxu1  ;;  %v6540_v48 = vld [vmem:[%s7722_s1 + $0x48] sm:$0xff]  }
 0x131   : > { %4984 = vst.msk [vmem:[%s7259_s30 + $0x10] sm:$0xf] %vm525_vm2, %v5486_v52  ;;  %v5487_v57 = vpack.c.bf16 %v1129_v53, %v1129_v53  ;;  %6236 = vmatprep.subr.bf16.mxu0 %v6567_v1  ;;  %v1269_v61 = vpop.f32.mrb[26].mxu1  ;;  %6247 = vmatpush3.bf16.msra.mxu1 %v6525_v51  ;;  %v6542_v58 = vld [vmem:[%s7722_s1 + $0x50] sm:$0xff]  }
 0x132   : > { %v1207_v60 = vpop.f32.mrb[24].mxu0  ;;  %v5891_v3 = vpop.f32.mrb[27].mxu1  ;;  %6262 = vmatprep.subr.bf16.mxu1 %v6567_v1 }
 0x133   : > { %v1141_v63 = vsel %vm7268_vm4, %v5487_v57, %v4985_v54  ;;  %v1267_v0 = vadd.f32 %v1266_v55, %v1207_v60  ;;  %v5880_v2 = vpop.f32.mrb[25].mxu0  ;;  %v6539_v54 = vld [vmem:[%s7722_s1 + $0x30] sm:$0xff]   ;;  %v4406_v57 = vshll.u32 %v7517_v45, 16  ;;  %v4404_v60 = vshrl.u32 %v7517_v45, 16 }
 0x134   : > { %4986 = vst [vmem:[%s7259_s30 + $0x14] sm:$0xf] %v1141_v63  ;;  %v1210_v4 = vpop.f32.mrb[26].mxu0  ;;  %6237 = vmatpush3.bf16.msra.mxu0 %v6524_v56  ;;  %6249 = vmatmul.mubr.msk.bf16.vlgmr.msra.gmra.mrb[96].mxu1 %vm247_vm1, %v7359_v11  ;;  %v6528_v11 = vld [vmem:[%s7722_s1 + $0x38] sm:$0xff]  }
 0x135   : > { %v1270_v7 = vadd.f32 %v1269_v61, %v1210_v4  ;;  %v5881_v8 = vpop.f32.mrb[27].mxu0  ;;  %6252 = vmatprep.subr.bf16.mxu0 %v6567_v1  ;;  %6263 = vmatpush3.bf16.msra.mxu1 %v6527_v62  ;;  %v4408_v61 = vrot.slane %v4406_v57, 1  ;;  %v6544_v62 = vld [vmem:[%s7722_s1 + $0x58] sm:$0xff]   ;;  %v7634_v57 = vld [vmem:[%s7723_s2] ss:$0 sm:$0xff] }
 0x136   : > { %6268 = vmatprep.mubr.msk.bf16.mxu1 %vm6568_vm0, %v6567_v1  ;;  %6264 = vmatprep.subr.bf16.mxu1 %v6567_v1 }
 0x137   : > { %6239 = vmatmul.mubr.msk.bf16.vlgmr.msra.gmra.mrb[96].mxu0 %vm247_vm1, %v7398_v33  ;;  %v7556_v3 = vor.u32 %v4408_v61, %v4404_v60 }
 0x138   : > { %6253 = vmatpush3.bf16.msra.mxu0 %v6526_v6  ;;  %6258 = vmatprep.mubr.msk.bf16.mxu0 %vm6568_vm0, %v6567_v1 }
 0x139   : > { %6254 = vmatprep.subr.bf16.mxu0 %v6567_v1  ;;  %6265 = vmatpush3.bf16.msra.mxu1 %v6529_v10 }
 0x13a   : > { %6266 = vmatprep.subr.bf16.mxu1 %v6567_v1 }
 0x13b   : > { %v1415_v15 = vpop.f32.mrb[28].mxu1 }
 0x13c   : > { %6255 = vmatpush3.bf16.msra.mxu0 %v6528_v11  ;;  %v5910_v17 = vpop.f32.mrb[29].mxu1 }
 0x13d   : > { %6256 = vmatprep.subr.bf16.mxu0 %v6567_v1  ;;  %v1418_v21 = vpop.f32.mrb[30].mxu1  ;;  %6267 = vmatpush3.bf16.msra.mxu1 %v6531_v14 }
 0x13e   : > { %v1339_v19 = vpop.f32.mrb[28].mxu0  ;;  %v5911_v25 = vpop.f32.mrb[31].mxu1  ;;  %6282 = vmatprep.subr.bf16.mxu1 %v6567_v1 }
 0x13f   : > { %v1346_v23 = vadd.f32 %v1339_v19, %v1267_v0  ;;  %v5900_v24 = vpop.f32.mrb[29].mxu0  ;;  %v6543_v0 = vld [vmem:[%s7722_s1 + $0x40] sm:$0xff]  }
 0x140   : > { %v1342_v26 = vpop.f32.mrb[30].mxu0  ;;  %6257 = vmatpush3.bf16.msra.mxu0 %v6530_v16  ;;  %6269 = vmatmul.mubr.msk.bf16.vlgmr.msra.gmra.mrb[100].mxu1 %vm247_vm1, %v7477_v18  ;;  %v6549_v16 = vld [vmem:[%s7722_s1 + $0x8] sm:$0xff]   ;;  %v6548_v19 = vld [vmem:[%s7722_s1 + $0x20] sm:$0xff]  }
 0x141   : > { %v1422_v28 = vadd.f32 %v1415_v15, %v1346_v23  ;;  %v1347_v29 = vadd.f32 %v1342_v26, %v1270_v7  ;;  %v5901_v30 = vpop.f32.mrb[31].mxu0  ;;  %6272 = vmatprep.subr.bf16.mxu0 %v6567_v1  ;;  %6283 = vmatpush3.bf16.msra.mxu1 %v6534_v22  ;;  %v6547_v7 = vld [vmem:[%s7722_s1] sm:$0xff]   ;;  %v6551_v23 = vld [vmem:[%s7722_s1 + $0x10] sm:$0xff]  }
 0x142   : > { %6288 = vmatprep.mubr.msk.bf16.mxu1 %vm6568_vm0, %v6567_v1  ;;  %6284 = vmatprep.subr.bf16.mxu1 %v6567_v1  ;;  %v5067_v26 = vld [vmem:[%s7259_s30 + $0x24] sm:$0xf]  ;;  %v6558_v30 = vld [vmem:[%s6630_s29 + $0x78] sm:$0xff]  }
 0x143   : > { %v1431_v32 = vadd.f32 %v7233_v5, %v1422_v28  ;;  %v1423_v33 = vadd.f32 %v1418_v21, %v1347_v29  ;;  %6259 = vmatmul.mubr.msk.bf16.vlgmr.msra.gmra.mrb[100].mxu0 %vm247_vm1, %v7438_v59  ;;  %v6550_v28 = vld [vmem:[%s7722_s1 + $0x28] sm:$0xff]  }
 0x144   : > { %6273 = vmatpush3.bf16.msra.mxu0 %v6533_v27  ;;  %6278 = vmatprep.mubr.msk.bf16.mxu0 %vm6568_vm0, %v6567_v1 }
 0x145   : > { %v1433_v35 = vmax.f32 %v1431_v32, 0.0  ;;  %v1432_v36 = vadd.f32 %v7233_v5, %v1423_v33  ;;  %6274 = vmatprep.subr.bf16.mxu0 %v6567_v1  ;;  %6285 = vmatpush3.bf16.msra.mxu1 %v6536_v31  ;;  %v6553_v33 = vld [vmem:[%s7722_s1 + $0x48] sm:$0xff]  }
 0x146   : > { %6286 = vmatprep.subr.bf16.mxu1 %v6567_v1 }
 0x147   : > { %v5488_v38 = vpack.c.bf16 %v1433_v35, %v1433_v35  ;;  %v1434_v39 = vmax.f32 %v1432_v36, 0.0  ;;  %v1571_v41 = vpop.f32.mrb[32].mxu1 }
 0x148   : > { %6275 = vmatpush3.bf16.msra.mxu0 %v6535_v34  ;;  %v5930_v44 = vpop.f32.mrb[33].mxu1 }
 0x149   : > { %5025 = vst.msk [vmem:[%s7259_s30 + $0x18] sm:$0xf] %vm525_vm2, %v5488_v38  ;;  %v5489_v43 = vpack.c.bf16 %v1434_v39, %v1434_v39  ;;  %6276 = vmatprep.subr.bf16.mxu0 %v6567_v1  ;;  %v1574_v47 = vpop.f32.mrb[34].mxu1  ;;  %6287 = vmatpush3.bf16.msra.mxu1 %v6538_v37  ;;  %v6552_v39 = vld [vmem:[%s7722_s1 + $0x30] sm:$0xff]   ;;  %v6554_v44 = vld [vmem:[%s7722_s1 + $0x38] sm:$0xff]  }
 0x14a   : > { %v1512_v46 = vpop.f32.mrb[32].mxu0  ;;  %v5931_v52 = vpop.f32.mrb[35].mxu1  ;;  %6302 = vmatprep.subr.bf16.mxu1 %v6567_v1 }
 0x14b   : > { %v1446_v49 = vsel %vm7268_vm4, %v5489_v43, %v5026_v40  ;;  %v1572_v50 = vadd.f32 %v1571_v41, %v1512_v46  ;;  %v5920_v51 = vpop.f32.mrb[33].mxu0  ;;  %v6555_v43 = vld [vmem:[%s7722_s1 + $0x50] sm:$0xff]  }
 0x14c   : > { %5027 = vst [vmem:[%s7259_s30 + $0x1c] sm:$0xf] %v1446_v49  ;;  %v1515_v53 = vpop.f32.mrb[34].mxu0  ;;  %6277 = vmatpush3.bf16.msra.mxu0 %v6537_v42  ;;  %6289 = vmatmul.mubr.msk.bf16.vlgmr.msra.gmra.mrb[104].mxu1 %vm247_vm1, %v7438_v59  ;;  %v6541_v59 = vld [vmem:[%s7722_s1 + $0x38] sm:$0xff]   ;;  %v4711_v42 = vshll.u32 %v6558_v30, 16  ;;  %v6556_v49 = vld [vmem:[%s7722_s1 + $0x40] sm:$0xff]  }
 0x14d   : > { %v1575_v55 = vadd.f32 %v1574_v47, %v1515_v53  ;;  %v5921_v56 = vpop.f32.mrb[35].mxu0  ;;  %6292 = vmatprep.subr.bf16.mxu0 %v6567_v1  ;;  %6303 = vmatpush3.bf16.msra.mxu1 %v6540_v48  ;;  %v6557_v47 = vld [vmem:[%s7722_s1 + $0x58] sm:$0xff]  }
 0x14e   : > { %6308 = vmatprep.mubr.msk.bf16.mxu1 %vm6568_vm0, %v6567_v1  ;;  %6304 = vmatprep.subr.bf16.mxu1 %v6567_v1  ;;  %v4713_v46 = vrot.slane %v4711_v42, 1 }
 0x14f   : > { %6279 = vmatmul.mubr.msk.bf16.vlgmr.msra.gmra.mrb[104].mxu0 %vm247_vm1, %v7477_v18 }
 0x150   : > { %6293 = vmatpush3.bf16.msra.mxu0 %v6539_v54  ;;  %6298 = vmatprep.mubr.msk.bf16.mxu0 %vm6568_vm0, %v6567_v1 }
 0x151   : > { %6294 = vmatprep.subr.bf16.mxu0 %v6567_v1  ;;  %6305 = vmatpush3.bf16.msra.mxu1 %v6542_v58 }
 0x152   : > { %6306 = vmatprep.subr.bf16.mxu1 %v6567_v1 }
 0x153   : > { %v1720_v63 = vpop.f32.mrb[36].mxu1 }
 0x154   : > { %6295 = vmatpush3.bf16.msra.mxu0 %v6541_v59  ;;  %v5950_v2 = vpop.f32.mrb[37].mxu1 }
 0x155   : > { %6296 = vmatprep.subr.bf16.mxu0 %v6567_v1  ;;  %v1723_v6 = vpop.f32.mrb[38].mxu1  ;;  %6307 = vmatpush3.bf16.msra.mxu1 %v6544_v62 }
 0x156   : > { %v1644_v4 = vpop.f32.mrb[36].mxu0  ;;  %v5951_v10 = vpop.f32.mrb[39].mxu1  ;;  %6322 = vmatprep.subr.bf16.mxu1 %v6567_v1 }
 0x157   : > { %v1651_v8 = vadd.f32 %v1644_v4, %v1572_v50  ;;  %v5940_v9 = vpop.f32.mrb[37].mxu0  ;;  %v5108_v4 = vld [vmem:[%s7259_s30 + $0x2c] sm:$0xf] }
 0x158   : > { %v1647_v11 = vpop.f32.mrb[38].mxu0  ;;  %6297 = vmatpush3.bf16.msra.mxu0 %v6543_v0  ;;  %6309 = vmatmul.mubr.msk.bf16.vlgmr.msra.gmra.mrb[108].mxu1 %vm247_vm1, %v7556_v3 }
 0x159   : > { %v1727_v13 = vadd.f32 %v1720_v63, %v1651_v8  ;;  %v1652_v14 = vadd.f32 %v1647_v11, %v1575_v55  ;;  %v5941_v15 = vpop.f32.mrb[39].mxu0  ;;  %6312 = vmatprep.subr.bf16.mxu0 %v6567_v1  ;;  %6323 = vmatpush3.bf16.msra.mxu1 %v6547_v7 }
 0x15a   : > { %6328 = vmatprep.mubr.msk.bf16.mxu1 %vm6568_vm0, %v6567_v1  ;;  %6324 = vmatprep.subr.bf16.mxu1 %v6567_v1 }
 0x15b   : > { %v1736_v17 = vadd.f32 %v7233_v5, %v1727_v13  ;;  %v1728_v18 = vadd.f32 %v1723_v6, %v1652_v14  ;;  %6299 = vmatmul.mubr.msk.bf16.vlgmr.msra.gmra.mrb[108].mxu0 %vm247_vm1, %v7517_v45 }
 0x15c   : > { %6313 = vmatpush3.bf16.msra.mxu0 %v6546_v12  ;;  %6318 = vmatprep.mubr.msk.bf16.mxu0 %vm6568_vm0, %v6567_v1 }
 0x15d   : > { %v1738_v21 = vmax.f32 %v1736_v17, 0.0  ;;  %v1737_v22 = vadd.f32 %v7233_v5, %v1728_v18  ;;  %6314 = vmatprep.subr.bf16.mxu0 %v6567_v1  ;;  %6325 = vmatpush3.bf16.msra.mxu1 %v6549_v16 }
 0x15e   : > { %6326 = vmatprep.subr.bf16.mxu1 %v6567_v1 }
 0x15f   : > { %v5490_v24 = vpack.c.bf16 %v1738_v21, %v1738_v21  ;;  %v1739_v25 = vmax.f32 %v1737_v22, 0.0  ;;  %v1876_v27 = vpop.f32.mrb[40].mxu1 }
 0x160   : > { %6315 = vmatpush3.bf16.msra.mxu0 %v6548_v19  ;;  %v5970_v29 = vpop.f32.mrb[41].mxu1 }
 0x161   : > { %5066 = vst.msk [vmem:[%s7259_s30 + $0x20] sm:$0xf] %vm525_vm2, %v5490_v24  ;;  %v5491_v5 = vpack.c.bf16 %v1739_v25, %v1739_v25  ;;  %6316 = vmatprep.subr.bf16.mxu0 %v6567_v1  ;;  %v1879_v32 = vpop.f32.mrb[42].mxu1  ;;  %6327 = vmatpush3.bf16.msra.mxu1 %v6551_v23 }
 0x162   : > { %v1817_v31 = vpop.f32.mrb[40].mxu0  ;;  %v5971_v37 = vpop.f32.mrb[43].mxu1  ;;  %6342 = vmatprep.subr.bf16.mxu1 %v6567_v1 }
 0x163   : > { %v1751_v34 = vsel %vm7268_vm4, %v5491_v5, %v5067_v26  ;;  %v1877_v35 = vadd.f32 %v1876_v27, %v1817_v31  ;;  %v5960_v36 = vpop.f32.mrb[41].mxu0 }
 0x164   : > { %5068 = vst [vmem:[%s7259_s30 + $0x24] sm:$0xf] %v1751_v34  ;;  %v1820_v38 = vpop.f32.mrb[42].mxu0  ;;  %6317 = vmatpush3.bf16.msra.mxu0 %v6550_v28  ;;  %6329 = vmatmul.mubr.msk.bf16.vlgmr.msra.gmra.mrb[112].mxu1 %vm247_vm1, %v7517_v45  ;;  %v4709_v45 = vshrl.u32 %v6558_v30, 16 }
 0x165   : > { %v1880_v40 = vadd.f32 %v1879_v32, %v1820_v38  ;;  %v5961_v41 = vpop.f32.mrb[43].mxu0  ;;  %6332 = vmatprep.subr.bf16.mxu0 %v6567_v1  ;;  %6343 = vmatpush3.bf16.msra.mxu1 %v6553_v33 }
 0x166   : > { %6348 = vmatprep.mubr.msk.bf16.mxu1 %vm6568_vm0, %v6567_v1  ;;  %6344 = vmatprep.subr.bf16.mxu1 %v6567_v1  ;;  %v4714_v51 = vor.u32 %v4713_v46, %v4709_v45 }
 0x167   : > { %6319 = vmatmul.mubr.msk.bf16.vlgmr.msra.gmra.mrb[112].mxu0 %vm247_vm1, %v7556_v3 }
 0x168   : > { %6333 = vmatpush3.bf16.msra.mxu0 %v6552_v39  ;;  %6338 = vmatprep.mubr.msk.bf16.mxu0 %vm6568_vm0, %v6567_v1 }
 0x169   : > { %6334 = vmatprep.subr.bf16.mxu0 %v6567_v1  ;;  %6345 = vmatpush3.bf16.msra.mxu1 %v6555_v43 }
 0x16a   : > { %6346 = vmatprep.subr.bf16.mxu1 %v6567_v1 }
 0x16b   : > { %v2025_v48 = vpop.f32.mrb[44].mxu1 }
 0x16c   : > { %6335 = vmatpush3.bf16.msra.mxu0 %v6554_v44  ;;  %v5990_v50 = vpop.f32.mrb[45].mxu1 }
 0x16d   : > { %6336 = vmatprep.subr.bf16.mxu0 %v6567_v1  ;;  %v2028_v53 = vpop.f32.mrb[46].mxu1  ;;  %6347 = vmatpush3.bf16.msra.mxu1 %v6557_v47 }
 0x16e   : > { %v1949_v52 = vpop.f32.mrb[44].mxu0  ;;  %v5991_v56 = vpop.f32.mrb[47].mxu1 }
 0x16f   : > { %v1956_v54 = vadd.f32 %v1949_v52, %v1877_v35  ;;  %v5980_v55 = vpop.f32.mrb[45].mxu0  ;;  %v5149_v35 = vld [vmem:[%s7259_s30 + $0x34] sm:$0xf] }
 0x170   : > { %v1952_v58 = vpop.f32.mrb[46].mxu0  ;;  %6337 = vmatpush3.bf16.msra.mxu0 %v6556_v49  ;;  %6349 = vmatmul.mubr.msk.bf16.vlgmr.msra.gmra.mrb[116].mxu1 %vm247_vm1, %v4714_v51 }
 0x171   : > { %v2032_v59 = vadd.f32 %v2025_v48, %v1956_v54  ;;  %v1957_v60 = vadd.f32 %v1952_v58, %v1880_v40  ;;  %v5981_v61 = vpop.f32.mrb[47].mxu0 }
 0x173   : > { %v2041_v1 = vadd.f32 %v7634_v57, %v2032_v59  ;;  %v2033_v62 = vadd.f32 %v2028_v53, %v1957_v60  ;;  %6339 = vmatmul.mubr.msk.bf16.vlgmr.msra.gmra.mrb[116].mxu0 %vm247_vm1, %v6558_v30 }
 0x175   : > { %v2043_v63 = vmax.f32 %v2041_v1, 0.0  ;;  %v2042_v0 = vadd.f32 %v7634_v57, %v2033_v62 }
 0x177   : > { %v5492_v2 = vpack.c.bf16 %v2043_v63, %v2043_v63  ;;  %v2044_v3 = vmax.f32 %v2042_v0, 0.0  ;;  %v2181_v6 = vpop.f32.mrb[48].mxu1 }
 0x178   : > { %v6010_v8 = vpop.f32.mrb[49].mxu1 }
 0x179   : > { %5107 = vst.msk [vmem:[%s7259_s30 + $0x28] sm:$0xf] %vm525_vm2, %v5492_v2  ;;  %v5493_v7 = vpack.c.bf16 %v2044_v3, %v2044_v3  ;;  %v2184_v10 = vpop.f32.mrb[50].mxu1  ;;  %v5190_v2 = vld [vmem:[%s7259_s30 + $0x3c] sm:$0xf] }
 0x17a   : > { %v2122_v9 = vpop.f32.mrb[48].mxu0  ;;  %v6011_v14 = vpop.f32.mrb[51].mxu1 }
 0x17b   : > { %v2056_v11 = vsel %vm7268_vm4, %v5493_v7, %v5108_v4  ;;  %v2182_v12 = vadd.f32 %v2181_v6, %v2122_v9  ;;  %v6000_v13 = vpop.f32.mrb[49].mxu0 }
 0x17c   : > { %5109 = vst [vmem:[%s7259_s30 + $0x2c] sm:$0xf] %v2056_v11  ;;  %v2125_v15 = vpop.f32.mrb[50].mxu0 }
 0x17d   : > { %v2185_v16 = vadd.f32 %v2184_v10, %v2125_v15  ;;  %v6001_v17 = vpop.f32.mrb[51].mxu0 }
 0x183   : > { %v2330_v18 = vpop.f32.mrb[52].mxu1 }
 0x184   : > { %v6030_v19 = vpop.f32.mrb[53].mxu1 }
 0x185   : > { %v2333_v22 = vpop.f32.mrb[54].mxu1 }
 0x186   : > { %v2254_v21 = vpop.f32.mrb[52].mxu0  ;;  %v6031_v25 = vpop.f32.mrb[55].mxu1 }
 0x187   : > { %v2261_v23 = vadd.f32 %v2254_v21, %v2182_v12  ;;  %v6020_v24 = vpop.f32.mrb[53].mxu0 }
 0x188   : > { %v2257_v26 = vpop.f32.mrb[54].mxu0 }
 0x189   : > { %v2337_v27 = vadd.f32 %v2330_v18, %v2261_v23  ;;  %v2262_v28 = vadd.f32 %v2257_v26, %v2185_v16  ;;  %v6021_v5 = vpop.f32.mrb[55].mxu0 }
 0x18b   : > { %v2346_v29 = vadd.f32 %v7634_v57, %v2337_v27  ;;  %v2338_v30 = vadd.f32 %v2333_v22, %v2262_v28 }
 0x18d   : > { %v2348_v31 = vmax.f32 %v2346_v29, 0.0  ;;  %v2347_v32 = vadd.f32 %v7634_v57, %v2338_v30 }
 0x18f   : > { %v5494_v33 = vpack.c.bf16 %v2348_v31, %v2348_v31  ;;  %v2349_v34 = vmax.f32 %v2347_v32, 0.0  ;;  %v2486_v36 = vpop.f32.mrb[56].mxu1 }
 0x190   : > { %v6050_v38 = vpop.f32.mrb[57].mxu1 }
 0x191   : > { %5148 = vst.msk [vmem:[%s7259_s30 + $0x30] sm:$0xf] %vm525_vm2, %v5494_v33  ;;  %v5495_v37 = vpack.c.bf16 %v2349_v34, %v2349_v34  ;;  %v2489_v40 = vpop.f32.mrb[58].mxu1  ;;  %v5231_v33 = vld [vmem:[%s7259_s30 + $0x44] sm:$0xf] }
 0x192   : > { %v2427_v39 = vpop.f32.mrb[56].mxu0  ;;  %v6051_v44 = vpop.f32.mrb[59].mxu1 }
 0x193   : > { %v2361_v41 = vsel %vm7268_vm4, %v5495_v37, %v5149_v35  ;;  %v2487_v42 = vadd.f32 %v2486_v36, %v2427_v39  ;;  %v6040_v43 = vpop.f32.mrb[57].mxu0 }
 0x194   : > { %5150 = vst [vmem:[%s7259_s30 + $0x34] sm:$0xf] %v2361_v41  ;;  %v2430_v45 = vpop.f32.mrb[58].mxu0 }
 0x195   : > { %v2490_v46 = vadd.f32 %v2489_v40, %v2430_v45  ;;  %v6041_v47 = vpop.f32.mrb[59].mxu0 }
 0x19b   : > { %v2635_v48 = vpop.f32.mrb[60].mxu1 }
 0x19c   : > { %v6070_v49 = vpop.f32.mrb[61].mxu1 }
 0x19d   : > { %v2638_v51 = vpop.f32.mrb[62].mxu1 }
 0x19e   : > { %v2559_v50 = vpop.f32.mrb[60].mxu0  ;;  %v6071_v54 = vpop.f32.mrb[63].mxu1 }
 0x19f   : > { %v2566_v52 = vadd.f32 %v2559_v50, %v2487_v42  ;;  %v6060_v53 = vpop.f32.mrb[61].mxu0 }
 0x1a0   : > { %v2562_v55 = vpop.f32.mrb[62].mxu0 }
 0x1a1   : > { %v2642_v56 = vadd.f32 %v2635_v48, %v2566_v52  ;;  %v2567_v58 = vadd.f32 %v2562_v55, %v2490_v46  ;;  %v6061_v59 = vpop.f32.mrb[63].mxu0 }
 0x1a3   : > { %v2651_v60 = vadd.f32 %v7634_v57, %v2642_v56  ;;  %v2643_v61 = vadd.f32 %v2638_v51, %v2567_v58 }
 0x1a5   : > { %v2653_v1 = vmax.f32 %v2651_v60, 0.0  ;;  %v2652_v62 = vadd.f32 %v7634_v57, %v2643_v61 }
 0x1a7   : > { %v5496_v63 = vpack.c.bf16 %v2653_v1, %v2653_v1  ;;  %v2654_v0 = vmax.f32 %v2652_v62, 0.0  ;;  %v2791_v3 = vpop.f32.mrb[64].mxu1 }
 0x1a8   : > { %v6090_v6 = vpop.f32.mrb[65].mxu1 }
 0x1a9   : > { %5189 = vst.msk [vmem:[%s7259_s30 + $0x38] sm:$0xf] %vm525_vm2, %v5496_v63  ;;  %v5497_v4 = vpack.c.bf16 %v2654_v0, %v2654_v0  ;;  %v2794_v8 = vpop.f32.mrb[66].mxu1  ;;  %v5272_v63 = vld [vmem:[%s7259_s30 + $0x4c] sm:$0xf] }
 0x1aa   : > { %v2732_v7 = vpop.f32.mrb[64].mxu0  ;;  %v6091_v12 = vpop.f32.mrb[67].mxu1 }
 0x1ab   : > { %v2666_v9 = vsel %vm7268_vm4, %v5497_v4, %v5190_v2  ;;  %v2792_v10 = vadd.f32 %v2791_v3, %v2732_v7  ;;  %v6080_v11 = vpop.f32.mrb[65].mxu0 }
 0x1ac   : > { %5191 = vst [vmem:[%s7259_s30 + $0x3c] sm:$0xf] %v2666_v9  ;;  %v2735_v13 = vpop.f32.mrb[66].mxu0 }
 0x1ad   : > { %v2795_v14 = vadd.f32 %v2794_v8, %v2735_v13  ;;  %v6081_v15 = vpop.f32.mrb[67].mxu0 }
 0x1b3   : > { %v2940_v16 = vpop.f32.mrb[68].mxu1 }
 0x1b4   : > { %v6110_v17 = vpop.f32.mrb[69].mxu1 }
 0x1b5   : > { %v2943_v19 = vpop.f32.mrb[70].mxu1 }
 0x1b6   : > { %v2864_v18 = vpop.f32.mrb[68].mxu0  ;;  %v6111_v23 = vpop.f32.mrb[71].mxu1 }
 0x1b7   : > { %v2871_v21 = vadd.f32 %v2864_v18, %v2792_v10  ;;  %v6100_v22 = vpop.f32.mrb[69].mxu0 }
 0x1b8   : > { %v2867_v24 = vpop.f32.mrb[70].mxu0 }
 0x1b9   : > { %v2947_v25 = vadd.f32 %v2940_v16, %v2871_v21  ;;  %v2872_v26 = vadd.f32 %v2867_v24, %v2795_v14  ;;  %v6101_v27 = vpop.f32.mrb[71].mxu0 }
 0x1bb   : > { %v2956_v28 = vadd.f32 %v7634_v57, %v2947_v25  ;;  %v2948_v5 = vadd.f32 %v2943_v19, %v2872_v26 }
 0x1bd   : > { %v2958_v29 = vmax.f32 %v2956_v28, 0.0  ;;  %v2957_v30 = vadd.f32 %v7634_v57, %v2948_v5 }
 0x1bf   : > { %v5498_v31 = vpack.c.bf16 %v2958_v29, %v2958_v29  ;;  %v2959_v32 = vmax.f32 %v2957_v30, 0.0  ;;  %v3096_v34 = vpop.f32.mrb[72].mxu1 }
 0x1c0   : > { %v6130_v36 = vpop.f32.mrb[73].mxu1 }
 0x1c1   : > { %5230 = vst.msk [vmem:[%s7259_s30 + $0x40] sm:$0xf] %vm525_vm2, %v5498_v31  ;;  %v5499_v35 = vpack.c.bf16 %v2959_v32, %v2959_v32  ;;  %v3099_v38 = vpop.f32.mrb[74].mxu1  ;;  %v5313_v31 = vld [vmem:[%s7259_s30 + $0x54] sm:$0xf] }
 0x1c2   : > { %v3037_v37 = vpop.f32.mrb[72].mxu0  ;;  %v6131_v42 = vpop.f32.mrb[75].mxu1 }
 0x1c3   : > { %v2971_v39 = vsel %vm7268_vm4, %v5499_v35, %v5231_v33  ;;  %v3097_v40 = vadd.f32 %v3096_v34, %v3037_v37  ;;  %v6120_v41 = vpop.f32.mrb[73].mxu0 }
 0x1c4   : > { %5232 = vst [vmem:[%s7259_s30 + $0x44] sm:$0xf] %v2971_v39  ;;  %v3040_v43 = vpop.f32.mrb[74].mxu0 }
 0x1c5   : > { %v3100_v44 = vadd.f32 %v3099_v38, %v3040_v43  ;;  %v6121_v45 = vpop.f32.mrb[75].mxu0 }
 0x1cb   : > { %v3245_v46 = vpop.f32.mrb[76].mxu1 }
 0x1cc   : > { %v6150_v47 = vpop.f32.mrb[77].mxu1 }
 0x1cd   : > { %v3248_v49 = vpop.f32.mrb[78].mxu1 }
 0x1ce   : > { %v3169_v48 = vpop.f32.mrb[76].mxu0  ;;  %v6151_v52 = vpop.f32.mrb[79].mxu1 }
 0x1cf   : > { %v3176_v50 = vadd.f32 %v3169_v48, %v3097_v40  ;;  %v6140_v51 = vpop.f32.mrb[77].mxu0 }
 0x1d0   : > { %v3172_v53 = vpop.f32.mrb[78].mxu0 }
 0x1d1   : > { %v3252_v54 = vadd.f32 %v3245_v46, %v3176_v50  ;;  %v3177_v55 = vadd.f32 %v3172_v53, %v3100_v44  ;;  %v6141_v56 = vpop.f32.mrb[79].mxu0 }
 0x1d3   : > { %v3261_v58 = vadd.f32 %v7634_v57, %v3252_v54  ;;  %v3253_v59 = vadd.f32 %v3248_v49, %v3177_v55 }
 0x1d5   : > { %v3263_v60 = vmax.f32 %v3261_v58, 0.0  ;;  %v3262_v61 = vadd.f32 %v7634_v57, %v3253_v59 }
 0x1d7   : > { %v5500_v1 = vpack.c.bf16 %v3263_v60, %v3263_v60  ;;  %v3264_v62 = vmax.f32 %v3262_v61, 0.0  ;;  %v3401_v0 = vpop.f32.mrb[80].mxu1 }
 0x1d8   : > { %v6170_v3 = vpop.f32.mrb[81].mxu1 }
 0x1d9   : > { %5271 = vst.msk [vmem:[%s7259_s30 + $0x48] sm:$0xf] %vm525_vm2, %v5500_v1  ;;  %v5501_v2 = vpack.c.bf16 %v3264_v62, %v3264_v62  ;;  %v3404_v6 = vpop.f32.mrb[82].mxu1  ;;  %v5354_v1 = vld [vmem:[%s7259_s30 + $0x5c] sm:$0xf] }
 0x1da   : > { %v3342_v4 = vpop.f32.mrb[80].mxu0  ;;  %v6171_v10 = vpop.f32.mrb[83].mxu1 }
 0x1db   : > { %v3276_v7 = vsel %vm7268_vm4, %v5501_v2, %v5272_v63  ;;  %v3402_v8 = vadd.f32 %v3401_v0, %v3342_v4  ;;  %v6160_v9 = vpop.f32.mrb[81].mxu0 }
 0x1dc   : > { %5273 = vst [vmem:[%s7259_s30 + $0x4c] sm:$0xf] %v3276_v7  ;;  %v3345_v11 = vpop.f32.mrb[82].mxu0 }
 0x1dd   : > { %v3405_v12 = vadd.f32 %v3404_v6, %v3345_v11  ;;  %v6161_v13 = vpop.f32.mrb[83].mxu0 }
 0x1e3   : > { %v3550_v14 = vpop.f32.mrb[84].mxu1 }
 0x1e4   : > { %v6190_v15 = vpop.f32.mrb[85].mxu1 }
 0x1e5   : > { %v3553_v17 = vpop.f32.mrb[86].mxu1 }
 0x1e6   : > { %v3474_v16 = vpop.f32.mrb[84].mxu0  ;;  %v6191_v21 = vpop.f32.mrb[87].mxu1 }
 0x1e7   : > { %v3481_v18 = vadd.f32 %v3474_v16, %v3402_v8  ;;  %v6180_v19 = vpop.f32.mrb[85].mxu0 }
 0x1e8   : > { %v3477_v22 = vpop.f32.mrb[86].mxu0 }
 0x1e9   : > { %v3557_v23 = vadd.f32 %v3550_v14, %v3481_v18  ;;  %v3482_v24 = vadd.f32 %v3477_v22, %v3405_v12  ;;  %v6181_v25 = vpop.f32.mrb[87].mxu0 }
 0x1eb   : > { %v3566_v26 = vadd.f32 %v7634_v57, %v3557_v23  ;;  %v3558_v27 = vadd.f32 %v3553_v17, %v3482_v24 }
 0x1ed   : > { %v3568_v28 = vmax.f32 %v3566_v26, 0.0  ;;  %v3567_v5 = vadd.f32 %v7634_v57, %v3558_v27 }
 0x1ef   : > { %v5502_v29 = vpack.c.bf16 %v3568_v28, %v3568_v28  ;;  %v3569_v30 = vmax.f32 %v3567_v5, 0.0  ;;  %v3706_v32 = vpop.f32.mrb[88].mxu1 }
 0x1f0   : > { %v6210_v34 = vpop.f32.mrb[89].mxu1 }
 0x1f1   : > { %5312 = vst.msk [vmem:[%s7259_s30 + $0x50] sm:$0xf] %vm525_vm2, %v5502_v29  ;;  %v5503_v33 = vpack.c.bf16 %v3569_v30, %v3569_v30  ;;  %v3709_v36 = vpop.f32.mrb[90].mxu1  ;;  %v5395_v29 = vld [vmem:[%s7259_s30 + $0x64] sm:$0xf] }
 0x1f2   : > { %v3647_v35 = vpop.f32.mrb[88].mxu0  ;;  %v6211_v40 = vpop.f32.mrb[91].mxu1 }
 0x1f3   : > { %v3581_v37 = vsel %vm7268_vm4, %v5503_v33, %v5313_v31  ;;  %v3707_v38 = vadd.f32 %v3706_v32, %v3647_v35  ;;  %v6200_v39 = vpop.f32.mrb[89].mxu0 }
 0x1f4   : > { %5314 = vst [vmem:[%s7259_s30 + $0x54] sm:$0xf] %v3581_v37  ;;  %v3650_v41 = vpop.f32.mrb[90].mxu0 }
 0x1f5   : > { %v3710_v42 = vadd.f32 %v3709_v36, %v3650_v41  ;;  %v6201_v43 = vpop.f32.mrb[91].mxu0 }
 0x1fb   : > { %v3855_v44 = vpop.f32.mrb[92].mxu1 }
 0x1fc   : > { %v6230_v45 = vpop.f32.mrb[93].mxu1 }
 0x1fd   : > { %v3858_v47 = vpop.f32.mrb[94].mxu1 }
 0x1fe   : > { %v3779_v46 = vpop.f32.mrb[92].mxu0  ;;  %v6231_v50 = vpop.f32.mrb[95].mxu1 }
 0x1ff   : > { %v3786_v48 = vadd.f32 %v3779_v46, %v3707_v38  ;;  %v6220_v49 = vpop.f32.mrb[93].mxu0 }
 0x200   : > { %v3782_v51 = vpop.f32.mrb[94].mxu0 }
 0x201   : > { %v3862_v52 = vadd.f32 %v3855_v44, %v3786_v48  ;;  %v3787_v53 = vadd.f32 %v3782_v51, %v3710_v42  ;;  %v6221_v54 = vpop.f32.mrb[95].mxu0 }
 0x203   : > { %v3871_v55 = vadd.f32 %v7634_v57, %v3862_v52  ;;  %v3863_v56 = vadd.f32 %v3858_v47, %v3787_v53 }
 0x205   : > { %v3873_v58 = vmax.f32 %v3871_v55, 0.0  ;;  %v3872_v59 = vadd.f32 %v7634_v57, %v3863_v56 }
 0x207   : > { %v5504_v60 = vpack.c.bf16 %v3873_v58, %v3873_v58  ;;  %v3874_v61 = vmax.f32 %v3872_v59, 0.0  ;;  %v4011_v62 = vpop.f32.mrb[96].mxu1 }
 0x208   : > { %v6250_v0 = vpop.f32.mrb[97].mxu1 }
 0x209   : > { %5353 = vst.msk [vmem:[%s7259_s30 + $0x58] sm:$0xf] %vm525_vm2, %v5504_v60  ;;  %v5505_v63 = vpack.c.bf16 %v3874_v61, %v3874_v61  ;;  %v4014_v3 = vpop.f32.mrb[98].mxu1  ;;  %v5436_v60 = vld [vmem:[%s7259_s30 + $0x6c] sm:$0xf] }
 0x20a   : > { %v3952_v2 = vpop.f32.mrb[96].mxu0  ;;  %v6251_v8 = vpop.f32.mrb[99].mxu1 }
 0x20b   : > { %v3886_v4 = vsel %vm7268_vm4, %v5505_v63, %v5354_v1  ;;  %v4012_v6 = vadd.f32 %v4011_v62, %v3952_v2  ;;  %v6240_v7 = vpop.f32.mrb[97].mxu0 }
 0x20c   : > { %5355 = vst [vmem:[%s7259_s30 + $0x5c] sm:$0xf] %v3886_v4  ;;  %v3955_v9 = vpop.f32.mrb[98].mxu0 }
 0x20d   : > { %v4015_v10 = vadd.f32 %v4014_v3, %v3955_v9  ;;  %v6241_v11 = vpop.f32.mrb[99].mxu0 }
 0x213   : > { %v4160_v12 = vpop.f32.mrb[100].mxu1 }
 0x214   : > { %v6270_v13 = vpop.f32.mrb[101].mxu1 }
 0x215   : > { %v4163_v15 = vpop.f32.mrb[102].mxu1 }
 0x216   : > { %v4084_v14 = vpop.f32.mrb[100].mxu0  ;;  %v6271_v18 = vpop.f32.mrb[103].mxu1 }
 0x217   : > { %v4091_v16 = vadd.f32 %v4084_v14, %v4012_v6  ;;  %v6260_v17 = vpop.f32.mrb[101].mxu0 }
 0x218   : > { %v4087_v19 = vpop.f32.mrb[102].mxu0 }
 0x219   : > { %v4167_v21 = vadd.f32 %v4160_v12, %v4091_v16  ;;  %v4092_v22 = vadd.f32 %v4087_v19, %v4015_v10  ;;  %v6261_v23 = vpop.f32.mrb[103].mxu0 }
 0x21b   : > { %v4176_v24 = vadd.f32 %v7634_v57, %v4167_v21  ;;  %v4168_v25 = vadd.f32 %v4163_v15, %v4092_v22 }
 0x21d   : > { %v4178_v26 = vmax.f32 %v4176_v24, 0.0  ;;  %v4177_v27 = vadd.f32 %v7634_v57, %v4168_v25 }
 0x21f   : > { %v5506_v28 = vpack.c.bf16 %v4178_v26, %v4178_v26  ;;  %v4179_v5 = vmax.f32 %v4177_v27, 0.0  ;;  %v4316_v30 = vpop.f32.mrb[104].mxu1 }
 0x220   : > { %v6290_v32 = vpop.f32.mrb[105].mxu1 }
 0x221   : > { %5394 = vst.msk [vmem:[%s7259_s30 + $0x60] sm:$0xf] %vm525_vm2, %v5506_v28  ;;  %v5507_v31 = vpack.c.bf16 %v4179_v5, %v4179_v5  ;;  %v4319_v34 = vpop.f32.mrb[106].mxu1  ;;  %v5477_v28 = vld [vmem:[%s7259_s30 + $0x74] sm:$0xf] }
 0x222   : > { %v4257_v33 = vpop.f32.mrb[104].mxu0  ;;  %v6291_v38 = vpop.f32.mrb[107].mxu1 }
 0x223   : > { %v4191_v35 = vsel %vm7268_vm4, %v5507_v31, %v5395_v29  ;;  %v4317_v36 = vadd.f32 %v4316_v30, %v4257_v33  ;;  %v6280_v37 = vpop.f32.mrb[105].mxu0 }
 0x224   : > { %5396 = vst [vmem:[%s7259_s30 + $0x64] sm:$0xf] %v4191_v35  ;;  %v4260_v39 = vpop.f32.mrb[106].mxu0 }
 0x225   : > { %v4320_v40 = vadd.f32 %v4319_v34, %v4260_v39  ;;  %v6281_v41 = vpop.f32.mrb[107].mxu0 }
 0x22b   : > { %v4465_v42 = vpop.f32.mrb[108].mxu1 }
 0x22c   : > { %v6310_v43 = vpop.f32.mrb[109].mxu1 }
 0x22d   : > { %v4468_v45 = vpop.f32.mrb[110].mxu1 }
 0x22e   : > { %v4389_v44 = vpop.f32.mrb[108].mxu0  ;;  %v6311_v48 = vpop.f32.mrb[111].mxu1 }
 0x22f   : > { %v4396_v46 = vadd.f32 %v4389_v44, %v4317_v36  ;;  %v6300_v47 = vpop.f32.mrb[109].mxu0 }
 0x230   : > { %v4392_v49 = vpop.f32.mrb[110].mxu0 }
 0x231   : > { %v4472_v50 = vadd.f32 %v4465_v42, %v4396_v46  ;;  %v4397_v51 = vadd.f32 %v4392_v49, %v4320_v40  ;;  %v6301_v52 = vpop.f32.mrb[111].mxu0 }
 0x233   : > { %v4481_v53 = vadd.f32 %v7634_v57, %v4472_v50  ;;  %v4473_v54 = vadd.f32 %v4468_v45, %v4397_v51 }
 0x235   : > { %v4483_v55 = vmax.f32 %v4481_v53, 0.0  ;;  %v4482_v56 = vadd.f32 %v7634_v57, %v4473_v54 }
 0x237   : > { %v5508_v58 = vpack.c.bf16 %v4483_v55, %v4483_v55  ;;  %v4484_v59 = vmax.f32 %v4482_v56, 0.0  ;;  %v4621_v61 = vpop.f32.mrb[112].mxu1 }
 0x238   : > { %v6330_v62 = vpop.f32.mrb[113].mxu1 }
 0x239   : > { %5435 = vst.msk [vmem:[%s7259_s30 + $0x68] sm:$0xf] %vm525_vm2, %v5508_v58  ;;  %v5509_v1 = vpack.c.bf16 %v4484_v59, %v4484_v59  ;;  %v4624_v0 = vpop.f32.mrb[114].mxu1 }
 0x23a   : > { %v4562_v63 = vpop.f32.mrb[112].mxu0  ;;  %v6331_v6 = vpop.f32.mrb[115].mxu1 }
 0x23b   : > { %v4496_v2 = vsel %vm7268_vm4, %v5509_v1, %v5436_v60  ;;  %v4622_v3 = vadd.f32 %v4621_v61, %v4562_v63  ;;  %v6320_v4 = vpop.f32.mrb[113].mxu0 }
 0x23c   : > { %5437 = vst [vmem:[%s7259_s30 + $0x6c] sm:$0xf] %v4496_v2  ;;  %v4565_v7 = vpop.f32.mrb[114].mxu0 }
 0x23d   : > { %v4625_v8 = vadd.f32 %v4624_v0, %v4565_v7  ;;  %v6321_v9 = vpop.f32.mrb[115].mxu0 }
 0x243   : > { %v4770_v10 = vpop.f32.mrb[116].mxu1 }
 0x244   : > { %v6350_v11 = vpop.f32.mrb[117].mxu1 }
 0x245   : > { %v4773_v13 = vpop.f32.mrb[118].mxu1 }
 0x246   : > { %v4694_v12 = vpop.f32.mrb[116].mxu0  ;;  %v6351_v16 = vpop.f32.mrb[119].mxu1 }
 0x247   : > { %v4701_v14 = vadd.f32 %v4694_v12, %v4622_v3  ;;  %v6340_v15 = vpop.f32.mrb[117].mxu0 }
 0x248   : > { %v4697_v17 = vpop.f32.mrb[118].mxu0 }
 0x249   : > { %v4777_v18 = vadd.f32 %v4770_v10, %v4701_v14  ;;  %v4702_v19 = vadd.f32 %v4697_v17, %v4625_v8  ;;  %v6341_v21 = vpop.f32.mrb[119].mxu0 }
 0x24b   : > { %v4786_v22 = vadd.f32 %v7634_v57, %v4777_v18  ;;  %v4778_v23 = vadd.f32 %v4773_v13, %v4702_v19 }
 0x24d   : > { %v4788_v24 = vmax.f32 %v4786_v22, 0.0  ;;  %v4787_v25 = vadd.f32 %v7634_v57, %v4778_v23 }
 0x24f   : > { %v5510_v26 = vpack.c.bf16 %v4788_v24, %v4788_v24  ;;  %v4789_v27 = vmax.f32 %v4787_v25, 0.0 }
 0x251   : > { %5476 = vst.msk [vmem:[%s7259_s30 + $0x70] sm:$0xf] %vm525_vm2, %v5510_v26  ;;  %v5511_v5 = vpack.c.bf16 %v4789_v27, %v4789_v27 }
 0x253   : > { %v4801_v29 = vsel %vm7268_vm4, %v5511_v5, %v5477_v28 }
 0x254   : > { %5478 = vst [vmem:[%s7259_s30 + $0x74] sm:$0xf] %v4801_v29 }
 0x255 PF: > { %s13_s12 = sadd.s32 1, %s6565_s12  }
 0x256   : > { %p10_p4 = scmp.ge.s32.totalorder %s13_s12, 4  }
 0x258   :  { %12 = sbr.rel (!%p10_p4) target bundleno = 1 (0x1), region = 79 }

// kernel: qnetwork_forward.3
= control target key start
LH: loop header
LB: loop body
LE: loop exit
PB: predicated region body
PF: predicated region fallthrough
CT: control target
= control target key end

     0   :  { %14 = vsyncpa [#allocation5], 0  ;;  %s8164_s0 = inlined_call_operand.vmem [shape: bf16[2,36,512], index: 0, kind: input, shape index: {}]   ;;  %s8165_s1 = inlined_call_operand.vmem [shape: bf16[512,64], index: 1, kind: input, shape index: {}]   ;;  %s8166_s2 = inlined_call_operand.vmem [shape: f32[1,64], index: 2, kind: input, shape index: {}]   ;;  %s8167_s3 = inlined_call_operand.vmem [shape: bf16[9,64,64], index: 3, kind: input, shape index: {}]   ;;  %s8168_s4 = inlined_call_operand.vmem [shape: f32[1,64], index: 4, kind: input, shape index: {}]   ;;  %s8169_s5 = inlined_call_operand.vmem [shape: bf16[4,4,64,512], index: 5, kind: input, shape index: {}]   ;;  %s8170_s6 = inlined_call_operand.vmem [shape: f32[1,512], index: 6, kind: input, shape index: {}]   ;;  %s8171_s7 = inlined_call_operand.vmem [shape: bf16[512,4], index: 7, kind: input, shape index: {}]   ;;  %s8172_s8 = inlined_call_operand.vmem [shape: f32[1,4], index: 8, kind: input, shape index: {}]   ;;  %s8173_s9 = inlined_call_operand.hbm [shape: f32[2,1,4], index: 9, kind: output, shape index: {}]  }
   0x1   :  { %16 = vsyncpa [#allocation5 + $0x1], 0  ;;  %s6891_s30 = smov 0   ;;  %s6893_s10 = smov 0  }
   0x2   :  { %s6895_s11 = smov 0   ;;  %s6897_s12 = smov 0  }
   0x3   :  { %s6899_s13 = smov 0   ;;  %s6901_s14 = smov 0  }
   0x4   :  { %s6903_s15 = smov 0   ;;  %s6905_s16 = smov 0  }
   0x5 LB: > { %8178 = sst [smem:[#allocation7_spill]] %s6814_s11  ;;  %s4965_s17 = sadd.s32 4294967295, %s6834_s16   ;;  %s6834_s16 = sphi %s6905_s16, %s22_s16   ;;  %s6830_s15 = sphi %s6903_s15, %s8193_s15   ;;  %s6826_s14 = sphi %s6901_s14, %s8192_s14   ;;  %s6822_s13 = sphi %s6899_s13, %s8191_s13   ;;  %s6818_s12 = sphi %s6897_s12, %s8190_s12   ;;  %s6814_s11 = sphi %s6895_s11, %s8189_s11   ;;  %s6810_s10 = sphi %s6893_s10, %s8195_s10   ;;  %s6806_s30 = sphi %s6891_s30, %s8194_s30  }
   0x6   : > { %8179 = sst [smem:[#allocation8_spill]] %s6826_s14  ;;  %s4966_s18 = sadd.s32 4294967294, %s6834_s16  }
   0x7   : > { %8180 = sst [smem:[#allocation9_spill]] %s6830_s15  ;;  %s31_s19 = sadd.s32 1, %s6826_s14 }
   0x8   : > { %p32_p0 = scmp.ge.s32.totalorder %s31_s19, 4  ;;  %s34_s20 = sadd.s32 1, %s6830_s15 }
   0x9   : > { %p250_p1 = scmp.ne.s32.totalorder %s6814_s11, %s6810_s10  ;;  %p251_p2 = scmp.eq.s32.totalorder %s4965_s17, 7 }
   0xa   : > { %s8197_s19 = smov (%p32_p0, %s31_s19), 0  ;;  %s8199_s20 = smov (!%p32_p0, %s34_s20), %s6830_s15 }
   0xb   : > { %8181 = sst [smem:[#allocation10_spill]] %s8197_s19  ;;  %p6940_p3 = por %p251_p2, %p250_p1 }
   0xc   : > { %p256_p4 = scmp.ne.s32.totalorder %s6810_s10, %s6806_s30  ;;  %p36_p5 = scmp.ge.s32.totalorder %s8199_s20, 2 }
   0xd   : > { %p257_p6 = scmp.eq.s32.totalorder %s4966_s18, 7  ;;  %p4969_p7 = scmp.ge.s32.totalorder %s6834_s16, 1 }
   0xe   : > { %p312_p8 = scmp.lt.s32.totalorder %s6834_s16, 9  ;;  %s8201_s20 = smov (%p36_p5, %s8199_s20), 0 }
   0xf   : > { %8183 = sst [smem:[#allocation11_spill]] %s8201_s20  ;;  %p6950_p9 = por %p257_p6, %p256_p4 }
  0x10   : > { %p313_p10 = pnand %p4969_p7, %p312_p8  ;;  %s237_s23 = ssub.s32 %s6830_s15, %s8201_s20 }
  0x11   : > { %s240_s24 = sadd.s32 1, %s6814_s11  ;;  %p238_p11 = scmp.eq.s32.totalorder %s237_s23, 0 }
  0x12   : > { %316 = sbr.rel (%p313_p10) target bundleno = 1348 (0x544), region = 56  ;;  %s350_s26 = sand.u32 (!%p313_p10), 1, %s6810_s10  }
  0x13   : > { %s6958_s25 = scalar_select %p238_p11, %s6814_s11, %s240_s24  }
  0x14   : > { %p352_p12 = scmp.lt.s32.totalorder (!%p313_p10), %s6822_s13, 1  ;;  %p357_p13 = scmp.lt.s32.totalorder (!%p313_p10), %s6818_s12, 3 }
  0x15   : > { %8185 = sst [smem:[#allocation12_spill]] %s6958_s25  ;;  %s6977_s14 = scalar_lea.vmem (!%p313_p10), [#allocation4], %s350_s26 }
  0x16   : > { %p4973_p0 = scmp.ne.s32.totalorder (!%p313_p10), %s6818_s12, 0 }
  0x19   : > { %s353_s27 = scalar_select %p352_p12, %s6822_s13, 1 }
  0x1a   : > { %s358_s28 = scalar_select %p357_p13, %s6818_s12, 3 }
  0x1b   : > { %s6344_s29 = smul.u32 80, %s353_s27  ;;  %v6420_v0 = vld [vmem:[%s8165_s1 + $0x40] sm:$0xff] (!%p4973_p0)   ;;  %v6424_v4 = vld [vmem:[%s8165_s1 + $0x48] sm:$0xff] (!%p4973_p0)   ;;  %v6428_v8 = vld [vmem:[%s8165_s1 + $0x50] sm:$0xff] (!%p4973_p0)   ;;  %v6836_v34 = vmov (!%p4973_p0), 0.0   ;;  %vm6837_vm0 = vmmov (!%p4973_p0), 0  }
  0x1c   : > { %s5619_s17 = sshll.u32 %s358_s28, 9  ;;  %366 = sbr.rel (%p4973_p0) target bundleno = 787 (0x313), region = 60  ;;  %v6421_v1 = vld [vmem:[%s8165_s1 + $0xc0] sm:$0xff] (!%p4973_p0)   ;;  %5620 = vmatprep.subr.bf16.mxu0 (!%p4973_p0), %v6420_v0  ;;  %v6425_v5 = vld [vmem:[%s8165_s1 + $0xc8] sm:$0xff] (!%p4973_p0)   ;;  %v6429_v9 = vld [vmem:[%s8165_s1 + $0xd0] sm:$0xff] (!%p4973_p0)   ;;  %vm862_vm1 = vcmask (!%p4973_p0), 523264  }
  0x1d   : > { %s6968_s23 = scalar_lea.vmem %s8164_s0, %s6344_s29  ;;  %s6973_s15 = scalar_lea.vmem %s8169_s5, %s5619_s17  ;;  %v6422_v2 = vld [vmem:[%s8165_s1] sm:$0xff] (!%p4973_p0)   ;;  %5654 = vmatprep.subr.bf16.mxu1 (!%p4973_p0), %v6421_v1  ;;  %v6426_v6 = vld [vmem:[%s8165_s1 + $0x8] sm:$0xff] (!%p4973_p0)   ;;  %v6430_v10 = vld [vmem:[%s8165_s1 + $0x10] sm:$0xff] (!%p4973_p0)   ;;  %vm1461_vm2 = vcmask (!%p4973_p0), 1040384   ;;  %vm1374_vm3 = vsmask.f32 (!%p4973_p0), 1280 }
  0x1e   : > { %v6423_v3 = vld [vmem:[%s8165_s1 + $0x80] sm:$0xff] (!%p4973_p0)   ;;  %5621 = vmatpush3.bf16.msra.mxu0 (!%p4973_p0), %v6422_v2  ;;  %v6427_v7 = vld [vmem:[%s8165_s1 + $0x88] sm:$0xff] (!%p4973_p0)   ;;  %v6431_v11 = vld [vmem:[%s8165_s1 + $0x90] sm:$0xff] (!%p4973_p0)   ;;  %vm3432_vm4 = vsmask.f32 (!%p4973_p0), 256  ;;  %vm1543_vm5 = vcmask (!%p4973_p0), 517120  }
  0x1f   : > { %5655 = vmatpush3.bf16.msra.mxu1 (!%p4973_p0), %v6423_v3  ;;  %5622 = vmatprep.subr.bf16.mxu0 (!%p4973_p0), %v6424_v4  ;;  %v6432_v12 = vld [vmem:[%s8165_s1 + $0x58] sm:$0xff] (!%p4973_p0)   ;;  %v6436_v16 = vld [vmem:[%s8165_s1 + $0x60] sm:$0xff] (!%p4973_p0)   ;;  %v6440_v20 = vld [vmem:[%s8165_s1 + $0x68] sm:$0xff] (!%p4973_p0)  }
  0x20   : > { %5656 = vmatprep.subr.bf16.mxu1 (!%p4973_p0), %v6425_v5  ;;  %v6433_v13 = vld [vmem:[%s8165_s1 + $0xd8] sm:$0xff] (!%p4973_p0)   ;;  %v6437_v17 = vld [vmem:[%s8165_s1 + $0xe0] sm:$0xff] (!%p4973_p0)   ;;  %v6441_v21 = vld [vmem:[%s8165_s1 + $0xe8] sm:$0xff] (!%p4973_p0)  }
  0x21   : > { %v6434_v14 = vld [vmem:[%s8165_s1 + $0x18] sm:$0xff] (!%p4973_p0)   ;;  %v6438_v18 = vld [vmem:[%s8165_s1 + $0x20] sm:$0xff] (!%p4973_p0)   ;;  %v6442_v22 = vld [vmem:[%s8165_s1 + $0x28] sm:$0xff] (!%p4973_p0)  }
  0x22   : > { %5623 = vmatpush3.bf16.msra.mxu0 (!%p4973_p0), %v6426_v6  ;;  %v6435_v15 = vld [vmem:[%s8165_s1 + $0x98] sm:$0xff] (!%p4973_p0)   ;;  %v6439_v19 = vld [vmem:[%s8165_s1 + $0xa0] sm:$0xff] (!%p4973_p0)   ;;  %v6443_v23 = vld [vmem:[%s8165_s1 + $0xa8] sm:$0xff] (!%p4973_p0)  }
  0x23   : > { %5657 = vmatpush3.bf16.msra.mxu1 %v6427_v7  ;;  %5624 = vmatprep.subr.bf16.mxu0 %v6428_v8  ;;  %v6444_v24 = vld [vmem:[%s8165_s1 + $0x70] sm:$0xff]   ;;  %v6448_v28 = vld [vmem:[%s8165_s1 + $0x78] sm:$0xff]   ;;  %v375_v39 = vld [vmem:[%s6968_s23 + $0x40] sm:$0x33] }
  0x24   : > { %5658 = vmatprep.subr.bf16.mxu1 %v6429_v9  ;;  %v6445_v25 = vld [vmem:[%s8165_s1 + $0xf0] sm:$0xff]   ;;  %v6449_v29 = vld [vmem:[%s8165_s1 + $0xf8] sm:$0xff]   ;;  %v376_v40 = vld [vmem:[%s6968_s23 + $0x48] sm:$0x33]  ;;  %v4984_v45 = vcombine.high %v375_v39, %v375_v39  ;;  %v4983_v47 = vcombine.low %v375_v39, %v375_v39 }
  0x25   : > { %v6446_v26 = vld [vmem:[%s8165_s1 + $0x30] sm:$0xff]   ;;  %v6450_v30 = vld [vmem:[%s8165_s1 + $0x38] sm:$0xff]   ;;  %v6468_v42 = vld [vmem:[%s8167_s3 + $0x20] sm:$0xff]   ;;  %v4986_v46 = vcombine.high %v376_v40, %v376_v40  ;;  %v4985_v48 = vcombine.low %v376_v40, %v376_v40 }
  0x26   : > { %5625 = vmatpush3.bf16.msra.mxu0 %v6430_v10  ;;  %v6447_v27 = vld [vmem:[%s8165_s1 + $0xb0] sm:$0xff]   ;;  %v6451_v31 = vld [vmem:[%s8165_s1 + $0xb8] sm:$0xff]   ;;  %v6469_v44 = vld [vmem:[%s8167_s3] sm:$0xff]  }
  0x27   : > { %5659 = vmatpush3.bf16.msra.mxu1 %v6431_v11  ;;  %5626 = vmatprep.subr.bf16.mxu0 %v6432_v12  ;;  %v6452_v32 = vld [vmem:[%s6968_s23] ss:$16 sps:$4 sm:$0xff]   ;;  %v6454_v33 = vld [vmem:[%s6968_s23 + $0x4] ss:$16 sps:$4 sm:$0xff]   ;;  %v6455_v35 = vld [vmem:[%s6968_s23 + $0x8] ss:$16 sps:$4 sm:$0xff]  }
  0x28   : > { %5660 = vmatprep.subr.bf16.mxu1 %v6433_v13  ;;  %v6457_v36 = vld [vmem:[%s6968_s23 + $0xc] ss:$16 sps:$4 sm:$0xff]   ;;  %726 = vmatprep.mubr.bf16.mxu0 %v6454_v33  ;;  %v6458_v37 = vld [vmem:[%s6968_s23 + $0x24] ss:$16 sps:$4 sm:$0xff]   ;;  %v6460_v41 = vld [vmem:[%s6968_s23 + $0x20] ss:$16 sps:$4 sm:$0xff]  }
  0x29   : > { %782 = vmatprep.mubr.bf16.mxu1 %v6457_v36  ;;  %v6461_v38 = vld [vmem:[%s6968_s23 + $0x2c] ss:$16 sps:$4 sm:$0xff]   ;;  %v6463_v43 = vld [vmem:[%s6968_s23 + $0x28] ss:$16 sps:$4 sm:$0xff]   ;;  %v6472_v50 = vld [vmem:[%s8167_s3 + $0x10] sm:$0xff]  }
  0x2a   : > { %5627 = vmatpush3.bf16.msra.mxu0 %v6434_v14  ;;  %v6471_v49 = vld [vmem:[%s8167_s3 + $0x8] sm:$0xff]   ;;  %v6474_v52 = vld [vmem:[%s8167_s3 + $0x18] sm:$0xff]   ;;  %v6473_v53 = vld [vmem:[%s8167_s3 + $0x30] sm:$0xff]  }
  0x2b   : > { %5661 = vmatpush3.bf16.msra.mxu1 %v6435_v15  ;;  %5628 = vmatprep.subr.bf16.mxu0 %v6436_v16  ;;  %v6470_v51 = vld [vmem:[%s8167_s3 + $0x28] sm:$0xff]   ;;  %v6475_v54 = vld [vmem:[%s8167_s3 + $0x38] sm:$0xff]   ;;  %v7127_v57 = vld [vmem:[%s8166_s2] ss:$0 sm:$0xff] }
  0x2c   : > { %5662 = vmatprep.subr.bf16.mxu1 %v6437_v17 }
  0x2e   : > { %5629 = vmatpush3.bf16.msra.mxu0 %v6438_v18 }
  0x2f   : > { %5663 = vmatpush3.bf16.msra.mxu1 %v6439_v19  ;;  %5630 = vmatprep.subr.bf16.mxu0 %v6440_v20  ;;  %v6476_v19 = vld [vmem:[%s8167_s3 + $0x60] sm:$0xff]  }
  0x30   : > { %5664 = vmatprep.subr.bf16.mxu1 %v6441_v21 }
  0x32   : > { %5631 = vmatpush3.bf16.msra.mxu0 %v6442_v22 }
  0x33   : > { %5665 = vmatpush3.bf16.msra.mxu1 %v6443_v23  ;;  %5632 = vmatprep.subr.bf16.mxu0 %v6444_v24 }
  0x34   : > { %5666 = vmatprep.subr.bf16.mxu1 %v6445_v25 }
  0x36   : > { %5633 = vmatpush3.bf16.msra.mxu0 %v6446_v26 }
  0x37   : > { %5667 = vmatpush3.bf16.msra.mxu1 %v6447_v27  ;;  %5634 = vmatprep.subr.bf16.mxu0 %v6448_v28  ;;  %v6477_v28 = vld [vmem:[%s8167_s3 + $0x68] sm:$0xff]  }
  0x38   : > { %5668 = vmatprep.subr.bf16.mxu1 %v6449_v29 }
  0x3a   : > { %5635 = vmatpush3.bf16.msra.mxu0 %v6450_v30 }
  0x3b   : > { %5669 = vmatpush3.bf16.msra.mxu1 %v6451_v31  ;;  %5912 = vmatprep.subr.bf16.mxu0 %v6836_v34 }
  0x3c   : > { %5924 = vmatprep.subr.bf16.mxu1 %v6836_v34 }
  0x3d   : > { %727 = vmatmul.mubr.bf16.vlgmr.msra.gmra.mrb[0].mxu0 %v6452_v32 }
  0x3e   : > { %783 = vmatmul.mubr.bf16.vlgmr.msra.gmra.mrb[0].mxu1 %v6455_v35  ;;  %734 = vmatprep.mubr.bf16.mxu0 %v6458_v37  ;;  %v6478_v35 = vld [vmem:[%s8167_s3 + $0x40] sm:$0xff]  }
  0x3f   : > { %790 = vmatprep.mubr.bf16.mxu1 %v6461_v38  ;;  %5913 = vmatpush3.bf16.msra.mxu0 %v6468_v42 }
  0x40   : > { %5925 = vmatpush3.bf16.msra.mxu1 %v6469_v44  ;;  %5914 = vmatprep.subr.bf16.mxu0 %v6836_v34 }
  0x41   : > { %5926 = vmatprep.subr.bf16.mxu1 %v6836_v34 }
  0x43   : > { %5915 = vmatpush3.bf16.msra.mxu0 %v6470_v51 }
  0x44   : > { %5927 = vmatpush3.bf16.msra.mxu1 %v6471_v49  ;;  %5916 = vmatprep.subr.bf16.mxu0 %v6836_v34 }
  0x45   : > { %735 = vmatmul.mubr.bf16.gmra.mrb[4].mxu0 %v6460_v41  ;;  %5928 = vmatprep.subr.bf16.mxu1 %v6836_v34 }
  0x46   : > { %791 = vmatmul.mubr.bf16.gmra.mrb[4].mxu1 %v6463_v43  ;;  %742 = vmatprep.mubr.bf16.mxu0 %v4984_v45  ;;  %v6479_v43 = vld [vmem:[%s8167_s3 + $0x70] sm:$0xff]  }
  0x47   : > { %798 = vmatprep.mubr.bf16.mxu1 %v4986_v46  ;;  %5917 = vmatpush3.bf16.msra.mxu0 %v6473_v53 }
  0x48   : > { %5929 = vmatpush3.bf16.msra.mxu1 %v6472_v50  ;;  %5918 = vmatprep.subr.bf16.mxu0 %v6836_v34 }
  0x49   : > { %5930 = vmatprep.subr.bf16.mxu1 %v6836_v34 }
  0x4b   : > { %5919 = vmatpush3.bf16.msra.mxu0 %v6475_v54 }
  0x4c   : > { %5931 = vmatpush3.bf16.msra.mxu1 %v6474_v52  ;;  %5936 = vmatprep.subr.bf16.mxu0 %v6836_v34  ;;  %v6480_v52 = vld [vmem:[%s8167_s3 + $0x48] sm:$0xff]  }
  0x4d   : > { %743 = vmatmul.mubr.bf16.gmra.mrb[8].mxu0 %v4983_v47  ;;  %5948 = vmatprep.subr.bf16.mxu1 %v6836_v34 }
  0x4e   : > { %799 = vmatmul.mubr.bf16.gmra.mrb[8].mxu1 %v4985_v48  ;;  %5920 = vmatprep.mubr.msk.bf16.mxu0 %vm6837_vm0, %v6836_v34 }
  0x4f   : > { %5932 = vmatprep.mubr.msk.bf16.mxu1 %vm6837_vm0, %v6836_v34 }
 0x110   : > { %v5636_v55 = vpop.f32.mrb[0].mxu0 }
 0x111   : > { %v5670_v56 = vpop.f32.mrb[0].mxu1  ;;  %v5637_v58 = vpop.f32.mrb[1].mxu0 }
 0x112   : > { %v5638_v59 = vadd.f32 %v5637_v58, %v5636_v55  ;;  %v5671_v60 = vpop.f32.mrb[1].mxu1  ;;  %v5639_v61 = vpop.f32.mrb[2].mxu0 }
 0x113   : > { %v5672_v62 = vadd.f32 %v5671_v60, %v5670_v56  ;;  %v5673_v63 = vpop.f32.mrb[2].mxu1  ;;  %v5640_v0 = vpop.f32.mrb[3].mxu0 }
 0x114   : > { %v729_v1 = vadd.f32 %v5638_v59, %v7127_v57  ;;  %v5641_v2 = vadd.f32 %v5640_v0, %v5639_v61  ;;  %v5674_v3 = vpop.f32.mrb[3].mxu1  ;;  %v6482_v0 = vld [vmem:[%s8167_s3 + $0x50] sm:$0xff]  }
 0x115   : > { %v5675_v4 = vadd.f32 %v5674_v3, %v5673_v63 }
 0x116   : > { %v785_v5 = vadd.f32 %v5672_v62, %v729_v1  ;;  %v732_v6 = vadd.f32 %v5641_v2, %v7127_v57 }
 0x118   : > { %v788_v7 = vadd.f32 %v5675_v4, %v732_v6  ;;  %v5642_v8 = vpop.f32.mrb[4].mxu0  ;;  %v806_v11 = vmax.f32 %v785_v5, 0.0  ;;  %v6483_v6 = vld [vmem:[%s8167_s3 + $0xa0] sm:$0xff]  }
 0x119   : > { %v5643_v9 = vpop.f32.mrb[5].mxu0  ;;  %v5676_v10 = vpop.f32.mrb[4].mxu1 }
 0x11a   : > { %v807_v12 = vmax.f32 %v788_v7, 0.0  ;;  %v5644_v13 = vadd.f32 %v5643_v9, %v5642_v8  ;;  %v5645_v14 = vpop.f32.mrb[6].mxu0  ;;  %v5677_v15 = vpop.f32.mrb[5].mxu1 }
 0x11b   : > { %v5646_v16 = vpop.f32.mrb[7].mxu0  ;;  %v5678_v17 = vadd.f32 %v5677_v15, %v5676_v10  ;;  %v5679_v18 = vpop.f32.mrb[6].mxu1 }
 0x11c   : > { %v7134_v20 = vpack.c.bf16 %v807_v12, %v806_v11  ;;  %v737_v21 = vadd.f32 %v5644_v13, %v7127_v57  ;;  %v5647_v22 = vadd.f32 %v5646_v16, %v5645_v14  ;;  %v5680_v23 = vpop.f32.mrb[7].mxu1  ;;  %v6484_v13 = vld [vmem:[%s8167_s3 + $0x58] sm:$0xff]  }
 0x11d   : > { %v5681_v24 = vadd.f32 %v5680_v23, %v5679_v18  ;;  %v6487_v23 = vld [vmem:[%s8167_s3 + $0xb0] sm:$0xff]  }
 0x11e   : > { %v740_v25 = vadd.f32 %v5647_v22, %v7127_v57  ;;  %v793_v26 = vadd.f32 %v5678_v17, %v737_v21  ;;  %5933 = vmatmul.mubr.msk.bf16.vlgmr.msra.gmra.mrb[12].mxu1 %vm862_vm1, %v7134_v20  ;;  %v7141_v27 = vshll.u32 %v7134_v20, 16  ;;  %v7147_v29 = vshrl.u32 %v7134_v20, 16  ;;  %v6485_v17 = vld [vmem:[%s8167_s3 + $0xa8] sm:$0xff]  }
 0x11f   : > { %5949 = vmatpush3.bf16.msra.mxu1 %v6476_v19  ;;  %5956 = vmatprep.mubr.msk.bf16.mxu1 %vm6837_vm0, %v6836_v34  ;;  %v1462_v55 = vrot.slane %v7134_v20, 7  ;;  %v1060_v9 = vrot.slane %v7134_v20, 3  ;;  %v6486_v19 = vld [vmem:[%s8167_s3 + $0x80] sm:$0xff]   ;;  %v982_v21 = vrot.slane %v7134_v20, 1 }
 0x120   : > { %v808_v30 = vmax.f32 %v793_v26, 0.0  ;;  %v796_v31 = vadd.f32 %v5681_v24, %v740_v25  ;;  %5950 = vmatprep.subr.bf16.mxu1 %v6836_v34  ;;  %v836_v32 = vrot.slane %v7141_v27, 1  ;;  %v5648_v33 = vpop.f32.mrb[8].mxu0  ;;  %v1375_v45 = vrot.slane %v7147_v29, 6  ;;  %v6488_v24 = vld [vmem:[%s8167_s3 + $0x88] sm:$0xff]   ;;  %v6489_v25 = vld [vmem:[%s8167_s3 + $0xb8] sm:$0xff]  }
 0x121   : > { %v5649_v36 = vpop.f32.mrb[9].mxu0  ;;  %v5682_v37 = vpop.f32.mrb[8].mxu1  ;;  %v1376_v46 = vrot.slane %v7141_v27, 7  ;;  %v6490_v26 = vld [vmem:[%s8167_s3 + $0x90] sm:$0xff]  }
 0x122   : > { %v809_v38 = vmax.f32 %v796_v31, 0.0  ;;  %v837_v39 = vor.u32 %v836_v32, %v7147_v29  ;;  %v5650_v40 = vadd.f32 %v5649_v36, %v5648_v33  ;;  %v5683_v41 = vpop.f32.mrb[9].mxu1  ;;  %v5651_v42 = vpop.f32.mrb[10].mxu0  ;;  %v6492_v31 = vld [vmem:[%s8167_s3 + $0x98] sm:$0xff]   ;;  %v1138_v32 = vrot.slane %v7147_v29, 3  ;;  %v6494_v36 = vld [vmem:[%s8167_s3 + $0xc0] sm:$0xff]  }
 0x123   : > { %5951 = vmatpush3.bf16.msra.mxu1 %v6477_v28  ;;  %v5684_v44 = vadd.f32 %v5683_v41, %v5682_v37  ;;  %v5652_v47 = vpop.f32.mrb[11].mxu0  ;;  %v5685_v48 = vpop.f32.mrb[10].mxu1  ;;  %v1377_v58 = vor.u32 %v1376_v46, %v1375_v45  ;;  %v6491_v28 = vld [vmem:[%s8167_s3 + $0xe0] sm:$0xff]   ;;  %v1139_v33 = vrot.slane %v7141_v27, 4  ;;  %v6495_v27 = vld [vmem:[%s8167_s3 + $0xf0] sm:$0xff]   ;;  %v6496_v29 = vld [vmem:[%s8167_s3 + $0xc8] sm:$0xff]  }
 0x124   : > { %v7162_v49 = vpack.c.bf16 %v809_v38, %v808_v30  ;;  %5921 = vmatmul.mubr.msk.bf16.vlgmr.msra.gmra.mrb[12].mxu0 %vm862_vm1, %v837_v39  ;;  %5952 = vmatprep.subr.bf16.mxu1 %v6836_v34  ;;  %v745_v50 = vadd.f32 %v5650_v40, %v7127_v57  ;;  %v5686_v51 = vpop.f32.mrb[11].mxu1  ;;  %v6481_v57 = vld [vmem:[%s8167_s3 + $0x78] sm:$0xff]   ;;  %v1218_v30 = vrot.slane %v7134_v20, 4  ;;  %v6498_v39 = vld [vmem:[%s8167_s3 + $0xd0] sm:$0xff]   ;;  %v6499_v40 = vld [vmem:[%s8167_s3 + $0x20] sm:$0xff]  }
 0x125   : > { %5937 = vmatpush3.bf16.msra.mxu0 %v6478_v35  ;;  %5944 = vmatprep.mubr.msk.bf16.mxu0 %vm6837_vm0, %v6836_v34  ;;  %v6493_v35 = vld [vmem:[%s8167_s3 + $0xe8] sm:$0xff]   ;;  %v1140_v37 = vor.u32 %v1139_v33, %v1138_v32  ;;  %v6497_v38 = vld [vmem:[%s8167_s3 + $0xf8] sm:$0xff]   ;;  %v6503_v45 = vld [vmem:[%s8167_s3 + $0x30] sm:$0xff]  }
 0x126   : > { %5938 = vmatprep.subr.bf16.mxu0 %v6836_v34  ;;  %v801_v53 = vadd.f32 %v5684_v44, %v745_v50  ;;  %v1379_v54 = vshll.u32 %v7162_v49, 16  ;;  %v1463_v56 = vrot.slane %v7162_v49, 7  ;;  %v2066_v59 = vshrl.u32 %v7162_v49, 16  ;;  %v6500_v41 = vld [vmem:[%s8167_s3 + $0xd8] sm:$0xff]   ;;  %v6501_v42 = vld [vmem:[%s8167_s3 + $0x28] sm:$0xff]   ;;  %v6506_v48 = vld [vmem:[%s8167_s3 + $0x110] sm:$0xff]  }
 0x127   : > { %5953 = vmatpush3.bf16.msra.mxu1 %v6479_v43  ;;  %v6502_v43 = vld [vmem:[%s8167_s3 + $0x100] sm:$0xff]   ;;  %v7309_v44 = vrot.slane %v7134_v20, 6  ;;  %v6504_v46 = vld [vmem:[%s8167_s3 + $0x108] sm:$0xff]   ;;  %v6505_v47 = vld [vmem:[%s8167_s3 + $0x38] sm:$0xff]  }
 0x128   : > { %5954 = vmatprep.subr.bf16.mxu1 %v6836_v34  ;;  %v810_v60 = vmax.f32 %v801_v53, 0.0  ;;  %v1381_v61 = vrot.slane %v1379_v54, 7  ;;  %v7182_v62 = vsel %vm1461_vm2, %v1462_v55, %v1463_v56  ;;  %v2069_v63 = vrot.slane %v1379_v54, 2  ;;  %v6507_v50 = vld [vmem:[%s8167_s3 + $0x40] sm:$0xff]   ;;  %v6508_v51 = vld [vmem:[%s8167_s3 + $0x118] sm:$0xff]   ;;  %v6512_v55 = vld [vmem:[%s8167_s3 + $0x8] sm:$0xff]  }
 0x129   : > { %5939 = vmatpush3.bf16.msra.mxu0 %v6480_v52  ;;  %v2068_v1 = vrot.slane %v2066_v59, 1  ;;  %v2749_v2 = vrot.slane %v2066_v59, 4  ;;  %v2750_v3 = vrot.slane %v1379_v54, 5  ;;  %v3433_v16 = vrot.slane %v2066_v59, 7  ;;  %v6509_v52 = vld [vmem:[%s8167_s3 + $0x48] sm:$0xff]   ;;  %v6510_v53 = vld [vmem:[%s8167_s3] sm:$0xff]  }
 0x12a   : > { %5940 = vmatprep.subr.bf16.mxu0 %v6836_v34  ;;  %v7188_v4 = vpack.c.bf16 %v810_v60, %v810_v60  ;;  %v7190_v5 = vsel %vm1374_vm3, %v1377_v58, %v1381_v61  ;;  %v6511_v54 = vld [vmem:[%s8167_s3 + $0x50] sm:$0xff]   ;;  %v6515_v58 = vld [vmem:[%s8167_s3 + $0x80] sm:$0xff]   ;;  %v6516_v59 = vld [vmem:[%s8167_s3 + $0x18] sm:$0xff]  }
 0x12b   : > { %5955 = vmatpush3.bf16.msra.mxu1 %v6481_v57  ;;  %v7195_v7 = vor.u32 %v2069_v63, %v2068_v1  ;;  %v7197_v8 = vor.u32 %v2750_v3, %v2749_v2  ;;  %v6514_v57 = vld [vmem:[%s8167_s3 + $0x10] sm:$0xff]   ;;  %v6517_v60 = vld [vmem:[%s8167_s3 + $0x88] sm:$0xff]   ;;  %v6518_v61 = vld [vmem:[%s8167_s3 + $0x60] sm:$0xff]  }
 0x12c   : > { %5972 = vmatprep.subr.bf16.mxu1 %v6836_v34  ;;  %v3435_v10 = vshrl.u32 %v7188_v4, 16  ;;  %v3438_v11 = vshll.u32 %v7188_v4, 16  ;;  %v3354_v12 = vrot.slane %v7188_v4, 7  ;;  %v6519_v63 = vld [vmem:[%s8167_s3 + $0x90] sm:$0xff]   ;;  %v6521_v1 = vld [vmem:[%s8167_s3 + $0x98] sm:$0xff]   ;;  %v6523_v2 = vld [vmem:[%s8167_s3 + $0xc0] sm:$0xff]  }
 0x12d   : > { %5941 = vmatpush3.bf16.msra.mxu0 %v6482_v0  ;;  %v6520_v0 = vld [vmem:[%s8167_s3 + $0x68] sm:$0xff]   ;;  %v6522_v20 = vld [vmem:[%s8167_s3 + $0x70] sm:$0xff]   ;;  %v6524_v3 = vld [vmem:[%s8167_s3 + $0x78] sm:$0xff]  }
 0x12e   : > { %5957 = vmatmul.mubr.msk.bf16.vlgmr.msra.gmra.mrb[16].mxu1 %vm862_vm1, %v1060_v9  ;;  %5942 = vmatprep.subr.bf16.mxu0 %v6836_v34  ;;  %v3437_v14 = vrot.slane %v3435_v10, 7  ;;  %v7212_v15 = vsel %vm1461_vm2, %v1463_v56, %v3354_v12  ;;  %v6513_v56 = vld [vmem:[%s8167_s3 + $0x58] sm:$0xff]   ;;  %v6527_v10 = vld [vmem:[%s8167_s3 + $0xd0] sm:$0xff]   ;;  %v6542_v32 = vld [vmem:[%s8167_s3 + $0x20] sm:$0xff]  }
 0x12f   : > { %5973 = vmatpush3.bf16.msra.mxu1 %v6483_v6  ;;  %5980 = vmatprep.mubr.msk.bf16.mxu1 %vm6837_vm0, %v6836_v34  ;;  %v6525_v6 = vld [vmem:[%s8167_s3 + $0xc8] sm:$0xff]   ;;  %v6529_v12 = vld [vmem:[%s8167_s3 + $0xd8] sm:$0xff]   ;;  %v6543_v33 = vld [vmem:[%s8167_s3 + $0x10] sm:$0xff]  }
 0x130   : > { %5974 = vmatprep.subr.bf16.mxu1 %v6836_v34  ;;  %v3440_v18 = vor.u32 %v3438_v11, %v3437_v14  ;;  %v6528_v11 = vld [vmem:[%s8167_s3 + $0xa8] sm:$0xff]   ;;  %v6531_v14 = vld [vmem:[%s8167_s3 + $0x100] sm:$0xff]  }
 0x131   : > { %5943 = vmatpush3.bf16.msra.mxu0 %v6484_v13  ;;  %v6530_v13 = vld [vmem:[%s8167_s3 + $0xb0] sm:$0xff]  }
 0x132   : > { %5960 = vmatprep.subr.bf16.mxu0 %v6836_v34  ;;  %v7225_v22 = vsel %vm3432_vm4, %v3433_v16, %v3440_v18  ;;  %v7457_v16 = vrot.slane %v7162_v49, 1  ;;  %v6533_v18 = vld [vmem:[%s8167_s3 + $0x108] sm:$0xff]  }
 0x133   : > { %5975 = vmatpush3.bf16.msra.mxu1 %v6485_v17  ;;  %v6532_v17 = vld [vmem:[%s8167_s3 + $0xb8] sm:$0xff]  }
 0x134   : > { %5945 = vmatmul.mubr.msk.bf16.vlgmr.msra.gmra.mrb[16].mxu0 %vm862_vm1, %v982_v21  ;;  %5976 = vmatprep.subr.bf16.mxu1 %v6836_v34  ;;  %v6535_v21 = vld [vmem:[%s8167_s3 + $0x110] sm:$0xff]  }
 0x135   : > { %5961 = vmatpush3.bf16.msra.mxu0 %v6486_v19  ;;  %5968 = vmatprep.mubr.msk.bf16.mxu0 %vm6837_vm0, %v6836_v34  ;;  %v6534_v19 = vld [vmem:[%s8167_s3 + $0xe0] sm:$0xff]  }
 0x136   : > { %5962 = vmatprep.subr.bf16.mxu0 %v6836_v34 }
 0x137   : > { %5977 = vmatpush3.bf16.msra.mxu1 %v6487_v23  ;;  %v6536_v23 = vld [vmem:[%s8167_s3 + $0xe8] sm:$0xff]  }
 0x138   : > { %5978 = vmatprep.subr.bf16.mxu1 %v6836_v34 }
 0x139   : > { %5963 = vmatpush3.bf16.msra.mxu0 %v6488_v24  ;;  %v6537_v24 = vld [vmem:[%s8167_s3 + $0x118] sm:$0xff]  }
 0x13a   : > { %5964 = vmatprep.subr.bf16.mxu0 %v6836_v34 }
 0x13b   : > { %5979 = vmatpush3.bf16.msra.mxu1 %v6489_v25  ;;  %v6538_v25 = vld [vmem:[%s8167_s3 + $0xf0] sm:$0xff]  }
 0x13c   : > { %5996 = vmatprep.subr.bf16.mxu1 %v6836_v34 }
 0x13d   : > { %5965 = vmatpush3.bf16.msra.mxu0 %v6490_v26  ;;  %v6539_v26 = vld [vmem:[%s8167_s3] sm:$0xff]  }
 0x13e   : > { %5981 = vmatmul.mubr.msk.bf16.vlgmr.msra.gmra.mrb[20].mxu1 %vm862_vm1, %v1218_v30  ;;  %5966 = vmatprep.subr.bf16.mxu0 %v6836_v34 }
 0x13f   : > { %5997 = vmatpush3.bf16.msra.mxu1 %v6491_v28  ;;  %6004 = vmatprep.mubr.msk.bf16.mxu1 %vm6837_vm0, %v6836_v34  ;;  %v7500_v28 = vrot.slane %v7162_v49, 2 }
 0x140   : > { %5998 = vmatprep.subr.bf16.mxu1 %v6836_v34 }
 0x141   : > { %5967 = vmatpush3.bf16.msra.mxu0 %v6492_v31  ;;  %v6541_v31 = vld [vmem:[%s8167_s3 + $0x8] sm:$0xff]  }
 0x142   : > { %5984 = vmatprep.subr.bf16.mxu0 %v6836_v34 }
 0x143   : > { %5999 = vmatpush3.bf16.msra.mxu1 %v6493_v35  ;;  %v6544_v35 = vld [vmem:[%s8167_s3 + $0x28] sm:$0xff]  }
 0x144   : > { %5969 = vmatmul.mubr.msk.bf16.vlgmr.msra.gmra.mrb[20].mxu0 %vm862_vm1, %v1140_v37  ;;  %6000 = vmatprep.subr.bf16.mxu1 %v6836_v34 }
 0x145   : > { %5985 = vmatpush3.bf16.msra.mxu0 %v6494_v36  ;;  %5992 = vmatprep.mubr.msk.bf16.mxu0 %vm6837_vm0, %v6836_v34  ;;  %v6545_v36 = vld [vmem:[%s8167_s3 + $0x18] sm:$0xff]  }
 0x146   : > { %5986 = vmatprep.subr.bf16.mxu0 %v6836_v34 }
 0x147   : > { %6001 = vmatpush3.bf16.msra.mxu1 %v6495_v27  ;;  %v6547_v27 = vld [vmem:[%s8167_s3 + $0x60] sm:$0xff]  }
 0x148   : > { %6002 = vmatprep.subr.bf16.mxu1 %v6836_v34 }
 0x149   : > { %5987 = vmatpush3.bf16.msra.mxu0 %v6496_v29  ;;  %v6548_v29 = vld [vmem:[%s8167_s3 + $0x38] sm:$0xff]  }
 0x14a   : > { %5988 = vmatprep.subr.bf16.mxu0 %v6836_v34 }
 0x14b   : > { %6003 = vmatpush3.bf16.msra.mxu1 %v6497_v38  ;;  %v6549_v38 = vld [vmem:[%s8167_s3 + $0x68] sm:$0xff]  }
 0x14c   : > { %6020 = vmatprep.subr.bf16.mxu1 %v6836_v34 }
 0x14d   : > { %5989 = vmatpush3.bf16.msra.mxu0 %v6498_v39  ;;  %v6550_v39 = vld [vmem:[%s8167_s3 + $0x40] sm:$0xff]  }
 0x14e   : > { %6005 = vmatmul.mubr.msk.bf16.vlgmr.msra.gmra.mrb[24].mxu1 %vm862_vm1, %v7190_v5  ;;  %5990 = vmatprep.subr.bf16.mxu0 %v6836_v34 }
 0x14f   : > { %6021 = vmatpush3.bf16.msra.mxu1 %v6499_v40  ;;  %6028 = vmatprep.mubr.msk.bf16.mxu1 %vm6837_vm0, %v6836_v34  ;;  %v6551_v40 = vld [vmem:[%s8167_s3 + $0x70] sm:$0xff]  }
 0x150   : > { %6022 = vmatprep.subr.bf16.mxu1 %v6836_v34 }
 0x151   : > { %5991 = vmatpush3.bf16.msra.mxu0 %v6500_v41  ;;  %v6552_v41 = vld [vmem:[%s8167_s3 + $0x48] sm:$0xff]  }
 0x152   : > { %6008 = vmatprep.subr.bf16.mxu0 %v6836_v34 }
 0x153   : > { %6023 = vmatpush3.bf16.msra.mxu1 %v6501_v42  ;;  %v6553_v42 = vld [vmem:[%s8167_s3 + $0x78] sm:$0xff]  }
 0x154   : > { %5993 = vmatmul.mubr.msk.bf16.vlgmr.msra.gmra.mrb[24].mxu0 %vm862_vm1, %v7309_v44  ;;  %6024 = vmatprep.subr.bf16.mxu1 %v6836_v34 }
 0x155   : > { %6009 = vmatpush3.bf16.msra.mxu0 %v6502_v43  ;;  %6016 = vmatprep.mubr.msk.bf16.mxu0 %vm6837_vm0, %v6836_v34  ;;  %v6555_v43 = vld [vmem:[%s8167_s3 + $0xa0] sm:$0xff]  }
 0x156   : > { %6010 = vmatprep.subr.bf16.mxu0 %v6836_v34 }
 0x157   : > { %6025 = vmatpush3.bf16.msra.mxu1 %v6503_v45  ;;  %v6557_v45 = vld [vmem:[%s8167_s3 + $0xa8] sm:$0xff]  }
 0x158   : > { %6026 = vmatprep.subr.bf16.mxu1 %v6836_v34 }
 0x159   : > { %6011 = vmatpush3.bf16.msra.mxu0 %v6504_v46  ;;  %v6558_v46 = vld [vmem:[%s8167_s3 + $0x80] sm:$0xff]  }
 0x15a   : > { %6012 = vmatprep.subr.bf16.mxu0 %v6836_v34 }
 0x15b   : > { %6027 = vmatpush3.bf16.msra.mxu1 %v6505_v47  ;;  %v6559_v47 = vld [vmem:[%s8167_s3 + $0xb0] sm:$0xff]  }
 0x15c   : > { %6044 = vmatprep.subr.bf16.mxu1 %v6836_v34 }
 0x15d   : > { %6013 = vmatpush3.bf16.msra.mxu0 %v6506_v48  ;;  %v6560_v48 = vld [vmem:[%s8167_s3 + $0x88] sm:$0xff]  }
 0x15e   : > { %6029 = vmatmul.mubr.msk.bf16.vlgmr.msra.gmra.mrb[28].mxu1 %vm862_vm1, %v1140_v37  ;;  %6014 = vmatprep.subr.bf16.mxu0 %v6836_v34  ;;  %v6546_v37 = vld [vmem:[%s8167_s3 + $0x30] sm:$0xff]  }
 0x15f   : > { %6045 = vmatpush3.bf16.msra.mxu1 %v6507_v50  ;;  %6052 = vmatprep.mubr.msk.bf16.mxu1 %vm6837_vm0, %v6836_v34  ;;  %v6561_v50 = vld [vmem:[%s8167_s3 + $0xb8] sm:$0xff]  }
 0x160   : > { %6046 = vmatprep.subr.bf16.mxu1 %v6836_v34 }
 0x161   : > { %6015 = vmatpush3.bf16.msra.mxu0 %v6508_v51  ;;  %v6563_v51 = vld [vmem:[%s8167_s3 + $0xe0] sm:$0xff]  }
 0x162   : > { %6032 = vmatprep.subr.bf16.mxu0 %v6836_v34 }
 0x163   : > { %6047 = vmatpush3.bf16.msra.mxu1 %v6509_v52  ;;  %v6564_v52 = vld [vmem:[%s8167_s3 + $0x98] sm:$0xff]  }
 0x164   : > { %6017 = vmatmul.mubr.msk.bf16.vlgmr.msra.gmra.mrb[28].mxu0 %vm862_vm1, %v7182_v62  ;;  %6048 = vmatprep.subr.bf16.mxu1 %v6836_v34 }
 0x165   : > { %6033 = vmatpush3.bf16.msra.mxu0 %v6510_v53  ;;  %6040 = vmatprep.mubr.msk.bf16.mxu0 %vm6837_vm0, %v6836_v34  ;;  %v6565_v53 = vld [vmem:[%s8167_s3 + $0xe8] sm:$0xff]  }
 0x166   : > { %6034 = vmatprep.subr.bf16.mxu0 %v6836_v34 }
 0x167   : > { %6049 = vmatpush3.bf16.msra.mxu1 %v6511_v54  ;;  %v6566_v54 = vld [vmem:[%s8167_s3 + $0xc0] sm:$0xff]  }
 0x168   : > { %6050 = vmatprep.subr.bf16.mxu1 %v6836_v34 }
 0x169   : > { %6035 = vmatpush3.bf16.msra.mxu0 %v6512_v55  ;;  %v6567_v55 = vld [vmem:[%s8167_s3 + $0xf0] sm:$0xff]  }
 0x16a   : > { %6036 = vmatprep.subr.bf16.mxu0 %v6836_v34 }
 0x16b   : > { %6051 = vmatpush3.bf16.msra.mxu1 %v6513_v56  ;;  %v6568_v56 = vld [vmem:[%s8167_s3 + $0xc8] sm:$0xff]  }
 0x16c   : > { %6068 = vmatprep.subr.bf16.mxu1 %v6836_v34 }
 0x16d   : > { %6037 = vmatpush3.bf16.msra.mxu0 %v6514_v57  ;;  %v6569_v57 = vld [vmem:[%s8167_s3 + $0xf8] sm:$0xff]  }
 0x16e   : > { %6053 = vmatmul.mubr.msk.bf16.vlgmr.msra.gmra.mrb[32].mxu1 %vm862_vm1, %v1218_v30  ;;  %6038 = vmatprep.subr.bf16.mxu0 %v6836_v34  ;;  %v6540_v30 = vld [vmem:[%s8167_s3 + $0xf8] sm:$0xff]  }
 0x16f   : > { %6069 = vmatpush3.bf16.msra.mxu1 %v6515_v58  ;;  %6076 = vmatprep.mubr.msk.bf16.mxu1 %vm6837_vm0, %v6836_v34  ;;  %v6570_v58 = vld [vmem:[%s8167_s3 + $0xd0] sm:$0xff]  }
 0x170   : > { %6070 = vmatprep.subr.bf16.mxu1 %v6836_v34 }
 0x171   : > { %6039 = vmatpush3.bf16.msra.mxu0 %v6516_v59  ;;  %v6571_v59 = vld [vmem:[%s8167_s3 + $0x20] sm:$0xff]  }
 0x172   : > { %6056 = vmatprep.subr.bf16.mxu0 %v6836_v34 }
 0x173   : > { %6071 = vmatpush3.bf16.msra.mxu1 %v6517_v60  ;;  %v6572_v60 = vld [vmem:[%s8167_s3 + $0xd8] sm:$0xff]  }
 0x174   : > { %6041 = vmatmul.mubr.msk.bf16.vlgmr.msra.gmra.mrb[32].mxu0 %vm862_vm1, %v1060_v9  ;;  %6072 = vmatprep.subr.bf16.mxu1 %v6836_v34  ;;  %v6526_v9 = vld [vmem:[%s8167_s3 + $0xa0] sm:$0xff]  }
 0x175   : > { %6057 = vmatpush3.bf16.msra.mxu0 %v6518_v61  ;;  %6064 = vmatprep.mubr.msk.bf16.mxu0 %vm6837_vm0, %v6836_v34  ;;  %v6573_v61 = vld [vmem:[%s8167_s3 + $0x28] sm:$0xff]  }
 0x176   : > { %6058 = vmatprep.subr.bf16.mxu0 %v6836_v34 }
 0x177   : > { %6073 = vmatpush3.bf16.msra.mxu1 %v6519_v63  ;;  %v6574_v63 = vld [vmem:[%s8167_s3 + $0x100] sm:$0xff]  }
 0x178   : > { %6074 = vmatprep.subr.bf16.mxu1 %v6836_v34 }
 0x179   : > { %6059 = vmatpush3.bf16.msra.mxu0 %v6520_v0  ;;  %v2672_v0 = vrot.slane %v7162_v49, 4 }
 0x17a   : > { %6060 = vmatprep.subr.bf16.mxu0 %v6836_v34 }
 0x17b   : > { %6075 = vmatpush3.bf16.msra.mxu1 %v6521_v1  ;;  %v6575_v1 = vld [vmem:[%s8167_s3 + $0x30] sm:$0xff]  }
 0x17c   : > { %6092 = vmatprep.subr.bf16.mxu1 %v6836_v34 }
 0x17d   : > { %6061 = vmatpush3.bf16.msra.mxu0 %v6522_v20  ;;  %v6576_v20 = vld [vmem:[%s8167_s3 + $0x108] sm:$0xff]  }
 0x17e   : > { %6077 = vmatmul.mubr.msk.bf16.vlgmr.msra.gmra.mrb[36].mxu1 %vm862_vm1, %v7190_v5  ;;  %6062 = vmatprep.subr.bf16.mxu0 %v6836_v34 }
 0x17f   : > { %6093 = vmatpush3.bf16.msra.mxu1 %v6523_v2  ;;  %6100 = vmatprep.mubr.msk.bf16.mxu1 %vm6837_vm0, %v6836_v34  ;;  %v6577_v2 = vld [vmem:[%s8167_s3 + $0x38] sm:$0xff]  }
 0x180   : > { %6094 = vmatprep.subr.bf16.mxu1 %v6836_v34 }
 0x181   : > { %6063 = vmatpush3.bf16.msra.mxu0 %v6524_v3  ;;  %v6578_v3 = vld [vmem:[%s8167_s3 + $0x110] sm:$0xff]  }
 0x182   : > { %6080 = vmatprep.subr.bf16.mxu0 %v6836_v34 }
 0x183   : > { %6095 = vmatpush3.bf16.msra.mxu1 %v6525_v6  ;;  %v6579_v6 = vld [vmem:[%s8167_s3 + $0x40] sm:$0xff]  }
 0x184   : > { %6065 = vmatmul.mubr.msk.bf16.vlgmr.msra.gmra.mrb[36].mxu0 %vm862_vm1, %v7309_v44  ;;  %6096 = vmatprep.subr.bf16.mxu1 %v6836_v34 }
 0x185   : > { %6081 = vmatpush3.bf16.msra.mxu0 %v6526_v9  ;;  %6088 = vmatprep.mubr.msk.bf16.mxu0 %vm6837_vm0, %v6836_v34  ;;  %v6580_v9 = vld [vmem:[%s8167_s3 + $0x118] sm:$0xff]  }
 0x186   : > { %6082 = vmatprep.subr.bf16.mxu0 %v6836_v34 }
 0x187   : > { %6097 = vmatpush3.bf16.msra.mxu1 %v6527_v10  ;;  %v6581_v10 = vld [vmem:[%s8167_s3 + $0x48] sm:$0xff]  }
 0x188   : > { %6098 = vmatprep.subr.bf16.mxu1 %v6836_v34 }
 0x189   : > { %6083 = vmatpush3.bf16.msra.mxu0 %v6528_v11 }
 0x18a   : > { %6084 = vmatprep.subr.bf16.mxu0 %v6836_v34 }
 0x18b   : > { %6099 = vmatpush3.bf16.msra.mxu1 %v6529_v12  ;;  %v6582_v12 = vld [vmem:[%s8167_s3] sm:$0xff]  }
 0x18c   : > { %6116 = vmatprep.subr.bf16.mxu1 %v6836_v34 }
 0x18d   : > { %6085 = vmatpush3.bf16.msra.mxu0 %v6530_v13 }
 0x18e   : > { %6101 = vmatmul.mubr.msk.bf16.vlgmr.msra.gmra.mrb[40].mxu1 %vm862_vm1, %v7457_v16  ;;  %6086 = vmatprep.subr.bf16.mxu0 %v6836_v34 }
 0x18f   : > { %6117 = vmatpush3.bf16.msra.mxu1 %v6531_v14  ;;  %6124 = vmatprep.mubr.msk.bf16.mxu1 %vm6837_vm0, %v6836_v34 }
 0x190   : > { %6118 = vmatprep.subr.bf16.mxu1 %v6836_v34 }
 0x191   : > { %6087 = vmatpush3.bf16.msra.mxu0 %v6532_v17  ;;  %v6583_v17 = vld [vmem:[%s8167_s3 + $0x50] sm:$0xff]  }
 0x192   : > { %6104 = vmatprep.subr.bf16.mxu0 %v6836_v34 }
 0x193   : > { %6119 = vmatpush3.bf16.msra.mxu1 %v6533_v18 }
 0x194   : > { %6089 = vmatmul.mubr.msk.bf16.vlgmr.msra.gmra.mrb[40].mxu0 %vm862_vm1, %v7182_v62  ;;  %6120 = vmatprep.subr.bf16.mxu1 %v6836_v34 }
 0x195   : > { %6105 = vmatpush3.bf16.msra.mxu0 %v6534_v19  ;;  %6112 = vmatprep.mubr.msk.bf16.mxu0 %vm6837_vm0, %v6836_v34  ;;  %v6584_v19 = vld [vmem:[%s8167_s3 + $0x8] sm:$0xff]  }
 0x196   : > { %6106 = vmatprep.subr.bf16.mxu0 %v6836_v34 }
 0x197   : > { %6121 = vmatpush3.bf16.msra.mxu1 %v6535_v21 }
 0x198   : > { %6122 = vmatprep.subr.bf16.mxu1 %v6836_v34 }
 0x199   : > { %6107 = vmatpush3.bf16.msra.mxu0 %v6536_v23  ;;  %v6585_v23 = vld [vmem:[%s8167_s3 + $0x58] sm:$0xff]  }
 0x19a   : > { %6108 = vmatprep.subr.bf16.mxu0 %v6836_v34 }
 0x19b   : > { %6123 = vmatpush3.bf16.msra.mxu1 %v6537_v24 }
 0x19c   : > { %6140 = vmatprep.subr.bf16.mxu1 %v6836_v34 }
 0x19d   : > { %6109 = vmatpush3.bf16.msra.mxu0 %v6538_v25 }
 0x19e   : > { %6125 = vmatmul.mubr.msk.bf16.vlgmr.msra.gmra.mrb[44].mxu1 %vm862_vm1, %v7500_v28  ;;  %6110 = vmatprep.subr.bf16.mxu0 %v6836_v34 }
 0x19f   : > { %6141 = vmatpush3.bf16.msra.mxu1 %v6539_v26  ;;  %6148 = vmatprep.mubr.msk.bf16.mxu1 %vm6837_vm0, %v6836_v34 }
 0x1a0   : > { %6142 = vmatprep.subr.bf16.mxu1 %v6836_v34 }
 0x1a1   : > { %6111 = vmatpush3.bf16.msra.mxu0 %v6540_v30  ;;  %v6586_v30 = vld [vmem:[%s8167_s3 + $0x10] sm:$0xff]  }
 0x1a2   : > { %6128 = vmatprep.subr.bf16.mxu0 %v6836_v34 }
 0x1a3   : > { %6143 = vmatpush3.bf16.msra.mxu1 %v6541_v31 }
 0x1a4   : > { %6113 = vmatmul.mubr.msk.bf16.vlgmr.msra.gmra.mrb[44].mxu0 %vm862_vm1, %v7195_v7  ;;  %6144 = vmatprep.subr.bf16.mxu1 %v6836_v34 }
 0x1a5   : > { %6129 = vmatpush3.bf16.msra.mxu0 %v6542_v32  ;;  %6136 = vmatprep.mubr.msk.bf16.mxu0 %vm6837_vm0, %v6836_v34  ;;  %v6587_v32 = vld [vmem:[%s8167_s3 + $0x80] sm:$0xff]  }
 0x1a6   : > { %6130 = vmatprep.subr.bf16.mxu0 %v6836_v34 }
 0x1a7   : > { %6145 = vmatpush3.bf16.msra.mxu1 %v6543_v33  ;;  %v6588_v33 = vld [vmem:[%s8167_s3 + $0x18] sm:$0xff]  }
 0x1a8   : > { %6146 = vmatprep.subr.bf16.mxu1 %v6836_v34 }
 0x1a9   : > { %6131 = vmatpush3.bf16.msra.mxu0 %v6544_v35  ;;  %v6589_v35 = vld [vmem:[%s8167_s3 + $0x88] sm:$0xff]  }
 0x1aa   : > { %6132 = vmatprep.subr.bf16.mxu0 %v6836_v34 }
 0x1ab   : > { %6147 = vmatpush3.bf16.msra.mxu1 %v6545_v36 }
 0x1ac   : > { %6164 = vmatprep.subr.bf16.mxu1 %v6836_v34 }
 0x1ad   : > { %6133 = vmatpush3.bf16.msra.mxu0 %v6546_v37  ;;  %v6590_v37 = vld [vmem:[%s8167_s3 + $0x60] sm:$0xff]  }
 0x1ae   : > { %6149 = vmatmul.mubr.msk.bf16.vlgmr.msra.gmra.mrb[48].mxu1 %vm862_vm1, %v7309_v44  ;;  %6134 = vmatprep.subr.bf16.mxu0 %v6836_v34  ;;  %v6556_v44 = vld [vmem:[%s8167_s3 + $0x58] sm:$0xff]  }
 0x1af   : > { %6165 = vmatpush3.bf16.msra.mxu1 %v6547_v27  ;;  %6172 = vmatprep.mubr.msk.bf16.mxu1 %vm6837_vm0, %v6836_v34 }
 0x1b0   : > { %6166 = vmatprep.subr.bf16.mxu1 %v6836_v34 }
 0x1b1   : > { %6135 = vmatpush3.bf16.msra.mxu0 %v6548_v29  ;;  %v6591_v29 = vld [vmem:[%s8167_s3 + $0x90] sm:$0xff]  }
 0x1b2   : > { %6152 = vmatprep.subr.bf16.mxu0 %v6836_v34 }
 0x1b3   : > { %6167 = vmatpush3.bf16.msra.mxu1 %v6549_v38 }
 0x1b4   : > { %6137 = vmatmul.mubr.msk.bf16.vlgmr.msra.gmra.mrb[48].mxu0 %vm862_vm1, %v7190_v5  ;;  %6168 = vmatprep.subr.bf16.mxu1 %v6836_v34  ;;  %v6554_v5 = vld [vmem:[%s8167_s3 + $0x50] sm:$0xff]  }
 0x1b5   : > { %6153 = vmatpush3.bf16.msra.mxu0 %v6550_v39  ;;  %6160 = vmatprep.mubr.msk.bf16.mxu0 %vm6837_vm0, %v6836_v34  ;;  %v6592_v39 = vld [vmem:[%s8167_s3 + $0x68] sm:$0xff]  }
 0x1b6   : > { %6154 = vmatprep.subr.bf16.mxu0 %v6836_v34 }
 0x1b7   : > { %6169 = vmatpush3.bf16.msra.mxu1 %v6551_v40 }
 0x1b8   : > { %6170 = vmatprep.subr.bf16.mxu1 %v6836_v34 }
 0x1b9   : > { %6155 = vmatpush3.bf16.msra.mxu0 %v6552_v41  ;;  %v6593_v41 = vld [vmem:[%s8167_s3 + $0x98] sm:$0xff]  }
 0x1ba   : > { %6156 = vmatprep.subr.bf16.mxu0 %v6836_v34 }
 0x1bb   : > { %6171 = vmatpush3.bf16.msra.mxu1 %v6553_v42 }
 0x1bc   : > { %6188 = vmatprep.subr.bf16.mxu1 %v6836_v34 }
 0x1bd   : > { %6157 = vmatpush3.bf16.msra.mxu0 %v6554_v5 }
 0x1be   : > { %6173 = vmatmul.mubr.msk.bf16.vlgmr.msra.gmra.mrb[52].mxu1 %vm862_vm1, %v7457_v16  ;;  %6158 = vmatprep.subr.bf16.mxu0 %v6836_v34 }
 0x1bf   : > { %6189 = vmatpush3.bf16.msra.mxu1 %v6555_v43  ;;  %6196 = vmatprep.mubr.msk.bf16.mxu1 %vm6837_vm0, %v6836_v34  ;;  %v6594_v43 = vld [vmem:[%s8167_s3 + $0x70] sm:$0xff]  }
 0x1c0   : > { %6190 = vmatprep.subr.bf16.mxu1 %v6836_v34 }
 0x1c1   : > { %6159 = vmatpush3.bf16.msra.mxu0 %v6556_v44 }
 0x1c2   : > { %6176 = vmatprep.subr.bf16.mxu0 %v6836_v34 }
 0x1c3   : > { %6191 = vmatpush3.bf16.msra.mxu1 %v6557_v45 }
 0x1c4   : > { %6161 = vmatmul.mubr.msk.bf16.vlgmr.msra.gmra.mrb[52].mxu0 %vm862_vm1, %v7182_v62  ;;  %6192 = vmatprep.subr.bf16.mxu1 %v6836_v34  ;;  %v6562_v62 = vld [vmem:[%s8167_s3 + $0x90] sm:$0xff]  }
 0x1c5   : > { %6177 = vmatpush3.bf16.msra.mxu0 %v6558_v46  ;;  %6184 = vmatprep.mubr.msk.bf16.mxu0 %vm6837_vm0, %v6836_v34  ;;  %v6595_v46 = vld [vmem:[%s8167_s3 + $0xc0] sm:$0xff]  }
 0x1c6   : > { %6178 = vmatprep.subr.bf16.mxu0 %v6836_v34 }
 0x1c7   : > { %6193 = vmatpush3.bf16.msra.mxu1 %v6559_v47  ;;  %v6596_v47 = vld [vmem:[%s8167_s3 + $0x78] sm:$0xff]  }
 0x1c8   : > { %6194 = vmatprep.subr.bf16.mxu1 %v6836_v34 }
 0x1c9   : > { %6179 = vmatpush3.bf16.msra.mxu0 %v6560_v48  ;;  %v6597_v48 = vld [vmem:[%s8167_s3 + $0xc8] sm:$0xff]  }
 0x1ca   : > { %6180 = vmatprep.subr.bf16.mxu0 %v6836_v34 }
 0x1cb   : > { %6195 = vmatpush3.bf16.msra.mxu1 %v6561_v50 }
 0x1cc   : > { %6212 = vmatprep.subr.bf16.mxu1 %v6836_v34 }
 0x1cd   : > { %6181 = vmatpush3.bf16.msra.mxu0 %v6562_v62  ;;  %v6598_v62 = vld [vmem:[%s8167_s3 + $0xa0] sm:$0xff]  }
 0x1ce   : > { %6197 = vmatmul.mubr.msk.bf16.vlgmr.msra.gmra.mrb[56].mxu1 %vm862_vm1, %v7500_v28  ;;  %6182 = vmatprep.subr.bf16.mxu0 %v6836_v34 }
 0x1cf   : > { %6213 = vmatpush3.bf16.msra.mxu1 %v6563_v51  ;;  %6220 = vmatprep.mubr.msk.bf16.mxu1 %vm6837_vm0, %v6836_v34 }
 0x1d0   : > { %6214 = vmatprep.subr.bf16.mxu1 %v6836_v34 }
 0x1d1   : > { %6183 = vmatpush3.bf16.msra.mxu0 %v6564_v52  ;;  %v6599_v52 = vld [vmem:[%s8167_s3 + $0xd0] sm:$0xff]  }
 0x1d2   : > { %6200 = vmatprep.subr.bf16.mxu0 %v6836_v34 }
 0x1d3   : > { %6215 = vmatpush3.bf16.msra.mxu1 %v6565_v53 }
 0x1d4   : > { %6185 = vmatmul.mubr.msk.bf16.vlgmr.msra.gmra.mrb[56].mxu0 %vm862_vm1, %v7195_v7  ;;  %6216 = vmatprep.subr.bf16.mxu1 %v6836_v34 }
 0x1d5   : > { %6201 = vmatpush3.bf16.msra.mxu0 %v6566_v54  ;;  %6208 = vmatprep.mubr.msk.bf16.mxu0 %vm6837_vm0, %v6836_v34  ;;  %v6600_v54 = vld [vmem:[%s8167_s3 + $0xa8] sm:$0xff]  }
 0x1d6   : > { %6202 = vmatprep.subr.bf16.mxu0 %v6836_v34 }
 0x1d7   : > { %6217 = vmatpush3.bf16.msra.mxu1 %v6567_v55 }
 0x1d8   : > { %6218 = vmatprep.subr.bf16.mxu1 %v6836_v34 }
 0x1d9   : > { %6203 = vmatpush3.bf16.msra.mxu0 %v6568_v56  ;;  %v6601_v56 = vld [vmem:[%s8167_s3 + $0xd8] sm:$0xff]  }
 0x1da   : > { %6204 = vmatprep.subr.bf16.mxu0 %v6836_v34 }
 0x1db   : > { %6219 = vmatpush3.bf16.msra.mxu1 %v6569_v57 }
 0x1dc   : > { %6236 = vmatprep.subr.bf16.mxu1 %v6836_v34 }
 0x1dd   : > { %6205 = vmatpush3.bf16.msra.mxu0 %v6570_v58 }
 0x1de   : > { %6221 = vmatmul.mubr.msk.bf16.vlgmr.msra.gmra.mrb[60].mxu1 %vm862_vm1, %v7197_v8  ;;  %6206 = vmatprep.subr.bf16.mxu0 %v6836_v34 }
 0x1df   : > { %6237 = vmatpush3.bf16.msra.mxu1 %v6571_v59  ;;  %6244 = vmatprep.mubr.msk.bf16.mxu1 %vm6837_vm0, %v6836_v34 }
 0x1e0   : > { %6238 = vmatprep.subr.bf16.mxu1 %v6836_v34 }
 0x1e1   : > { %6207 = vmatpush3.bf16.msra.mxu0 %v6572_v60  ;;  %v6602_v60 = vld [vmem:[%s8167_s3 + $0xb0] sm:$0xff]  }
 0x1e2   : > { %6224 = vmatprep.subr.bf16.mxu0 %v6836_v34 }
 0x1e3   : > { %6239 = vmatpush3.bf16.msra.mxu1 %v6573_v61 }
 0x1e4   : > { %6209 = vmatmul.mubr.msk.bf16.vlgmr.msra.gmra.mrb[60].mxu0 %vm862_vm1, %v2672_v0  ;;  %6240 = vmatprep.subr.bf16.mxu1 %v6836_v34 }
 0x1e5   : > { %6225 = vmatpush3.bf16.msra.mxu0 %v6574_v63  ;;  %6232 = vmatprep.mubr.msk.bf16.mxu0 %vm6837_vm0, %v6836_v34 }
 0x1e6   : > { %6226 = vmatprep.subr.bf16.mxu0 %v6836_v34 }
 0x1e7   : > { %6241 = vmatpush3.bf16.msra.mxu1 %v6575_v1  ;;  %v6604_v1 = vld [vmem:[%s8167_s3 + $0xb8] sm:$0xff]  }
 0x1e8   : > { %6242 = vmatprep.subr.bf16.mxu1 %v6836_v34 }
 0x1e9   : > { %6227 = vmatpush3.bf16.msra.mxu0 %v6576_v20  ;;  %v6605_v20 = vld [vmem:[%s8167_s3 + $0x108] sm:$0xff]  }
 0x1ea   : > { %6228 = vmatprep.subr.bf16.mxu0 %v6836_v34 }
 0x1eb   : > { %6243 = vmatpush3.bf16.msra.mxu1 %v6577_v2 }
 0x1ec   : > { %6260 = vmatprep.subr.bf16.mxu1 %v6836_v34 }
 0x1ed   : > { %6229 = vmatpush3.bf16.msra.mxu0 %v6578_v3  ;;  %v6606_v3 = vld [vmem:[%s8167_s3 + $0xe0] sm:$0xff]  }
 0x1ee   : > { %6245 = vmatmul.mubr.msk.bf16.vlgmr.msra.gmra.mrb[64].mxu1 %vm862_vm1, %v7195_v7  ;;  %6230 = vmatprep.subr.bf16.mxu0 %v6836_v34  ;;  %v2828_v7 = vrot.slane %v7162_v49, 5  ;;  %v6609_v49 = vld [vmem:[%s8167_s3 + $0x118] sm:$0xff]  }
 0x1ef   : > { %6261 = vmatpush3.bf16.msra.mxu1 %v6579_v6  ;;  %6268 = vmatprep.mubr.msk.bf16.mxu1 %vm6837_vm0, %v6836_v34 }
 0x1f0   : > { %6262 = vmatprep.subr.bf16.mxu1 %v6836_v34 }
 0x1f1   : > { %6231 = vmatpush3.bf16.msra.mxu0 %v6580_v9  ;;  %v966_v11 = vpop.f32.mrb[12].mxu1  ;;  %v6607_v9 = vld [vmem:[%s8167_s3 + $0x110] sm:$0xff]  }
 0x1f2   : > { %v5934_v13 = vpop.f32.mrb[13].mxu1  ;;  %6248 = vmatprep.subr.bf16.mxu0 %v6836_v34 }
 0x1f3   : > { %6263 = vmatpush3.bf16.msra.mxu1 %v6581_v10  ;;  %v969_v14 = vpop.f32.mrb[14].mxu1 }
 0x1f4   : > { %6233 = vmatmul.mubr.msk.bf16.vlgmr.msra.gmra.mrb[64].mxu0 %vm862_vm1, %v2828_v7  ;;  %v5935_v18 = vpop.f32.mrb[15].mxu1  ;;  %6264 = vmatprep.subr.bf16.mxu1 %v6836_v34 }
 0x1f5   : > { %6249 = vmatpush3.bf16.msra.mxu0 %v6582_v12  ;;  %6256 = vmatprep.mubr.msk.bf16.mxu0 %vm6837_vm0, %v6836_v34 }
 0x1f6   : > { %6250 = vmatprep.subr.bf16.mxu0 %v6836_v34 }
 0x1f7   : > { %6265 = vmatpush3.bf16.msra.mxu1 %v6583_v17  ;;  %v900_v21 = vpop.f32.mrb[12].mxu0  ;;  %v6610_v17 = vld [vmem:[%s8167_s3 + $0xf0] sm:$0xff]  }
 0x1f8   : > { %v967_v24 = vadd.f32 %v966_v11, %v900_v21  ;;  %v5922_v25 = vpop.f32.mrb[13].mxu0  ;;  %6266 = vmatprep.subr.bf16.mxu1 %v6836_v34  ;;  %v6608_v11 = vld [vmem:[%s8167_s3 + $0xe8] sm:$0xff]   ;;  %v6611_v21 = vld [vmem:[%s8167_s3 + $0xf8] sm:$0xff]  }
 0x1f9   : > { %6251 = vmatpush3.bf16.msra.mxu0 %v6584_v19  ;;  %v903_v26 = vpop.f32.mrb[14].mxu0 }
 0x1fa   : > { %v5923_v31 = vpop.f32.mrb[15].mxu0  ;;  %6252 = vmatprep.subr.bf16.mxu0 %v6836_v34 }
 0x1fb   : > { %6267 = vmatpush3.bf16.msra.mxu1 %v6585_v23  ;;  %v7876_v31 = vld [vmem:[%s8168_s4] ss:$0 sm:$0xff] }
 0x1fc   : > { %6284 = vmatprep.subr.bf16.mxu1 %v6836_v34 }
 0x1fd   : > { %6253 = vmatpush3.bf16.msra.mxu0 %v6586_v30 }
 0x1fe   : > { %6269 = vmatmul.mubr.msk.bf16.vlgmr.msra.gmra.mrb[68].mxu1 %vm862_vm1, %v7500_v28  ;;  %6254 = vmatprep.subr.bf16.mxu0 %v6836_v34 }
 0x1ff   : > { %6285 = vmatpush3.bf16.msra.mxu1 %v6587_v32  ;;  %6292 = vmatprep.mubr.msk.bf16.mxu1 %vm6837_vm0, %v6836_v34 }
 0x200   : > { %6286 = vmatprep.subr.bf16.mxu1 %v6836_v34 }
 0x201   : > { %v1122_v36 = vpop.f32.mrb[16].mxu1  ;;  %6255 = vmatpush3.bf16.msra.mxu0 %v6588_v33 }
 0x202   : > { %v5958_v27 = vpop.f32.mrb[17].mxu1  ;;  %6272 = vmatprep.subr.bf16.mxu0 %v6836_v34 }
 0x203   : > { %v1125_v28 = vpop.f32.mrb[18].mxu1  ;;  %6287 = vmatpush3.bf16.msra.mxu1 %v6589_v35 }
 0x204   : > { %v5959_v38 = vpop.f32.mrb[19].mxu1  ;;  %6257 = vmatmul.mubr.msk.bf16.vlgmr.msra.gmra.mrb[68].mxu0 %vm862_vm1, %v7457_v16  ;;  %6288 = vmatprep.subr.bf16.mxu1 %v6836_v34 }
 0x205   : > { %6273 = vmatpush3.bf16.msra.mxu0 %v6590_v37  ;;  %6280 = vmatprep.mubr.msk.bf16.mxu0 %vm6837_vm0, %v6836_v34 }
 0x206   : > { %6274 = vmatprep.subr.bf16.mxu0 %v6836_v34 }
 0x207   : > { %v1044_v40 = vpop.f32.mrb[16].mxu0  ;;  %6289 = vmatpush3.bf16.msra.mxu1 %v6591_v29 }
 0x208   : > { %v1050_v42 = vadd.f32 %v1044_v40, %v967_v24  ;;  %v5946_v16 = vpop.f32.mrb[17].mxu0  ;;  %6290 = vmatprep.subr.bf16.mxu1 %v6836_v34 }
 0x209   : > { %v1047_v5 = vpop.f32.mrb[18].mxu0  ;;  %6275 = vmatpush3.bf16.msra.mxu0 %v6592_v39 }
 0x20a   : > { %v5947_v44 = vpop.f32.mrb[19].mxu0  ;;  %6276 = vmatprep.subr.bf16.mxu0 %v6836_v34  ;;  %v1128_v45 = vadd.f32 %v1122_v36, %v1050_v42 }
 0x20b   : > { %6291 = vmatpush3.bf16.msra.mxu1 %v6593_v41 }
 0x20c   : > { %6308 = vmatprep.subr.bf16.mxu1 %v6836_v34 }
 0x20d   : > { %6277 = vmatpush3.bf16.msra.mxu0 %v6594_v43 }
 0x20e   : > { %6293 = vmatmul.mubr.msk.bf16.vlgmr.msra.gmra.mrb[72].mxu1 %vm862_vm1, %v7197_v8  ;;  %6278 = vmatprep.subr.bf16.mxu0 %v6836_v34 }
 0x20f   : > { %6309 = vmatpush3.bf16.msra.mxu1 %v6595_v46  ;;  %6316 = vmatprep.mubr.msk.bf16.mxu1 %vm6837_vm0, %v6836_v34 }
 0x210   : > { %6310 = vmatprep.subr.bf16.mxu1 %v6836_v34 }
 0x211   : > { %v1280_v50 = vpop.f32.mrb[20].mxu1  ;;  %6279 = vmatpush3.bf16.msra.mxu0 %v6596_v47 }
 0x212   : > { %v5982_v51 = vpop.f32.mrb[21].mxu1  ;;  %6296 = vmatprep.subr.bf16.mxu0 %v6836_v34 }
 0x213   : > { %v1283_v8 = vpop.f32.mrb[22].mxu1  ;;  %6311 = vmatpush3.bf16.msra.mxu1 %v6597_v48 }
 0x214   : > { %v5983_v53 = vpop.f32.mrb[23].mxu1  ;;  %6281 = vmatmul.mubr.msk.bf16.vlgmr.msra.gmra.mrb[72].mxu0 %vm862_vm1, %v2672_v0  ;;  %6312 = vmatprep.subr.bf16.mxu1 %v6836_v34  ;;  %v6603_v0 = vld [vmem:[%s8167_s3 + $0x100] sm:$0xff]  }
 0x215   : > { %6297 = vmatpush3.bf16.msra.mxu0 %v6598_v62  ;;  %6304 = vmatprep.mubr.msk.bf16.mxu0 %vm6837_vm0, %v6836_v34 }
 0x216   : > { %6298 = vmatprep.subr.bf16.mxu0 %v6836_v34 }
 0x217   : > { %v1202_v55 = vpop.f32.mrb[20].mxu0  ;;  %6313 = vmatpush3.bf16.msra.mxu1 %v6599_v52 }
 0x218   : > { %v1208_v57 = vadd.f32 %v1202_v55, %v1128_v45  ;;  %v5970_v58 = vpop.f32.mrb[21].mxu0  ;;  %6314 = vmatprep.subr.bf16.mxu1 %v6836_v34 }
 0x219   : > { %v1205_v59 = vpop.f32.mrb[22].mxu0  ;;  %6299 = vmatpush3.bf16.msra.mxu0 %v6600_v54 }
 0x21a   : > { %v5971_v61 = vpop.f32.mrb[23].mxu0  ;;  %6300 = vmatprep.subr.bf16.mxu0 %v6836_v34  ;;  %v1286_v63 = vadd.f32 %v1280_v50, %v1208_v57 }
 0x21b   : > { %6315 = vmatpush3.bf16.msra.mxu1 %v6601_v56 }
 0x21c   : > { %6332 = vmatprep.subr.bf16.mxu1 %v6836_v34 }
 0x21d   : > { %6301 = vmatpush3.bf16.msra.mxu0 %v6602_v60 }
 0x21e   : > { %6317 = vmatmul.mubr.msk.bf16.vlgmr.msra.gmra.mrb[76].mxu1 %vm862_vm1, %v7212_v15  ;;  %6302 = vmatprep.subr.bf16.mxu0 %v6836_v34 }
 0x21f   : > { %6333 = vmatpush3.bf16.msra.mxu1 %v6603_v0  ;;  %6340 = vmatprep.mubr.msk.bf16.mxu1 %vm6837_vm0, %v6836_v34 }
 0x220   : > { %6334 = vmatprep.subr.bf16.mxu1 %v6836_v34 }
 0x221   : > { %v1444_v2 = vpop.f32.mrb[24].mxu1  ;;  %6303 = vmatpush3.bf16.msra.mxu0 %v6604_v1 }
 0x222   : > { %v6006_v6 = vpop.f32.mrb[25].mxu1  ;;  %6320 = vmatprep.subr.bf16.mxu0 %v6836_v34 }
 0x223   : > { %v1447_v15 = vpop.f32.mrb[26].mxu1  ;;  %6335 = vmatpush3.bf16.msra.mxu1 %v6605_v20 }
 0x224   : > { %v6007_v10 = vpop.f32.mrb[27].mxu1  ;;  %6305 = vmatmul.mubr.msk.bf16.vlgmr.msra.gmra.mrb[76].mxu0 %vm862_vm1, %v2828_v7  ;;  %6336 = vmatprep.subr.bf16.mxu1 %v6836_v34 }
 0x225   : > { %6321 = vmatpush3.bf16.msra.mxu0 %v6606_v3  ;;  %6328 = vmatprep.mubr.msk.bf16.mxu0 %vm6837_vm0, %v6836_v34 }
 0x226   : > { %6322 = vmatprep.subr.bf16.mxu0 %v6836_v34 }
 0x227   : > { %v1358_v12 = vpop.f32.mrb[24].mxu0  ;;  %6337 = vmatpush3.bf16.msra.mxu1 %v6607_v9 }
 0x228   : > { %v1364_v13 = vadd.f32 %v1358_v12, %v1286_v63  ;;  %v5994_v7 = vpop.f32.mrb[25].mxu0  ;;  %6338 = vmatprep.subr.bf16.mxu1 %v6836_v34 }
 0x229   : > { %v1361_v14 = vpop.f32.mrb[26].mxu0  ;;  %6323 = vmatpush3.bf16.msra.mxu0 %v6608_v11 }
 0x22a   : > { %v5995_v18 = vpop.f32.mrb[27].mxu0  ;;  %6324 = vmatprep.subr.bf16.mxu0 %v6836_v34  ;;  %v1450_v19 = vadd.f32 %v1444_v2, %v1364_v13 }
 0x22b   : > { %6339 = vmatpush3.bf16.msra.mxu1 %v6609_v49 }
 0x22d   : > { %6325 = vmatpush3.bf16.msra.mxu0 %v6610_v17 }
 0x22e   : > { %6341 = vmatmul.mubr.msk.bf16.vlgmr.msra.gmra.mrb[80].mxu1 %vm862_vm1, %v7188_v4  ;;  %6326 = vmatprep.subr.bf16.mxu0 %v6836_v34 }
 0x231   : > { %v1619_v23 = vpop.f32.mrb[28].mxu1  ;;  %6327 = vmatpush3.bf16.msra.mxu0 %v6611_v21 }
 0x232   : > { %v6030_v24 = vpop.f32.mrb[29].mxu1 }
 0x233   : > { %v1622_v25 = vpop.f32.mrb[30].mxu1 }
 0x234   : > { %v6031_v26 = vpop.f32.mrb[31].mxu1  ;;  %6329 = vmatmul.mubr.msk.bf16.vlgmr.msra.gmra.mrb[80].mxu0 %vm862_vm1, %v7225_v22 }
 0x235   : > { %v3597_v26 = vlaneseq }
 0x237   : > { %v1526_v30 = vpop.f32.mrb[28].mxu0  ;;  %vm3599_vm6 = vcmp.lt.s32.totalorder %v3597_v26, 512 }
 0x238   : > { %v1532_v32 = vadd.f32 %v1526_v30, %v1450_v19  ;;  %v6018_v33 = vpop.f32.mrb[29].mxu0  ;;  %3601 = vst.msk [vmem:[#allocation3] sm:$0xf] %vm3599_vm6, %v6836_v34 }
 0x239   : > { %v1529_v35 = vpop.f32.mrb[30].mxu0 }
 0x23a   : > { %v1540_v4 = vadd.f32 %v7876_v31, %v1532_v32  ;;  %v6019_v36 = vpop.f32.mrb[31].mxu0 }
 0x23c   : > { %v1541_v37 = vmax.f32 %v1540_v4, 0.0 }
 0x23e   : > { %v1542_v27 = vpack.c.bf16 %v1541_v37, %v1541_v37 }
 0x240   : > { %1544 = vst.msk [vmem:[#allocation2] sm:$0x3] %vm1543_vm5, %v1542_v27 }
 0x241   : > { %v1755_v28 = vpop.f32.mrb[32].mxu1 }
 0x242   : > { %v6054_v29 = vpop.f32.mrb[33].mxu1 }
 0x243   : > { %v1758_v22 = vpop.f32.mrb[34].mxu1 }
 0x244   : > { %v6055_v38 = vpop.f32.mrb[35].mxu1 }
 0x247   : > { %v1683_v39 = vpop.f32.mrb[32].mxu0 }
 0x248   : > { %v1684_v40 = vadd.f32 %v1683_v39, %v1619_v23  ;;  %v6042_v41 = vpop.f32.mrb[33].mxu0 }
 0x249   : > { %v1686_v42 = vpop.f32.mrb[34].mxu0 }
 0x24a   : > { %v6043_v16 = vpop.f32.mrb[35].mxu0  ;;  %v1761_v5 = vadd.f32 %v1755_v28, %v1684_v40 }
 0x251   : > { %v1901_v43 = vpop.f32.mrb[36].mxu1 }
 0x252   : > { %v6078_v44 = vpop.f32.mrb[37].mxu1 }
 0x253   : > { %v1904_v45 = vpop.f32.mrb[38].mxu1 }
 0x254   : > { %v6079_v46 = vpop.f32.mrb[39].mxu1 }
 0x257   : > { %v1828_v47 = vpop.f32.mrb[36].mxu0 }
 0x258   : > { %v1834_v48 = vadd.f32 %v1828_v47, %v1761_v5  ;;  %v6066_v50 = vpop.f32.mrb[37].mxu0 }
 0x259   : > { %v1831_v62 = vpop.f32.mrb[38].mxu0 }
 0x25a   : > { %v6067_v51 = vpop.f32.mrb[39].mxu0  ;;  %v1907_v8 = vadd.f32 %v1901_v43, %v1834_v48 }
 0x261   : > { %v2051_v52 = vpop.f32.mrb[40].mxu1 }
 0x262   : > { %v6102_v53 = vpop.f32.mrb[41].mxu1 }
 0x263   : > { %v2054_v54 = vpop.f32.mrb[42].mxu1 }
 0x264   : > { %v6103_v55 = vpop.f32.mrb[43].mxu1 }
 0x267   : > { %v1974_v56 = vpop.f32.mrb[40].mxu0 }
 0x268   : > { %v1980_v57 = vadd.f32 %v1974_v56, %v1907_v8  ;;  %v6090_v58 = vpop.f32.mrb[41].mxu0 }
 0x269   : > { %v1977_v59 = vpop.f32.mrb[42].mxu0 }
 0x26a   : > { %v6091_v60 = vpop.f32.mrb[43].mxu0  ;;  %v2057_v61 = vadd.f32 %v2051_v52, %v1980_v57 }
 0x271   : > { %v2209_v63 = vpop.f32.mrb[44].mxu1 }
 0x272   : > { %v6126_v0 = vpop.f32.mrb[45].mxu1 }
 0x273   : > { %v2212_v1 = vpop.f32.mrb[46].mxu1 }
 0x274   : > { %v6127_v20 = vpop.f32.mrb[47].mxu1 }
 0x277   : > { %v2132_v2 = vpop.f32.mrb[44].mxu0 }
 0x278   : > { %v2138_v3 = vadd.f32 %v2132_v2, %v2057_v61  ;;  %v6114_v6 = vpop.f32.mrb[45].mxu0 }
 0x279   : > { %v2135_v15 = vpop.f32.mrb[46].mxu0 }
 0x27a   : > { %v2215_v9 = vadd.f32 %v2209_v63, %v2138_v3  ;;  %v6115_v10 = vpop.f32.mrb[47].mxu0 }
 0x27c   : > { %v2223_v11 = vadd.f32 %v7876_v31, %v2215_v9 }
 0x27e   : > { %v2224_v12 = vmax.f32 %v2223_v11, 0.0 }
 0x280   : > { %v2225_v49 = vpack.c.bf16 %v2224_v12, %v2224_v12 }
 0x281   : > { %v2366_v13 = vpop.f32.mrb[48].mxu1 }
 0x282   : > { %2227 = vst.msk [vmem:[#allocation2 + $0x2] sm:$0x3] %vm1543_vm5, %v2225_v49  ;;  %v6150_v7 = vpop.f32.mrb[49].mxu1 }
 0x283   : > { %v2369_v14 = vpop.f32.mrb[50].mxu1 }
 0x284   : > { %v6151_v17 = vpop.f32.mrb[51].mxu1 }
 0x287   : > { %v2302_v18 = vpop.f32.mrb[48].mxu0 }
 0x288   : > { %v2367_v19 = vadd.f32 %v2366_v13, %v2302_v18  ;;  %v6138_v21 = vpop.f32.mrb[49].mxu0 }
 0x289   : > { %v2305_v23 = vpop.f32.mrb[50].mxu0 }
 0x28a   : > { %v6139_v24 = vpop.f32.mrb[51].mxu0 }
 0x291   : > { %v2511_v25 = vpop.f32.mrb[52].mxu1 }
 0x292   : > { %v6174_v30 = vpop.f32.mrb[53].mxu1 }
 0x293   : > { %v2514_v32 = vpop.f32.mrb[54].mxu1 }
 0x294   : > { %v6175_v33 = vpop.f32.mrb[55].mxu1 }
 0x297   : > { %v2438_v35 = vpop.f32.mrb[52].mxu0 }
 0x298   : > { %v2444_v4 = vadd.f32 %v2438_v35, %v2367_v19  ;;  %v6162_v36 = vpop.f32.mrb[53].mxu0 }
 0x299   : > { %v2441_v37 = vpop.f32.mrb[54].mxu0 }
 0x29a   : > { %v6163_v27 = vpop.f32.mrb[55].mxu0  ;;  %v2517_v28 = vadd.f32 %v2511_v25, %v2444_v4 }
 0x2a1   : > { %v2657_v29 = vpop.f32.mrb[56].mxu1 }
 0x2a2   : > { %v6198_v22 = vpop.f32.mrb[57].mxu1 }
 0x2a3   : > { %v2660_v38 = vpop.f32.mrb[58].mxu1 }
 0x2a4   : > { %v6199_v39 = vpop.f32.mrb[59].mxu1 }
 0x2a7   : > { %v2584_v40 = vpop.f32.mrb[56].mxu0 }
 0x2a8   : > { %v2590_v41 = vadd.f32 %v2584_v40, %v2517_v28  ;;  %v6186_v42 = vpop.f32.mrb[57].mxu0 }
 0x2a9   : > { %v2587_v16 = vpop.f32.mrb[58].mxu0 }
 0x2aa   : > { %v6187_v5 = vpop.f32.mrb[59].mxu0  ;;  %v2663_v43 = vadd.f32 %v2657_v29, %v2590_v41 }
 0x2b1   : > { %v2813_v44 = vpop.f32.mrb[60].mxu1 }
 0x2b2   : > { %v6222_v45 = vpop.f32.mrb[61].mxu1 }
 0x2b3   : > { %v2816_v46 = vpop.f32.mrb[62].mxu1 }
 0x2b4   : > { %v6223_v34 = vpop.f32.mrb[63].mxu1 }
 0x2b7   : > { %v2734_v47 = vpop.f32.mrb[60].mxu0 }
 0x2b8   : > { %v2740_v48 = vadd.f32 %v2734_v47, %v2663_v43  ;;  %v6210_v50 = vpop.f32.mrb[61].mxu0 }
 0x2b9   : > { %v2737_v62 = vpop.f32.mrb[62].mxu0 }
 0x2ba   : > { %v6211_v51 = vpop.f32.mrb[63].mxu0  ;;  %v2819_v8 = vadd.f32 %v2813_v44, %v2740_v48 }
 0x2c1   : > { %v2983_v52 = vpop.f32.mrb[64].mxu1 }
 0x2c2   : > { %v6246_v53 = vpop.f32.mrb[65].mxu1 }
 0x2c3   : > { %v2986_v54 = vpop.f32.mrb[66].mxu1 }
 0x2c4   : > { %v6247_v55 = vpop.f32.mrb[67].mxu1 }
 0x2c7   : > { %v2890_v56 = vpop.f32.mrb[64].mxu0 }
 0x2c8   : > { %v2896_v57 = vadd.f32 %v2890_v56, %v2819_v8  ;;  %v6234_v58 = vpop.f32.mrb[65].mxu0 }
 0x2c9   : > { %v2893_v59 = vpop.f32.mrb[66].mxu0 }
 0x2ca   : > { %v2904_v60 = vadd.f32 %v7876_v31, %v2896_v57  ;;  %v6235_v61 = vpop.f32.mrb[67].mxu0 }
 0x2cc   : > { %v2905_v63 = vmax.f32 %v2904_v60, 0.0 }
 0x2ce   : > { %v2906_v0 = vpack.c.bf16 %v2905_v63, %v2905_v63 }
 0x2d0   : > { %2908 = vst.msk [vmem:[#allocation2 + $0x4] sm:$0x3] %vm1543_vm5, %v2906_v0 }
 0x2d1   : > { %v3119_v1 = vpop.f32.mrb[68].mxu1 }
 0x2d2   : > { %v6270_v20 = vpop.f32.mrb[69].mxu1 }
 0x2d3   : > { %v3122_v2 = vpop.f32.mrb[70].mxu1 }
 0x2d4   : > { %v6271_v3 = vpop.f32.mrb[71].mxu1 }
 0x2d7   : > { %v3047_v6 = vpop.f32.mrb[68].mxu0 }
 0x2d8   : > { %v3048_v15 = vadd.f32 %v3047_v6, %v2983_v52  ;;  %v6258_v9 = vpop.f32.mrb[69].mxu0 }
 0x2d9   : > { %v3050_v10 = vpop.f32.mrb[70].mxu0 }
 0x2da   : > { %v6259_v11 = vpop.f32.mrb[71].mxu0  ;;  %v3125_v12 = vadd.f32 %v3119_v1, %v3048_v15 }
 0x2e1   : > { %v3265_v49 = vpop.f32.mrb[72].mxu1 }
 0x2e2   : > { %v6294_v13 = vpop.f32.mrb[73].mxu1 }
 0x2e3   : > { %v3268_v7 = vpop.f32.mrb[74].mxu1 }
 0x2e4   : > { %v6295_v14 = vpop.f32.mrb[75].mxu1 }
 0x2e7   : > { %v3192_v17 = vpop.f32.mrb[72].mxu0 }
 0x2e8   : > { %v3198_v18 = vadd.f32 %v3192_v17, %v3125_v12  ;;  %v6282_v19 = vpop.f32.mrb[73].mxu0 }
 0x2e9   : > { %v3195_v21 = vpop.f32.mrb[74].mxu0 }
 0x2ea   : > { %v6283_v23 = vpop.f32.mrb[75].mxu0  ;;  %v3271_v24 = vadd.f32 %v3265_v49, %v3198_v18 }
 0x2f1   : > { %v3417_v25 = vpop.f32.mrb[76].mxu1 }
 0x2f2   : > { %v6318_v26 = vpop.f32.mrb[77].mxu1 }
 0x2f3   : > { %v3420_v30 = vpop.f32.mrb[78].mxu1 }
 0x2f4   : > { %v6319_v32 = vpop.f32.mrb[79].mxu1 }
 0x2f7   : > { %v3338_v33 = vpop.f32.mrb[76].mxu0 }
 0x2f8   : > { %v3344_v35 = vadd.f32 %v3338_v33, %v3271_v24  ;;  %v6306_v4 = vpop.f32.mrb[77].mxu0 }
 0x2f9   : > { %v3341_v36 = vpop.f32.mrb[78].mxu0 }
 0x2fa   : > { %v6307_v37 = vpop.f32.mrb[79].mxu0  ;;  %v3423_v27 = vadd.f32 %v3417_v25, %v3344_v35 }
 0x301   : > { %v3578_v28 = vpop.f32.mrb[80].mxu1 }
 0x302   : > { %v6342_v29 = vpop.f32.mrb[81].mxu1 }
 0x303   : > { %v3581_v22 = vpop.f32.mrb[82].mxu1 }
 0x304   : > { %v6343_v38 = vpop.f32.mrb[83].mxu1 }
 0x307   : > { %v3503_v39 = vpop.f32.mrb[80].mxu0 }
 0x308   : > { %v3509_v40 = vadd.f32 %v3503_v39, %v3423_v27  ;;  %v6330_v41 = vpop.f32.mrb[81].mxu0 }
 0x309   : > { %v3506_v42 = vpop.f32.mrb[82].mxu0 }
 0x30a   : > { %v3584_v16 = vadd.f32 %v3578_v28, %v3509_v40  ;;  %v6331_v5 = vpop.f32.mrb[83].mxu0 }
 0x30c   : > { %v3592_v43 = vadd.f32 %v7876_v31, %v3584_v16 }
 0x30e   : > { %v3593_v44 = vmax.f32 %v3592_v43, 0.0 }
 0x310   : > { %v3594_v45 = vpack.c.bf16 %v3593_v44, %v3593_v44 }
 0x312   : > { %3596 = vst.msk [vmem:[#allocation2 + $0x6] sm:$0x3] %vm1543_vm5, %v3594_v45 }
 0x313 PF: > { %v6612_v46 = vld [vmem:[%s6973_s15 + $0x4] ss:$16 sps:$4 sm:$0xff]   ;;  %v6614_v34 = vld [vmem:[%s6973_s15 + $0xc] ss:$16 sps:$4 sm:$0xff]   ;;  %v6838_v47 = vmov 0   ;;  %s5459_s24 = sshll.u32 %s6818_s12, 1 }
 0x314   : > { %3738 = vmatprep.mubr.bf16.mxu0 %v6838_v47  ;;  %3779 = vmatprep.mubr.bf16.mxu1 %v6838_v47  ;;  %v6616_v31 = vld [vmem:[%s6973_s15] ss:$16 sps:$4 sm:$0xff]   ;;  %v6617_v48 = vld [vmem:[%s6973_s15 + $0x8] ss:$16 sps:$4 sm:$0xff]   ;;  %v6618_v50 = vld [vmem:[%s6973_s15 + $0x24] ss:$16 sps:$4 sm:$0xff]  }
 0x315   : > { %3706 = vmatprep.subr.bf16.mxu0 %v6612_v46  ;;  %3747 = vmatprep.subr.bf16.mxu1 %v6614_v34  ;;  %v6620_v62 = vld [vmem:[%s6973_s15 + $0x2c] ss:$16 sps:$4 sm:$0xff]   ;;  %v6622_v51 = vld [vmem:[%s6973_s15 + $0x20] ss:$16 sps:$4 sm:$0xff]   ;;  %v6623_v8 = vld [vmem:[%s6973_s15 + $0x28] ss:$16 sps:$4 sm:$0xff]  }
 0x316   : > { %3707 = vmatpush1.bf16.msra.mxu0 %v6616_v31  ;;  %3748 = vmatpush1.bf16.msra.mxu1 %v6617_v48  ;;  %v6624_v52 = vld [vmem:[%s6973_s15 + $0x44] ss:$16 sps:$4 sm:$0xff]   ;;  %v6626_v53 = vld [vmem:[%s6973_s15 + $0x4c] ss:$16 sps:$4 sm:$0xff]   ;;  %v6628_v54 = vld [vmem:[%s6973_s15 + $0x40] ss:$16 sps:$4 sm:$0xff]  }
 0x317   : > { %3708 = vmatprep.subr.bf16.mxu0 %v6618_v50  ;;  %3749 = vmatprep.subr.bf16.mxu1 %v6620_v62  ;;  %v6629_v55 = vld [vmem:[%s6973_s15 + $0x48] ss:$16 sps:$4 sm:$0xff]   ;;  %v6630_v56 = vld [vmem:[%s6973_s15 + $0x64] ss:$16 sps:$4 sm:$0xff]   ;;  %v6632_v57 = vld [vmem:[%s6973_s15 + $0x6c] ss:$16 sps:$4 sm:$0xff]  }
 0x318   : > { %v6634_v58 = vld [vmem:[%s6973_s15 + $0x60] ss:$16 sps:$4 sm:$0xff]   ;;  %v6635_v59 = vld [vmem:[%s6973_s15 + $0x68] ss:$16 sps:$4 sm:$0xff]   ;;  %v6638_v60 = vld [vmem:[%s6973_s15 + $0x84] ss:$16 sps:$4 sm:$0xff]  }
 0x319   : > { %s7907_s11 = scalar_lea.vmem [#allocation2], %s5459_s24  ;;  %v6641_v63 = vld [vmem:[%s6973_s15 + $0x8c] ss:$16 sps:$4 sm:$0xff]   ;;  %v6636_v0 = vld [vmem:[%s6973_s15 + $0x80] ss:$16 sps:$4 sm:$0xff]   ;;  %vm3702_vm7 = vcmask 523264  }
 0x31a   : > { %3709 = vmatpush1.bf16.msra.mxu0 %v6622_v51  ;;  %3750 = vmatpush1.bf16.msra.mxu1 %v6623_v8  ;;  %v3605_v61 = vld [vmem:[%s7907_s11] sm:$0x1]  ;;  %v6639_v1 = vld [vmem:[%s6973_s15 + $0x88] ss:$16 sps:$4 sm:$0xff]   ;;  %v6644_v20 = vld [vmem:[%s6973_s15 + $0xa4] ss:$16 sps:$4 sm:$0xff]  }
 0x31b   : > { %3710 = vmatprep.subr.bf16.mxu0 %v6624_v52  ;;  %3751 = vmatprep.subr.bf16.mxu1 %v6626_v53  ;;  %v6647_v2 = vld [vmem:[%s6973_s15 + $0xac] ss:$16 sps:$4 sm:$0xff]   ;;  %v6642_v3 = vld [vmem:[%s6973_s15 + $0xa0] ss:$16 sps:$4 sm:$0xff]   ;;  %v6645_v6 = vld [vmem:[%s6973_s15 + $0xa8] ss:$16 sps:$4 sm:$0xff]   ;;  %v3797_v53 = vlaneseq }
 0x31c   : > { %v6650_v15 = vld [vmem:[%s6973_s15 + $0xc4] ss:$16 sps:$4 sm:$0xff]   ;;  %v6653_v9 = vld [vmem:[%s6973_s15 + $0xcc] ss:$16 sps:$4 sm:$0xff]   ;;  %v6648_v10 = vld [vmem:[%s6973_s15 + $0xc0] ss:$16 sps:$4 sm:$0xff]  }
 0x31d   : > { %v6651_v11 = vld [vmem:[%s6973_s15 + $0xc8] ss:$16 sps:$4 sm:$0xff]   ;;  %v6656_v12 = vld [vmem:[%s6973_s15 + $0xe4] ss:$16 sps:$4 sm:$0xff]   ;;  %v6659_v49 = vld [vmem:[%s6973_s15 + $0xec] ss:$16 sps:$4 sm:$0xff]  }
 0x31e   : > { %3711 = vmatpush1.bf16.msra.mxu0 %v6628_v54  ;;  %3752 = vmatpush1.bf16.msra.mxu1 %v6629_v55  ;;  %v5494_v13 = vld.sshfl [vmem:[%s7907_s11] sm:$0x1 pattern:$0x76325410]  ;;  %v6657_v14 = vld [vmem:[%s6973_s15 + $0xe8] ss:$16 sps:$4 sm:$0xff]  }
 0x31f   : > { %3712 = vmatprep.subr.bf16.mxu0 %v6630_v56  ;;  %3753 = vmatprep.subr.bf16.mxu1 %v6632_v57  ;;  %v6654_v7 = vld [vmem:[%s6973_s15 + $0xe0] ss:$16 sps:$4 sm:$0xff]   ;;  %v6662_v17 = vld [vmem:[%s6973_s15 + $0x104] ss:$16 sps:$4 sm:$0xff]   ;;  %v6665_v18 = vld [vmem:[%s6973_s15 + $0x10c] ss:$16 sps:$4 sm:$0xff]  }
 0x320   : > { %v3851_v19 = vshrl.u32 %v5494_v13, 16  ;;  %v6660_v21 = vld [vmem:[%s6973_s15 + $0x100] ss:$16 sps:$4 sm:$0xff]   ;;  %v6663_v23 = vld [vmem:[%s6973_s15 + $0x108] ss:$16 sps:$4 sm:$0xff]   ;;  %v7973_v55 = vshrl.u32 %v3797_v53, 7 }
 0x321   : > { %v6668_v24 = vld [vmem:[%s6973_s15 + $0x124] ss:$16 sps:$4 sm:$0xff]   ;;  %v6671_v25 = vld [vmem:[%s6973_s15 + $0x12c] ss:$16 sps:$4 sm:$0xff]   ;;  %v6666_v26 = vld [vmem:[%s6973_s15 + $0x120] ss:$16 sps:$4 sm:$0xff]  }
 0x322   : > { %3713 = vmatpush1.bf16.msra.mxu0 %v6634_v58  ;;  %3754 = vmatpush1.bf16.msra.mxu1 %v6635_v59  ;;  %v6669_v30 = vld [vmem:[%s6973_s15 + $0x128] ss:$16 sps:$4 sm:$0xff]   ;;  %v6674_v32 = vld [vmem:[%s6973_s15 + $0x144] ss:$16 sps:$4 sm:$0xff]   ;;  %v6677_v33 = vld [vmem:[%s6973_s15 + $0x14c] ss:$16 sps:$4 sm:$0xff]  }
 0x323   : > { %3936 = vmatprep.subr.bf16.mxu0 %v6638_v60  ;;  %3977 = vmatprep.subr.bf16.mxu1 %v6641_v63  ;;  %v6672_v35 = vld [vmem:[%s6973_s15 + $0x140] ss:$16 sps:$4 sm:$0xff]   ;;  %v6675_v4 = vld [vmem:[%s6973_s15 + $0x148] ss:$16 sps:$4 sm:$0xff]   ;;  %v6680_v36 = vld [vmem:[%s6973_s15 + $0x164] ss:$16 sps:$4 sm:$0xff]  }
 0x324   : > { %v6683_v37 = vld [vmem:[%s6973_s15 + $0x16c] ss:$16 sps:$4 sm:$0xff]   ;;  %v5529_v27 = vld.sshfl [vmem:[%s7907_s11] sm:$0x2 pattern:$0x76325410] }
 0x325   : > { %5476 = vmatmul.mubr.msk.bf16.vlgmr.msra.gmra.mrb[0].mxu0 %vm3702_vm7, %v3605_v61  ;;  %5477 = vmatmul.mubr.msk.bf16.vlgmr.msra.gmra.mrb[0].mxu1 %vm3702_vm7, %v3605_v61  ;;  %v6678_v28 = vld [vmem:[%s6973_s15 + $0x160] ss:$16 sps:$4 sm:$0xff]   ;;  %v6681_v29 = vld [vmem:[%s6973_s15 + $0x168] ss:$16 sps:$4 sm:$0xff]   ;;  %v6686_v22 = vld [vmem:[%s6973_s15 + $0x184] ss:$16 sps:$4 sm:$0xff]  }
 0x326   : > { %3937 = vmatpush1.bf16.msra.mxu0 %v6636_v0  ;;  %3978 = vmatpush1.bf16.msra.mxu1 %v6639_v1  ;;  %v6689_v38 = vld [vmem:[%s6973_s15 + $0x18c] ss:$16 sps:$4 sm:$0xff]   ;;  %v4076_v39 = vrot.slane %v5529_v27, 1  ;;  %v6684_v40 = vld [vmem:[%s6973_s15 + $0x180] ss:$16 sps:$4 sm:$0xff]   ;;  %v4301_v50 = vshrl.u32 %v5529_v27, 16 }
 0x327   : > { %3938 = vmatprep.subr.bf16.mxu0 %v6644_v20  ;;  %3979 = vmatprep.subr.bf16.mxu1 %v6647_v2  ;;  %v6687_v41 = vld [vmem:[%s6973_s15 + $0x188] ss:$16 sps:$4 sm:$0xff]   ;;  %v6692_v42 = vld [vmem:[%s6973_s15 + $0x1a4] ss:$16 sps:$4 sm:$0xff]   ;;  %v6695_v16 = vld [vmem:[%s6973_s15 + $0x1ac] ss:$16 sps:$4 sm:$0xff]  }
 0x328   : > { %3968 = vmatprep.mubr.bf16.mxu0 %v6838_v47  ;;  %4009 = vmatprep.mubr.bf16.mxu1 %v6838_v47  ;;  %v6690_v5 = vld [vmem:[%s6973_s15 + $0x1a0] ss:$16 sps:$4 sm:$0xff]   ;;  %v6693_v43 = vld [vmem:[%s6973_s15 + $0x1a8] ss:$16 sps:$4 sm:$0xff]   ;;  %v6698_v44 = vld [vmem:[%s6973_s15 + $0x1c4] ss:$16 sps:$4 sm:$0xff]  }
 0x329   : > { %v6701_v45 = vld [vmem:[%s6973_s15 + $0x1cc] ss:$16 sps:$4 sm:$0xff]   ;;  %v6696_v46 = vld [vmem:[%s6973_s15 + $0x1c0] ss:$16 sps:$4 sm:$0xff]   ;;  %v6699_v34 = vld [vmem:[%s6973_s15 + $0x1c8] ss:$16 sps:$4 sm:$0xff]  }
 0x32a   : > { %3939 = vmatpush1.bf16.msra.mxu0 %v6642_v3  ;;  %3980 = vmatpush1.bf16.msra.mxu1 %v6645_v6  ;;  %v6704_v31 = vld [vmem:[%s6973_s15 + $0x1e4] ss:$16 sps:$4 sm:$0xff]   ;;  %v6707_v48 = vld [vmem:[%s6973_s15 + $0x1ec] ss:$16 sps:$4 sm:$0xff]   ;;  %v6702_v62 = vld [vmem:[%s6973_s15 + $0x1e0] ss:$16 sps:$4 sm:$0xff]  }
 0x32b   : > { %3940 = vmatprep.subr.bf16.mxu0 %v6650_v15  ;;  %3981 = vmatprep.subr.bf16.mxu1 %v6653_v9  ;;  %v6705_v51 = vld [vmem:[%s6973_s15 + $0x1e8] ss:$16 sps:$4 sm:$0xff]   ;;  %v4303_v8 = vrot.slane %v4301_v50, 1  ;;  %vm7981_vm8 = vcmp.lt.s32.totalorder %v3797_v53, 512  ;;  %p5583_p1 = scmp.ne.s32.totalorder %s6818_s12, 3 }
 0x32c   : > { %v3602_v9 = vld [vmem:[#allocation3] sm:$0xf]  ;;  %vm4870_vm9 = vcmask (!%p5583_p1), 24576  }
 0x32e   : > { %3941 = vmatpush1.bf16.msra.mxu0 %v6648_v10  ;;  %3982 = vmatpush1.bf16.msra.mxu1 %v6651_v11  ;;  %v6721_v11 = vld [vmem:[%s8171_s7 + $0xd8] sm:$0xff] (!%p5583_p1)  }
 0x32f   : > { %3942 = vmatprep.subr.bf16.mxu0 %v6656_v12  ;;  %3983 = vmatprep.subr.bf16.mxu1 %v6659_v49 }
 0x332   : > { %3943 = vmatpush1.bf16.msra.mxu0 %v6654_v7  ;;  %3984 = vmatpush1.bf16.msra.mxu1 %v6657_v14 }
 0x333   : > { %4160 = vmatprep.subr.bf16.mxu0 %v6662_v17  ;;  %4201 = vmatprep.subr.bf16.mxu1 %v6665_v18 }
 0x335   : > { %5511 = vmatmul.mubr.msk.bf16.vlgmr.msra.gmra.mrb[4].mxu0 %vm3702_vm7, %v3851_v19  ;;  %5512 = vmatmul.mubr.msk.bf16.vlgmr.msra.gmra.mrb[4].mxu1 %vm3702_vm7, %v3851_v19 }
 0x336   : > { %4161 = vmatpush1.bf16.msra.mxu0 %v6660_v21  ;;  %4202 = vmatpush1.bf16.msra.mxu1 %v6663_v23 }
 0x337   : > { %4162 = vmatprep.subr.bf16.mxu0 %v6668_v24  ;;  %4203 = vmatprep.subr.bf16.mxu1 %v6671_v25 }
 0x338   : > { %4192 = vmatprep.mubr.bf16.mxu0 %v6838_v47  ;;  %4233 = vmatprep.mubr.bf16.mxu1 %v6838_v47 }
 0x33a   : > { %4163 = vmatpush1.bf16.msra.mxu0 %v6666_v26  ;;  %4204 = vmatpush1.bf16.msra.mxu1 %v6669_v30 }
 0x33b   : > { %4164 = vmatprep.subr.bf16.mxu0 %v6674_v32  ;;  %4205 = vmatprep.subr.bf16.mxu1 %v6677_v33 }
 0x33e   : > { %4165 = vmatpush1.bf16.msra.mxu0 %v6672_v35  ;;  %4206 = vmatpush1.bf16.msra.mxu1 %v6675_v4 }
 0x33f   : > { %4166 = vmatprep.subr.bf16.mxu0 %v6680_v36  ;;  %4207 = vmatprep.subr.bf16.mxu1 %v6683_v37 }
 0x342   : > { %4167 = vmatpush1.bf16.msra.mxu0 %v6678_v28  ;;  %4208 = vmatpush1.bf16.msra.mxu1 %v6681_v29 }
 0x343   : > { %4387 = vmatprep.subr.bf16.mxu0 %v6686_v22  ;;  %4428 = vmatprep.subr.bf16.mxu1 %v6689_v38 }
 0x345   : > { %5546 = vmatmul.mubr.msk.bf16.vlgmr.msra.gmra.mrb[8].mxu0 %vm3702_vm7, %v4076_v39  ;;  %5547 = vmatmul.mubr.msk.bf16.vlgmr.msra.gmra.mrb[8].mxu1 %vm3702_vm7, %v4076_v39 }
 0x346   : > { %4388 = vmatpush1.bf16.msra.mxu0 %v6684_v40  ;;  %4429 = vmatpush1.bf16.msra.mxu1 %v6687_v41 }
 0x347   : > { %4389 = vmatprep.subr.bf16.mxu0 %v6692_v42  ;;  %4430 = vmatprep.subr.bf16.mxu1 %v6695_v16 }
 0x348   : > { %4419 = vmatprep.mubr.bf16.mxu0 %v6838_v47  ;;  %4460 = vmatprep.mubr.bf16.mxu1 %v6838_v47  ;;  %v6839_v47 = vmov 1966171168  }
 0x349   : > { %v3795_v52 = vunpack.c.l.s4 %v6839_v47 }
 0x34a   : > { %4390 = vmatpush1.bf16.msra.mxu0 %v6690_v5  ;;  %4431 = vmatpush1.bf16.msra.mxu1 %v6693_v43 }
 0x34b   : > { %4391 = vmatprep.subr.bf16.mxu0 %v6698_v44  ;;  %4432 = vmatprep.subr.bf16.mxu1 %v6701_v45  ;;  %v3796_v54 = vunpack.c.0.s8 %v3795_v52 }
 0x34d   : > { %v7976_v58 = vsub.s32 %v3796_v54, %v7973_v55 }
 0x34e   : > { %4392 = vmatpush1.bf16.msra.mxu0 %v6696_v46  ;;  %4433 = vmatpush1.bf16.msra.mxu1 %v6699_v34 }
 0x34f   : > { %4393 = vmatprep.subr.bf16.mxu0 %v6704_v31  ;;  %4434 = vmatprep.subr.bf16.mxu1 %v6707_v48 }
 0x352   : > { %4394 = vmatpush1.bf16.msra.mxu0 %v6702_v62  ;;  %4435 = vmatpush1.bf16.msra.mxu1 %v6705_v51 }
 0x355   : > { %5581 = vmatmul.mubr.msk.bf16.vlgmr.msra.gmra.mrb[12].mxu0 %vm3702_vm7, %v4303_v8  ;;  %5582 = vmatmul.mubr.msk.bf16.vlgmr.msra.gmra.mrb[12].mxu1 %vm3702_vm7, %v4303_v8 }
 0x3f8   : > { %v3740_v56 = vpop.f32.mrb[0].mxu0  ;;  %v3781_v57 = vpop.f32.mrb[0].mxu1 }
 0x3f9   : > { %v3742_v59 = vpop.f32.mrb[1].mxu0  ;;  %v3783_v60 = vpop.f32.mrb[1].mxu1 }
 0x3fa   : > { %v3792_v61 = vcombine.low %v3740_v56, %v3742_v59  ;;  %v3793_v63 = vcombine.low %v3781_v57, %v3783_v60  ;;  %v3744_v0 = vpop.f32.mrb[2].mxu0  ;;  %v3785_v1 = vpop.f32.mrb[2].mxu1  ;;  %v6708_v60 = vld [vmem:[%s8171_s7 + $0x40] sm:$0xff] (!%p5583_p1)  }
 0x3fb   : > { %v3745_v20 = vpop.f32.mrb[3].mxu0  ;;  %v3786_v2 = vpop.f32.mrb[3].mxu1  ;;  %5868 = vmatprep.subr.bf16.mxu0 (!%p5583_p1), %v6708_v60  ;;  %v6712_v0 = vld [vmem:[%s8171_s7 + $0x48] sm:$0xff] (!%p5583_p1)  }
 0x3fc   : > { %v3800_v3 = vrot.slane %v3792_v61, %v7976_v58  ;;  %v3807_v6 = vrot.slane %v3793_v63, %v7976_v58  ;;  %v6709_v61 = vld [vmem:[%s8171_s7 + $0xc0] sm:$0xff] (!%p5583_p1)   ;;  %v6713_v1 = vld [vmem:[%s8171_s7 + $0xc8] sm:$0xff] (!%p5583_p1)  }
 0x3fd   : > { %5890 = vmatprep.subr.bf16.mxu1 (!%p5583_p1), %v6709_v61  ;;  %v6711_v63 = vld [vmem:[%s8171_s7 + $0x80] sm:$0xff] (!%p5583_p1)   ;;  %v6714_v20 = vld [vmem:[%s8171_s7 + $0x8] sm:$0xff] (!%p5583_p1)  }
 0x3fe   : > { %v3808_v15 = vcombine.low %v3800_v3, %v3807_v6  ;;  %5891 = vmatpush3.bf16.msra.mxu1 (!%p5583_p1), %v6711_v63  ;;  %v6715_v2 = vld [vmem:[%s8171_s7 + $0x88] sm:$0xff] (!%p5583_p1)   ;;  %v6716_v3 = vld [vmem:[%s8171_s7 + $0x50] sm:$0xff] (!%p5583_p1)  }
 0x3ff   : > { %5892 = vmatprep.subr.bf16.mxu1 (!%p5583_p1), %v6713_v1  ;;  %v6717_v6 = vld [vmem:[%s8171_s7 + $0xd0] sm:$0xff] (!%p5583_p1)  }
 0x400   : > { %v3815_v10 = vrot.slane %v3808_v15, %v7976_v58  ;;  %v6718_v15 = vld [vmem:[%s8171_s7 + $0x10] sm:$0xff] (!%p5583_p1)  }
 0x402   : > { %v3817_v12 = vadd.f32 %v3815_v10, %v3602_v9  ;;  %5893 = vmatpush3.bf16.msra.mxu1 (!%p5583_p1), %v6715_v2  ;;  %v6719_v9 = vld [vmem:[%s8171_s7 + $0x90] sm:$0xff] (!%p5583_p1)   ;;  %v6720_v10 = vld [vmem:[%s8171_s7 + $0x58] sm:$0xff] (!%p5583_p1)  }
 0x403   : > { %5894 = vmatprep.subr.bf16.mxu1 (!%p5583_p1), %v6717_v6 }
 0x404   : > { %3822 = vst.msk [vmem:[#allocation3] sm:$0xf] %vm7981_vm8, %v3817_v12  ;;  %v6722_v12 = vld [vmem:[%s8171_s7 + $0x18] sm:$0xff] (!%p5583_p1)  }
 0x406   : > { %5895 = vmatpush3.bf16.msra.mxu1 (!%p5583_p1), %v6719_v9 }
 0x407   : > { %5896 = vmatprep.subr.bf16.mxu1 (!%p5583_p1), %v6721_v11 }
 0x408   : > { %v3970_v49 = vpop.f32.mrb[4].mxu0  ;;  %v4011_v13 = vpop.f32.mrb[4].mxu1 }
 0x409   : > { %v3972_v7 = vpop.f32.mrb[5].mxu0  ;;  %v4013_v14 = vpop.f32.mrb[5].mxu1 }
 0x40a   : > { %v4022_v17 = vcombine.low %v3970_v49, %v3972_v7  ;;  %v4023_v18 = vcombine.low %v4011_v13, %v4013_v14  ;;  %v3974_v19 = vpop.f32.mrb[6].mxu0  ;;  %v4015_v21 = vpop.f32.mrb[6].mxu1  ;;  %v6723_v49 = vld [vmem:[%s8171_s7 + $0x98] sm:$0xff] (!%p5583_p1)   ;;  %v6724_v13 = vld [vmem:[%s8171_s7 + $0x60] sm:$0xff] (!%p5583_p1)  }
 0x40b   : > { %v3975_v23 = vpop.f32.mrb[7].mxu0  ;;  %v4016_v24 = vpop.f32.mrb[7].mxu1  ;;  %v3823_v33 = vld [vmem:[#allocation3] sm:$0xf]  ;;  %5897 = vmatpush3.bf16.msra.mxu1 (!%p5583_p1), %v6723_v49  ;;  %v6725_v7 = vld [vmem:[%s8171_s7 + $0xe0] sm:$0xff] (!%p5583_p1)  }
 0x40c   : > { %v4030_v25 = vrot.slane %v4022_v17, %v7976_v58  ;;  %v4037_v26 = vrot.slane %v4023_v18, %v7976_v58  ;;  %v6726_v14 = vld [vmem:[%s8171_s7 + $0x20] sm:$0xff] (!%p5583_p1)   ;;  %5898 = vmatprep.subr.bf16.mxu1 (!%p5583_p1), %v6725_v7  ;;  %v6728_v18 = vld [vmem:[%s8171_s7 + $0x68] sm:$0xff] (!%p5583_p1)   ;;  %v6732_v24 = vld [vmem:[%s8171_s7 + $0x70] sm:$0xff] (!%p5583_p1)  }
 0x40d   : > { %v6727_v17 = vld [vmem:[%s8171_s7 + $0xa0] sm:$0xff] (!%p5583_p1)   ;;  %v6729_v19 = vld [vmem:[%s8171_s7 + $0xe8] sm:$0xff] (!%p5583_p1)  }
 0x40e   : > { %v4038_v30 = vcombine.low %v4030_v25, %v4037_v26  ;;  %v6730_v21 = vld [vmem:[%s8171_s7 + $0x28] sm:$0xff] (!%p5583_p1)   ;;  %v6733_v25 = vld [vmem:[%s8171_s7 + $0xf0] sm:$0xff] (!%p5583_p1)  }
 0x40f   : > { %5899 = vmatpush3.bf16.msra.mxu1 (!%p5583_p1), %v6727_v17  ;;  %v6731_v23 = vld [vmem:[%s8171_s7 + $0xa8] sm:$0xff] (!%p5583_p1)   ;;  %v6734_v26 = vld [vmem:[%s8171_s7 + $0x30] sm:$0xff] (!%p5583_p1)  }
 0x410   : > { %v4045_v32 = vrot.slane %v4038_v30, %v7976_v58  ;;  %5900 = vmatprep.subr.bf16.mxu1 (!%p5583_p1), %v6729_v19  ;;  %v6735_v30 = vld [vmem:[%s8171_s7 + $0xb0] sm:$0xff] (!%p5583_p1)  }
 0x412   : > { %v4047_v35 = vadd.f32 %v4045_v32, %v3823_v33  ;;  %v6736_v32 = vld [vmem:[%s8171_s7 + $0x78] sm:$0xff] (!%p5583_p1)  }
 0x413   : > { %5901 = vmatpush3.bf16.msra.mxu1 (!%p5583_p1), %v6731_v23  ;;  %v6737_v33 = vld [vmem:[%s8171_s7 + $0xf8] sm:$0xff] (!%p5583_p1)  }
 0x414   : > { %4048 = vst.msk [vmem:[#allocation3] sm:$0xf] %vm7981_vm8, %v4047_v35  ;;  %5902 = vmatprep.subr.bf16.mxu1 (!%p5583_p1), %v6733_v25  ;;  %v6738_v35 = vld [vmem:[%s8171_s7 + $0x38] sm:$0xff] (!%p5583_p1)  }
 0x417   : > { %5903 = vmatpush3.bf16.msra.mxu1 (!%p5583_p1), %v6735_v30 }
 0x418   : > { %v4194_v4 = vpop.f32.mrb[8].mxu0  ;;  %v4235_v36 = vpop.f32.mrb[8].mxu1  ;;  %5904 = vmatprep.subr.bf16.mxu1 (!%p5583_p1), %v6737_v33 }
 0x419   : > { %v4196_v37 = vpop.f32.mrb[9].mxu0  ;;  %v4237_v27 = vpop.f32.mrb[9].mxu1 }
 0x41a   : > { %v4246_v28 = vcombine.low %v4194_v4, %v4196_v37  ;;  %v4247_v29 = vcombine.low %v4235_v36, %v4237_v27  ;;  %v4198_v22 = vpop.f32.mrb[10].mxu0  ;;  %v4239_v38 = vpop.f32.mrb[10].mxu1  ;;  %v6739_v4 = vld [vmem:[%s8171_s7 + $0xb8] sm:$0xff] (!%p5583_p1)   ;;  %v4505_v37 = vld [vmem:[%s8170_s6] sm:$0xf] (!%p5583_p1)  ;;  %v4515_v27 = vsub.s32 (!%p5583_p1), 1, %v7973_v55 }
 0x41b   : > { %v4199_v39 = vpop.f32.mrb[11].mxu0  ;;  %v4240_v40 = vpop.f32.mrb[11].mxu1  ;;  %v4049_v43 = vld [vmem:[#allocation3] sm:$0xf]  ;;  %5905 = vmatpush3.bf16.msra.mxu1 (!%p5583_p1), %v6739_v4  ;;  %v4511_v22 = vsub.s32 (!%p5583_p1), 0, %v7973_v55  ;;  %v4519_v38 = vsub.s32 (!%p5583_p1), 2, %v7973_v55 }
 0x41c   : > { %v4254_v41 = vrot.slane %v4246_v28, %v7976_v58  ;;  %v4261_v42 = vrot.slane %v4247_v29, %v7976_v58  ;;  %v4523_v29 = vsub.s32 (!%p5583_p1), 3, %v7973_v55  ;;  %v4597_v55 = vld [vmem:[%s8172_s8] sm:$0x1] (!%p5583_p1) }
 0x41e   : > { %v4262_v16 = vcombine.low %v4254_v41, %v4261_v42 }
 0x420   : > { %v4269_v5 = vrot.slane %v4262_v16, %v7976_v58 }
 0x422   : > { %v4271_v44 = vadd.f32 %v4269_v5, %v4049_v43 }
 0x424   : > { %4272 = vst.msk [vmem:[#allocation3] sm:$0xf] %vm7981_vm8, %v4271_v44 }
 0x428   : > { %v4421_v45 = vpop.f32.mrb[12].mxu0  ;;  %v4462_v46 = vpop.f32.mrb[12].mxu1 }
 0x429   : > { %v4423_v34 = vpop.f32.mrb[13].mxu0  ;;  %v4464_v31 = vpop.f32.mrb[13].mxu1 }
 0x42a   : > { %v4473_v48 = vcombine.low %v4421_v45, %v4423_v34  ;;  %v4474_v50 = vcombine.low %v4462_v46, %v4464_v31  ;;  %v4425_v62 = vpop.f32.mrb[14].mxu0  ;;  %v4466_v51 = vpop.f32.mrb[14].mxu1 }
 0x42b   : > { %v4426_v8 = vpop.f32.mrb[15].mxu0  ;;  %v4467_v47 = vpop.f32.mrb[15].mxu1  ;;  %v4273_v57 = vld [vmem:[#allocation3] sm:$0xf] }
 0x42c   : > { %v4481_v52 = vrot.slane %v4473_v48, %v7976_v58  ;;  %v4488_v53 = vrot.slane %v4474_v50, %v7976_v58 }
 0x42e   : > { %v4489_v54 = vcombine.low %v4481_v52, %v4488_v53  ;;  %4503 = sbr.rel (%p5583_p1) target bundleno = 1324 (0x52c), region = 64 }
 0x430   : > { %v4496_v56 = vrot.slane %v4489_v54, %v7976_v58  ;;  %v6710_v58 = vld [vmem:[%s8171_s7] sm:$0xff] (!%p5583_p1)  }
 0x431   : > { %5869 = vmatpush3.bf16.msra.mxu0 (!%p5583_p1), %v6710_v58 }
 0x432   : > { %v4498_v59 = vadd.f32 %v4496_v56, %v4273_v57  ;;  %5870 = vmatprep.subr.bf16.mxu0 (!%p5583_p1), %v6712_v0 }
 0x434   : > { %4499 = vst.msk [vmem:[#allocation3] sm:$0xf] %vm7981_vm8, %v4498_v59 }
 0x435   : > { %5871 = vmatpush3.bf16.msra.mxu0 %v6714_v20 }
 0x436   : > { %5872 = vmatprep.subr.bf16.mxu0 %v6716_v3 }
 0x439   : > { %5873 = vmatpush3.bf16.msra.mxu0 %v6718_v15 }
 0x43a   : > { %5874 = vmatprep.subr.bf16.mxu0 %v6720_v10 }
 0x43b   : > { %v4504_v36 = vld [vmem:[#allocation3] sm:$0xf] }
 0x43c   : > { %v4506_v28 = vadd.f32 %v4505_v37, %v4504_v36 }
 0x43d   : > { %5875 = vmatpush3.bf16.msra.mxu0 %v6722_v12 }
 0x43e   : > { %5876 = vmatprep.subr.bf16.mxu0 %v6724_v13  ;;  %v4507_v39 = vmax.f32 %v4506_v28, 0.0 }
 0x440   : > { %v4516_v40 = vrot.slane %v4507_v39, %v4515_v27  ;;  %v4524_v41 = vrot.slane %v4507_v39, %v4523_v29  ;;  %v4512_v42 = vrot.slane %v4507_v39, %v4511_v22  ;;  %v4520_v16 = vrot.slane %v4507_v39, %v4519_v38 }
 0x441   : > { %5877 = vmatpush3.bf16.msra.mxu0 %v6726_v14 }
 0x442   : > { %5878 = vmatprep.subr.bf16.mxu0 %v6728_v18  ;;  %v4530_v5 = vpack.c.bf16 %v4516_v40, %v4516_v40  ;;  %v4532_v43 = vpack.c.bf16 %v4524_v41, %v4524_v41  ;;  %v4529_v44 = vpack.c.bf16 %v4512_v42, %v4512_v42  ;;  %v4531_v45 = vpack.c.bf16 %v4520_v16, %v4520_v16 }
 0x444   : > { %4822 = vmatprep.mubr.bf16.mxu0 %v4530_v5  ;;  %4862 = vmatprep.mubr.bf16.mxu1 %v4532_v43 }
 0x445   : > { %5879 = vmatpush3.bf16.msra.mxu0 %v6730_v21  ;;  %4863 = vmatmul.mubr.bf16.vlgmr.msra.gmra.mrb[0].mxu1 %v4531_v45 }
 0x446   : > { %5880 = vmatprep.subr.bf16.mxu0 %v6732_v24 }
 0x449   : > { %5881 = vmatpush3.bf16.msra.mxu0 %v6734_v26 }
 0x44a   : > { %5882 = vmatprep.subr.bf16.mxu0 %v6736_v32 }
 0x44d   : > { %5883 = vmatpush3.bf16.msra.mxu0 %v6738_v35 }
 0x450   : > { %4823 = vmatmul.mubr.bf16.vlgmr.msra.gmra.mrb[0].mxu0 %v4529_v44 }
 0x518   : > { %v5906_v34 = vpop.f32.mrb[0].mxu1 }
 0x519   : > { %v5907_v48 = vpop.f32.mrb[1].mxu1 }
 0x51a   : > { %v5908_v62 = vadd.f32 %v5907_v48, %v5906_v34  ;;  %v5909_v8 = vpop.f32.mrb[2].mxu1 }
 0x51b   : > { %v5910_v52 = vpop.f32.mrb[3].mxu1 }
 0x523   : > { %v5884_v46 = vpop.f32.mrb[0].mxu0 }
 0x524   : > { %v5885_v31 = vpop.f32.mrb[1].mxu0 }
 0x525   : > { %v5886_v50 = vadd.f32 %v5885_v31, %v5884_v46  ;;  %v5887_v51 = vpop.f32.mrb[2].mxu0 }
 0x526   : > { %v5888_v47 = vpop.f32.mrb[3].mxu0 }
 0x527   : > { %v4825_v53 = vadd.f32 %v5886_v50, %v4597_v55 }
 0x529   : > { %v4865_v54 = vadd.f32 %v5908_v62, %v4825_v53 }
 0x52b   : > { %4871 = vst.msk [vmem:[%s6977_s14] sm:$0x1] %vm4870_vm9, %v4865_v54 }
 0x52c PF: > { %s5616_s28 = sshll.u32 %s6822_s13, 4  ;;  %s4885_s17 = sshll.u32 %s6977_s14, 4  ;;  %s4886_s17 = int_to_ptr.vmem [resolvable:$true] %s4885_s17 }
 0x52d   : > { %s8114_s19 = scalar_lea.hbm %s8173_s9, %s5616_s28  ;;  %s4873_s12 = scalar_lea.sflag [#allocation5], %s350_s26 }
 0x52e   : > { %s6740_s23 = scalar_lea.vmem %s4886_s17, 16  ;;  %s6840_s18 = smov [#allocation4]  }
 0x52f   : > { %p6741_p2 = scmp.ne.s32.totalorder %s4886_s17, %s6740_s23  ;;  %s6744_s24 = sshll.u32 %s6840_s18, 4  ;;  %s6745_s24 = int_to_ptr.vmem [resolvable:$false] %s6744_s24 }
 0x530   : > { %s6746_s11 = scalar_lea.vmem %s6745_s24, 32  ;;  %p6747_p6 = scmp.lt.s32.totalorder %s4886_s17, %s6745_s24 }
 0x531   : > { %p6742_p4 = pnand %p6741_p2, %p6940_p3  ;;  %p6748_p7 = scmp.lt.s32.totalorder %s6746_s11, %s6740_s23 }
 0x533   : > { %p6743_p5 = pneg %p6742_p4  ;;  %p6749_p8 = por %p6748_p7, %p6747_p6 }
 0x535   : > { %p6750_p10 = pnand %p6749_p8, %p6743_p5 }
 0x537   : > { %6753 = shalt.err (!%p6750_p10)
}
 0x538   : > { %s6754_s13 = scalar_lea.hbm %s8114_s19, 16  ;;  %s6758_s15 = scalar_lea.hbm %s8173_s9, 32 }
 0x539   : > { %p6755_p11 = scmp.ne.s32.totalorder %s8114_s19, %s6754_s13  ;;  %p6759_p0 = scmp.lt.u32.totalorder %s8114_s19, %s8173_s9 }
 0x53a   : > { %p6760_p1 = scmp.lt.u32.totalorder %s6758_s15, %s6754_s13  ;;  %p6762_p4 = scmp.lt.u32.totalorder %s6754_s13, %s8114_s19 }
 0x53b   : > { %p6756_p12 = pnand %p6755_p11, %p6940_p3 }
 0x53c   : > { %p6761_p2 = por %p6760_p1, %p6759_p0 }
 0x53d   : > { %p6757_p13 = pneg %p6756_p12 }
 0x53e   : > { %p6763_p5 = por %p6762_p4, %p6761_p2 }
 0x540   : > { %p6764_p6 = pnand %p6763_p5, %p6757_p13 }
 0x542   : > { %6767 = shalt.err (!%p6764_p6)
}
 0x543   : > { %6345 = dma.vmem_to_hbm [thread:$0]  (%p6940_p3), %s4886_s17, 16, %s8114_s19, %s4873_s12  }
 0x544 PF: > { %p6351_p7 = scmp.ge.s32.totalorder %s6834_s16, 2  ;;  %s4897_s28 = sand.u32 1, %s6806_s30  }
 0x545   : > { %s4898_s20 = scalar_lea.sflag [#allocation5], %s4897_s28 }
 0x546   : > { %p6348_p8 = pnand %p6351_p7, %p6950_p9 }
 0x548   : > { %6801 = dma.done.wait (!%p6348_p8), %s4898_s20, 16  }
 0x549   : > { %6803 = vsyncadd (!%p6348_p8), %s4898_s20, 4294967280  ;;  %s22_s16 = sadd.s32 1, %s6834_s16   ;;  %s8188_s29 = sld [smem:[#allocation7_spill]] }
 0x54a   : > { %p19_p10 = scmp.ge.s32.totalorder %s22_s16, 10   ;;  %s8189_s11 = sld [smem:[#allocation12_spill]] }
 0x54b   : > { %s8190_s12 = sld [smem:[#allocation8_spill]]  ;;  %s8191_s13 = sld [smem:[#allocation9_spill]] }
 0x54c   : > { %s8192_s14 = sld [smem:[#allocation10_spill]]  ;;  %s8193_s15 = sld [smem:[#allocation11_spill]] }
 0x54d   : > { %s8194_s30 = smov %s6810_s10  ;;  %21 = sbr.rel (!%p19_p10) target bundleno = 5 (0x5), region = 117 }
 0x54f   : > { %s8195_s10 = smov %s8188_s29 }
 0x554   :  { %4902 = vsyncpa [#allocation5], 1 }
 0x555   :  { %4904 = vsyncpa [#allocation5 + $0x1], 1 }

</bundles_post_ra>
